<compile_context>
chip_gen: v7x
topology: tpu7x:2x2x1
jax: 0.10.0
libtpu: 0.0.40
codegen_flags: <defaults>
</compile_context>

<pallas_src>
import functools

import numpy as np
import jax
import jax.numpy as jnp
from jax import lax
from jax.experimental import pallas as pl
from jax.experimental.pallas import tpu as pltpu


# -----------------------------------------------------------------------------
# Static tap geometry for a 3x3x3 conv on a flattened (D*H*W) axis
# -----------------------------------------------------------------------------
def _tap_shifts_and_mask(D, H, W):
    """Flat-index shifts and boundary-validity masks for the 27 conv taps."""
    n = D * H * W
    d = np.arange(D)[:, None, None]
    h = np.arange(H)[None, :, None]
    w = np.arange(W)[None, None, :]
    shifts = []
    mask = np.zeros((27, n), np.float32)
    k = 0
    for kd in (-1, 0, 1):          # same (kd, kh, kw) order as conv_w.reshape
        for kh in (-1, 0, 1):
            for kw in (-1, 0, 1):
                shifts.append(kd * H * W + kh * W + kw)
                valid = ((d + kd >= 0) & (d + kd < D) &
                         (h + kh >= 0) & (h + kh < H) &
                         (w + kw >= 0) & (w + kw < W))
                mask[k] = valid.reshape(-1).astype(np.float32)
                k += 1
    return tuple(shifts), jnp.asarray(mask)


# -----------------------------------------------------------------------------
# Fused Pallas kernel: (conv + HWD + C-embed + BN + ReLU) x 2 layers
# -----------------------------------------------------------------------------
def _encoding_blocks_kernel(shifts, B,
                            x_ref, mask_ref,
                            w1_ref, b1_ref, g1_ref, be1_ref,
                            w2_ref, b2_ref, g2_ref, be2_ref,
                            out_ref, act1_ref):
    """
    x_ref    : VMEM (B*Cin1, n)            flattened input, n = D*H*W (lane-dense)
    mask_ref : VMEM (27, n) f32            tap boundary masks
    w*_ref   : VMEM (B, Cout, 3*27*Cin) bf16   [w_hi | w_lo | w_hi] effective weights
    b*_ref   : VMEM (B*Cout, 1) f32        conv bias + embedding shift
    g*/be*   : VMEM (Cout, 1) f32          BatchNorm gamma / beta
    out_ref  : VMEM (B*Cout2, n) f32
    act1_ref : VMEM scratch (B*Cout1, n) f32   layer-1 pre-BN activations
    """
    f32 = jnp.float32
    bf16 = jnp.bfloat16
    n = x_ref.shape[-1]
    Cin1 = x_ref.shape[0] // B
    Cout1 = w1_ref.shape[1]
    Cout2 = w2_ref.shape[1]
    eps = 1e-5
    inv_cnt = 1.0 / float(B * n)

    def conv_batch(x_b, w_b):
        """x_b (Cin, n) f32, w_b (Cout, 3*27*Cin) bf16 -> pre-bias conv (Cout, n) f32."""
        wins = []
        for k, s in enumerate(shifts):
            if s == 0:
                wins.append(x_b)                       # center tap: mask is all ones
            else:
                # roll(x, -s): win[p] = x[p + s]; wrapped lanes are masked to 0.
                wins.append(pltpu.roll(x_b, (-s) % n, axis=1)
                            * mask_ref[k:k + 1, :])
        slab = jnp.concatenate(wins, axis=0)           # (27*Cin, n) f32
        hi = slab.astype(bf16)
        lo = (slab - hi.astype(f32)).astype(bf16)
        big = jnp.concatenate([hi, hi, lo], axis=0)    # (3*27*Cin, n) bf16
        # single K-stacked MXU push; exact-ish f32 result via bf16x3 terms
        return jnp.dot(w_b, big, preferred_element_type=f32)

    # ----------------------- layer 1 -----------------------
    s1 = jnp.zeros((Cout1, 1), f32)
    q1 = jnp.zeros((Cout1, 1), f32)
    for b in range(B):
        xb = x_ref[b * Cin1:(b + 1) * Cin1, :]
        xa = conv_batch(xb, w1_ref[b]) + b1_ref[b * Cout1:(b + 1) * Cout1, :]
        act1_ref[b * Cout1:(b + 1) * Cout1, :] = xa    # pre-BN activations
        s1 = s1 + jnp.sum(xa, axis=-1, keepdims=True)
        q1 = q1 + jnp.sum(xa * xa, axis=-1, keepdims=True)
    mean1 = s1 * inv_cnt
    var1 = q1 * inv_cnt - mean1 * mean1                # one-pass batch stats
    scale1 = g1_ref[...] * lax.rsqrt(var1 + eps)       # (Cout1, 1)
    off1 = be1_ref[...] - mean1 * scale1

    # ----------------------- layer 2 -----------------------
    s2 = jnp.zeros((Cout2, 1), f32)
    q2 = jnp.zeros((Cout2, 1), f32)
    for b in range(B):
        # layer-1 BN + ReLU fused into the read
        h = act1_ref[b * Cout1:(b + 1) * Cout1, :] * scale1 + off1
        h = jnp.maximum(h, 0.0)
        xa = conv_batch(h, w2_ref[b]) + b2_ref[b * Cout2:(b + 1) * Cout2, :]
        out_ref[b * Cout2:(b + 1) * Cout2, :] = xa     # pre-BN activations
        s2 = s2 + jnp.sum(xa, axis=-1, keepdims=True)
        q2 = q2 + jnp.sum(xa * xa, axis=-1, keepdims=True)
    mean2 = s2 * inv_cnt
    var2 = q2 * inv_cnt - mean2 * mean2
    scale2 = g2_ref[...] * lax.rsqrt(var2 + eps)       # (Cout2, 1)
    off2 = be2_ref[...] - mean2 * scale2
    scale_rows = jnp.concatenate([scale2] * B, axis=0)  # (B*Cout2, 1)
    off_rows = jnp.concatenate([off2] * B, axis=0)
    # final BN + ReLU: one full-tile (B*Cout2, n) read-modify-write
    out_ref[...] = jnp.maximum(out_ref[...] * scale_rows + off_rows, 0.0)


# -----------------------------------------------------------------------------
# Plain-JAX glue: embedding MLPs and weight folding
# -----------------------------------------------------------------------------
def _mlp(z, w1, b1, w2, b2):
    # nn.Sequential(SiLU, Linear(5,10), SiLU, Linear(10,K))
    h = jax.nn.silu(z)
    h = h @ w1.T + b1
    h = jax.nn.silu(h)
    return h @ w2.T + b2


def _layer_effective_params(z_prjs, p):
    """Fold HWD conv + C-embedding into per-batch conv weights / biases; pre-split bf16."""
    Cout, Cin = p["conv_w"].shape[:2]
    B = z_prjs.shape[0]
    hwd_w = _mlp(z_prjs, *p["hwd_mlp"])                      # (B, 27)
    c_emb = _mlp(z_prjs, *p["c_mlp"])                        # (B, 2*Cout)
    scale, shift = c_emb[:, :Cout], c_emb[:, Cout:]
    conv_w = p["conv_w"].reshape(Cout, Cin, 27)
    # w_eff[b, co, ci, k] = conv_w[co, ci, k] + scale[b, co] * hwd_w[b, k]
    w_eff = conv_w[None] + scale[:, :, None, None] * hwd_w[:, None, None, :]
    # tap-major / channel-minor rows to match the in-kernel slab layout
    w2d = jnp.transpose(w_eff, (0, 1, 3, 2)).reshape(B, Cout, 27 * Cin)
    w2d = w2d.astype(jnp.float32)
    w_hi = w2d.astype(jnp.bfloat16)
    w_lo = (w2d - w_hi.astype(jnp.float32)).astype(jnp.bfloat16)
    w_big = jnp.concatenate([w_hi, w_lo, w_hi], axis=-1)     # (B, Cout, 3*27*Cin)
    bias = (p["conv_b"][None, :] + shift).reshape(B * Cout, 1).astype(jnp.float32)
    gamma = p["bn_gamma"].reshape(Cout, 1).astype(jnp.float32)
    beta = p["bn_beta"].reshape(Cout, 1).astype(jnp.float32)
    return w_big, bias, gamma, beta


def encoding_blocks_pallas(x, z_prjs, p1, p2):
    B, Cin1, D, H, W = x.shape
    n = D * H * W
    Cout1 = p1["conv_w"].shape[0]
    Cout2 = p2["conv_w"].shape[0]

    shifts, mask = _tap_shifts_and_mask(D, H, W)

    w1, b1, g1, be1 = _layer_effective_params(z_prjs, p1)
    w2, b2, g2, be2 = _layer_effective_params(z_prjs, p2)

    x_flat = x.reshape(B * Cin1, n).astype(jnp.float32)

    vmem = pl.BlockSpec(memory_space=pltpu.MemorySpace.VMEM)
    kernel = functools.partial(_encoding_blocks_kernel, shifts, B)

    out = pl.pallas_call(
        kernel,
        out_shape=jax.ShapeDtypeStruct((B * Cout2, n), jnp.float32),
        in_specs=[vmem] * 10,
        out_specs=vmem,
        scratch_shapes=[
            pltpu.VMEM((B * Cout1, n), jnp.float32),   # layer-1 pre-BN activations
        ],
    )(x_flat, mask, w1, b1, g1, be1, w2, b2, g2, be2)
    return out.reshape(B, Cout2, D, H, W)


@jax.jit
def encoding_blocks(x, z_prjs, p1, p2):
    return encoding_blocks_pallas(x, z_prjs, p1, p2)


# -----------------------------------------------------------------------------
# Pure-JAX reference (for correctness check)
# -----------------------------------------------------------------------------
def _conv3d_ref(x, w):
    return lax.conv_general_dilated(
        x, w, window_strides=(1, 1, 1),
        padding=((1, 1), (1, 1), (1, 1)),
        dimension_numbers=("NCDHW", "OIDHW", "NCDHW"),
        precision=lax.Precision.HIGHEST)


def zprjs_conv_layer_ref(x, z_prjs, p):
    B = x.shape[0]
    Cout = p["conv_w"].shape[0]
    x_conv = _conv3d_ref(x, p["conv_w"]) + p["conv_b"][None, :, None, None, None]

    hwd_w = _mlp(z_prjs, *p["hwd_mlp"]).reshape(B, 1, 1, 3, 3, 3)
    xs = jnp.sum(x, axis=1, keepdims=True)

    def one(xb, wb):
        return _conv3d_ref(xb[None], wb)[0]

    hwd = jax.vmap(one)(xs, hwd_w)                            # (B, 1, D, H, W)

    c = _mlp(z_prjs, *p["c_mlp"])
    scale = c[:, :Cout][:, :, None, None, None]
    shift = c[:, Cout:][:, :, None, None, None]
    x_emb = hwd * scale + shift                               # (B, Cout, D, H, W)

    x_all = x_conv + x_emb
    mean = jnp.mean(x_all, axis=(0, 2, 3, 4), keepdims=True)
    var = jnp.mean((x_all - mean) ** 2, axis=(0, 2, 3, 4), keepdims=True)
    y = (x_all - mean) * lax.rsqrt(var + 1e-5)
    y = y * p["bn_gamma"][None, :, None, None, None] + \
        p["bn_beta"][None, :, None, None, None]
    return jnp.maximum(y, 0.0)


def encoding_blocks_ref(x, z_prjs, p1, p2):
    return zprjs_conv_layer_ref(zprjs_conv_layer_ref(x, z_prjs, p1), z_prjs, p2)


# -----------------------------------------------------------------------------
# Deterministic parameter init (synthetic; shapes follow the torch module)
# -----------------------------------------------------------------------------
def init_layer_params(key, cin, cout):
    ks = jax.random.split(key, 10)
    return {
        "conv_w": jax.random.normal(ks[0], (cout, cin, 3, 3, 3), jnp.float32)
        * (1.0 / np.sqrt(cin * 27)),
        "conv_b": jax.random.normal(ks[1], (cout,), jnp.float32) * 0.1,
        "hwd_mlp": (
            jax.random.normal(ks[2], (10, 5), jnp.float32) * 0.4,
            jax.random.normal(ks[3], (10,), jnp.float32) * 0.1,
            jax.random.normal(ks[4], (27, 10), jnp.float32) * 0.3,
            jax.random.normal(ks[5], (27,), jnp.float32) * 0.1,
        ),
        "c_mlp": (
            jax.random.normal(ks[6], (10, 5), jnp.float32) * 0.4,
            jax.random.normal(ks[7], (10,), jnp.float32) * 0.1,
            jax.random.normal(ks[8], (2 * cout, 10), jnp.float32) * 0.3,
            jax.random.normal(ks[9], (2 * cout,), jnp.float32) * 0.1,
        ),
        "bn_gamma": jnp.ones((cout,), jnp.float32),   # torch BN default init
        "bn_beta": jnp.zeros((cout,), jnp.float32),
    }


if __name__ == "__main__":
    key = jax.random.PRNGKey(0)
    kx, kz, kp1, kp2 = jax.random.split(key, 4)

    B, num_in, num_out = 2, 2, 4
    D, H, W = 4, 8, 16            # D*H*W = 512 -> lane-dense flattened axis

    x = jax.random.normal(kx, (B, num_in, D, H, W), jnp.float32)
    z_prjs = jax.random.normal(kz, (B, 5), jnp.float32)

    p1 = init_layer_params(kp1, num_in, num_out)   # ZPrjs_Conv_Layer(num_in, num_out)
    p2 = init_layer_params(kp2, num_out, num_out)  # ZPrjs_Conv_Layer(num_out, num_out)

    y = encoding_blocks(x, z_prjs, p1, p2)
    y = jax.block_until_ready(y)

    y_ref = encoding_blocks_ref(x, z_prjs, p1, p2)
    np.testing.assert_allclose(np.asarray(y), np.asarray(y_ref),
                               rtol=1e-3, atol=5e-4)
    print("KERNEL_OK")
</pallas_src>

<mosaic_0001>
module attributes {stable_mosaic.version = 11 : i64} {
  func.func @_encoding_blocks_kernel(%arg0: memref<4x512xf32, #tpu.memory_space<vmem>>, %arg1: memref<27x512xf32, #tpu.memory_space<vmem>>, %arg2: memref<2x4x162xbf16, #tpu.memory_space<vmem>>, %arg3: memref<8x1xf32, #tpu.memory_space<vmem>>, %arg4: memref<4x1xf32, #tpu.memory_space<vmem>>, %arg5: memref<4x1xf32, #tpu.memory_space<vmem>>, %arg6: memref<2x4x324xbf16, #tpu.memory_space<vmem>>, %arg7: memref<8x1xf32, #tpu.memory_space<vmem>>, %arg8: memref<4x1xf32, #tpu.memory_space<vmem>>, %arg9: memref<4x1xf32, #tpu.memory_space<vmem>>, %arg10: memref<8x512xf32, #tpu.memory_space<vmem>>, %arg11: memref<8x512xf32, #tpu.memory_space<vmem>>) attributes {dimension_semantics = [], scalar_prefetch = 0 : i64, scratch_operands = 1 : i64, tpu.core_type = #tpu.core_type<tc>} {
    %cst = arith.constant 0.000000e+00 : f32
    %0 = vector.broadcast %cst : f32 to vector<4x1xf32>
    %cst_0 = arith.constant 0.000000e+00 : f32
    %1 = vector.broadcast %cst_0 : f32 to vector<4x1xf32>
    %c0 = arith.constant 0 : index
    %c0_1 = arith.constant 0 : index
    %2 = vector.load %arg0[%c0, %c0_1] : memref<4x512xf32, #tpu.memory_space<vmem>>, vector<2x512xf32>
    %c0_2 = arith.constant 0 : index
    %c0_3 = arith.constant 0 : index
    %c0_4 = arith.constant 0 : index
    %3 = vector.load %arg2[%c0_2, %c0_3, %c0_4] : memref<2x4x162xbf16, #tpu.memory_space<vmem>>, vector<1x4x162xbf16>
    %4 = vector.shape_cast %3 : vector<1x4x162xbf16> to vector<4x162xbf16>
    %c145_i32 = arith.constant 145 : i32
    %5 = tpu.dynamic_rotate %2 by %c145_i32 dim 1 : vector<2x512xf32>, i32 -> vector<2x512xf32>
    %c0_5 = arith.constant 0 : index
    %c0_6 = arith.constant 0 : index
    %6 = vector.load %arg1[%c0_5, %c0_6] : memref<27x512xf32, #tpu.memory_space<vmem>>, vector<1x512xf32>
    %7 = vector.broadcast %6 : vector<1x512xf32> to vector<2x512xf32>
    %8 = arith.mulf %5, %7 : vector<2x512xf32>
    %c144_i32 = arith.constant 144 : i32
    %9 = tpu.dynamic_rotate %2 by %c144_i32 dim 1 : vector<2x512xf32>, i32 -> vector<2x512xf32>
    %c1 = arith.constant 1 : index
    %c0_7 = arith.constant 0 : index
    %10 = vector.load %arg1[%c1, %c0_7] : memref<27x512xf32, #tpu.memory_space<vmem>>, vector<1x512xf32>
    %11 = vector.broadcast %10 : vector<1x512xf32> to vector<2x512xf32>
    %12 = arith.mulf %9, %11 : vector<2x512xf32>
    %c143_i32 = arith.constant 143 : i32
    %13 = tpu.dynamic_rotate %2 by %c143_i32 dim 1 : vector<2x512xf32>, i32 -> vector<2x512xf32>
    %c2 = arith.constant 2 : index
    %c0_8 = arith.constant 0 : index
    %14 = vector.load %arg1[%c2, %c0_8] : memref<27x512xf32, #tpu.memory_space<vmem>>, vector<1x512xf32>
    %15 = vector.broadcast %14 : vector<1x512xf32> to vector<2x512xf32>
    %16 = arith.mulf %13, %15 : vector<2x512xf32>
    %c129_i32 = arith.constant 129 : i32
    %17 = tpu.dynamic_rotate %2 by %c129_i32 dim 1 : vector<2x512xf32>, i32 -> vector<2x512xf32>
    %c3 = arith.constant 3 : index
    %c0_9 = arith.constant 0 : index
    %18 = vector.load %arg1[%c3, %c0_9] : memref<27x512xf32, #tpu.memory_space<vmem>>, vector<1x512xf32>
    %19 = vector.broadcast %18 : vector<1x512xf32> to vector<2x512xf32>
    %20 = arith.mulf %17, %19 : vector<2x512xf32>
    %c128_i32 = arith.constant 128 : i32
    %21 = tpu.dynamic_rotate %2 by %c128_i32 dim 1 : vector<2x512xf32>, i32 -> vector<2x512xf32>
    %c4 = arith.constant 4 : index
    %c0_10 = arith.constant 0 : index
    %22 = vector.load %arg1[%c4, %c0_10] : memref<27x512xf32, #tpu.memory_space<vmem>>, vector<1x512xf32>
    %23 = vector.broadcast %22 : vector<1x512xf32> to vector<2x512xf32>
    %24 = arith.mulf %21, %23 : vector<2x512xf32>
    %c127_i32 = arith.constant 127 : i32
    %25 = tpu.dynamic_rotate %2 by %c127_i32 dim 1 : vector<2x512xf32>, i32 -> vector<2x512xf32>
    %c5 = arith.constant 5 : index
    %c0_11 = arith.constant 0 : index
    %26 = vector.load %arg1[%c5, %c0_11] : memref<27x512xf32, #tpu.memory_space<vmem>>, vector<1x512xf32>
    %27 = vector.broadcast %26 : vector<1x512xf32> to vector<2x512xf32>
    %28 = arith.mulf %25, %27 : vector<2x512xf32>
    %c113_i32 = arith.constant 113 : i32
    %29 = tpu.dynamic_rotate %2 by %c113_i32 dim 1 : vector<2x512xf32>, i32 -> vector<2x512xf32>
    %c6 = arith.constant 6 : index
    %c0_12 = arith.constant 0 : index
    %30 = vector.load %arg1[%c6, %c0_12] : memref<27x512xf32, #tpu.memory_space<vmem>>, vector<1x512xf32>
    %31 = vector.broadcast %30 : vector<1x512xf32> to vector<2x512xf32>
    %32 = arith.mulf %29, %31 : vector<2x512xf32>
    %c112_i32 = arith.constant 112 : i32
    %33 = tpu.dynamic_rotate %2 by %c112_i32 dim 1 : vector<2x512xf32>, i32 -> vector<2x512xf32>
    %c7 = arith.constant 7 : index
    %c0_13 = arith.constant 0 : index
    %34 = vector.load %arg1[%c7, %c0_13] : memref<27x512xf32, #tpu.memory_space<vmem>>, vector<1x512xf32>
    %35 = vector.broadcast %34 : vector<1x512xf32> to vector<2x512xf32>
    %36 = arith.mulf %33, %35 : vector<2x512xf32>
    %c111_i32 = arith.constant 111 : i32
    %37 = tpu.dynamic_rotate %2 by %c111_i32 dim 1 : vector<2x512xf32>, i32 -> vector<2x512xf32>
    %c8 = arith.constant 8 : index
    %c0_14 = arith.constant 0 : index
    %38 = vector.load %arg1[%c8, %c0_14] : memref<27x512xf32, #tpu.memory_space<vmem>>, vector<1x512xf32>
    %39 = vector.broadcast %38 : vector<1x512xf32> to vector<2x512xf32>
    %40 = arith.mulf %37, %39 : vector<2x512xf32>
    %c17_i32 = arith.constant 17 : i32
    %41 = tpu.dynamic_rotate %2 by %c17_i32 dim 1 : vector<2x512xf32>, i32 -> vector<2x512xf32>
    %c9 = arith.constant 9 : index
    %c0_15 = arith.constant 0 : index
    %42 = vector.load %arg1[%c9, %c0_15] : memref<27x512xf32, #tpu.memory_space<vmem>>, vector<1x512xf32>
    %43 = vector.broadcast %42 : vector<1x512xf32> to vector<2x512xf32>
    %44 = arith.mulf %41, %43 : vector<2x512xf32>
    %c16_i32 = arith.constant 16 : i32
    %45 = tpu.dynamic_rotate %2 by %c16_i32 dim 1 : vector<2x512xf32>, i32 -> vector<2x512xf32>
    %c10 = arith.constant 10 : index
    %c0_16 = arith.constant 0 : index
    %46 = vector.load %arg1[%c10, %c0_16] : memref<27x512xf32, #tpu.memory_space<vmem>>, vector<1x512xf32>
    %47 = vector.broadcast %46 : vector<1x512xf32> to vector<2x512xf32>
    %48 = arith.mulf %45, %47 : vector<2x512xf32>
    %c15_i32 = arith.constant 15 : i32
    %49 = tpu.dynamic_rotate %2 by %c15_i32 dim 1 : vector<2x512xf32>, i32 -> vector<2x512xf32>
    %c11 = arith.constant 11 : index
    %c0_17 = arith.constant 0 : index
    %50 = vector.load %arg1[%c11, %c0_17] : memref<27x512xf32, #tpu.memory_space<vmem>>, vector<1x512xf32>
    %51 = vector.broadcast %50 : vector<1x512xf32> to vector<2x512xf32>
    %52 = arith.mulf %49, %51 : vector<2x512xf32>
    %c1_i32 = arith.constant 1 : i32
    %53 = tpu.dynamic_rotate %2 by %c1_i32 dim 1 : vector<2x512xf32>, i32 -> vector<2x512xf32>
    %c12 = arith.constant 12 : index
    %c0_18 = arith.constant 0 : index
    %54 = vector.load %arg1[%c12, %c0_18] : memref<27x512xf32, #tpu.memory_space<vmem>>, vector<1x512xf32>
    %55 = vector.broadcast %54 : vector<1x512xf32> to vector<2x512xf32>
    %56 = arith.mulf %53, %55 : vector<2x512xf32>
    %c511_i32 = arith.constant 511 : i32
    %57 = tpu.dynamic_rotate %2 by %c511_i32 dim 1 : vector<2x512xf32>, i32 -> vector<2x512xf32>
    %c14 = arith.constant 14 : index
    %c0_19 = arith.constant 0 : index
    %58 = vector.load %arg1[%c14, %c0_19] : memref<27x512xf32, #tpu.memory_space<vmem>>, vector<1x512xf32>
    %59 = vector.broadcast %58 : vector<1x512xf32> to vector<2x512xf32>
    %60 = arith.mulf %57, %59 : vector<2x512xf32>
    %c497_i32 = arith.constant 497 : i32
    %61 = tpu.dynamic_rotate %2 by %c497_i32 dim 1 : vector<2x512xf32>, i32 -> vector<2x512xf32>
    %c15 = arith.constant 15 : index
    %c0_20 = arith.constant 0 : index
    %62 = vector.load %arg1[%c15, %c0_20] : memref<27x512xf32, #tpu.memory_space<vmem>>, vector<1x512xf32>
    %63 = vector.broadcast %62 : vector<1x512xf32> to vector<2x512xf32>
    %64 = arith.mulf %61, %63 : vector<2x512xf32>
    %c496_i32 = arith.constant 496 : i32
    %65 = tpu.dynamic_rotate %2 by %c496_i32 dim 1 : vector<2x512xf32>, i32 -> vector<2x512xf32>
    %c16 = arith.constant 16 : index
    %c0_21 = arith.constant 0 : index
    %66 = vector.load %arg1[%c16, %c0_21] : memref<27x512xf32, #tpu.memory_space<vmem>>, vector<1x512xf32>
    %67 = vector.broadcast %66 : vector<1x512xf32> to vector<2x512xf32>
    %68 = arith.mulf %65, %67 : vector<2x512xf32>
    %c495_i32 = arith.constant 495 : i32
    %69 = tpu.dynamic_rotate %2 by %c495_i32 dim 1 : vector<2x512xf32>, i32 -> vector<2x512xf32>
    %c17 = arith.constant 17 : index
    %c0_22 = arith.constant 0 : index
    %70 = vector.load %arg1[%c17, %c0_22] : memref<27x512xf32, #tpu.memory_space<vmem>>, vector<1x512xf32>
    %71 = vector.broadcast %70 : vector<1x512xf32> to vector<2x512xf32>
    %72 = arith.mulf %69, %71 : vector<2x512xf32>
    %c401_i32 = arith.constant 401 : i32
    %73 = tpu.dynamic_rotate %2 by %c401_i32 dim 1 : vector<2x512xf32>, i32 -> vector<2x512xf32>
    %c18 = arith.constant 18 : index
    %c0_23 = arith.constant 0 : index
    %74 = vector.load %arg1[%c18, %c0_23] : memref<27x512xf32, #tpu.memory_space<vmem>>, vector<1x512xf32>
    %75 = vector.broadcast %74 : vector<1x512xf32> to vector<2x512xf32>
    %76 = arith.mulf %73, %75 : vector<2x512xf32>
    %c400_i32 = arith.constant 400 : i32
    %77 = tpu.dynamic_rotate %2 by %c400_i32 dim 1 : vector<2x512xf32>, i32 -> vector<2x512xf32>
    %c19 = arith.constant 19 : index
    %c0_24 = arith.constant 0 : index
    %78 = vector.load %arg1[%c19, %c0_24] : memref<27x512xf32, #tpu.memory_space<vmem>>, vector<1x512xf32>
    %79 = vector.broadcast %78 : vector<1x512xf32> to vector<2x512xf32>
    %80 = arith.mulf %77, %79 : vector<2x512xf32>
    %c399_i32 = arith.constant 399 : i32
    %81 = tpu.dynamic_rotate %2 by %c399_i32 dim 1 : vector<2x512xf32>, i32 -> vector<2x512xf32>
    %c20 = arith.constant 20 : index
    %c0_25 = arith.constant 0 : index
    %82 = vector.load %arg1[%c20, %c0_25] : memref<27x512xf32, #tpu.memory_space<vmem>>, vector<1x512xf32>
    %83 = vector.broadcast %82 : vector<1x512xf32> to vector<2x512xf32>
    %84 = arith.mulf %81, %83 : vector<2x512xf32>
    %c385_i32 = arith.constant 385 : i32
    %85 = tpu.dynamic_rotate %2 by %c385_i32 dim 1 : vector<2x512xf32>, i32 -> vector<2x512xf32>
    %c21 = arith.constant 21 : index
    %c0_26 = arith.constant 0 : index
    %86 = vector.load %arg1[%c21, %c0_26] : memref<27x512xf32, #tpu.memory_space<vmem>>, vector<1x512xf32>
    %87 = vector.broadcast %86 : vector<1x512xf32> to vector<2x512xf32>
    %88 = arith.mulf %85, %87 : vector<2x512xf32>
    %c384_i32 = arith.constant 384 : i32
    %89 = tpu.dynamic_rotate %2 by %c384_i32 dim 1 : vector<2x512xf32>, i32 -> vector<2x512xf32>
    %c22 = arith.constant 22 : index
    %c0_27 = arith.constant 0 : index
    %90 = vector.load %arg1[%c22, %c0_27] : memref<27x512xf32, #tpu.memory_space<vmem>>, vector<1x512xf32>
    %91 = vector.broadcast %90 : vector<1x512xf32> to vector<2x512xf32>
    %92 = arith.mulf %89, %91 : vector<2x512xf32>
    %c383_i32 = arith.constant 383 : i32
    %93 = tpu.dynamic_rotate %2 by %c383_i32 dim 1 : vector<2x512xf32>, i32 -> vector<2x512xf32>
    %c23 = arith.constant 23 : index
    %c0_28 = arith.constant 0 : index
    %94 = vector.load %arg1[%c23, %c0_28] : memref<27x512xf32, #tpu.memory_space<vmem>>, vector<1x512xf32>
    %95 = vector.broadcast %94 : vector<1x512xf32> to vector<2x512xf32>
    %96 = arith.mulf %93, %95 : vector<2x512xf32>
    %c369_i32 = arith.constant 369 : i32
    %97 = tpu.dynamic_rotate %2 by %c369_i32 dim 1 : vector<2x512xf32>, i32 -> vector<2x512xf32>
    %c24 = arith.constant 24 : index
    %c0_29 = arith.constant 0 : index
    %98 = vector.load %arg1[%c24, %c0_29] : memref<27x512xf32, #tpu.memory_space<vmem>>, vector<1x512xf32>
    %99 = vector.broadcast %98 : vector<1x512xf32> to vector<2x512xf32>
    %100 = arith.mulf %97, %99 : vector<2x512xf32>
    %c368_i32 = arith.constant 368 : i32
    %101 = tpu.dynamic_rotate %2 by %c368_i32 dim 1 : vector<2x512xf32>, i32 -> vector<2x512xf32>
    %c25 = arith.constant 25 : index
    %c0_30 = arith.constant 0 : index
    %102 = vector.load %arg1[%c25, %c0_30] : memref<27x512xf32, #tpu.memory_space<vmem>>, vector<1x512xf32>
    %103 = vector.broadcast %102 : vector<1x512xf32> to vector<2x512xf32>
    %104 = arith.mulf %101, %103 : vector<2x512xf32>
    %c367_i32 = arith.constant 367 : i32
    %105 = tpu.dynamic_rotate %2 by %c367_i32 dim 1 : vector<2x512xf32>, i32 -> vector<2x512xf32>
    %c26 = arith.constant 26 : index
    %c0_31 = arith.constant 0 : index
    %106 = vector.load %arg1[%c26, %c0_31] : memref<27x512xf32, #tpu.memory_space<vmem>>, vector<1x512xf32>
    %107 = vector.broadcast %106 : vector<1x512xf32> to vector<2x512xf32>
    %108 = arith.mulf %105, %107 : vector<2x512xf32>
    %109 = tpu.concatenate %8, %12, %16, %20, %24, %28, %32, %36, %40, %44, %48, %52, %56, %2, %60, %64 in 0 : vector<2x512xf32>, vector<2x512xf32>, vector<2x512xf32>, vector<2x512xf32>, vector<2x512xf32>, vector<2x512xf32>, vector<2x512xf32>, vector<2x512xf32>, vector<2x512xf32>, vector<2x512xf32>, vector<2x512xf32>, vector<2x512xf32>, vector<2x512xf32>, vector<2x512xf32>, vector<2x512xf32>, vector<2x512xf32> -> vector<32x512xf32>
    %110 = tpu.concatenate %68, %72, %76, %80, %84, %88, %92, %96, %100, %104, %108 in 0 : vector<2x512xf32>, vector<2x512xf32>, vector<2x512xf32>, vector<2x512xf32>, vector<2x512xf32>, vector<2x512xf32>, vector<2x512xf32>, vector<2x512xf32>, vector<2x512xf32>, vector<2x512xf32>, vector<2x512xf32> -> vector<22x512xf32>
    %111 = tpu.concatenate %109, %110 in 0 : vector<32x512xf32>, vector<22x512xf32> -> vector<54x512xf32>
    %112 = arith.truncf %111 : vector<54x512xf32> to vector<54x512xbf16>
    %113 = arith.extf %112 : vector<54x512xbf16> to vector<54x512xf32>
    %114 = arith.subf %111, %113 : vector<54x512xf32>
    %115 = arith.truncf %114 : vector<54x512xf32> to vector<54x512xbf16>
    %116 = tpu.concatenate %112, %112, %115 in 0 : vector<54x512xbf16>, vector<54x512xbf16>, vector<54x512xbf16> -> vector<162x512xbf16>
    %cst_32 = arith.constant dense<0.000000e+00> : vector<4x512xf32>
    %117 = tpu.matmul %4, %116, %cst_32 {dimension_numbers = #tpu.dot_dimension_numbers<[1], [0], [0], [1], [0, 0, 1, 1], [], []>} : vector<4x162xbf16>, vector<162x512xbf16>, vector<4x512xf32> -> vector<4x512xf32>
    %c0_33 = arith.constant 0 : index
    %c0_34 = arith.constant 0 : index
    %118 = vector.load %arg3[%c0_33, %c0_34] : memref<8x1xf32, #tpu.memory_space<vmem>>, vector<4x1xf32>
    %119 = vector.broadcast %118 : vector<4x1xf32> to vector<4x512xf32>
    %120 = arith.addf %117, %119 : vector<4x512xf32>
    %c0_35 = arith.constant 0 : index
    %c0_36 = arith.constant 0 : index
    %121 = vector.load %arg11[%c0_35, %c0_36] : memref<8x512xf32, #tpu.memory_space<vmem>>, vector<4x512xf32>
    tpu.vector_store %arg11[%c0_35, %c0_36], %120 {strides = array<i32>} : memref<8x512xf32, #tpu.memory_space<vmem>>, vector<4x512xf32>,
    %cst_37 = arith.constant dense<0.000000e+00> : vector<4xf32>
    %122 = vector.multi_reduction <add>, %120, %cst_37 [1] : vector<4x512xf32> to vector<4xf32>
    %123 = vector.shape_cast %122 : vector<4xf32> to vector<4x1xf32>
    %124 = arith.addf %0, %123 : vector<4x1xf32>
    %125 = arith.mulf %120, %120 : vector<4x512xf32>
    %cst_38 = arith.constant dense<0.000000e+00> : vector<4xf32>
    %126 = vector.multi_reduction <add>, %125, %cst_38 [1] : vector<4x512xf32> to vector<4xf32>
    %127 = vector.shape_cast %126 : vector<4xf32> to vector<4x1xf32>
    %128 = arith.addf %1, %127 : vector<4x1xf32>
    %c2_39 = arith.constant 2 : index
    %c0_40 = arith.constant 0 : index
    %129 = vector.load %arg0[%c2_39, %c0_40] : memref<4x512xf32, #tpu.memory_space<vmem>>, vector<2x512xf32>
    %c1_41 = arith.constant 1 : index
    %c0_42 = arith.constant 0 : index
    %c0_43 = arith.constant 0 : index
    %130 = vector.load %arg2[%c1_41, %c0_42, %c0_43] : memref<2x4x162xbf16, #tpu.memory_space<vmem>>, vector<1x4x162xbf16>
    %131 = vector.shape_cast %130 : vector<1x4x162xbf16> to vector<4x162xbf16>
    %c145_i32_44 = arith.constant 145 : i32
    %132 = tpu.dynamic_rotate %129 by %c145_i32_44 dim 1 : vector<2x512xf32>, i32 -> vector<2x512xf32>
    %c0_45 = arith.constant 0 : index
    %c0_46 = arith.constant 0 : index
    %133 = vector.load %arg1[%c0_45, %c0_46] : memref<27x512xf32, #tpu.memory_space<vmem>>, vector<1x512xf32>
    %134 = vector.broadcast %133 : vector<1x512xf32> to vector<2x512xf32>
    %135 = arith.mulf %132, %134 : vector<2x512xf32>
    %c144_i32_47 = arith.constant 144 : i32
    %136 = tpu.dynamic_rotate %129 by %c144_i32_47 dim 1 : vector<2x512xf32>, i32 -> vector<2x512xf32>
    %c1_48 = arith.constant 1 : index
    %c0_49 = arith.constant 0 : index
    %137 = vector.load %arg1[%c1_48, %c0_49] : memref<27x512xf32, #tpu.memory_space<vmem>>, vector<1x512xf32>
    %138 = vector.broadcast %137 : vector<1x512xf32> to vector<2x512xf32>
    %139 = arith.mulf %136, %138 : vector<2x512xf32>
    %c143_i32_50 = arith.constant 143 : i32
    %140 = tpu.dynamic_rotate %129 by %c143_i32_50 dim 1 : vector<2x512xf32>, i32 -> vector<2x512xf32>
    %c2_51 = arith.constant 2 : index
    %c0_52 = arith.constant 0 : index
    %141 = vector.load %arg1[%c2_51, %c0_52] : memref<27x512xf32, #tpu.memory_space<vmem>>, vector<1x512xf32>
    %142 = vector.broadcast %141 : vector<1x512xf32> to vector<2x512xf32>
    %143 = arith.mulf %140, %142 : vector<2x512xf32>
    %c129_i32_53 = arith.constant 129 : i32
    %144 = tpu.dynamic_rotate %129 by %c129_i32_53 dim 1 : vector<2x512xf32>, i32 -> vector<2x512xf32>
    %c3_54 = arith.constant 3 : index
    %c0_55 = arith.constant 0 : index
    %145 = vector.load %arg1[%c3_54, %c0_55] : memref<27x512xf32, #tpu.memory_space<vmem>>, vector<1x512xf32>
    %146 = vector.broadcast %145 : vector<1x512xf32> to vector<2x512xf32>
    %147 = arith.mulf %144, %146 : vector<2x512xf32>
    %c128_i32_56 = arith.constant 128 : i32
    %148 = tpu.dynamic_rotate %129 by %c128_i32_56 dim 1 : vector<2x512xf32>, i32 -> vector<2x512xf32>
    %c4_57 = arith.constant 4 : index
    %c0_58 = arith.constant 0 : index
    %149 = vector.load %arg1[%c4_57, %c0_58] : memref<27x512xf32, #tpu.memory_space<vmem>>, vector<1x512xf32>
    %150 = vector.broadcast %149 : vector<1x512xf32> to vector<2x512xf32>
    %151 = arith.mulf %148, %150 : vector<2x512xf32>
    %c127_i32_59 = arith.constant 127 : i32
    %152 = tpu.dynamic_rotate %129 by %c127_i32_59 dim 1 : vector<2x512xf32>, i32 -> vector<2x512xf32>
    %c5_60 = arith.constant 5 : index
    %c0_61 = arith.constant 0 : index
    %153 = vector.load %arg1[%c5_60, %c0_61] : memref<27x512xf32, #tpu.memory_space<vmem>>, vector<1x512xf32>
    %154 = vector.broadcast %153 : vector<1x512xf32> to vector<2x512xf32>
    %155 = arith.mulf %152, %154 : vector<2x512xf32>
    %c113_i32_62 = arith.constant 113 : i32
    %156 = tpu.dynamic_rotate %129 by %c113_i32_62 dim 1 : vector<2x512xf32>, i32 -> vector<2x512xf32>
    %c6_63 = arith.constant 6 : index
    %c0_64 = arith.constant 0 : index
    %157 = vector.load %arg1[%c6_63, %c0_64] : memref<27x512xf32, #tpu.memory_space<vmem>>, vector<1x512xf32>
    %158 = vector.broadcast %157 : vector<1x512xf32> to vector<2x512xf32>
    %159 = arith.mulf %156, %158 : vector<2x512xf32>
    %c112_i32_65 = arith.constant 112 : i32
    %160 = tpu.dynamic_rotate %129 by %c112_i32_65 dim 1 : vector<2x512xf32>, i32 -> vector<2x512xf32>
    %c7_66 = arith.constant 7 : index
    %c0_67 = arith.constant 0 : index
    %161 = vector.load %arg1[%c7_66, %c0_67] : memref<27x512xf32, #tpu.memory_space<vmem>>, vector<1x512xf32>
    %162 = vector.broadcast %161 : vector<1x512xf32> to vector<2x512xf32>
    %163 = arith.mulf %160, %162 : vector<2x512xf32>
    %c111_i32_68 = arith.constant 111 : i32
    %164 = tpu.dynamic_rotate %129 by %c111_i32_68 dim 1 : vector<2x512xf32>, i32 -> vector<2x512xf32>
    %c8_69 = arith.constant 8 : index
    %c0_70 = arith.constant 0 : index
    %165 = vector.load %arg1[%c8_69, %c0_70] : memref<27x512xf32, #tpu.memory_space<vmem>>, vector<1x512xf32>
    %166 = vector.broadcast %165 : vector<1x512xf32> to vector<2x512xf32>
    %167 = arith.mulf %164, %166 : vector<2x512xf32>
    %c17_i32_71 = arith.constant 17 : i32
    %168 = tpu.dynamic_rotate %129 by %c17_i32_71 dim 1 : vector<2x512xf32>, i32 -> vector<2x512xf32>
    %c9_72 = arith.constant 9 : index
    %c0_73 = arith.constant 0 : index
    %169 = vector.load %arg1[%c9_72, %c0_73] : memref<27x512xf32, #tpu.memory_space<vmem>>, vector<1x512xf32>
    %170 = vector.broadcast %169 : vector<1x512xf32> to vector<2x512xf32>
    %171 = arith.mulf %168, %170 : vector<2x512xf32>
    %c16_i32_74 = arith.constant 16 : i32
    %172 = tpu.dynamic_rotate %129 by %c16_i32_74 dim 1 : vector<2x512xf32>, i32 -> vector<2x512xf32>
    %c10_75 = arith.constant 10 : index
    %c0_76 = arith.constant 0 : index
    %173 = vector.load %arg1[%c10_75, %c0_76] : memref<27x512xf32, #tpu.memory_space<vmem>>, vector<1x512xf32>
    %174 = vector.broadcast %173 : vector<1x512xf32> to vector<2x512xf32>
    %175 = arith.mulf %172, %174 : vector<2x512xf32>
    %c15_i32_77 = arith.constant 15 : i32
    %176 = tpu.dynamic_rotate %129 by %c15_i32_77 dim 1 : vector<2x512xf32>, i32 -> vector<2x512xf32>
    %c11_78 = arith.constant 11 : index
    %c0_79 = arith.constant 0 : index
    %177 = vector.load %arg1[%c11_78, %c0_79] : memref<27x512xf32, #tpu.memory_space<vmem>>, vector<1x512xf32>
    %178 = vector.broadcast %177 : vector<1x512xf32> to vector<2x512xf32>
    %179 = arith.mulf %176, %178 : vector<2x512xf32>
    %c1_i32_80 = arith.constant 1 : i32
    %180 = tpu.dynamic_rotate %129 by %c1_i32_80 dim 1 : vector<2x512xf32>, i32 -> vector<2x512xf32>
    %c12_81 = arith.constant 12 : index
    %c0_82 = arith.constant 0 : index
    %181 = vector.load %arg1[%c12_81, %c0_82] : memref<27x512xf32, #tpu.memory_space<vmem>>, vector<1x512xf32>
    %182 = vector.broadcast %181 : vector<1x512xf32> to vector<2x512xf32>
    %183 = arith.mulf %180, %182 : vector<2x512xf32>
    %c511_i32_83 = arith.constant 511 : i32
    %184 = tpu.dynamic_rotate %129 by %c511_i32_83 dim 1 : vector<2x512xf32>, i32 -> vector<2x512xf32>
    %c14_84 = arith.constant 14 : index
    %c0_85 = arith.constant 0 : index
    %185 = vector.load %arg1[%c14_84, %c0_85] : memref<27x512xf32, #tpu.memory_space<vmem>>, vector<1x512xf32>
    %186 = vector.broadcast %185 : vector<1x512xf32> to vector<2x512xf32>
    %187 = arith.mulf %184, %186 : vector<2x512xf32>
    %c497_i32_86 = arith.constant 497 : i32
    %188 = tpu.dynamic_rotate %129 by %c497_i32_86 dim 1 : vector<2x512xf32>, i32 -> vector<2x512xf32>
    %c15_87 = arith.constant 15 : index
    %c0_88 = arith.constant 0 : index
    %189 = vector.load %arg1[%c15_87, %c0_88] : memref<27x512xf32, #tpu.memory_space<vmem>>, vector<1x512xf32>
    %190 = vector.broadcast %189 : vector<1x512xf32> to vector<2x512xf32>
    %191 = arith.mulf %188, %190 : vector<2x512xf32>
    %c496_i32_89 = arith.constant 496 : i32
    %192 = tpu.dynamic_rotate %129 by %c496_i32_89 dim 1 : vector<2x512xf32>, i32 -> vector<2x512xf32>
    %c16_90 = arith.constant 16 : index
    %c0_91 = arith.constant 0 : index
    %193 = vector.load %arg1[%c16_90, %c0_91] : memref<27x512xf32, #tpu.memory_space<vmem>>, vector<1x512xf32>
    %194 = vector.broadcast %193 : vector<1x512xf32> to vector<2x512xf32>
    %195 = arith.mulf %192, %194 : vector<2x512xf32>
    %c495_i32_92 = arith.constant 495 : i32
    %196 = tpu.dynamic_rotate %129 by %c495_i32_92 dim 1 : vector<2x512xf32>, i32 -> vector<2x512xf32>
    %c17_93 = arith.constant 17 : index
    %c0_94 = arith.constant 0 : index
    %197 = vector.load %arg1[%c17_93, %c0_94] : memref<27x512xf32, #tpu.memory_space<vmem>>, vector<1x512xf32>
    %198 = vector.broadcast %197 : vector<1x512xf32> to vector<2x512xf32>
    %199 = arith.mulf %196, %198 : vector<2x512xf32>
    %c401_i32_95 = arith.constant 401 : i32
    %200 = tpu.dynamic_rotate %129 by %c401_i32_95 dim 1 : vector<2x512xf32>, i32 -> vector<2x512xf32>
    %c18_96 = arith.constant 18 : index
    %c0_97 = arith.constant 0 : index
    %201 = vector.load %arg1[%c18_96, %c0_97] : memref<27x512xf32, #tpu.memory_space<vmem>>, vector<1x512xf32>
    %202 = vector.broadcast %201 : vector<1x512xf32> to vector<2x512xf32>
    %203 = arith.mulf %200, %202 : vector<2x512xf32>
    %c400_i32_98 = arith.constant 400 : i32
    %204 = tpu.dynamic_rotate %129 by %c400_i32_98 dim 1 : vector<2x512xf32>, i32 -> vector<2x512xf32>
    %c19_99 = arith.constant 19 : index
    %c0_100 = arith.constant 0 : index
    %205 = vector.load %arg1[%c19_99, %c0_100] : memref<27x512xf32, #tpu.memory_space<vmem>>, vector<1x512xf32>
    %206 = vector.broadcast %205 : vector<1x512xf32> to vector<2x512xf32>
    %207 = arith.mulf %204, %206 : vector<2x512xf32>
    %c399_i32_101 = arith.constant 399 : i32
    %208 = tpu.dynamic_rotate %129 by %c399_i32_101 dim 1 : vector<2x512xf32>, i32 -> vector<2x512xf32>
    %c20_102 = arith.constant 20 : index
    %c0_103 = arith.constant 0 : index
    %209 = vector.load %arg1[%c20_102, %c0_103] : memref<27x512xf32, #tpu.memory_space<vmem>>, vector<1x512xf32>
    %210 = vector.broadcast %209 : vector<1x512xf32> to vector<2x512xf32>
    %211 = arith.mulf %208, %210 : vector<2x512xf32>
    %c385_i32_104 = arith.constant 385 : i32
    %212 = tpu.dynamic_rotate %129 by %c385_i32_104 dim 1 : vector<2x512xf32>, i32 -> vector<2x512xf32>
    %c21_105 = arith.constant 21 : index
    %c0_106 = arith.constant 0 : index
    %213 = vector.load %arg1[%c21_105, %c0_106] : memref<27x512xf32, #tpu.memory_space<vmem>>, vector<1x512xf32>
    %214 = vector.broadcast %213 : vector<1x512xf32> to vector<2x512xf32>
    %215 = arith.mulf %212, %214 : vector<2x512xf32>
    %c384_i32_107 = arith.constant 384 : i32
    %216 = tpu.dynamic_rotate %129 by %c384_i32_107 dim 1 : vector<2x512xf32>, i32 -> vector<2x512xf32>
    %c22_108 = arith.constant 22 : index
    %c0_109 = arith.constant 0 : index
    %217 = vector.load %arg1[%c22_108, %c0_109] : memref<27x512xf32, #tpu.memory_space<vmem>>, vector<1x512xf32>
    %218 = vector.broadcast %217 : vector<1x512xf32> to vector<2x512xf32>
    %219 = arith.mulf %216, %218 : vector<2x512xf32>
    %c383_i32_110 = arith.constant 383 : i32
    %220 = tpu.dynamic_rotate %129 by %c383_i32_110 dim 1 : vector<2x512xf32>, i32 -> vector<2x512xf32>
    %c23_111 = arith.constant 23 : index
    %c0_112 = arith.constant 0 : index
    %221 = vector.load %arg1[%c23_111, %c0_112] : memref<27x512xf32, #tpu.memory_space<vmem>>, vector<1x512xf32>
    %222 = vector.broadcast %221 : vector<1x512xf32> to vector<2x512xf32>
    %223 = arith.mulf %220, %222 : vector<2x512xf32>
    %c369_i32_113 = arith.constant 369 : i32
    %224 = tpu.dynamic_rotate %129 by %c369_i32_113 dim 1 : vector<2x512xf32>, i32 -> vector<2x512xf32>
    %c24_114 = arith.constant 24 : index
    %c0_115 = arith.constant 0 : index
    %225 = vector.load %arg1[%c24_114, %c0_115] : memref<27x512xf32, #tpu.memory_space<vmem>>, vector<1x512xf32>
    %226 = vector.broadcast %225 : vector<1x512xf32> to vector<2x512xf32>
    %227 = arith.mulf %224, %226 : vector<2x512xf32>
    %c368_i32_116 = arith.constant 368 : i32
    %228 = tpu.dynamic_rotate %129 by %c368_i32_116 dim 1 : vector<2x512xf32>, i32 -> vector<2x512xf32>
    %c25_117 = arith.constant 25 : index
    %c0_118 = arith.constant 0 : index
    %229 = vector.load %arg1[%c25_117, %c0_118] : memref<27x512xf32, #tpu.memory_space<vmem>>, vector<1x512xf32>
    %230 = vector.broadcast %229 : vector<1x512xf32> to vector<2x512xf32>
    %231 = arith.mulf %228, %230 : vector<2x512xf32>
    %c367_i32_119 = arith.constant 367 : i32
    %232 = tpu.dynamic_rotate %129 by %c367_i32_119 dim 1 : vector<2x512xf32>, i32 -> vector<2x512xf32>
    %c26_120 = arith.constant 26 : index
    %c0_121 = arith.constant 0 : index
    %233 = vector.load %arg1[%c26_120, %c0_121] : memref<27x512xf32, #tpu.memory_space<vmem>>, vector<1x512xf32>
    %234 = vector.broadcast %233 : vector<1x512xf32> to vector<2x512xf32>
    %235 = arith.mulf %232, %234 : vector<2x512xf32>
    %236 = tpu.concatenate %135, %139, %143, %147, %151, %155, %159, %163, %167, %171, %175, %179, %183, %129, %187, %191 in 0 : vector<2x512xf32>, vector<2x512xf32>, vector<2x512xf32>, vector<2x512xf32>, vector<2x512xf32>, vector<2x512xf32>, vector<2x512xf32>, vector<2x512xf32>, vector<2x512xf32>, vector<2x512xf32>, vector<2x512xf32>, vector<2x512xf32>, vector<2x512xf32>, vector<2x512xf32>, vector<2x512xf32>, vector<2x512xf32> -> vector<32x512xf32>
    %237 = tpu.concatenate %195, %199, %203, %207, %211, %215, %219, %223, %227, %231, %235 in 0 : vector<2x512xf32>, vector<2x512xf32>, vector<2x512xf32>, vector<2x512xf32>, vector<2x512xf32>, vector<2x512xf32>, vector<2x512xf32>, vector<2x512xf32>, vector<2x512xf32>, vector<2x512xf32>, vector<2x512xf32> -> vector<22x512xf32>
    %238 = tpu.concatenate %236, %237 in 0 : vector<32x512xf32>, vector<22x512xf32> -> vector<54x512xf32>
    %239 = arith.truncf %238 : vector<54x512xf32> to vector<54x512xbf16>
    %240 = arith.extf %239 : vector<54x512xbf16> to vector<54x512xf32>
    %241 = arith.subf %238, %240 : vector<54x512xf32>
    %242 = arith.truncf %241 : vector<54x512xf32> to vector<54x512xbf16>
    %243 = tpu.concatenate %239, %239, %242 in 0 : vector<54x512xbf16>, vector<54x512xbf16>, vector<54x512xbf16> -> vector<162x512xbf16>
    %cst_122 = arith.constant dense<0.000000e+00> : vector<4x512xf32>
    %244 = tpu.matmul %131, %243, %cst_122 {dimension_numbers = #tpu.dot_dimension_numbers<[1], [0], [0], [1], [0, 0, 1, 1], [], []>} : vector<4x162xbf16>, vector<162x512xbf16>, vector<4x512xf32> -> vector<4x512xf32>
    %c4_123 = arith.constant 4 : index
    %c0_124 = arith.constant 0 : index
    %245 = vector.load %arg3[%c4_123, %c0_124] : memref<8x1xf32, #tpu.memory_space<vmem>>, vector<4x1xf32>
    %246 = vector.broadcast %245 : vector<4x1xf32> to vector<4x512xf32>
    %247 = arith.addf %244, %246 : vector<4x512xf32>
    %c4_125 = arith.constant 4 : index
    %c0_126 = arith.constant 0 : index
    %248 = vector.load %arg11[%c4_125, %c0_126] : memref<8x512xf32, #tpu.memory_space<vmem>>, vector<4x512xf32>
    tpu.vector_store %arg11[%c4_125, %c0_126], %247 {strides = array<i32>} : memref<8x512xf32, #tpu.memory_space<vmem>>, vector<4x512xf32>,
    %cst_127 = arith.constant dense<0.000000e+00> : vector<4xf32>
    %249 = vector.multi_reduction <add>, %247, %cst_127 [1] : vector<4x512xf32> to vector<4xf32>
    %250 = vector.shape_cast %249 : vector<4xf32> to vector<4x1xf32>
    %251 = arith.addf %124, %250 : vector<4x1xf32>
    %252 = arith.mulf %247, %247 : vector<4x512xf32>
    %cst_128 = arith.constant dense<0.000000e+00> : vector<4xf32>
    %253 = vector.multi_reduction <add>, %252, %cst_128 [1] : vector<4x512xf32> to vector<4xf32>
    %254 = vector.shape_cast %253 : vector<4xf32> to vector<4x1xf32>
    %255 = arith.addf %128, %254 : vector<4x1xf32>
    %cst_129 = arith.constant 9.765625E-4 : f32
    %256 = vector.broadcast %cst_129 : f32 to vector<4x1xf32>
    %257 = arith.mulf %251, %256 : vector<4x1xf32>
    %cst_130 = arith.constant 9.765625E-4 : f32
    %258 = vector.broadcast %cst_130 : f32 to vector<4x1xf32>
    %259 = arith.mulf %255, %258 : vector<4x1xf32>
    %260 = arith.mulf %257, %257 : vector<4x1xf32>
    %261 = arith.subf %259, %260 : vector<4x1xf32>
    %c0_131 = arith.constant 0 : index
    %c0_132 = arith.constant 0 : index
    %262 = vector.load %arg4[%c0_131, %c0_132] : memref<4x1xf32, #tpu.memory_space<vmem>>, vector<4x1xf32>
    %cst_133 = arith.constant 9.99999974E-6 : f32
    %263 = vector.broadcast %cst_133 : f32 to vector<4x1xf32>
    %264 = arith.addf %261, %263 : vector<4x1xf32>
    %265 = math.rsqrt %264 : vector<4x1xf32>
    %266 = arith.mulf %262, %265 : vector<4x1xf32>
    %c0_134 = arith.constant 0 : index
    %c0_135 = arith.constant 0 : index
    %267 = vector.load %arg5[%c0_134, %c0_135] : memref<4x1xf32, #tpu.memory_space<vmem>>, vector<4x1xf32>
    %268 = arith.mulf %257, %266 : vector<4x1xf32>
    %269 = arith.subf %267, %268 : vector<4x1xf32>
    %cst_136 = arith.constant 0.000000e+00 : f32
    %270 = vector.broadcast %cst_136 : f32 to vector<4x1xf32>
    %cst_137 = arith.constant 0.000000e+00 : f32
    %271 = vector.broadcast %cst_137 : f32 to vector<4x1xf32>
    %c0_138 = arith.constant 0 : index
    %c0_139 = arith.constant 0 : index
    %272 = vector.load %arg11[%c0_138, %c0_139] : memref<8x512xf32, #tpu.memory_space<vmem>>, vector<4x512xf32>
    %273 = vector.broadcast %266 : vector<4x1xf32> to vector<4x512xf32>
    %274 = arith.mulf %272, %273 : vector<4x512xf32>
    %275 = vector.broadcast %269 : vector<4x1xf32> to vector<4x512xf32>
    %276 = arith.addf %274, %275 : vector<4x512xf32>
    %cst_140 = arith.constant 0.000000e+00 : f32
    %277 = vector.broadcast %cst_140 : f32 to vector<4x512xf32>
    %278 = arith.maximumf %276, %277 : vector<4x512xf32>
    %c0_141 = arith.constant 0 : index
    %c0_142 = arith.constant 0 : index
    %c0_143 = arith.constant 0 : index
    %279 = vector.load %arg6[%c0_141, %c0_142, %c0_143] : memref<2x4x324xbf16, #tpu.memory_space<vmem>>, vector<1x4x324xbf16>
    %280 = vector.shape_cast %279 : vector<1x4x324xbf16> to vector<4x324xbf16>
    %c145_i32_144 = arith.constant 145 : i32
    %281 = tpu.dynamic_rotate %278 by %c145_i32_144 dim 1 : vector<4x512xf32>, i32 -> vector<4x512xf32>
    %c0_145 = arith.constant 0 : index
    %c0_146 = arith.constant 0 : index
    %282 = vector.load %arg1[%c0_145, %c0_146] : memref<27x512xf32, #tpu.memory_space<vmem>>, vector<1x512xf32>
    %283 = vector.broadcast %282 : vector<1x512xf32> to vector<4x512xf32>
    %284 = arith.mulf %281, %283 : vector<4x512xf32>
    %c144_i32_147 = arith.constant 144 : i32
    %285 = tpu.dynamic_rotate %278 by %c144_i32_147 dim 1 : vector<4x512xf32>, i32 -> vector<4x512xf32>
    %c1_148 = arith.constant 1 : index
    %c0_149 = arith.constant 0 : index
    %286 = vector.load %arg1[%c1_148, %c0_149] : memref<27x512xf32, #tpu.memory_space<vmem>>, vector<1x512xf32>
    %287 = vector.broadcast %286 : vector<1x512xf32> to vector<4x512xf32>
    %288 = arith.mulf %285, %287 : vector<4x512xf32>
    %c143_i32_150 = arith.constant 143 : i32
    %289 = tpu.dynamic_rotate %278 by %c143_i32_150 dim 1 : vector<4x512xf32>, i32 -> vector<4x512xf32>
    %c2_151 = arith.constant 2 : index
    %c0_152 = arith.constant 0 : index
    %290 = vector.load %arg1[%c2_151, %c0_152] : memref<27x512xf32, #tpu.memory_space<vmem>>, vector<1x512xf32>
    %291 = vector.broadcast %290 : vector<1x512xf32> to vector<4x512xf32>
    %292 = arith.mulf %289, %291 : vector<4x512xf32>
    %c129_i32_153 = arith.constant 129 : i32
    %293 = tpu.dynamic_rotate %278 by %c129_i32_153 dim 1 : vector<4x512xf32>, i32 -> vector<4x512xf32>
    %c3_154 = arith.constant 3 : index
    %c0_155 = arith.constant 0 : index
    %294 = vector.load %arg1[%c3_154, %c0_155] : memref<27x512xf32, #tpu.memory_space<vmem>>, vector<1x512xf32>
    %295 = vector.broadcast %294 : vector<1x512xf32> to vector<4x512xf32>
    %296 = arith.mulf %293, %295 : vector<4x512xf32>
    %c128_i32_156 = arith.constant 128 : i32
    %297 = tpu.dynamic_rotate %278 by %c128_i32_156 dim 1 : vector<4x512xf32>, i32 -> vector<4x512xf32>
    %c4_157 = arith.constant 4 : index
    %c0_158 = arith.constant 0 : index
    %298 = vector.load %arg1[%c4_157, %c0_158] : memref<27x512xf32, #tpu.memory_space<vmem>>, vector<1x512xf32>
    %299 = vector.broadcast %298 : vector<1x512xf32> to vector<4x512xf32>
    %300 = arith.mulf %297, %299 : vector<4x512xf32>
    %c127_i32_159 = arith.constant 127 : i32
    %301 = tpu.dynamic_rotate %278 by %c127_i32_159 dim 1 : vector<4x512xf32>, i32 -> vector<4x512xf32>
    %c5_160 = arith.constant 5 : index
    %c0_161 = arith.constant 0 : index
    %302 = vector.load %arg1[%c5_160, %c0_161] : memref<27x512xf32, #tpu.memory_space<vmem>>, vector<1x512xf32>
    %303 = vector.broadcast %302 : vector<1x512xf32> to vector<4x512xf32>
    %304 = arith.mulf %301, %303 : vector<4x512xf32>
    %c113_i32_162 = arith.constant 113 : i32
    %305 = tpu.dynamic_rotate %278 by %c113_i32_162 dim 1 : vector<4x512xf32>, i32 -> vector<4x512xf32>
    %c6_163 = arith.constant 6 : index
    %c0_164 = arith.constant 0 : index
    %306 = vector.load %arg1[%c6_163, %c0_164] : memref<27x512xf32, #tpu.memory_space<vmem>>, vector<1x512xf32>
    %307 = vector.broadcast %306 : vector<1x512xf32> to vector<4x512xf32>
    %308 = arith.mulf %305, %307 : vector<4x512xf32>
    %c112_i32_165 = arith.constant 112 : i32
    %309 = tpu.dynamic_rotate %278 by %c112_i32_165 dim 1 : vector<4x512xf32>, i32 -> vector<4x512xf32>
    %c7_166 = arith.constant 7 : index
    %c0_167 = arith.constant 0 : index
    %310 = vector.load %arg1[%c7_166, %c0_167] : memref<27x512xf32, #tpu.memory_space<vmem>>, vector<1x512xf32>
    %311 = vector.broadcast %310 : vector<1x512xf32> to vector<4x512xf32>
    %312 = arith.mulf %309, %311 : vector<4x512xf32>
    %c111_i32_168 = arith.constant 111 : i32
    %313 = tpu.dynamic_rotate %278 by %c111_i32_168 dim 1 : vector<4x512xf32>, i32 -> vector<4x512xf32>
    %c8_169 = arith.constant 8 : index
    %c0_170 = arith.constant 0 : index
    %314 = vector.load %arg1[%c8_169, %c0_170] : memref<27x512xf32, #tpu.memory_space<vmem>>, vector<1x512xf32>
    %315 = vector.broadcast %314 : vector<1x512xf32> to vector<4x512xf32>
    %316 = arith.mulf %313, %315 : vector<4x512xf32>
    %c17_i32_171 = arith.constant 17 : i32
    %317 = tpu.dynamic_rotate %278 by %c17_i32_171 dim 1 : vector<4x512xf32>, i32 -> vector<4x512xf32>
    %c9_172 = arith.constant 9 : index
    %c0_173 = arith.constant 0 : index
    %318 = vector.load %arg1[%c9_172, %c0_173] : memref<27x512xf32, #tpu.memory_space<vmem>>, vector<1x512xf32>
    %319 = vector.broadcast %318 : vector<1x512xf32> to vector<4x512xf32>
    %320 = arith.mulf %317, %319 : vector<4x512xf32>
    %c16_i32_174 = arith.constant 16 : i32
    %321 = tpu.dynamic_rotate %278 by %c16_i32_174 dim 1 : vector<4x512xf32>, i32 -> vector<4x512xf32>
    %c10_175 = arith.constant 10 : index
    %c0_176 = arith.constant 0 : index
    %322 = vector.load %arg1[%c10_175, %c0_176] : memref<27x512xf32, #tpu.memory_space<vmem>>, vector<1x512xf32>
    %323 = vector.broadcast %322 : vector<1x512xf32> to vector<4x512xf32>
    %324 = arith.mulf %321, %323 : vector<4x512xf32>
    %c15_i32_177 = arith.constant 15 : i32
    %325 = tpu.dynamic_rotate %278 by %c15_i32_177 dim 1 : vector<4x512xf32>, i32 -> vector<4x512xf32>
    %c11_178 = arith.constant 11 : index
    %c0_179 = arith.constant 0 : index
    %326 = vector.load %arg1[%c11_178, %c0_179] : memref<27x512xf32, #tpu.memory_space<vmem>>, vector<1x512xf32>
    %327 = vector.broadcast %326 : vector<1x512xf32> to vector<4x512xf32>
    %328 = arith.mulf %325, %327 : vector<4x512xf32>
    %c1_i32_180 = arith.constant 1 : i32
    %329 = tpu.dynamic_rotate %278 by %c1_i32_180 dim 1 : vector<4x512xf32>, i32 -> vector<4x512xf32>
    %c12_181 = arith.constant 12 : index
    %c0_182 = arith.constant 0 : index
    %330 = vector.load %arg1[%c12_181, %c0_182] : memref<27x512xf32, #tpu.memory_space<vmem>>, vector<1x512xf32>
    %331 = vector.broadcast %330 : vector<1x512xf32> to vector<4x512xf32>
    %332 = arith.mulf %329, %331 : vector<4x512xf32>
    %c511_i32_183 = arith.constant 511 : i32
    %333 = tpu.dynamic_rotate %278 by %c511_i32_183 dim 1 : vector<4x512xf32>, i32 -> vector<4x512xf32>
    %c14_184 = arith.constant 14 : index
    %c0_185 = arith.constant 0 : index
    %334 = vector.load %arg1[%c14_184, %c0_185] : memref<27x512xf32, #tpu.memory_space<vmem>>, vector<1x512xf32>
    %335 = vector.broadcast %334 : vector<1x512xf32> to vector<4x512xf32>
    %336 = arith.mulf %333, %335 : vector<4x512xf32>
    %c497_i32_186 = arith.constant 497 : i32
    %337 = tpu.dynamic_rotate %278 by %c497_i32_186 dim 1 : vector<4x512xf32>, i32 -> vector<4x512xf32>
    %c15_187 = arith.constant 15 : index
    %c0_188 = arith.constant 0 : index
    %338 = vector.load %arg1[%c15_187, %c0_188] : memref<27x512xf32, #tpu.memory_space<vmem>>, vector<1x512xf32>
    %339 = vector.broadcast %338 : vector<1x512xf32> to vector<4x512xf32>
    %340 = arith.mulf %337, %339 : vector<4x512xf32>
    %c496_i32_189 = arith.constant 496 : i32
    %341 = tpu.dynamic_rotate %278 by %c496_i32_189 dim 1 : vector<4x512xf32>, i32 -> vector<4x512xf32>
    %c16_190 = arith.constant 16 : index
    %c0_191 = arith.constant 0 : index
    %342 = vector.load %arg1[%c16_190, %c0_191] : memref<27x512xf32, #tpu.memory_space<vmem>>, vector<1x512xf32>
    %343 = vector.broadcast %342 : vector<1x512xf32> to vector<4x512xf32>
    %344 = arith.mulf %341, %343 : vector<4x512xf32>
    %c495_i32_192 = arith.constant 495 : i32
    %345 = tpu.dynamic_rotate %278 by %c495_i32_192 dim 1 : vector<4x512xf32>, i32 -> vector<4x512xf32>
    %c17_193 = arith.constant 17 : index
    %c0_194 = arith.constant 0 : index
    %346 = vector.load %arg1[%c17_193, %c0_194] : memref<27x512xf32, #tpu.memory_space<vmem>>, vector<1x512xf32>
    %347 = vector.broadcast %346 : vector<1x512xf32> to vector<4x512xf32>
    %348 = arith.mulf %345, %347 : vector<4x512xf32>
    %c401_i32_195 = arith.constant 401 : i32
    %349 = tpu.dynamic_rotate %278 by %c401_i32_195 dim 1 : vector<4x512xf32>, i32 -> vector<4x512xf32>
    %c18_196 = arith.constant 18 : index
    %c0_197 = arith.constant 0 : index
    %350 = vector.load %arg1[%c18_196, %c0_197] : memref<27x512xf32, #tpu.memory_space<vmem>>, vector<1x512xf32>
    %351 = vector.broadcast %350 : vector<1x512xf32> to vector<4x512xf32>
    %352 = arith.mulf %349, %351 : vector<4x512xf32>
    %c400_i32_198 = arith.constant 400 : i32
    %353 = tpu.dynamic_rotate %278 by %c400_i32_198 dim 1 : vector<4x512xf32>, i32 -> vector<4x512xf32>
    %c19_199 = arith.constant 19 : index
    %c0_200 = arith.constant 0 : index
    %354 = vector.load %arg1[%c19_199, %c0_200] : memref<27x512xf32, #tpu.memory_space<vmem>>, vector<1x512xf32>
    %355 = vector.broadcast %354 : vector<1x512xf32> to vector<4x512xf32>
    %356 = arith.mulf %353, %355 : vector<4x512xf32>
    %c399_i32_201 = arith.constant 399 : i32
    %357 = tpu.dynamic_rotate %278 by %c399_i32_201 dim 1 : vector<4x512xf32>, i32 -> vector<4x512xf32>
    %c20_202 = arith.constant 20 : index
    %c0_203 = arith.constant 0 : index
    %358 = vector.load %arg1[%c20_202, %c0_203] : memref<27x512xf32, #tpu.memory_space<vmem>>, vector<1x512xf32>
    %359 = vector.broadcast %358 : vector<1x512xf32> to vector<4x512xf32>
    %360 = arith.mulf %357, %359 : vector<4x512xf32>
    %c385_i32_204 = arith.constant 385 : i32
    %361 = tpu.dynamic_rotate %278 by %c385_i32_204 dim 1 : vector<4x512xf32>, i32 -> vector<4x512xf32>
    %c21_205 = arith.constant 21 : index
    %c0_206 = arith.constant 0 : index
    %362 = vector.load %arg1[%c21_205, %c0_206] : memref<27x512xf32, #tpu.memory_space<vmem>>, vector<1x512xf32>
    %363 = vector.broadcast %362 : vector<1x512xf32> to vector<4x512xf32>
    %364 = arith.mulf %361, %363 : vector<4x512xf32>
    %c384_i32_207 = arith.constant 384 : i32
    %365 = tpu.dynamic_rotate %278 by %c384_i32_207 dim 1 : vector<4x512xf32>, i32 -> vector<4x512xf32>
    %c22_208 = arith.constant 22 : index
    %c0_209 = arith.constant 0 : index
    %366 = vector.load %arg1[%c22_208, %c0_209] : memref<27x512xf32, #tpu.memory_space<vmem>>, vector<1x512xf32>
    %367 = vector.broadcast %366 : vector<1x512xf32> to vector<4x512xf32>
    %368 = arith.mulf %365, %367 : vector<4x512xf32>
    %c383_i32_210 = arith.constant 383 : i32
    %369 = tpu.dynamic_rotate %278 by %c383_i32_210 dim 1 : vector<4x512xf32>, i32 -> vector<4x512xf32>
    %c23_211 = arith.constant 23 : index
    %c0_212 = arith.constant 0 : index
    %370 = vector.load %arg1[%c23_211, %c0_212] : memref<27x512xf32, #tpu.memory_space<vmem>>, vector<1x512xf32>
    %371 = vector.broadcast %370 : vector<1x512xf32> to vector<4x512xf32>
    %372 = arith.mulf %369, %371 : vector<4x512xf32>
    %c369_i32_213 = arith.constant 369 : i32
    %373 = tpu.dynamic_rotate %278 by %c369_i32_213 dim 1 : vector<4x512xf32>, i32 -> vector<4x512xf32>
    %c24_214 = arith.constant 24 : index
    %c0_215 = arith.constant 0 : index
    %374 = vector.load %arg1[%c24_214, %c0_215] : memref<27x512xf32, #tpu.memory_space<vmem>>, vector<1x512xf32>
    %375 = vector.broadcast %374 : vector<1x512xf32> to vector<4x512xf32>
    %376 = arith.mulf %373, %375 : vector<4x512xf32>
    %c368_i32_216 = arith.constant 368 : i32
    %377 = tpu.dynamic_rotate %278 by %c368_i32_216 dim 1 : vector<4x512xf32>, i32 -> vector<4x512xf32>
    %c25_217 = arith.constant 25 : index
    %c0_218 = arith.constant 0 : index
    %378 = vector.load %arg1[%c25_217, %c0_218] : memref<27x512xf32, #tpu.memory_space<vmem>>, vector<1x512xf32>
    %379 = vector.broadcast %378 : vector<1x512xf32> to vector<4x512xf32>
    %380 = arith.mulf %377, %379 : vector<4x512xf32>
    %c367_i32_219 = arith.constant 367 : i32
    %381 = tpu.dynamic_rotate %278 by %c367_i32_219 dim 1 : vector<4x512xf32>, i32 -> vector<4x512xf32>
    %c26_220 = arith.constant 26 : index
    %c0_221 = arith.constant 0 : index
    %382 = vector.load %arg1[%c26_220, %c0_221] : memref<27x512xf32, #tpu.memory_space<vmem>>, vector<1x512xf32>
    %383 = vector.broadcast %382 : vector<1x512xf32> to vector<4x512xf32>
    %384 = arith.mulf %381, %383 : vector<4x512xf32>
    %385 = tpu.concatenate %284, %288, %292, %296, %300, %304, %308, %312, %316, %320, %324, %328, %332, %278, %336, %340 in 0 : vector<4x512xf32>, vector<4x512xf32>, vector<4x512xf32>, vector<4x512xf32>, vector<4x512xf32>, vector<4x512xf32>, vector<4x512xf32>, vector<4x512xf32>, vector<4x512xf32>, vector<4x512xf32>, vector<4x512xf32>, vector<4x512xf32>, vector<4x512xf32>, vector<4x512xf32>, vector<4x512xf32>, vector<4x512xf32> -> vector<64x512xf32>
    %386 = tpu.concatenate %344, %348, %352, %356, %360, %364, %368, %372, %376, %380, %384 in 0 : vector<4x512xf32>, vector<4x512xf32>, vector<4x512xf32>, vector<4x512xf32>, vector<4x512xf32>, vector<4x512xf32>, vector<4x512xf32>, vector<4x512xf32>, vector<4x512xf32>, vector<4x512xf32>, vector<4x512xf32> -> vector<44x512xf32>
    %387 = tpu.concatenate %385, %386 in 0 : vector<64x512xf32>, vector<44x512xf32> -> vector<108x512xf32>
    %388 = arith.truncf %387 : vector<108x512xf32> to vector<108x512xbf16>
    %389 = arith.extf %388 : vector<108x512xbf16> to vector<108x512xf32>
    %390 = arith.subf %387, %389 : vector<108x512xf32>
    %391 = arith.truncf %390 : vector<108x512xf32> to vector<108x512xbf16>
    %392 = tpu.concatenate %388, %388, %391 in 0 : vector<108x512xbf16>, vector<108x512xbf16>, vector<108x512xbf16> -> vector<324x512xbf16>
    %cst_222 = arith.constant dense<0.000000e+00> : vector<4x512xf32>
    %393 = tpu.matmul %280, %392, %cst_222 {dimension_numbers = #tpu.dot_dimension_numbers<[1], [0], [0], [1], [0, 0, 1, 1], [], []>} : vector<4x324xbf16>, vector<324x512xbf16>, vector<4x512xf32> -> vector<4x512xf32>
    %c0_223 = arith.constant 0 : index
    %c0_224 = arith.constant 0 : index
    %394 = vector.load %arg7[%c0_223, %c0_224] : memref<8x1xf32, #tpu.memory_space<vmem>>, vector<4x1xf32>
    %395 = vector.broadcast %394 : vector<4x1xf32> to vector<4x512xf32>
    %396 = arith.addf %393, %395 : vector<4x512xf32>
    %c0_225 = arith.constant 0 : index
    %c0_226 = arith.constant 0 : index
    %397 = vector.load %arg10[%c0_225, %c0_226] : memref<8x512xf32, #tpu.memory_space<vmem>>, vector<4x512xf32>
    tpu.vector_store %arg10[%c0_225, %c0_226], %396 {strides = array<i32>} : memref<8x512xf32, #tpu.memory_space<vmem>>, vector<4x512xf32>,
    %cst_227 = arith.constant dense<0.000000e+00> : vector<4xf32>
    %398 = vector.multi_reduction <add>, %396, %cst_227 [1] : vector<4x512xf32> to vector<4xf32>
    %399 = vector.shape_cast %398 : vector<4xf32> to vector<4x1xf32>
    %400 = arith.addf %270, %399 : vector<4x1xf32>
    %401 = arith.mulf %396, %396 : vector<4x512xf32>
    %cst_228 = arith.constant dense<0.000000e+00> : vector<4xf32>
    %402 = vector.multi_reduction <add>, %401, %cst_228 [1] : vector<4x512xf32> to vector<4xf32>
    %403 = vector.shape_cast %402 : vector<4xf32> to vector<4x1xf32>
    %404 = arith.addf %271, %403 : vector<4x1xf32>
    %c4_229 = arith.constant 4 : index
    %c0_230 = arith.constant 0 : index
    %405 = vector.load %arg11[%c4_229, %c0_230] : memref<8x512xf32, #tpu.memory_space<vmem>>, vector<4x512xf32>
    %406 = vector.broadcast %266 : vector<4x1xf32> to vector<4x512xf32>
    %407 = arith.mulf %405, %406 : vector<4x512xf32>
    %408 = vector.broadcast %269 : vector<4x1xf32> to vector<4x512xf32>
    %409 = arith.addf %407, %408 : vector<4x512xf32>
    %cst_231 = arith.constant 0.000000e+00 : f32
    %410 = vector.broadcast %cst_231 : f32 to vector<4x512xf32>
    %411 = arith.maximumf %409, %410 : vector<4x512xf32>
    %c1_232 = arith.constant 1 : index
    %c0_233 = arith.constant 0 : index
    %c0_234 = arith.constant 0 : index
    %412 = vector.load %arg6[%c1_232, %c0_233, %c0_234] : memref<2x4x324xbf16, #tpu.memory_space<vmem>>, vector<1x4x324xbf16>
    %413 = vector.shape_cast %412 : vector<1x4x324xbf16> to vector<4x324xbf16>
    %c145_i32_235 = arith.constant 145 : i32
    %414 = tpu.dynamic_rotate %411 by %c145_i32_235 dim 1 : vector<4x512xf32>, i32 -> vector<4x512xf32>
    %c0_236 = arith.constant 0 : index
    %c0_237 = arith.constant 0 : index
    %415 = vector.load %arg1[%c0_236, %c0_237] : memref<27x512xf32, #tpu.memory_space<vmem>>, vector<1x512xf32>
    %416 = vector.broadcast %415 : vector<1x512xf32> to vector<4x512xf32>
    %417 = arith.mulf %414, %416 : vector<4x512xf32>
    %c144_i32_238 = arith.constant 144 : i32
    %418 = tpu.dynamic_rotate %411 by %c144_i32_238 dim 1 : vector<4x512xf32>, i32 -> vector<4x512xf32>
    %c1_239 = arith.constant 1 : index
    %c0_240 = arith.constant 0 : index
    %419 = vector.load %arg1[%c1_239, %c0_240] : memref<27x512xf32, #tpu.memory_space<vmem>>, vector<1x512xf32>
    %420 = vector.broadcast %419 : vector<1x512xf32> to vector<4x512xf32>
    %421 = arith.mulf %418, %420 : vector<4x512xf32>
    %c143_i32_241 = arith.constant 143 : i32
    %422 = tpu.dynamic_rotate %411 by %c143_i32_241 dim 1 : vector<4x512xf32>, i32 -> vector<4x512xf32>
    %c2_242 = arith.constant 2 : index
    %c0_243 = arith.constant 0 : index
    %423 = vector.load %arg1[%c2_242, %c0_243] : memref<27x512xf32, #tpu.memory_space<vmem>>, vector<1x512xf32>
    %424 = vector.broadcast %423 : vector<1x512xf32> to vector<4x512xf32>
    %425 = arith.mulf %422, %424 : vector<4x512xf32>
    %c129_i32_244 = arith.constant 129 : i32
    %426 = tpu.dynamic_rotate %411 by %c129_i32_244 dim 1 : vector<4x512xf32>, i32 -> vector<4x512xf32>
    %c3_245 = arith.constant 3 : index
    %c0_246 = arith.constant 0 : index
    %427 = vector.load %arg1[%c3_245, %c0_246] : memref<27x512xf32, #tpu.memory_space<vmem>>, vector<1x512xf32>
    %428 = vector.broadcast %427 : vector<1x512xf32> to vector<4x512xf32>
    %429 = arith.mulf %426, %428 : vector<4x512xf32>
    %c128_i32_247 = arith.constant 128 : i32
    %430 = tpu.dynamic_rotate %411 by %c128_i32_247 dim 1 : vector<4x512xf32>, i32 -> vector<4x512xf32>
    %c4_248 = arith.constant 4 : index
    %c0_249 = arith.constant 0 : index
    %431 = vector.load %arg1[%c4_248, %c0_249] : memref<27x512xf32, #tpu.memory_space<vmem>>, vector<1x512xf32>
    %432 = vector.broadcast %431 : vector<1x512xf32> to vector<4x512xf32>
    %433 = arith.mulf %430, %432 : vector<4x512xf32>
    %c127_i32_250 = arith.constant 127 : i32
    %434 = tpu.dynamic_rotate %411 by %c127_i32_250 dim 1 : vector<4x512xf32>, i32 -> vector<4x512xf32>
    %c5_251 = arith.constant 5 : index
    %c0_252 = arith.constant 0 : index
    %435 = vector.load %arg1[%c5_251, %c0_252] : memref<27x512xf32, #tpu.memory_space<vmem>>, vector<1x512xf32>
    %436 = vector.broadcast %435 : vector<1x512xf32> to vector<4x512xf32>
    %437 = arith.mulf %434, %436 : vector<4x512xf32>
    %c113_i32_253 = arith.constant 113 : i32
    %438 = tpu.dynamic_rotate %411 by %c113_i32_253 dim 1 : vector<4x512xf32>, i32 -> vector<4x512xf32>
    %c6_254 = arith.constant 6 : index
    %c0_255 = arith.constant 0 : index
    %439 = vector.load %arg1[%c6_254, %c0_255] : memref<27x512xf32, #tpu.memory_space<vmem>>, vector<1x512xf32>
    %440 = vector.broadcast %439 : vector<1x512xf32> to vector<4x512xf32>
    %441 = arith.mulf %438, %440 : vector<4x512xf32>
    %c112_i32_256 = arith.constant 112 : i32
    %442 = tpu.dynamic_rotate %411 by %c112_i32_256 dim 1 : vector<4x512xf32>, i32 -> vector<4x512xf32>
    %c7_257 = arith.constant 7 : index
    %c0_258 = arith.constant 0 : index
    %443 = vector.load %arg1[%c7_257, %c0_258] : memref<27x512xf32, #tpu.memory_space<vmem>>, vector<1x512xf32>
    %444 = vector.broadcast %443 : vector<1x512xf32> to vector<4x512xf32>
    %445 = arith.mulf %442, %444 : vector<4x512xf32>
    %c111_i32_259 = arith.constant 111 : i32
    %446 = tpu.dynamic_rotate %411 by %c111_i32_259 dim 1 : vector<4x512xf32>, i32 -> vector<4x512xf32>
    %c8_260 = arith.constant 8 : index
    %c0_261 = arith.constant 0 : index
    %447 = vector.load %arg1[%c8_260, %c0_261] : memref<27x512xf32, #tpu.memory_space<vmem>>, vector<1x512xf32>
    %448 = vector.broadcast %447 : vector<1x512xf32> to vector<4x512xf32>
    %449 = arith.mulf %446, %448 : vector<4x512xf32>
    %c17_i32_262 = arith.constant 17 : i32
    %450 = tpu.dynamic_rotate %411 by %c17_i32_262 dim 1 : vector<4x512xf32>, i32 -> vector<4x512xf32>
    %c9_263 = arith.constant 9 : index
    %c0_264 = arith.constant 0 : index
    %451 = vector.load %arg1[%c9_263, %c0_264] : memref<27x512xf32, #tpu.memory_space<vmem>>, vector<1x512xf32>
    %452 = vector.broadcast %451 : vector<1x512xf32> to vector<4x512xf32>
    %453 = arith.mulf %450, %452 : vector<4x512xf32>
    %c16_i32_265 = arith.constant 16 : i32
    %454 = tpu.dynamic_rotate %411 by %c16_i32_265 dim 1 : vector<4x512xf32>, i32 -> vector<4x512xf32>
    %c10_266 = arith.constant 10 : index
    %c0_267 = arith.constant 0 : index
    %455 = vector.load %arg1[%c10_266, %c0_267] : memref<27x512xf32, #tpu.memory_space<vmem>>, vector<1x512xf32>
    %456 = vector.broadcast %455 : vector<1x512xf32> to vector<4x512xf32>
    %457 = arith.mulf %454, %456 : vector<4x512xf32>
    %c15_i32_268 = arith.constant 15 : i32
    %458 = tpu.dynamic_rotate %411 by %c15_i32_268 dim 1 : vector<4x512xf32>, i32 -> vector<4x512xf32>
    %c11_269 = arith.constant 11 : index
    %c0_270 = arith.constant 0 : index
    %459 = vector.load %arg1[%c11_269, %c0_270] : memref<27x512xf32, #tpu.memory_space<vmem>>, vector<1x512xf32>
    %460 = vector.broadcast %459 : vector<1x512xf32> to vector<4x512xf32>
    %461 = arith.mulf %458, %460 : vector<4x512xf32>
    %c1_i32_271 = arith.constant 1 : i32
    %462 = tpu.dynamic_rotate %411 by %c1_i32_271 dim 1 : vector<4x512xf32>, i32 -> vector<4x512xf32>
    %c12_272 = arith.constant 12 : index
    %c0_273 = arith.constant 0 : index
    %463 = vector.load %arg1[%c12_272, %c0_273] : memref<27x512xf32, #tpu.memory_space<vmem>>, vector<1x512xf32>
    %464 = vector.broadcast %463 : vector<1x512xf32> to vector<4x512xf32>
    %465 = arith.mulf %462, %464 : vector<4x512xf32>
    %c511_i32_274 = arith.constant 511 : i32
    %466 = tpu.dynamic_rotate %411 by %c511_i32_274 dim 1 : vector<4x512xf32>, i32 -> vector<4x512xf32>
    %c14_275 = arith.constant 14 : index
    %c0_276 = arith.constant 0 : index
    %467 = vector.load %arg1[%c14_275, %c0_276] : memref<27x512xf32, #tpu.memory_space<vmem>>, vector<1x512xf32>
    %468 = vector.broadcast %467 : vector<1x512xf32> to vector<4x512xf32>
    %469 = arith.mulf %466, %468 : vector<4x512xf32>
    %c497_i32_277 = arith.constant 497 : i32
    %470 = tpu.dynamic_rotate %411 by %c497_i32_277 dim 1 : vector<4x512xf32>, i32 -> vector<4x512xf32>
    %c15_278 = arith.constant 15 : index
    %c0_279 = arith.constant 0 : index
    %471 = vector.load %arg1[%c15_278, %c0_279] : memref<27x512xf32, #tpu.memory_space<vmem>>, vector<1x512xf32>
    %472 = vector.broadcast %471 : vector<1x512xf32> to vector<4x512xf32>
    %473 = arith.mulf %470, %472 : vector<4x512xf32>
    %c496_i32_280 = arith.constant 496 : i32
    %474 = tpu.dynamic_rotate %411 by %c496_i32_280 dim 1 : vector<4x512xf32>, i32 -> vector<4x512xf32>
    %c16_281 = arith.constant 16 : index
    %c0_282 = arith.constant 0 : index
    %475 = vector.load %arg1[%c16_281, %c0_282] : memref<27x512xf32, #tpu.memory_space<vmem>>, vector<1x512xf32>
    %476 = vector.broadcast %475 : vector<1x512xf32> to vector<4x512xf32>
    %477 = arith.mulf %474, %476 : vector<4x512xf32>
    %c495_i32_283 = arith.constant 495 : i32
    %478 = tpu.dynamic_rotate %411 by %c495_i32_283 dim 1 : vector<4x512xf32>, i32 -> vector<4x512xf32>
    %c17_284 = arith.constant 17 : index
    %c0_285 = arith.constant 0 : index
    %479 = vector.load %arg1[%c17_284, %c0_285] : memref<27x512xf32, #tpu.memory_space<vmem>>, vector<1x512xf32>
    %480 = vector.broadcast %479 : vector<1x512xf32> to vector<4x512xf32>
    %481 = arith.mulf %478, %480 : vector<4x512xf32>
    %c401_i32_286 = arith.constant 401 : i32
    %482 = tpu.dynamic_rotate %411 by %c401_i32_286 dim 1 : vector<4x512xf32>, i32 -> vector<4x512xf32>
    %c18_287 = arith.constant 18 : index
    %c0_288 = arith.constant 0 : index
    %483 = vector.load %arg1[%c18_287, %c0_288] : memref<27x512xf32, #tpu.memory_space<vmem>>, vector<1x512xf32>
    %484 = vector.broadcast %483 : vector<1x512xf32> to vector<4x512xf32>
    %485 = arith.mulf %482, %484 : vector<4x512xf32>
    %c400_i32_289 = arith.constant 400 : i32
    %486 = tpu.dynamic_rotate %411 by %c400_i32_289 dim 1 : vector<4x512xf32>, i32 -> vector<4x512xf32>
    %c19_290 = arith.constant 19 : index
    %c0_291 = arith.constant 0 : index
    %487 = vector.load %arg1[%c19_290, %c0_291] : memref<27x512xf32, #tpu.memory_space<vmem>>, vector<1x512xf32>
    %488 = vector.broadcast %487 : vector<1x512xf32> to vector<4x512xf32>
    %489 = arith.mulf %486, %488 : vector<4x512xf32>
    %c399_i32_292 = arith.constant 399 : i32
    %490 = tpu.dynamic_rotate %411 by %c399_i32_292 dim 1 : vector<4x512xf32>, i32 -> vector<4x512xf32>
    %c20_293 = arith.constant 20 : index
    %c0_294 = arith.constant 0 : index
    %491 = vector.load %arg1[%c20_293, %c0_294] : memref<27x512xf32, #tpu.memory_space<vmem>>, vector<1x512xf32>
    %492 = vector.broadcast %491 : vector<1x512xf32> to vector<4x512xf32>
    %493 = arith.mulf %490, %492 : vector<4x512xf32>
    %c385_i32_295 = arith.constant 385 : i32
    %494 = tpu.dynamic_rotate %411 by %c385_i32_295 dim 1 : vector<4x512xf32>, i32 -> vector<4x512xf32>
    %c21_296 = arith.constant 21 : index
    %c0_297 = arith.constant 0 : index
    %495 = vector.load %arg1[%c21_296, %c0_297] : memref<27x512xf32, #tpu.memory_space<vmem>>, vector<1x512xf32>
    %496 = vector.broadcast %495 : vector<1x512xf32> to vector<4x512xf32>
    %497 = arith.mulf %494, %496 : vector<4x512xf32>
    %c384_i32_298 = arith.constant 384 : i32
    %498 = tpu.dynamic_rotate %411 by %c384_i32_298 dim 1 : vector<4x512xf32>, i32 -> vector<4x512xf32>
    %c22_299 = arith.constant 22 : index
    %c0_300 = arith.constant 0 : index
    %499 = vector.load %arg1[%c22_299, %c0_300] : memref<27x512xf32, #tpu.memory_space<vmem>>, vector<1x512xf32>
    %500 = vector.broadcast %499 : vector<1x512xf32> to vector<4x512xf32>
    %501 = arith.mulf %498, %500 : vector<4x512xf32>
    %c383_i32_301 = arith.constant 383 : i32
    %502 = tpu.dynamic_rotate %411 by %c383_i32_301 dim 1 : vector<4x512xf32>, i32 -> vector<4x512xf32>
    %c23_302 = arith.constant 23 : index
    %c0_303 = arith.constant 0 : index
    %503 = vector.load %arg1[%c23_302, %c0_303] : memref<27x512xf32, #tpu.memory_space<vmem>>, vector<1x512xf32>
    %504 = vector.broadcast %503 : vector<1x512xf32> to vector<4x512xf32>
    %505 = arith.mulf %502, %504 : vector<4x512xf32>
    %c369_i32_304 = arith.constant 369 : i32
    %506 = tpu.dynamic_rotate %411 by %c369_i32_304 dim 1 : vector<4x512xf32>, i32 -> vector<4x512xf32>
    %c24_305 = arith.constant 24 : index
    %c0_306 = arith.constant 0 : index
    %507 = vector.load %arg1[%c24_305, %c0_306] : memref<27x512xf32, #tpu.memory_space<vmem>>, vector<1x512xf32>
    %508 = vector.broadcast %507 : vector<1x512xf32> to vector<4x512xf32>
    %509 = arith.mulf %506, %508 : vector<4x512xf32>
    %c368_i32_307 = arith.constant 368 : i32
    %510 = tpu.dynamic_rotate %411 by %c368_i32_307 dim 1 : vector<4x512xf32>, i32 -> vector<4x512xf32>
    %c25_308 = arith.constant 25 : index
    %c0_309 = arith.constant 0 : index
    %511 = vector.load %arg1[%c25_308, %c0_309] : memref<27x512xf32, #tpu.memory_space<vmem>>, vector<1x512xf32>
    %512 = vector.broadcast %511 : vector<1x512xf32> to vector<4x512xf32>
    %513 = arith.mulf %510, %512 : vector<4x512xf32>
    %c367_i32_310 = arith.constant 367 : i32
    %514 = tpu.dynamic_rotate %411 by %c367_i32_310 dim 1 : vector<4x512xf32>, i32 -> vector<4x512xf32>
    %c26_311 = arith.constant 26 : index
    %c0_312 = arith.constant 0 : index
    %515 = vector.load %arg1[%c26_311, %c0_312] : memref<27x512xf32, #tpu.memory_space<vmem>>, vector<1x512xf32>
    %516 = vector.broadcast %515 : vector<1x512xf32> to vector<4x512xf32>
    %517 = arith.mulf %514, %516 : vector<4x512xf32>
    %518 = tpu.concatenate %417, %421, %425, %429, %433, %437, %441, %445, %449, %453, %457, %461, %465, %411, %469, %473 in 0 : vector<4x512xf32>, vector<4x512xf32>, vector<4x512xf32>, vector<4x512xf32>, vector<4x512xf32>, vector<4x512xf32>, vector<4x512xf32>, vector<4x512xf32>, vector<4x512xf32>, vector<4x512xf32>, vector<4x512xf32>, vector<4x512xf32>, vector<4x512xf32>, vector<4x512xf32>, vector<4x512xf32>, vector<4x512xf32> -> vector<64x512xf32>
    %519 = tpu.concatenate %477, %481, %485, %489, %493, %497, %501, %505, %509, %513, %517 in 0 : vector<4x512xf32>, vector<4x512xf32>, vector<4x512xf32>, vector<4x512xf32>, vector<4x512xf32>, vector<4x512xf32>, vector<4x512xf32>, vector<4x512xf32>, vector<4x512xf32>, vector<4x512xf32>, vector<4x512xf32> -> vector<44x512xf32>
    %520 = tpu.concatenate %518, %519 in 0 : vector<64x512xf32>, vector<44x512xf32> -> vector<108x512xf32>
    %521 = arith.truncf %520 : vector<108x512xf32> to vector<108x512xbf16>
    %522 = arith.extf %521 : vector<108x512xbf16> to vector<108x512xf32>
    %523 = arith.subf %520, %522 : vector<108x512xf32>
    %524 = arith.truncf %523 : vector<108x512xf32> to vector<108x512xbf16>
    %525 = tpu.concatenate %521, %521, %524 in 0 : vector<108x512xbf16>, vector<108x512xbf16>, vector<108x512xbf16> -> vector<324x512xbf16>
    %cst_313 = arith.constant dense<0.000000e+00> : vector<4x512xf32>
    %526 = tpu.matmul %413, %525, %cst_313 {dimension_numbers = #tpu.dot_dimension_numbers<[1], [0], [0], [1], [0, 0, 1, 1], [], []>} : vector<4x324xbf16>, vector<324x512xbf16>, vector<4x512xf32> -> vector<4x512xf32>
    %c4_314 = arith.constant 4 : index
    %c0_315 = arith.constant 0 : index
    %527 = vector.load %arg7[%c4_314, %c0_315] : memref<8x1xf32, #tpu.memory_space<vmem>>, vector<4x1xf32>
    %528 = vector.broadcast %527 : vector<4x1xf32> to vector<4x512xf32>
    %529 = arith.addf %526, %528 : vector<4x512xf32>
    %c4_316 = arith.constant 4 : index
    %c0_317 = arith.constant 0 : index
    %530 = vector.load %arg10[%c4_316, %c0_317] : memref<8x512xf32, #tpu.memory_space<vmem>>, vector<4x512xf32>
    tpu.vector_store %arg10[%c4_316, %c0_317], %529 {strides = array<i32>} : memref<8x512xf32, #tpu.memory_space<vmem>>, vector<4x512xf32>,
    %cst_318 = arith.constant dense<0.000000e+00> : vector<4xf32>
    %531 = vector.multi_reduction <add>, %529, %cst_318 [1] : vector<4x512xf32> to vector<4xf32>
    %532 = vector.shape_cast %531 : vector<4xf32> to vector<4x1xf32>
    %533 = arith.addf %400, %532 : vector<4x1xf32>
    %534 = arith.mulf %529, %529 : vector<4x512xf32>
    %cst_319 = arith.constant dense<0.000000e+00> : vector<4xf32>
    %535 = vector.multi_reduction <add>, %534, %cst_319 [1] : vector<4x512xf32> to vector<4xf32>
    %536 = vector.shape_cast %535 : vector<4xf32> to vector<4x1xf32>
    %537 = arith.addf %404, %536 : vector<4x1xf32>
    %cst_320 = arith.constant 9.765625E-4 : f32
    %538 = vector.broadcast %cst_320 : f32 to vector<4x1xf32>
    %539 = arith.mulf %533, %538 : vector<4x1xf32>
    %cst_321 = arith.constant 9.765625E-4 : f32
    %540 = vector.broadcast %cst_321 : f32 to vector<4x1xf32>
    %541 = arith.mulf %537, %540 : vector<4x1xf32>
    %542 = arith.mulf %539, %539 : vector<4x1xf32>
    %543 = arith.subf %541, %542 : vector<4x1xf32>
    %c0_322 = arith.constant 0 : index
    %c0_323 = arith.constant 0 : index
    %544 = vector.load %arg8[%c0_322, %c0_323] : memref<4x1xf32, #tpu.memory_space<vmem>>, vector<4x1xf32>
    %cst_324 = arith.constant 9.99999974E-6 : f32
    %545 = vector.broadcast %cst_324 : f32 to vector<4x1xf32>
    %546 = arith.addf %543, %545 : vector<4x1xf32>
    %547 = math.rsqrt %546 : vector<4x1xf32>
    %548 = arith.mulf %544, %547 : vector<4x1xf32>
    %c0_325 = arith.constant 0 : index
    %c0_326 = arith.constant 0 : index
    %549 = vector.load %arg9[%c0_325, %c0_326] : memref<4x1xf32, #tpu.memory_space<vmem>>, vector<4x1xf32>
    %550 = arith.mulf %539, %548 : vector<4x1xf32>
    %551 = arith.subf %549, %550 : vector<4x1xf32>
    %552 = tpu.concatenate %548, %548 in 0 : vector<4x1xf32>, vector<4x1xf32> -> vector<8x1xf32>
    %553 = tpu.concatenate %551, %551 in 0 : vector<4x1xf32>, vector<4x1xf32> -> vector<8x1xf32>
    %c0_327 = arith.constant 0 : index
    %c0_328 = arith.constant 0 : index
    %554 = vector.load %arg10[%c0_327, %c0_328] : memref<8x512xf32, #tpu.memory_space<vmem>>, vector<8x512xf32>
    %555 = vector.broadcast %552 : vector<8x1xf32> to vector<8x512xf32>
    %556 = arith.mulf %554, %555 : vector<8x512xf32>
    %557 = vector.broadcast %553 : vector<8x1xf32> to vector<8x512xf32>
    %558 = arith.addf %556, %557 : vector<8x512xf32>
    %cst_329 = arith.constant 0.000000e+00 : f32
    %559 = vector.broadcast %cst_329 : f32 to vector<8x512xf32>
    %560 = arith.maximumf %558, %559 : vector<8x512xf32>
    %c0_330 = arith.constant 0 : index
    %c0_331 = arith.constant 0 : index
    %561 = vector.load %arg10[%c0_330, %c0_331] : memref<8x512xf32, #tpu.memory_space<vmem>>, vector<8x512xf32>
    tpu.vector_store %arg10[%c0_330, %c0_331], %560 {strides = array<i32>} : memref<8x512xf32, #tpu.memory_space<vmem>>, vector<8x512xf32>,
    return
  }
}

</mosaic_0001>

<bundles_post_ra>
// kernel: encoding_blocks.1
= control target key start
LH: loop header
LB: loop body
LE: loop exit
PB: predicated region body
PF: predicated region fallthrough
CT: control target
= control target key end

     0   :  { %s6582_s17 = smov 127   ;;  %s6583_s18 = smov 16   ;;  %v53_v12 = vlaneseq  ;;  %vm992_vm4 = vcmask 1041408   ;;  %vm997_vm6 = vcmask 1043456   ;;  %vm1002_vm9 = vcmask 1045504   ;;  %s13185_s0 = inlined_call_operand.vmem [shape: f32[4,512], index: 0, kind: input, shape index: {}]   ;;  %s13186_s1 = inlined_call_operand.vmem [shape: f32[27,512], index: 1, kind: input, shape index: {}]   ;;  %s13187_s2 = inlined_call_operand.vmem [shape: bf16[2,4,162], index: 2, kind: input, shape index: {}]   ;;  %s13188_s3 = inlined_call_operand.vmem [shape: f32[8,1], index: 3, kind: input, shape index: {}]   ;;  %s13189_s4 = inlined_call_operand.vmem [shape: f32[4,1], index: 4, kind: input, shape index: {}]   ;;  %s13190_s5 = inlined_call_operand.vmem [shape: f32[4,1], index: 5, kind: input, shape index: {}]   ;;  %s13191_s7 = inlined_call_operand.vmem [shape: f32[8,1], index: 7, kind: input, shape index: {}]   ;;  %s13192_s6 = inlined_call_operand.vmem [shape: bf16[2,4,324], index: 6, kind: input, shape index: {}]   ;;  %s13193_s10 = inlined_call_operand.vmem [shape: f32[8,512], index: 10, kind: output, shape index: {}]   ;;  %s13194_s8 = inlined_call_operand.vmem [shape: f32[4,1], index: 8, kind: input, shape index: {}]   ;;  %s13195_s9 = inlined_call_operand.vmem [shape: f32[4,1], index: 9, kind: input, shape index: {}]  }
   0x1   :  { %v6650_v0 = vld [vmem:[%s13185_s0] sm:$0x33]  ;;  %v6655_v1 = vld [vmem:[%s13185_s0 + $0x8] sm:$0x33]  ;;  %s6584_s19 = smov 15   ;;  %s6585_s20 = smov 113  }
   0x2   :  { %13537 = vst [vmem:[#allocation3_spill] sm:$0xff] %v6655_v1  ;;  %233 = vrot.lane.b32.xlu1 %v6650_v0, %s6582_s17  ;;  %86 = vrot.lane.b32.xlu0 %v6650_v0, %s6583_s18  ;;  %v6663_v2 = vcombine.high %v6655_v1, %v6655_v1  ;;  %v6667_v3 = vcombine.high %v6650_v0, %v6650_v0  ;;  %s6586_s21 = smov 17   ;;  %s6587_s22 = smov 1   ;;  %v1546_v4 = vld [vmem:[%s13185_s0 + $0x8] sm:$0xcc]  ;;  %v6766_v13 = vshrl.u32 %v53_v12, 7 }
   0x3   :  { %s6588_s23 = smov 112   ;;  %v6724_v5 = vcombine.high %v1546_v4, %v1546_v4  ;;  %s6589_s26 = smov 111   ;;  %v1545_v6 = vld [vmem:[%s13185_s0] sm:$0xcc]  ;;  %v6751_v11 = vrot.slane %v1546_v4, 2  ;;  %v7023_v63 = vand.u32 127, %v53_v12 }
   0x4   :  { %13538 = vst [vmem:[#allocation4_spill] sm:$0xff] %v6663_v2  ;;  %13539 = vst [vmem:[#allocation5_spill] sm:$0xff] %v6667_v3  ;;  %v6733_v7 = vcombine.high %v1545_v6, %v1545_v6  ;;  %v6735_v8 = vrot.slane %v1545_v6, 2  ;;  %v6775_v14 = vld [vmem:[%s13186_s1 + $0x1] ss:$8 sm:$0xf] }
   0x5   :  { %13540 = vst [vmem:[#allocation6_spill] sm:$0xff] %v6724_v5  ;;  %v6738_v9 = vrot.slane %v6724_v5, 2  ;;  %13545 = vst [vmem:[#allocation11_spill] sm:$0xff] %v6751_v11  ;;  %v6780_v15 = vld [vmem:[%s13186_s1 + $0x4] ss:$8 sm:$0xf] }
   0x6   :  { %92 = vrot.lane.b32.xlu0 %v6663_v2, %s6583_s18  ;;  %235 = vrot.lane.b32.xlu1 %v6667_v3, %s6582_s17  ;;  %13541 = vst [vmem:[#allocation7_spill] sm:$0xff] %v6733_v7  ;;  %13542 = vst [vmem:[#allocation8_spill] sm:$0xff] %v6735_v8  ;;  %v6745_v10 = vrot.slane %v6733_v7, 2  ;;  %v6783_v16 = vsub.s32 0, %v6766_v13  ;;  %v6786_v17 = vsub.s32 1, %v6766_v13  ;;  %v6789_v18 = vsub.s32 2, %v6766_v13 }
   0x7   :  { %13543 = vst [vmem:[#allocation9_spill] sm:$0xff] %v6738_v9  ;;  %13546 = vst [vmem:[#allocation12_spill] sm:$0xff] %v6766_v13  ;;  %v6792_v19 = vsub.s32 3, %v6766_v13  ;;  %v6797_v20 = vld [vmem:[%s13186_s1 + $0x22] ss:$8 sm:$0xf] }
   0x8   :  { %13544 = vst [vmem:[#allocation10_spill] sm:$0xff] %v6745_v10  ;;  %13547 = vst [vmem:[#allocation13_spill] sm:$0xff] %v6775_v14  ;;  %v6802_v21 = vld [vmem:[%s13186_s1 + $0x43] ss:$8 sm:$0xf]  ;;  %v216_v22 = vrot.slane %v6780_v15, %v6786_v17  ;;  %v212_v31 = vrot.slane %v6780_v15, %v6783_v16  ;;  %v220_v61 = vrot.slane %v6780_v15, %v6789_v18  ;;  %vm94_vm0 = vcmp.lt.s32.totalorder %v7023_v63, 16 }
   0x9   :  { %13548 = vst [vmem:[#allocation14_spill] sm:$0xff] %v6797_v20  ;;  %13549 = vst [vmem:[#allocation15_spill] sm:$0xff] %v6802_v21  ;;  %v6813_v23 = vld [vmem:[%s13186_s1 + $0x5] ss:$8 sm:$0xf]  ;;  %v224_v62 = vrot.slane %v6780_v15, %v6792_v19  ;;  %vm241_vm1 = vcmp.lt.s32.totalorder %v7023_v63, 127 }
   0xa   :  { %90 = vrot.lane.b32.xlu0 %v6655_v1, %s6583_s18  ;;  %126 = vrot.lane.b32.xlu1 %v6650_v0, %s6584_s19  ;;  %13550 = vst [vmem:[#allocation16_spill] sm:$0xff] %v6813_v23  ;;  %v6818_v24 = vld [vmem:[%s13186_s1 + $0x26] ss:$8 sm:$0xf]  ;;  %v6869_v38 = vmul.f32 %v216_v22, %v6650_v0  ;;  %v6906_v50 = vmul.f32 %v212_v31, %v6663_v2  ;;  %13553 = vst [vmem:[#allocation19_spill] sm:$0xff] %v7023_v63  ;;  %vm134_vm2 = vcmp.lt.s32.totalorder %v7023_v63, 15 }
   0xb   :  { %13551 = vst [vmem:[#allocation17_spill] sm:$0xff] %v6818_v24  ;;  %v6823_v25 = vld [vmem:[%s13186_s1 + $0x47] ss:$8 sm:$0xf]  ;;  %v7035_v58 = vmul.f32 %v224_v62, %v6655_v1  ;;  %v7040_v31 = vmul.f32 %v220_v61, %v6667_v3  ;;  %vm281_vm3 = vcmp.lt.s32.totalorder %v7023_v63, 113  ;;  %vm55_vm5 = vcmp.lt.s32.totalorder %v7023_v63, 17 }
   0xc   :  { %13552 = vst [vmem:[#allocation18_spill] sm:$0xff] %v6823_v25  ;;  %v6828_v26 = vld [vmem:[%s13186_s1 + $0x2] ss:$8 sm:$0xf]  ;;  %vm174_vm7 = vcmp.lt.s32.totalorder %v7023_v63, 1  ;;  %vm321_vm8 = vcmp.lt.s32.totalorder %v7023_v63, 112 }
   0xd   :  { %v6837_v29 = vld [vmem:[%s13186_s1 + $0x23] ss:$8 sm:$0xf]  ;;  %v6842_v30 = vld [vmem:[%s13186_s1 + $0x44] ss:$8 sm:$0xf] }
   0xe   :  { %132 = vrot.lane.b32.xlu0 %v6663_v2, %s6584_s19  ;;  %239 = vrot.lane.b32.xlu1 %v6663_v2, %s6582_s17  ;;  %v6857_v36 = vld [vmem:[%s13186_s1 + $0x6] ss:$8 sm:$0xf]  ;;  %v6862_v37 = vld [vmem:[%s13186_s1 + $0x27] ss:$8 sm:$0xf] }
   0xf   :  { %v6878_v41 = vld [vmem:[%s13186_s1 + $0x60] ss:$8 sm:$0xf]  ;;  %v6896_v47 = vld [vmem:[%s13186_s1 + $0x21] ss:$8 sm:$0xf] }
  0x10   :  { %v6883_v42 = vld [vmem:[%s13186_s1] ss:$8 sm:$0xf]  ;;  %v6901_v48 = vld [vmem:[%s13186_s1 + $0x42] ss:$8 sm:$0xf] }
  0x11   :  { %v6915_v53 = vld [vmem:[%s13186_s1 + $0x3] ss:$8 sm:$0xf]  ;;  %v6920_v54 = vld [vmem:[%s13186_s1 + $0x24] ss:$8 sm:$0xf] }
  0x12   :  { %273 = vrot.lane.b32.xlu0 %v6650_v0, %s6585_s20  ;;  %275 = vrot.lane.b32.xlu1 %v6667_v3, %s6585_s20  ;;  %v6933_v59 = vld [vmem:[%s13186_s1 + $0x45] ss:$8 sm:$0xf]  ;;  %v6938_v60 = vld [vmem:[%s13186_s1 + $0x7] ss:$8 sm:$0xf] }
  0x13   :  { %v6953_v4 = vld [vmem:[%s13186_s1 + $0x40] ss:$8 sm:$0xf]  ;;  %v6958_v6 = vld [vmem:[%s13186_s1 + $0x61] ss:$8 sm:$0xf] }
  0x14   :  { %v6411_v22 = vld [vmem:[%s13186_s1 + $0x46] ss:$8 sm:$0xf]  ;;  %13554 = vst [vmem:[#allocation20_spill] sm:$0xff] %v7035_v58  ;;  %13555 = vst [vmem:[#allocation21_spill] sm:$0xff] %v7040_v31  ;;  %v13584_v31 = vrot.slane %v6797_v20, %v6783_v16  ;;  %vm361_vm10 = vcmp.lt.s32.totalorder %v7023_v63, 111 }
  0x15   :  { %v735_v56 = vrot.slane %v6411_v22, %v6792_v19  ;;  %v727_v61 = vrot.slane %v6411_v22, %v6786_v17  ;;  %v723_v15 = vrot.slane %v6411_v22, %v6783_v16  ;;  %v731_v55 = vrot.slane %v6411_v22, %v6789_v18  ;;  %v7112_v57 = vld [vmem:[%s13186_s1 + $0x20] ss:$8 sm:$0xf]  ;;  %v7132_v51 = vld [vmem:[%s13186_s1 + $0x62] ss:$8 sm:$0xf] }
  0x16   :  { %45 = vrot.lane.b32.xlu0 %v6650_v0, %s6586_s21  ;;  %51 = vrot.lane.b32.xlu1 %v6663_v2, %s6586_s21  ;;  %13556 = vst [vmem:[#allocation22_spill] sm:$0xff] %v7112_v57  ;;  %13558 = vst [vmem:[#allocation24_spill] sm:$0xff] %v7132_v51  ;;  %v7149_v45 = vld [vmem:[%s13186_s1 + $0x4] ss:$8 sm:$0xf]  ;;  %vm1275_vm11 = vcmask 1042432  }
  0x17   :  { %v7093_v62 = vmul.f32 %v735_v56, %v6650_v0  ;;  %v7127_v56 = vld [vmem:[%s13186_s1 + $0x41] ss:$8 sm:$0xf]  ;;  %v7152_v22 = vmul.f32 %v727_v61, %v6655_v1  ;;  %v7156_v12 = vmul.f32 %v723_v15, %v6667_v3  ;;  %v7159_v52 = vmul.f32 %v731_v55, %v6663_v2  ;;  %v7177_v55 = vld [vmem:[%s13186_s1 + $0x22] ss:$8 sm:$0xf] }
  0x18   :  { %13557 = vst [vmem:[#allocation23_spill] sm:$0xff] %v7127_v56  ;;  %v7172_v15 = vld [vmem:[%s13186_s1 + $0x1] ss:$8 sm:$0xf]  ;;  %13563 = vst [vmem:[#allocation29_spill] sm:$0xff] %v7177_v55  ;;  %v1722_v33 = vrot.slane %v7149_v45, %v6786_v17  ;;  %v1718_v5 = vrot.slane %v7149_v45, %v6783_v16  ;;  %v13586_v61 = vrot.slane %v6813_v23, %v6786_v17  ;;  %vm1422_vm12 = vcmask 1040384  }
  0x19   :  { %13559 = vst [vmem:[#allocation25_spill] sm:$0xff] %v7152_v22  ;;  %13560 = vst [vmem:[#allocation26_spill] sm:$0xff] %v7156_v12  ;;  %v7194_v46 = vld [vmem:[%s13186_s1 + $0x43] ss:$8 sm:$0xf]  ;;  %vm1418_vm13 = vcmask 277504  }
  0x1a   :  { %130 = vrot.lane.b32.xlu0 %v6655_v1, %s6584_s19  ;;  %166 = vrot.lane.b32.xlu1 %v6650_v0, %s6587_s22  ;;  %13561 = vst [vmem:[#allocation27_spill] sm:$0xff] %v7159_v52  ;;  %13562 = vst [vmem:[#allocation28_spill] sm:$0xff] %v7172_v15  ;;  %v7199_v43 = vld [vmem:[%s13186_s1 + $0x5] ss:$8 sm:$0xf]  ;;  %v7273_v13 = vmul.f32 %v1722_v33, %v6735_v8  ;;  %vm4476_vm14 = vcmask 556032  }
  0x1b   :  { %13565 = vst [vmem:[#allocation31_spill] sm:$0xff] %v7194_v46  ;;  %13566 = vst [vmem:[#allocation32_spill] sm:$0xff] %v7199_v43  ;;  %v7212_v40 = vld [vmem:[%s13186_s1 + $0x26] ss:$8 sm:$0xf]  ;;  %v13596_v43 = vrot.slane %v6775_v14, %v6783_v16 }
  0x1c   :  { %13567 = vst [vmem:[#allocation33_spill] sm:$0xff] %v7212_v40  ;;  %v7217_v32 = vld [vmem:[%s13186_s1 + $0x47] ss:$8 sm:$0xf]  ;;  %13575 = vst [vmem:[#allocation41_spill] sm:$0xff] %v7273_v13 }
  0x1d   :  { %13568 = vst [vmem:[#allocation34_spill] sm:$0xff] %v7217_v32  ;;  %v7232_v28 = vld [vmem:[%s13186_s1 + $0x2] ss:$8 sm:$0xf] }
  0x1e   :  { %172 = vrot.lane.b32.xlu0 %v6663_v2, %s6587_s22  ;;  %279 = vrot.lane.b32.xlu1 %v6663_v2, %s6585_s20  ;;  %13569 = vst [vmem:[#allocation35_spill] sm:$0xff] %v7232_v28  ;;  %v7245_v39 = vld [vmem:[%s13186_s1 + $0x23] ss:$8 sm:$0xf] }
  0x1f   :  { %13570 = vst [vmem:[#allocation36_spill] sm:$0xff] %v7245_v39  ;;  %v7250_v34 = vld [vmem:[%s13186_s1 + $0x44] ss:$8 sm:$0xf]  ;;  %v13589_v39 = vrot.slane %v6802_v21, %v6792_v19 }
  0x20   :  { %13571 = vst [vmem:[#allocation37_spill] sm:$0xff] %v7250_v34  ;;  %v7265_v52 = vld [vmem:[%s13186_s1 + $0x6] ss:$8 sm:$0xf]  ;;  %v13595_v34 = vrot.slane %v6813_v23, %v6783_v16 }
  0x21   :  { %13573 = vst [vmem:[#allocation39_spill] sm:$0xff] %v7265_v52  ;;  %v7270_v12 = vld [vmem:[%s13186_s1 + $0x27] ss:$8 sm:$0xf] }
  0x22   :  { %313 = vrot.lane.b32.xlu0 %v6650_v0, %s6588_s23  ;;  %315 = vrot.lane.b32.xlu1 %v6667_v3, %s6588_s23  ;;  %13574 = vst [vmem:[#allocation40_spill] sm:$0xff] %v7270_v12  ;;  %v7284_v51 = vld [vmem:[%s13186_s1 + $0x60] ss:$8 sm:$0xf] }
  0x23   :  { %13576 = vst [vmem:[#allocation42_spill] sm:$0xff] %v7284_v51  ;;  %v7289_v56 = vld [vmem:[%s13186_s1] ss:$8 sm:$0xf] }
  0x24   :  { %13577 = vst [vmem:[#allocation43_spill] sm:$0xff] %v7289_v56  ;;  %v7305_v13 = vld [vmem:[%s13186_s1 + $0x21] ss:$8 sm:$0xf] }
  0x25   :  { %13578 = vst [vmem:[#allocation44_spill] sm:$0xff] %v7305_v13  ;;  %v13624_v13 = vrot.slane %v6842_v30, %v6789_v18 }
  0x26   :  { %49 = vrot.lane.b32.xlu0 %v6655_v1, %s6586_s21  ;;  %88 = vrot.lane.b32.xlu1 %v6667_v3, %s6583_s18 }
  0x2a   :  { %170 = vrot.lane.b32.xlu0 %v6655_v1, %s6587_s22  ;;  %237 = vrot.lane.b32.xlu1 %v6655_v1, %s6582_s17 }
  0x2e   :  { %319 = vrot.lane.b32.xlu0 %v6663_v2, %s6588_s23  ;;  %47 = vrot.lane.b32.xlu1 %v6667_v3, %s6586_s21 }
  0x32   :  { %128 = vrot.lane.b32.xlu0 %v6667_v3, %s6584_s19  ;;  %277 = vrot.lane.b32.xlu1 %v6655_v1, %s6585_s20 }
  0x36   :  { %168 = vrot.lane.b32.xlu0 %v6667_v3, %s6587_s22  ;;  %317 = vrot.lane.b32.xlu1 %v6655_v1, %s6588_s23 }
  0x3a   :  { %353 = vrot.lane.b32.xlu0 %v6650_v0, %s6589_s26  ;;  %355 = vrot.lane.b32.xlu1 %v6667_v3, %s6589_s26  ;;  %v13583_v3 = vrot.slane %v6775_v14, %v6786_v17  ;;  %v13612_v14 = vrot.slane %v6857_v36, %v6786_v17 }
  0x3e   :  { %359 = vrot.lane.b32.xlu0 %v6663_v2, %s6589_s26  ;;  %357 = vrot.lane.b32.xlu1 %v6655_v1, %s6589_s26  ;;  %v7330_v1 = vmul.f32 %v1718_v5, %v6738_v9  ;;  %v13591_v2 = vrot.slane %v6818_v24, %v6783_v16 }
  0x40   :  { %13582 = vst [vmem:[#allocation48_spill] sm:$0xff] %v7330_v1 }
  0x42   :  { %1599 = vrot.lane.b32.xlu0 %v6735_v8, %s6583_s18  ;;  %1605 = vrot.lane.b32.xlu1 %v6738_v9, %s6583_s18 }
  0x46   :  { %1739 = vrot.lane.b32.xlu0 %v6735_v8, %s6582_s17  ;;  %1741 = vrot.lane.b32.xlu1 %v6745_v10, %s6582_s17 }
  0x4a   :  { %1603 = vrot.lane.b32.xlu0 %v6751_v11, %s6583_s18  ;;  %1637 = vrot.lane.b32.xlu1 %v6735_v8, %s6584_s19 }
  0x4e   :  { %1643 = vrot.lane.b32.xlu0 %v6738_v9, %s6584_s19  ;;  %1745 = vrot.lane.b32.xlu1 %v6738_v9, %s6582_s17 }
  0x52   :  { %1777 = vrot.lane.b32.xlu0 %v6735_v8, %s6585_s20  ;;  %1779 = vrot.lane.b32.xlu1 %v6745_v10, %s6585_s20 }
  0x56   :  { %1561 = vrot.lane.b32.xlu0 %v6735_v8, %s6586_s21  ;;  %1567 = vrot.lane.b32.xlu1 %v6738_v9, %s6586_s21 }
  0x5a   :  { %1641 = vrot.lane.b32.xlu0 %v6751_v11, %s6584_s19  ;;  %1675 = vrot.lane.b32.xlu1 %v6735_v8, %s6587_s22 }
  0x5e   :  { %1681 = vrot.lane.b32.xlu0 %v6738_v9, %s6587_s22  ;;  %1783 = vrot.lane.b32.xlu1 %v6738_v9, %s6585_s20 }
  0x62   :  { %1815 = vrot.lane.b32.xlu0 %v6735_v8, %s6588_s23  ;;  %1817 = vrot.lane.b32.xlu1 %v6745_v10, %s6588_s23 }
  0x66   :  { %1565 = vrot.lane.b32.xlu0 %v6751_v11, %s6586_s21  ;;  %1601 = vrot.lane.b32.xlu1 %v6745_v10, %s6583_s18 }
  0x6a   :  { %1679 = vrot.lane.b32.xlu0 %v6751_v11, %s6587_s22  ;;  %1743 = vrot.lane.b32.xlu1 %v6751_v11, %s6582_s17 }
  0x6e   :  { %1821 = vrot.lane.b32.xlu0 %v6738_v9, %s6588_s23  ;;  %1563 = vrot.lane.b32.xlu1 %v6745_v10, %s6586_s21 }
  0x72   :  { %1639 = vrot.lane.b32.xlu0 %v6745_v10, %s6584_s19  ;;  %1781 = vrot.lane.b32.xlu1 %v6751_v11, %s6585_s20 }
  0x74   :  { %v7179_v44 = vpop.permute.xlu1 %233  ;;  %v7181_v49 = vpop.permute.xlu0 %86 }
  0x75   :  { %13564 = vst [vmem:[#allocation30_spill] sm:$0xff] %v7181_v49 }
  0x76   :  { %1677 = vrot.lane.b32.xlu0 %v6745_v10, %s6587_s22  ;;  %1819 = vrot.lane.b32.xlu1 %v6751_v11, %s6588_s23 }
  0x78   :  { %v93_v27 = vpop.permute.xlu0 %92  ;;  %v7252_v7 = vpop.permute.xlu1 %235 }
  0x79   :  { %13572 = vst [vmem:[#allocation38_spill] sm:$0xff] %v7252_v7  ;;  %v98_v22 = vsel %vm94_vm0, %v93_v27, %v7181_v49  ;;  %v244_v35 = vsel %vm241_vm1, %v7179_v44, %v7252_v7 }
  0x7a   :  { %1853 = vrot.lane.b32.xlu0 %v6735_v8, %s6589_s26  ;;  %v7310_v8 = vld [vmem:[%s13186_s1 + $0x42] ss:$8 sm:$0xf]  ;;  %1855 = vrot.lane.b32.xlu1 %v6745_v10, %s6589_s26  ;;  %v7349_v1 = vmul.f32 %v13583_v3, %v98_v22  ;;  %v7354_v58 = vmul.f32 %v13584_v31, %v98_v22  ;;  %v270_v33 = vmul.f32 %v13586_v61, %v244_v35  ;;  %v7367_v3 = vld [vmem:[%s13186_s1 + $0x3] ss:$8 sm:$0xf] }
  0x7b   :  { %13579 = vst [vmem:[#allocation45_spill] sm:$0xff] %v7310_v8  ;;  %13587 = vst [vmem:[#allocation50_spill] sm:$0xff] %v7367_v3  ;;  %v7372_v31 = vld [vmem:[%s13186_s1 + $0x24] ss:$8 sm:$0xf]  ;;  %v7387_v28 = vmul.f32 %v13589_v39, %v98_v22  ;;  %v7392_v7 = vmul.f32 %v13591_v2, %v244_v35  ;;  %v13592_v61 = vrot.slane %v6823_v25, %v6792_v19 }
  0x7c   :  { %v7325_v40 = vpop.permute.xlu0 %90  ;;  %v7327_v57 = vpop.permute.xlu1 %126  ;;  %13585 = vst [vmem:[#allocation49_spill] sm:$0xff] %v7354_v58  ;;  %13588 = vst [vmem:[#allocation51_spill] sm:$0xff] %v7372_v31  ;;  %v7409_v39 = vld [vmem:[%s13186_s1 + $0x45] ss:$8 sm:$0xf]  ;;  %v893_v52 = vrot.slane %v270_v33, 6 }
  0x7d   :  { %13580 = vst [vmem:[#allocation46_spill] sm:$0xff] %v7325_v40  ;;  %13581 = vst [vmem:[#allocation47_spill] sm:$0xff] %v7327_v57  ;;  %v7397_v32 = vmul.f32 %v13592_v61, %v244_v35  ;;  %v95_v5 = vsel %vm94_vm0, %v7325_v40, %v93_v27  ;;  %v857_v61 = vrot.slane %v7349_v1, 6  ;;  %v13599_v1 = vrot.slane %v6802_v21, %v6789_v18 }
  0x7e   :  { %1859 = vrot.lane.b32.xlu0 %v6738_v9, %s6589_s26  ;;  %1857 = vrot.lane.b32.xlu1 %v6751_v11, %s6589_s26  ;;  %13590 = vst [vmem:[#allocation52_spill] sm:$0xff] %v7387_v28  ;;  %13594 = vst [vmem:[#allocation54_spill] sm:$0xff] %v7409_v39  ;;  %v7431_v49 = vmul.f32 %v13596_v43, %v95_v5  ;;  %v7453_v43 = vld [vmem:[%s13186_s1 + $0x40] ss:$8 sm:$0xf] }
  0x7f   :  { %v7441_v22 = vmul.f32 %v13599_v1, %v95_v5  ;;  %13602 = vst [vmem:[#allocation58_spill] sm:$0xff] %v7453_v43  ;;  %v13603_v1 = vrot.slane %v6828_v26, %v6786_v17 }
  0x80   :  { %v7402_v9 = vpop.permute.xlu0 %132  ;;  %v7404_v51 = vpop.permute.xlu1 %239 }
  0x81   :  { %13593 = vst [vmem:[#allocation53_spill] sm:$0xff] %v7404_v51  ;;  %v138_v2 = vsel %vm134_vm2, %v7402_v9, %v7327_v57  ;;  %v245_v35 = vsel %vm241_vm1, %v7404_v51, %v7179_v44  ;;  %v13597_v44 = vrot.slane %v6797_v20, %v6792_v19  ;;  %13600 = vst [vmem:[#allocation56_spill] sm:$0xff] %v7441_v22 }
  0x82   :  { %v269_v57 = vmul.f32 %v13595_v34, %v245_v35  ;;  %v7448_v34 = vld [vmem:[%s13186_s1 + $0x7] ss:$8 sm:$0xf]  ;;  %v163_v33 = vmul.f32 %v13603_v1, %v138_v2  ;;  %v13605_v51 = vrot.slane %v6837_v29, %v6783_v16  ;;  %v13617_v20 = vrot.slane %v6883_v42, %v6786_v17 }
  0x83   :  { %v7436_v27 = vmul.f32 %v13597_v44, %v95_v5  ;;  %13601 = vst [vmem:[#allocation57_spill] sm:$0xff] %v7448_v34  ;;  %v13607_v44 = vrot.slane %v6818_v24, %v6792_v19  ;;  %v13609_v5 = vrot.slane %v6823_v25, %v6789_v18  ;;  %v1008_v24 = vsel %vm992_vm4, %v6869_v38, %v893_v52 }
  0x84   :  { %v7461_v58 = vpop.permute.xlu0 %273  ;;  %v7463_v23 = vpop.permute.xlu1 %275  ;;  %v7468_v21 = vmul.f32 %v13605_v51, %v138_v2  ;;  %v7487_v51 = vld [vmem:[%s13186_s1 + $0x61] ss:$8 sm:$0xf]  ;;  %v13613_v38 = vrot.slane %v6842_v30, %v6792_v19 }
  0x85   :  { %13598 = vst [vmem:[#allocation55_spill] sm:$0xff] %v7436_v27  ;;  %13604 = vst [vmem:[#allocation59_spill] sm:$0xff] %v7463_v23  ;;  %v7473_v12 = vmul.f32 %v13607_v44, %v245_v35  ;;  %v7478_v28 = vmul.f32 %v13609_v5, %v245_v35  ;;  %v284_v1 = vsel %vm281_vm3, %v7461_v58, %v7463_v23  ;;  %v892_v44 = vrot.slane %v269_v57, 6 }
  0x86   :  { %13606 = vst [vmem:[#allocation60_spill] sm:$0xff] %v7468_v21  ;;  %13611 = vst [vmem:[#allocation63_spill] sm:$0xff] %v7487_v51  ;;  %v310_v40 = vmul.f32 %v13612_v14, %v284_v1  ;;  %v7505_v52 = vmul.f32 %v13613_v38, %v138_v2  ;;  %v869_v57 = vrot.slane %v163_v33, 4  ;;  %v13614_v35 = vrot.slane %v6862_v37, %v6783_v16 }
  0x87   :  { %13608 = vst [vmem:[#allocation61_spill] sm:$0xff] %v7473_v12  ;;  %13610 = vst [vmem:[#allocation62_spill] sm:$0xff] %v7478_v28  ;;  %v13615_v38 = vrot.slane %v6878_v41, %v6792_v19  ;;  %v13618_v51 = vrot.slane %v6896_v47, %v6783_v16  ;;  %v13622_v2 = vrot.slane %v6837_v29, %v6792_v19 }
  0x88   :  { %v7510_v5 = vmul.f32 %v13614_v35, %v284_v1  ;;  %v7512_v25 = vpop.permute.xlu0 %45  ;;  %v7514_v23 = vpop.permute.xlu1 %51  ;;  %v7527_v35 = vsel %vm992_vm4, %v6906_v50, %v892_v44  ;;  %v905_v14 = vrot.slane %v310_v40, 4  ;;  %v13619_v44 = vrot.slane %v6901_v48, %v6792_v19  ;;  %v13666_v39 = vld [vmem:[#allocation53_spill] sm:$0xff] }
  0x89   :  { %v59_v33 = vsel %vm55_vm5, %v7514_v23, %v7512_v25  ;;  %v7532_v34 = vmul.f32 %v13615_v38, %v284_v1 }
  0x8a   :  { %v83_v43 = vmul.f32 %v13617_v20, %v59_v33  ;;  %v7543_v50 = vmul.f32 %v13618_v51, %v59_v33  ;;  %v7548_v1 = vmul.f32 %v13619_v44, %v59_v33  ;;  %v984_v20 = vrot.slane %v7510_v5, 2 }
  0x8b   :  { %13616 = vst [vmem:[#allocation64_spill] sm:$0xff] %v7532_v34  ;;  %v13621_v44 = vrot.slane %v6828_v26, %v6783_v16 }
  0x8c   :  { %13620 = vst [vmem:[#allocation65_spill] sm:$0xff] %v7548_v1  ;;  %v994_v34 = vsel %vm992_vm4, %v83_v43, %v857_v61  ;;  %v7554_v28 = vpop.permute.xlu0 %130  ;;  %v7556_v40 = vpop.permute.xlu1 %166  ;;  %v13626_v43 = vrot.slane %v6920_v54, %v6783_v16  ;;  %v13627_v61 = vrot.slane %v6933_v59, %v6792_v19 }
  0x8d   :  { %v135_v33 = vsel %vm134_vm2, %v7554_v28, %v7402_v9  ;;  %v999_v8 = vsel %vm997_vm6, %v994_v34, %v869_v57  ;;  %v1726_v57 = vrot.slane %v7149_v45, %v6789_v18  ;;  %v13629_v34 = vrot.slane %v6862_v37, %v6792_v19 }
  0x8e   :  { %v7575_v51 = vmul.f32 %v13621_v44, %v135_v33  ;;  %v7580_v38 = vmul.f32 %v13622_v2, %v135_v33  ;;  %v7590_v44 = vsel %vm997_vm6, %v1008_v24, %v905_v14  ;;  %v7595_v2 = vmul.f32 %v13624_v13, %v135_v33 }
  0x8f   :  { %v13625_v14 = vrot.slane %v6915_v53, %v6786_v17 }
  0x90   :  { %13623 = vst [vmem:[#allocation66_spill] sm:$0xff] %v7580_v38  ;;  %v7599_v22 = vpop.permute.xlu0 %172  ;;  %v7601_v5 = vpop.permute.xlu1 %279  ;;  %v13633_v38 = vrot.slane %v6650_v0, 6  ;;  %v7659_v0 = vmul.f32 %v1726_v57, %v6745_v10 }
  0x91   :  { %v178_v24 = vsel %vm174_vm7, %v7599_v22, %v7556_v40  ;;  %v285_v13 = vsel %vm281_vm3, %v7601_v5, %v7461_v58  ;;  %v13628_v58 = vrot.slane %v6857_v36, %v6783_v16 }
  0x92   :  { %v203_v33 = vmul.f32 %v13625_v14, %v178_v24  ;;  %v497_v9 = vmul.f32 %v13626_v43, %v178_v24  ;;  %v716_v56 = vmul.f32 %v13627_v61, %v178_v24  ;;  %v7632_v31 = vmul.f32 %v13629_v34, %v285_v13  ;;  %13635 = vst [vmem:[#allocation69_spill] sm:$0xff] %v7659_v0 }
  0x93   :  { %v309_v3 = vmul.f32 %v13628_v58, %v285_v13  ;;  %v13631_v14 = vrot.slane %v6878_v41, %v6789_v18  ;;  %v1730_v61 = vrot.slane %v7149_v45, %v6792_v19  ;;  %v13634_v45 = vrot.slane %v7392_v7, 4 }
  0x94   :  { %13630 = vst [vmem:[#allocation67_spill] sm:$0xff] %v7632_v31  ;;  %v881_v24 = vrot.slane %v203_v33, 2  ;;  %v1031_v58 = vsel %vm992_vm4, %v497_v9, %v13633_v38  ;;  %v1086_v12 = vrot.slane %v716_v56, 6  ;;  %v7646_v34 = vpop.permute.xlu0 %313  ;;  %v7648_v21 = vpop.permute.xlu1 %315  ;;  %v13637_v9 = vrot.slane %v6958_v6, %v6792_v19  ;;  %v13674_v31 = vld [vmem:[#allocation17_spill] sm:$0xff] }
  0x95   :  { %v7637_v1 = vmul.f32 %v13631_v14, %v285_v13  ;;  %v904_v27 = vrot.slane %v309_v3, 4  ;;  %v324_v14 = vsel %vm321_vm8, %v7646_v34, %v7648_v21  ;;  %v1035_v33 = vsel %vm997_vm6, %v1031_v58, %v13634_v45 }
  0x96   :  { %v1154_v56 = vsel %vm992_vm4, %v7505_v52, %v1086_v12  ;;  %v13636_v3 = vrot.slane %v6938_v60, %v6786_v17  ;;  %v7669_v43 = vmul.f32 %v13637_v9, %v324_v14  ;;  %v7672_v13 = vmul.f32 %v1730_v61, %v6751_v11 }
  0x97   :  { %13632 = vst [vmem:[#allocation68_spill] sm:$0xff] %v7637_v1  ;;  %v13640_v7 = vrot.slane %v6953_v4, %v6783_v16  ;;  %v7680_v58 = vsel %vm1002_vm9, %v999_v8, %v881_v24  ;;  %v7684_v12 = vsel %vm997_vm6, %v7527_v35, %v904_v27  ;;  %v13642_v52 = vrot.slane %v7093_v62, 4  ;;  %v13646_v62 = vld [vmem:[#allocation46_spill] sm:$0xff] }
  0x98   :  { %v350_v38 = vmul.f32 %v13636_v3, %v324_v14  ;;  %13638 = vst [vmem:[#allocation70_spill] sm:$0xff] %v7669_v43  ;;  %13639 = vst [vmem:[#allocation71_spill] sm:$0xff] %v7672_v13  ;;  %v50_v9 = vpop.permute.xlu0 %49  ;;  %v89_v10 = vpop.permute.xlu1 %88  ;;  %v7691_v11 = vsel %vm1002_vm9, %v1035_v33, %v984_v20  ;;  %v13647_v24 = vld [vmem:[#allocation30_spill] sm:$0xff] }
  0x99   :  { %v7677_v57 = vmul.f32 %v13640_v7, %v324_v14  ;;  %13641 = vst [vmem:[#allocation72_spill] sm:$0xff] %v7680_v58  ;;  %v1158_v45 = vsel %vm997_vm6, %v1154_v56, %v13642_v52  ;;  %13643 = vst [vmem:[#allocation73_spill] sm:$0xff] %v7691_v11  ;;  %v13644_v14 = vrot.slane %v7397_v32, 2  ;;  %v56_v27 = vsel %vm55_vm5, %v50_v9, %v7514_v23 }
  0x9a   :  { %v917_v3 = vrot.slane %v350_v38, 2  ;;  %v96_v35 = vsel %vm94_vm0, %v89_v10, %v13646_v62  ;;  %v97_v56 = vsel %vm94_vm0, %v13647_v24, %v89_v10  ;;  %v13649_v32 = vrot.slane %v6883_v42, %v6783_v16 }
  0x9b   :  { %v7696_v8 = vsel %vm1002_vm9, %v1158_v45, %v13644_v14  ;;  %v13650_v7 = vrot.slane %v6896_v47, %v6792_v19  ;;  %v13651_v23 = vrot.slane %v6901_v48, %v6789_v18  ;;  %v13653_v14 = vld [vmem:[#allocation13_spill] sm:$0xff] }
  0x9c   :  { %13645 = vst [vmem:[#allocation74_spill] sm:$0xff] %v7696_v8  ;;  %v82_v38 = vmul.f32 %v13649_v32, %v56_v27  ;;  %v13654_v10 = vrot.slane %v13653_v14, %v6789_v18  ;;  %v13655_v24 = vrot.slane %v13653_v14, %v6792_v19  ;;  %v13656_v32 = vld [vmem:[#allocation14_spill] sm:$0xff]  ;;  %v13664_v14 = vrot.slane %v7431_v49, 6  ;;  %v7754_v1 = vpop.permute.xlu0 %170  ;;  %v238_v43 = vpop.permute.xlu1 %237 }
  0x9d   :  { %v7715_v52 = vmul.f32 %v13650_v7, %v56_v27  ;;  %v7720_v45 = vmul.f32 %v13651_v23, %v56_v27  ;;  %v13657_v61 = vrot.slane %v13656_v32, %v6786_v17  ;;  %v13659_v13 = vrot.slane %v13656_v32, %v6789_v18  ;;  %v13661_v23 = vld [vmem:[#allocation15_spill] sm:$0xff] }
  0x9e   :  { %v7725_v62 = vmul.f32 %v13654_v10, %v97_v56  ;;  %v7730_v33 = vmul.f32 %v13655_v24, %v96_v35  ;;  %v13662_v0 = vrot.slane %v13661_v23, %v6783_v16  ;;  %v7751_v24 = vsel %vm992_vm4, %v82_v38, %v13664_v14  ;;  %v13670_v38 = vld [vmem:[#allocation38_spill] sm:$0xff] }
  0x9f   :  { %13652 = vst [vmem:[#allocation46_spill] sm:$0xff] %v7720_v45  ;;  %v7735_v7 = vmul.f32 %v13657_v61, %v97_v56  ;;  %v7740_v27 = vmul.f32 %v13659_v13, %v96_v35  ;;  %v13665_v32 = vrot.slane %v13661_v23, %v6786_v17  ;;  %v175_v13 = vsel %vm174_vm7, %v7754_v1, %v7599_v22  ;;  %v13671_v45 = vld [vmem:[#allocation16_spill] sm:$0xff] }
  0xa0   :  { %v7745_v10 = vmul.f32 %v13662_v0, %v97_v56  ;;  %v858_v56 = vrot.slane %v7725_v62, 6  ;;  %v859_v49 = vrot.slane %v7730_v33, 6  ;;  %v13667_v62 = vrot.slane %v6915_v53, %v6783_v16  ;;  %v7805_v11 = vpop.permute.xlu0 %319 }
  0xa1   :  { %13658 = vst [vmem:[#allocation30_spill] sm:$0xff] %v7735_v7  ;;  %13660 = vst [vmem:[#allocation13_spill] sm:$0xff] %v7740_v27  ;;  %v7761_v0 = vmul.f32 %v13665_v32, %v96_v35  ;;  %v242_v35 = vsel %vm241_vm1, %v238_v43, %v13666_v39  ;;  %v13668_v33 = vrot.slane %v6920_v54, %v6792_v19 }
  0xa2   :  { %13663 = vst [vmem:[#allocation14_spill] sm:$0xff] %v7745_v10  ;;  %v7778_v23 = vmul.f32 %v13667_v62, %v175_v13  ;;  %v13669_v61 = vrot.slane %v6933_v59, %v6789_v18  ;;  %v243_v22 = vsel %vm241_vm1, %v13670_v38, %v238_v43  ;;  %v13672_v39 = vrot.slane %v13671_v45, %v6789_v18  ;;  %v48_v43 = vpop.permute.xlu1 %47 }
  0xa3   :  { %v500_v32 = vmul.f32 %v13668_v33, %v175_v13  ;;  %v13673_v62 = vrot.slane %v13671_v45, %v6792_v19  ;;  %v13675_v27 = vrot.slane %v13674_v31, %v6786_v17  ;;  %v13677_v45 = vld [vmem:[#allocation18_spill] sm:$0xff] }
  0xa4   :  { %v715_v14 = vmul.f32 %v13669_v61, %v175_v13  ;;  %v271_v10 = vmul.f32 %v13672_v39, %v243_v22  ;;  %v13676_v61 = vrot.slane %v13674_v31, %v6789_v18  ;;  %v13681_v31 = vrot.slane %v13677_v45, %v6786_v17 }
  0xa5   :  { %v272_v8 = vmul.f32 %v13673_v62, %v242_v35  ;;  %v7798_v33 = vmul.f32 %v13675_v27, %v243_v22  ;;  %v13678_v62 = vrot.slane %v13677_v45, %v6783_v16  ;;  %v13679_v27 = vld [vmem:[#allocation4_spill] sm:$0xff] }
  0xa6   :  { %v7803_v13 = vmul.f32 %v13676_v61, %v242_v35  ;;  %v1085_v20 = vrot.slane %v715_v14, 6  ;;  %v13680_v7 = vrot.slane %v13679_v27, 6  ;;  %v7822_v61 = vmul.f32 %v13681_v31, %v242_v35  ;;  %v13685_v35 = vld [vmem:[#allocation20_spill] sm:$0xff]  ;;  %v278_v45 = vpop.permute.xlu1 %277 }
  0xa7   :  { %v7812_v46 = vmul.f32 %v13678_v62, %v243_v22  ;;  %v894_v15 = vrot.slane %v271_v10, 6  ;;  %v895_v38 = vrot.slane %v272_v8, 6  ;;  %v7832_v62 = vsel %vm1002_vm9, %v7590_v44, %v917_v3 }
  0xa8   :  { %v7817_v55 = vsel %vm992_vm4, %v500_v32, %v13680_v7  ;;  %v7826_v14 = vsel %vm992_vm4, %v7595_v2, %v1085_v20  ;;  %13683 = vst [vmem:[#allocation53_spill] sm:$0xff] %v7832_v62  ;;  %v13684_v7 = vld [vmem:[#allocation21_spill] sm:$0xff]  ;;  %v7845_v2 = vpack.c.bf16 %v7832_v62, %v7680_v58  ;;  %v129_v20 = vpop.permute.xlu0 %128  ;;  %v57_v44 = vsel %vm55_vm5, %v48_v43, %v50_v9 }
  0xa9   :  { %13682 = vst [vmem:[#allocation15_spill] sm:$0xff] %v7826_v14  ;;  %v7836_v32 = vsel %vm992_vm4, %v13684_v7, %v894_v15  ;;  %v7840_v10 = vsel %vm992_vm4, %v13685_v35, %v895_v38  ;;  %v325_v15 = vsel %vm321_vm8, %v7805_v11, %v7646_v34  ;;  %v58_v3 = vsel %vm55_vm5, %v7512_v25, %v48_v43 }
  0xaa   :  { %13686 = vst [vmem:[#allocation38_spill] sm:$0xff] %v7845_v2  ;;  %1435 = vmatprep.subr.bf16.mxu0 %v7845_v2  ;;  %v13687_v38 = vrot.slane %v6938_v60, %v6783_v16  ;;  %v13688_v7 = vrot.slane %v6958_v6, %v6789_v18  ;;  %v13690_v34 = vrot.slane %v6883_v42, %v6789_v18  ;;  %v13719_v2 = vld [vmem:[#allocation5_spill] sm:$0xff] }
  0xab   :  { %v136_v25 = vsel %vm134_vm2, %v129_v20, %v7554_v28  ;;  %v13691_v43 = vrot.slane %v6883_v42, %v6792_v19  ;;  %v13695_v28 = vrot.slane %v6953_v4, %v6792_v19  ;;  %v13696_v62 = vrot.slane %v6901_v48, %v6786_v17 }
  0xac   :  { %v7861_v31 = vmul.f32 %v13687_v38, %v325_v15  ;;  %v7866_v35 = vmul.f32 %v13688_v7, %v325_v15  ;;  %v84_v9 = vmul.f32 %v13690_v34, %v58_v3  ;;  %v13692_v38 = vrot.slane %v6896_v47, %v6786_v17 }
  0xad   :  { %v85_v8 = vmul.f32 %v13691_v43, %v57_v44  ;;  %v13693_v7 = vrot.slane %v6896_v47, %v6789_v18  ;;  %v13694_v34 = vrot.slane %v6901_v48, %v6783_v16  ;;  %v7895_v42 = vmul.f32 %v13695_v28, %v325_v15  ;;  %v169_v15 = vpop.permute.xlu0 %168  ;;  %v13697_v43 = vld [vmem:[#allocation47_spill] sm:$0xff] }
  0xae   :  { %13689 = vst [vmem:[#allocation16_spill] sm:$0xff] %v7866_v35  ;;  %v7880_v27 = vmul.f32 %v13692_v38, %v58_v3  ;;  %v7902_v47 = vmul.f32 %v13696_v62, %v57_v44  ;;  %v137_v38 = vsel %vm134_vm2, %v13697_v43, %v129_v20  ;;  %v13698_v48 = vrot.slane %v6828_v26, %v6792_v19 }
  0xaf   :  { %v7885_v22 = vmul.f32 %v13693_v7, %v57_v44  ;;  %v7890_v39 = vmul.f32 %v13694_v34, %v58_v3  ;;  %v7907_v3 = vsel %vm992_vm4, %v84_v9, %v858_v56  ;;  %v7910_v34 = vsel %vm992_vm4, %v85_v8, %v859_v49  ;;  %v318_v9 = vpop.permute.xlu1 %317 }
  0xb0   :  { %v7919_v62 = vmul.f32 %v13698_v48, %v136_v25  ;;  %v13699_v44 = vrot.slane %v6837_v29, %v6789_v18  ;;  %v13700_v8 = vrot.slane %v6828_v26, %v6789_v18  ;;  %v13701_v20 = vrot.slane %v6837_v29, %v6786_v17 }
  0xb1   :  { %v13702_v48 = vrot.slane %v6842_v30, %v6783_v16  ;;  %v282_v26 = vsel %vm281_vm3, %v278_v45, %v7601_v5  ;;  %v13715_v5 = vrot.slane %v6920_v54, %v6786_v17 }
  0xb2   :  { %v7924_v56 = vmul.f32 %v13699_v44, %v136_v25  ;;  %v7930_v28 = vmul.f32 %v13700_v8, %v137_v38  ;;  %v7935_v43 = vmul.f32 %v13701_v20, %v137_v38  ;;  %v13703_v44 = vrot.slane %v6842_v30, %v6786_v17  ;;  %v13704_v8 = vld [vmem:[#allocation59_spill] sm:$0xff] }
  0xb3   :  { %v686_v58 = vmul.f32 %v13702_v48, %v137_v38  ;;  %v283_v29 = vsel %vm281_vm3, %v13704_v8, %v278_v45  ;;  %v13705_v30 = vrot.slane %v6857_v36, %v6789_v18  ;;  %v13706_v48 = vrot.slane %v6857_v36, %v6792_v19 }
  0xb4   :  { %v687_v7 = vmul.f32 %v13703_v44, %v136_v25  ;;  %v13707_v45 = vrot.slane %v6862_v37, %v6786_v17  ;;  %v13708_v38 = vrot.slane %v6862_v37, %v6789_v18  ;;  %v13711_v36 = vrot.slane %v6878_v41, %v6786_v17 }
  0xb5   :  { %v7956_v25 = vmul.f32 %v13705_v30, %v283_v29  ;;  %v7961_v44 = vmul.f32 %v13706_v48, %v282_v26  ;;  %v13709_v30 = vrot.slane %v6878_v41, %v6783_v16  ;;  %v177_v37 = vsel %vm174_vm7, %v7556_v40, %v169_v15 }
  0xb6   :  { %v7967_v8 = vmul.f32 %v13707_v45, %v283_v29  ;;  %v7972_v20 = vmul.f32 %v13708_v38, %v282_v26  ;;  %v7982_v48 = vmul.f32 %v13711_v36, %v282_v26  ;;  %v176_v45 = vsel %vm174_vm7, %v169_v15, %v7754_v1  ;;  %v354_v38 = vpop.permute.xlu0 %353  ;;  %v356_v1 = vpop.permute.xlu1 %355 }
  0xb7   :  { %v7977_v49 = vmul.f32 %v13709_v30, %v283_v29  ;;  %v13713_v41 = vrot.slane %v6915_v53, %v6789_v18  ;;  %v13714_v30 = vrot.slane %v6915_v53, %v6792_v19  ;;  %v498_v40 = vmul.f32 %v13715_v5, %v177_v37 }
  0xb8   :  { %13712 = vst [vmem:[#allocation18_spill] sm:$0xff] %v7982_v48  ;;  %v13716_v15 = vrot.slane %v6920_v54, %v6789_v18  ;;  %v13717_v29 = vrot.slane %v6933_v59, %v6783_v16  ;;  %v322_v5 = vsel %vm321_vm8, %v318_v9, %v7805_v11  ;;  %v323_v54 = vsel %vm321_vm8, %v7648_v21, %v318_v9 }
  0xb9   :  { %13710 = vst [vmem:[#allocation17_spill] sm:$0xff] %v7977_v49  ;;  %v7996_v26 = vmul.f32 %v13713_v41, %v177_v37  ;;  %v8001_v36 = vmul.f32 %v13714_v30, %v176_v45  ;;  %v13718_v41 = vrot.slane %v6933_v59, %v6786_v17  ;;  %v13723_v11 = vrot.slane %v6938_v60, %v6789_v18 }
  0xba   :  { %v499_v35 = vmul.f32 %v13716_v15, %v176_v45  ;;  %v713_v49 = vmul.f32 %v13717_v29, %v177_v37  ;;  %v13720_v37 = vrot.slane %v13719_v2, 6  ;;  %v13724_v21 = vrot.slane %v6938_v60, %v6792_v19 }
  0xbb   :  { %v714_v14 = vmul.f32 %v13718_v41, %v176_v45  ;;  %v883_v15 = vrot.slane %v8001_v36, 2  ;;  %v13721_v41 = vld [vmem:[#allocation3_spill] sm:$0xff]  ;;  %v8037_v48 = vmul.f32 %v13723_v11, %v323_v54  ;;  %v13725_v2 = vrot.slane %v6953_v4, %v6786_v17 }
  0xbc   :  { %v8027_v29 = vsel %vm992_vm4, %v498_v40, %v13720_v37  ;;  %v1083_v59 = vrot.slane %v713_v49, 6  ;;  %v13722_v53 = vrot.slane %v13721_v41, 6  ;;  %v352_v9 = vmul.f32 %v13724_v21, %v322_v5  ;;  %v360_v41 = vpop.permute.xlu0 %359 }
  0xbd   :  { %v1084_v45 = vrot.slane %v714_v14, 6  ;;  %v579_v36 = vmul.f32 %v13725_v2, %v323_v54  ;;  %v13727_v40 = vrot.slane %v6958_v6, %v6783_v16  ;;  %v13729_v60 = vrot.slane %v6958_v6, %v6786_v17  ;;  %v358_v6 = vpop.permute.xlu1 %357 }
  0xbe   :  { %v8032_v30 = vsel %vm992_vm4, %v499_v35, %v13722_v53  ;;  %v8046_v14 = vsel %vm992_vm4, %v686_v58, %v1083_v59  ;;  %v13726_v35 = vrot.slane %v6953_v4, %v6789_v18  ;;  %v918_v58 = vrot.slane %v8037_v48, 2 }
  0xbf   :  { %v8056_v53 = vmul.f32 %v13727_v40, %v323_v54  ;;  %v8061_v37 = vmul.f32 %v13729_v60, %v322_v5  ;;  %v8064_v11 = vsel %vm992_vm4, %v687_v7, %v1084_v45  ;;  %v13730_v4 = vrot.slane %v7575_v51, 4  ;;  %v13740_v60 = vld [vmem:[#allocation24_spill] sm:$0xff] }
  0xc0   :  { %v8051_v49 = vmul.f32 %v13726_v35, %v322_v5  ;;  %v13731_v21 = vrot.slane %v7861_v31, 2  ;;  %v919_v5 = vrot.slane %v352_v9, 2  ;;  %v13733_v7 = vrot.slane %v7778_v23, 2  ;;  %v13736_v31 = vld [vmem:[#allocation22_spill] sm:$0xff]  ;;  %v13738_v35 = vld [vmem:[#allocation23_spill] sm:$0xff] }
  0xc1   :  { %13728 = vst [vmem:[#allocation4_spill] sm:$0xff] %v8056_v53  ;;  %v998_v59 = vsel %vm997_vm6, %v7751_v24, %v13730_v4  ;;  %v364_v51 = vsel %vm361_vm10, %v354_v38, %v356_v1  ;;  %v13739_v9 = vrot.slane %v13738_v35, %v6783_v16  ;;  %v13741_v23 = vrot.slane %v13740_v60, %v6792_v19 }
  0xc2   :  { %v8075_v54 = vsel %vm1002_vm9, %v7684_v12, %v13731_v21  ;;  %v8081_v45 = vsel %vm1002_vm9, %v998_v59, %v13733_v7  ;;  %v13737_v12 = vrot.slane %v13736_v31, %v6786_v17  ;;  %v365_v21 = vsel %vm361_vm10, %v360_v41, %v354_v38 }
  0xc3   :  { %13732 = vst [vmem:[#allocation21_spill] sm:$0xff] %v8075_v54  ;;  %13734 = vst [vmem:[#allocation20_spill] sm:$0xff] %v8081_v45  ;;  %v8087_v24 = vpack.c.bf16 %v8075_v54, %v8081_v45  ;;  %v605_v40 = vmul.f32 %v13739_v9, %v364_v51  ;;  %v8098_v4 = vmul.f32 %v13741_v23, %v364_v51  ;;  %v13742_v9 = vrot.slane %v7880_v27, 6  ;;  %v8145_v45 = vpop.permute.xlu1 %1605 }
  0xc4   :  { %v390_v48 = vmul.f32 %v13737_v12, %v364_v51  ;;  %v362_v7 = vsel %vm361_vm10, %v358_v6, %v360_v41  ;;  %v363_v12 = vsel %vm361_vm10, %v356_v1, %v358_v6  ;;  %v13743_v51 = vrot.slane %v13736_v31, %v6783_v16 }
  0xc5   :  { %13735 = vst [vmem:[#allocation47_spill] sm:$0xff] %v8087_v24  ;;  %1436 = vmatpush1.bf16.msra.mxu0 %v8087_v24  ;;  %v1047_v54 = vrot.slane %v605_v40, 6  ;;  %v13744_v59 = vrot.slane %v7919_v62, 4  ;;  %v13745_v41 = vrot.slane %v13738_v35, %v6792_v19  ;;  %v13746_v6 = vrot.slane %v13740_v60, %v6789_v18 }
  0xc6   :  { %v1020_v2 = vsel %vm992_vm4, %v390_v48, %v13742_v9  ;;  %v389_v23 = vmul.f32 %v13743_v51, %v365_v21  ;;  %v13747_v48 = vrot.slane %v13736_v31, %v6789_v18  ;;  %v13748_v9 = vrot.slane %v13736_v31, %v6792_v19  ;;  %v8132_v51 = vpop.permute.xlu0 %1599 }
  0xc7   :  { %v1001_v38 = vsel %vm997_vm6, %v7910_v34, %v13744_v59  ;;  %v608_v1 = vmul.f32 %v13745_v41, %v365_v21  ;;  %v8124_v27 = vmul.f32 %v13746_v6, %v365_v21  ;;  %13749 = vst [vmem:[#allocation59_spill] sm:$0xff] %v8132_v51  ;;  %v8137_v59 = vsel %vm992_vm4, %v7677_v57, %v1047_v54 }
  0xc8   :  { %v391_v40 = vmul.f32 %v13747_v48, %v363_v12  ;;  %v392_v62 = vmul.f32 %v13748_v9, %v362_v7  ;;  %v13750_v21 = vrot.slane %v13738_v35, %v6786_v17  ;;  %v13751_v6 = vrot.slane %v13738_v35, %v6789_v18  ;;  %v13786_v35 = vld [vmem:[#allocation60_spill] sm:$0xff] }
  0xc9   :  { %v13752_v31 = vrot.slane %v7543_v50, 6  ;;  %v1050_v24 = vrot.slane %v608_v1, 6  ;;  %v13753_v34 = vrot.slane %v13740_v60, %v6783_v16  ;;  %v13754_v54 = vrot.slane %v13740_v60, %v6786_v17 }
  0xca   :  { %v606_v41 = vmul.f32 %v13750_v21, %v363_v12  ;;  %v607_v48 = vmul.f32 %v13751_v6, %v362_v7  ;;  %v13755_v6 = vrot.slane %v7885_v22, 6  ;;  %v13756_v50 = vrot.slane %v7715_v52, 6 }
  0xcb   :  { %v1019_v9 = vsel %vm992_vm4, %v389_v23, %v13752_v31  ;;  %v8153_v57 = vmul.f32 %v13753_v34, %v363_v12  ;;  %v8158_v21 = vmul.f32 %v13754_v54, %v362_v7  ;;  %v1142_v12 = vsel %vm992_vm4, %v7895_v42, %v1050_v24 }
  0xcc   :  { %v1021_v53 = vsel %vm992_vm4, %v391_v40, %v13755_v6  ;;  %v1022_v23 = vsel %vm992_vm4, %v392_v62, %v13756_v50  ;;  %v1048_v1 = vrot.slane %v606_v41, 6  ;;  %v1049_v34 = vrot.slane %v607_v48, 6  ;;  %v8218_v6 = vpop.permute.xlu1 %1741 }
  0xcd   :  { %v8171_v60 = vsel %vm1002_vm9, %v1001_v38, %v883_v15  ;;  %v13757_v40 = vrot.slane %v7961_v44, 4  ;;  %v13758_v62 = vrot.slane %v7930_v28, 4  ;;  %v13759_v15 = vrot.slane %v7996_v26, 2  ;;  %v8199_v28 = vpop.permute.xlu0 %1739  ;;  %13767 = vst [vmem:[#allocation22_spill] sm:$0xff] %v8218_v6 }
  0xce   :  { %v1140_v22 = vsel %vm992_vm4, %v579_v36, %v1048_v1  ;;  %v13760_v36 = vrot.slane %v7956_v25, 4  ;;  %v8222_v50 = vsel %vm992_vm4, %v8051_v49, %v1049_v34  ;;  %v13768_v1 = vld [vmem:[#allocation30_spill] sm:$0xff]  ;;  %v13787_v31 = vrot.slane %v13786_v35, 2 }
  0xcf   :  { %v1014_v52 = vsel %vm997_vm6, %v7840_v10, %v13757_v40  ;;  %v1000_v42 = vsel %vm997_vm6, %v7907_v3, %v13758_v62  ;;  %v1610_v10 = vsel %vm94_vm0, %v8145_v45, %v8132_v51  ;;  %v13769_v40 = vrot.slane %v13768_v1, 4  ;;  %v13828_v51 = vld [vmem:[#allocation26_spill] sm:$0xff] }
  0xd0   :  { %v8184_v24 = vsel %vm1002_vm9, %v1014_v52, %v919_v5  ;;  %v8189_v38 = vsel %vm1002_vm9, %v1000_v42, %v13759_v15  ;;  %v1013_v44 = vsel %vm997_vm6, %v7836_v32, %v13760_v36  ;;  %v13762_v5 = vld [vmem:[#allocation28_spill] sm:$0xff]  ;;  %v13764_v32 = vld [vmem:[#allocation29_spill] sm:$0xff]  ;;  %v13770_v62 = vrot.slane %v7798_v33, 4  ;;  %v13771_v15 = vld [vmem:[#allocation31_spill] sm:$0xff] }
  0xd1   :  { %v8203_v3 = vpack.c.bf16 %v8184_v24, %v8171_v60  ;;  %v8206_v26 = vsel %vm1002_vm9, %v1013_v44, %v918_v58  ;;  %v13763_v25 = vrot.slane %v13762_v5, %v6786_v17  ;;  %v13765_v48 = vrot.slane %v13764_v32, %v6783_v16 }
  0xd2   :  { %13761 = vst [vmem:[#allocation5_spill] sm:$0xff] %v8206_v26  ;;  %v8226_v58 = vpack.c.bf16 %v8206_v26, %v8189_v38  ;;  %v1024_v52 = vsel %vm997_vm6, %v1020_v2, %v13769_v40  ;;  %v1036_v42 = vsel %vm997_vm6, %v8027_v29, %v13770_v62  ;;  %v13772_v36 = vrot.slane %v13771_v15, %v6792_v19  ;;  %v13778_v40 = vld [vmem:[#allocation32_spill] sm:$0xff] }
  0xd3   :  { %v8211_v41 = vmul.f32 %v13763_v25, %v1610_v10  ;;  %v8216_v54 = vmul.f32 %v13765_v48, %v1610_v10  ;;  %1476 = vmatprep.subr.bf16.mxu1 %v8203_v3  ;;  %v13774_v44 = vrot.slane %v7935_v43, 2  ;;  %v13775_v2 = vrot.slane %v7967_v8, 2  ;;  %v13776_v48 = vld [vmem:[#allocation49_spill] sm:$0xff] }
  0xd4   :  { %v8239_v49 = vmul.f32 %v13772_v36, %v1610_v10  ;;  %1477 = vmatpush1.bf16.msra.mxu1 %v8226_v58  ;;  %v1749_v43 = vsel %vm241_vm1, %v8199_v28, %v8218_v6  ;;  %v13777_v1 = vrot.slane %v13776_v48, 4 }
  0xd5   :  { %13766 = vst [vmem:[#allocation3_spill] sm:$0xff] %v8216_v54  ;;  %v8245_v25 = vsel %vm1002_vm9, %v1024_v52, %v13774_v44  ;;  %v8250_v33 = vsel %vm1002_vm9, %v1036_v42, %v13775_v2  ;;  %v13779_v52 = vrot.slane %v13778_v40, %v6786_v17  ;;  %v13780_v42 = vld [vmem:[#allocation33_spill] sm:$0xff]  ;;  %v13783_v2 = vld [vmem:[#allocation34_spill] sm:$0xff] }
  0xd6   :  { %13773 = vst [vmem:[#allocation23_spill] sm:$0xff] %v8239_v49  ;;  %v8256_v10 = vpack.c.bf16 %v8250_v33, %v8245_v25  ;;  %v1023_v8 = vsel %vm997_vm6, %v1019_v9, %v13777_v1  ;;  %v13781_v36 = vrot.slane %v13780_v42, %v6783_v16  ;;  %v13784_v29 = vrot.slane %v13783_v2, %v6792_v19  ;;  %v13789_v9 = vld [vmem:[#allocation73_spill] sm:$0xff]  ;;  %v13842_v49 = vld [vmem:[#allocation15_spill] sm:$0xff] }
  0xd7   :  { %v1774_v62 = vmul.f32 %v13779_v52, %v1749_v43  ;;  %v8281_v48 = vsel %vm1002_vm9, %v1023_v8, %v13787_v31  ;;  %v13790_v52 = vld [vmem:[#allocation55_spill] sm:$0xff]  ;;  %v13792_v54 = vld [vmem:[#allocation61_spill] sm:$0xff]  ;;  %v8298_v8 = vpop.permute.xlu0 %1603 }
  0xd8   :  { %v8271_v44 = vmul.f32 %v13781_v36, %v1749_v43  ;;  %v8276_v34 = vmul.f32 %v13784_v29, %v1749_v43  ;;  %13788 = vst [vmem:[#allocation49_spill] sm:$0xff] %v8281_v48  ;;  %1437 = vmatprep.subr.bf16.mxu0 %v8256_v10  ;;  %v8286_v1 = vpack.c.bf16 %v13789_v9, %v8281_v48  ;;  %v13791_v7 = vrot.slane %v13790_v52, 4  ;;  %v13794_v43 = vld [vmem:[#allocation13_spill] sm:$0xff]  ;;  %v13797_v48 = vld [vmem:[#allocation66_spill] sm:$0xff] }
  0xd9   :  { %v13793_v6 = vrot.slane %v13792_v54, 4  ;;  %v13795_v35 = vrot.slane %v13794_v43, 4  ;;  %13796 = vst [vmem:[#allocation33_spill] sm:$0xff] %v8298_v8  ;;  %v2374_v26 = vrot.slane %v1774_v62, 6  ;;  %v13798_v52 = vrot.slane %v13797_v48, 2 }
  0xda   :  { %13782 = vst [vmem:[#allocation24_spill] sm:$0xff] %v8271_v44  ;;  %13785 = vst [vmem:[#allocation30_spill] sm:$0xff] %v8276_v34  ;;  %v1026_v36 = vsel %vm997_vm6, %v1022_v23, %v13791_v7  ;;  %v8307_v7 = vpop.permute.xlu1 %1637  ;;  %1438 = vmatpush1.bf16.msra.mxu0 %v8286_v1  ;;  %v13803_v43 = vrot.slane %v7803_v13, 4  ;;  %v13806_v13 = vrot.slane %v7761_v0, 2  ;;  %v1607_v0 = vsel %vm94_vm0, %v8298_v8, %v8145_v45 }
  0xdb   :  { %v1038_v29 = vsel %vm997_vm6, %v7817_v55, %v13793_v6  ;;  %v1025_v31 = vsel %vm997_vm6, %v1021_v53, %v13795_v35  ;;  %v8305_v23 = vsel %vm1002_vm9, %v1026_v36, %v13798_v52  ;;  %13799 = vst [vmem:[#allocation34_spill] sm:$0xff] %v8307_v7  ;;  %v13800_v55 = vld [vmem:[#allocation67_spill] sm:$0xff]  ;;  %v13802_v6 = vrot.slane %v7924_v56, 2 }
  0xdc   :  { %v13801_v54 = vrot.slane %v13800_v55, 2  ;;  %v1037_v48 = vsel %vm997_vm6, %v8032_v30, %v13803_v43  ;;  %v13804_v36 = vrot.slane %v7902_v47, 4  ;;  %v13805_v56 = vrot.slane %v7972_v20, 2  ;;  %v13807_v30 = vld [vmem:[#allocation25_spill] sm:$0xff] }
  0xdd   :  { %v8318_v62 = vsel %vm1002_vm9, %v1025_v31, %v13802_v6  ;;  %v13809_v6 = vld [vmem:[#allocation65_spill] sm:$0xff]  ;;  %v13817_v45 = vrot.slane %v13764_v32, %v6792_v19  ;;  %v13829_v9 = vrot.slane %v13828_v51, 4 }
  0xde   :  { %v8313_v53 = vsel %vm1002_vm9, %v1038_v29, %v13801_v54  ;;  %v1144_v35 = vsel %vm997_vm6, %v1140_v22, %v13804_v36  ;;  %v8335_v31 = vsel %vm1002_vm9, %v1037_v48, %v13805_v56  ;;  %v13808_v22 = vrot.slane %v13807_v30, 4 }
  0xdf   :  { %v8330_v29 = vpack.c.bf16 %v8313_v53, %v8305_v23  ;;  %v8340_v55 = vsel %vm1002_vm9, %v1144_v35, %v13806_v13  ;;  %v8344_v47 = vpack.c.bf16 %v8335_v31, %v8318_v62  ;;  %v13810_v20 = vrot.slane %v13809_v6, 4  ;;  %v13812_v35 = vld [vmem:[#allocation52_spill] sm:$0xff]  ;;  %v13821_v6 = vld [vmem:[#allocation74_spill] sm:$0xff] }
  0xe0   :  { %v1156_v54 = vsel %vm997_vm6, %v8064_v11, %v13808_v22  ;;  %v13811_v48 = vrot.slane %v7822_v61, 2  ;;  %v13813_v56 = vrot.slane %v13812_v35, 2  ;;  %v8376_v30 = vmul.f32 %v13817_v45, %v1607_v0  ;;  %v13819_v22 = vld [vmem:[#allocation41_spill] sm:$0xff]  ;;  %v8395_v35 = vpop.permute.xlu0 %1643  ;;  %v13825_v45 = vld [vmem:[#allocation14_spill] sm:$0xff] }
  0xe1   :  { %v1146_v43 = vsel %vm997_vm6, %v1142_v12, %v13810_v20  ;;  %1478 = vmatprep.subr.bf16.mxu1 %v8330_v29  ;;  %v13815_v12 = vrot.slane %v13762_v5, %v6783_v16  ;;  %v8380_v61 = vsel %vm992_vm4, %v13819_v22, %v2374_v26  ;;  %v13823_v26 = vrot.slane %v13771_v15, %v6789_v18  ;;  %v13860_v15 = vld [vmem:[#allocation37_spill] sm:$0xff] }
  0xe2   :  { %v8361_v36 = vsel %vm1002_vm9, %v1156_v54, %v13811_v48  ;;  %v8366_v11 = vsel %vm1002_vm9, %v1146_v43, %v13813_v56  ;;  %13818 = vst [vmem:[#allocation61_spill] sm:$0xff] %v8376_v30  ;;  %13820 = vst [vmem:[#allocation13_spill] sm:$0xff] %v8380_v61  ;;  %1479 = vmatpush1.bf16.msra.mxu1 %v8344_v47  ;;  %v13822_v43 = vrot.slane %v7890_v39, 4  ;;  %v13826_v22 = vrot.slane %v13825_v45, 2  ;;  %v13834_v45 = vld [vmem:[#allocation18_spill] sm:$0xff]  ;;  %v13843_v30 = vld [vmem:[#allocation56_spill] sm:$0xff] }
  0xe3   :  { %13814 = vst [vmem:[#allocation60_spill] sm:$0xff] %v8366_v11  ;;  %v8371_v13 = vmul.f32 %v13815_v12, %v1607_v0  ;;  %v8385_v54 = vpack.c.bf16 %v8361_v36, %v8340_v55  ;;  %v8389_v20 = vpack.c.bf16 %v13821_v6, %v8366_v11  ;;  %v8400_v56 = vmul.f32 %v13823_v26, %v1607_v0  ;;  %v13889_v6 = vld [vmem:[#allocation42_spill] sm:$0xff] }
  0xe4   :  { %v1143_v48 = vsel %vm997_vm6, %v8137_v59, %v13822_v43  ;;  %v1155_v39 = vsel %vm997_vm6, %v8046_v14, %v13829_v9  ;;  %v8412_v59 = vpop.permute.xlu1 %1745  ;;  %v13831_v43 = vrot.slane %v7812_v46, 2  ;;  %v13836_v12 = vrot.slane %v8158_v21, 4  ;;  %v13838_v46 = vld [vmem:[#allocation46_spill] sm:$0xff] }
  0xe5   :  { %13816 = vst [vmem:[#allocation55_spill] sm:$0xff] %v8371_v13  ;;  %13824 = vst [vmem:[#allocation66_spill] sm:$0xff] %v8400_v56  ;;  %v8406_v52 = vsel %vm1002_vm9, %v1143_v48, %v13826_v22  ;;  %1439 = vmatprep.subr.bf16.mxu0 %v8385_v54  ;;  %1480 = vmatprep.subr.bf16.mxu1 %v8389_v20  ;;  %v13833_v48 = vrot.slane %v8061_v37, 6  ;;  %v13835_v22 = vld [vmem:[#allocation38_spill] sm:$0xff]  ;;  %v13839_v34 = vrot.slane %v13838_v46, 4  ;;  %v13840_v37 = vld [vmem:[#allocation27_spill] sm:$0xff] }
  0xe6   :  { %13827 = vst [vmem:[#allocation67_spill] sm:$0xff] %v8406_v52  ;;  %13830 = vst [vmem:[#allocation25_spill] sm:$0xff] %v8412_v59  ;;  %v8420_v26 = vsel %vm1002_vm9, %v1155_v39, %v13831_v43  ;;  %v1277_v14 = vrot.slane %v13835_v22, 5  ;;  %v13841_v43 = vrot.slane %v13840_v37, 4  ;;  %v13844_v44 = vrot.slane %v13843_v30, 2  ;;  %v13851_v37 = vld [vmem:[#allocation64_spill] sm:$0xff] }
  0xe7   :  { %13832 = vst [vmem:[#allocation65_spill] sm:$0xff] %v8420_v26  ;;  %v1164_v51 = vsel %vm992_vm4, %v13834_v45, %v13833_v48  ;;  %v8429_v9 = vpack.c.bf16 %v8420_v26, %v8406_v52  ;;  %v1145_v39 = vsel %vm997_vm6, %v8222_v50, %v13839_v34  ;;  %v13849_v50 = vld [vmem:[#allocation70_spill] sm:$0xff]  ;;  %v13852_v30 = vrot.slane %v8098_v4, 4  ;;  %v13862_v13 = vld [vmem:[#allocation4_spill] sm:$0xff]  ;;  %v13867_v56 = vld [vmem:[#allocation47_spill] sm:$0xff] }
  0xe8   :  { %v8434_v0 = vsel %vm997_vm6, %v1164_v51, %v13836_v12  ;;  %v1157_v48 = vsel %vm997_vm6, %v13842_v49, %v13841_v43  ;;  %v8451_v21 = vsel %vm1002_vm9, %v1145_v39, %v13844_v44  ;;  %v13846_v12 = vld [vmem:[#allocation62_spill] sm:$0xff]  ;;  %v13850_v34 = vrot.slane %v13849_v50, 6 }
  0xe9   :  { %13837 = vst [vmem:[#allocation52_spill] sm:$0xff] %v8434_v0  ;;  %v8446_v45 = vpack.c.bf16 %v8434_v0, %v8434_v0  ;;  %13845 = vst [vmem:[#allocation41_spill] sm:$0xff] %v8451_v21  ;;  %v13847_v51 = vrot.slane %v13846_v12, 2  ;;  %1440 = vmatpush1.bf16.msra.mxu0 %v8429_v9  ;;  %v1279_v39 = vrot.slane %v8203_v3, 5  ;;  %v1648_v43 = vsel %vm134_vm2, %v8395_v35, %v8307_v7  ;;  %v13876_v0 = vld [vmem:[#allocation68_spill] sm:$0xff] }
  0xea   :  { %v1166_v61 = vsel %vm992_vm4, %v13851_v37, %v13850_v34  ;;  %v13861_v32 = vrot.slane %v13860_v15, %v6792_v19 }
  0xeb   :  { %v8456_v46 = vsel %vm1002_vm9, %v1157_v48, %v13847_v51  ;;  %v8470_v44 = vsel %vm997_vm6, %v1166_v61, %v13852_v30  ;;  %v1376_v48 = vsel %vm1275_vm11, %v8446_v45, %v1277_v14  ;;  %v13854_v51 = vld [vmem:[#allocation35_spill] sm:$0xff]  ;;  %v13857_v61 = vld [vmem:[#allocation36_spill] sm:$0xff]  ;;  %v8493_v30 = vpop.permute.xlu0 %1777 }
  0xec   :  { %13848 = vst [vmem:[#allocation14_spill] sm:$0xff] %v8456_v46  ;;  %v8465_v49 = vpack.c.bf16 %v8456_v46, %v8451_v21  ;;  %13853 = vst [vmem:[#allocation26_spill] sm:$0xff] %v8470_v44  ;;  %v8481_v12 = vpack.c.bf16 %v8470_v44, %v8470_v44  ;;  %v13855_v4 = vrot.slane %v13854_v51, %v6786_v17  ;;  %1441 = vmatprep.subr.bf16.mxu0 %v1376_v48  ;;  %v13864_v44 = vld [vmem:[#allocation17_spill] sm:$0xff]  ;;  %v8510_v46 = vpop.permute.xlu1 %1779 }
  0xed   :  { %v13858_v34 = vrot.slane %v13857_v61, %v6783_v16  ;;  %v8500_v5 = vmul.f32 %v13861_v32, %v1648_v43  ;;  %13865 = vst [vmem:[#allocation46_spill] sm:$0xff] %v8510_v46  ;;  %v13866_v32 = vrot.slane %v13778_v40, %v6783_v16  ;;  %v1276_v21 = vrot.slane %v13867_v56, 5 }
  0xee   :  { %v8486_v50 = vmul.f32 %v13855_v4, %v1648_v43  ;;  %1481 = vmatpush1.bf16.msra.mxu1 %v8465_v49  ;;  %v1750_v4 = vsel %vm241_vm1, %v8412_v59, %v8199_v28  ;;  %v1384_v48 = vsel %vm1275_vm11, %v8481_v12, %v1279_v39  ;;  %v13868_v28 = vrot.slane %v13780_v42, %v6792_v19 }
  0xef   :  { %v8491_v37 = vmul.f32 %v13858_v34, %v1648_v43  ;;  %v13863_v34 = vrot.slane %v13862_v13, 6  ;;  %v1773_v43 = vmul.f32 %v13866_v32, %v1750_v4  ;;  %1482 = vmatprep.subr.bf16.mxu1 %v1384_v48  ;;  %v13872_v59 = vrot.slane %v8153_v57, 4 }
  0xf0   :  { %13856 = vst [vmem:[#allocation18_spill] sm:$0xff] %v8486_v50  ;;  %v8522_v13 = vmul.f32 %v13868_v28, %v1750_v4  ;;  %v1282_v32 = vrot.slane %v8256_v10, 5  ;;  %v13874_v28 = vld [vmem:[#allocation16_spill] sm:$0xff]  ;;  %v8569_v57 = vpop.permute.xlu1 %1567 }
  0xf1   :  { %13859 = vst [vmem:[#allocation38_spill] sm:$0xff] %v8491_v37  ;;  %v1163_v8 = vsel %vm992_vm4, %v13864_v44, %v13863_v34  ;;  %v13870_v44 = vrot.slane %v13783_v2, %v6789_v18  ;;  %v2373_v48 = vrot.slane %v1773_v43, 6  ;;  %v13875_v40 = vrot.slane %v13874_v28, 6  ;;  %13880 = vst [vmem:[#allocation64_spill] sm:$0xff] %v8569_v57 }
  0xf2   :  { %13869 = vst [vmem:[#allocation27_spill] sm:$0xff] %v8522_v13  ;;  %v8532_v7 = vsel %vm997_vm6, %v1163_v8, %v13872_v59  ;;  %v13877_v8 = vrot.slane %v8124_v27, 4  ;;  %v1278_v43 = vrot.slane %v8226_v58, 5  ;;  %v1283_v50 = vsel %vm1275_vm11, %v1277_v14, %v1282_v32  ;;  %v13883_v13 = vld [vmem:[#allocation39_spill] sm:$0xff] }
  0xf3   :  { %v8527_v34 = vmul.f32 %v13870_v44, %v1750_v4  ;;  %13873 = vst [vmem:[#allocation56_spill] sm:$0xff] %v8532_v7  ;;  %v8538_v42 = vpack.c.bf16 %v8532_v7, %v8532_v7  ;;  %v1165_v2 = vsel %vm992_vm4, %v13876_v0, %v13875_v40  ;;  %v1286_v40 = vrot.slane %v8330_v29, 5  ;;  %v8560_v0 = vpop.permute.xlu0 %1561  ;;  %v13881_v4 = vld [vmem:[#allocation48_spill] sm:$0xff] }
  0xf4   :  { %v8549_v59 = vsel %vm997_vm6, %v1165_v2, %v13877_v8  ;;  %13879 = vst [vmem:[#allocation70_spill] sm:$0xff] %v8560_v0  ;;  %v1787_v27 = vsel %vm281_vm3, %v8493_v30, %v8510_v46  ;;  %v1280_v2 = vrot.slane %v8286_v1, 5  ;;  %v1290_v8 = vrot.slane %v8385_v54, 5 }
  0xf5   :  { %13871 = vst [vmem:[#allocation15_spill] sm:$0xff] %v8527_v34  ;;  %13878 = vst [vmem:[#allocation62_spill] sm:$0xff] %v8549_v59  ;;  %v1372_v44 = vsel %vm1275_vm11, %v8538_v42, %v1276_v21  ;;  %v8557_v28 = vpack.c.bf16 %v8549_v59, %v8549_v59  ;;  %v1284_v14 = vrot.slane %v8344_v47, 5  ;;  %v8573_v34 = vsel %vm992_vm4, %v13881_v4, %v2373_v48  ;;  %v13886_v59 = vld [vmem:[#allocation40_spill] sm:$0xff] }
  0xf6   :  { %1442 = vmatpush1.bf16.msra.mxu0 %v1372_v44  ;;  %13882 = vst [vmem:[#allocation35_spill] sm:$0xff] %v8573_v34  ;;  %v13884_v37 = vrot.slane %v13883_v13, %v6786_v17  ;;  %v13887_v7 = vrot.slane %v13886_v59, %v6783_v16  ;;  %v1287_v52 = vsel %vm1275_vm11, %v1279_v39, %v1286_v40 }
  0xf7   :  { %1443 = vmatprep.subr.bf16.mxu0 %v1283_v50  ;;  %v1380_v44 = vsel %vm1275_vm11, %v8557_v28, %v1278_v43  ;;  %v13890_v48 = vrot.slane %v13889_v6, %v6792_v19  ;;  %v1281_v4 = vsel %vm1275_vm11, %v1276_v21, %v1280_v2  ;;  %v1291_v34 = vsel %vm1275_vm11, %v1282_v32, %v1290_v8  ;;  %v13894_v32 = vld [vmem:[#allocation44_spill] sm:$0xff] }
  0xf8   :  { %v8580_v46 = vmul.f32 %v13884_v37, %v1787_v27  ;;  %v8585_v26 = vmul.f32 %v13887_v7, %v1787_v27  ;;  %1483 = vmatpush1.bf16.msra.mxu1 %v1380_v44  ;;  %v1285_v11 = vsel %vm1275_vm11, %v1278_v43, %v1284_v14  ;;  %v1294_v7 = vrot.slane %v8389_v20, 5  ;;  %v13896_v43 = vld [vmem:[#allocation45_spill] sm:$0xff] }
  0xf9   :  { %v8591_v50 = vmul.f32 %v13890_v48, %v1787_v27  ;;  %1484 = vmatprep.subr.bf16.mxu1 %v1287_v52  ;;  %v1572_v39 = vsel %vm55_vm5, %v8569_v57, %v8560_v0  ;;  %v13892_v27 = vld [vmem:[#allocation43_spill] sm:$0xff]  ;;  %v13895_v52 = vrot.slane %v13894_v32, %v6783_v16  ;;  %v1288_v44 = vrot.slane %v8429_v9, 5 }
  0xfa   :  { %13885 = vst [vmem:[#allocation36_spill] sm:$0xff] %v8580_v46  ;;  %13888 = vst [vmem:[#allocation37_spill] sm:$0xff] %v8585_v26  ;;  %1444 = vmatpush1.bf16.msra.mxu0 %v1281_v4  ;;  %v13893_v21 = vrot.slane %v13892_v27, %v6786_v17  ;;  %v13897_v46 = vrot.slane %v13896_v43, %v6792_v19  ;;  %v1295_v0 = vsel %vm1275_vm11, %v1286_v40, %v1294_v7 }
  0xfb   :  { %13891 = vst [vmem:[#allocation4_spill] sm:$0xff] %v8591_v50  ;;  %v8609_v37 = vmul.f32 %v13895_v52, %v1572_v39  ;;  %1445 = vmatprep.subr.bf16.mxu0 %v1291_v34  ;;  %v1188_v4 = vunpack.c.l.bf16 %v13835_v22  ;;  %v1192_v26 = vunpack.c.h.bf16 %v13835_v22  ;;  %v13899_v32 = vrot.slane %v8211_v41, 6  ;;  %v13901_v22 = vld [vmem:[#allocation53_spill] sm:$0xff] }
  0xfc   :  { %v1596_v48 = vmul.f32 %v13893_v21, %v1572_v39  ;;  %v8614_v50 = vmul.f32 %v13897_v46, %v1572_v39  ;;  %v8620_v21 = vpop.permute.xlu0 %1641  ;;  %1485 = vmatpush1.bf16.msra.mxu1 %v1285_v11  ;;  %v1298_v34 = vrot.slane %v8446_v45, 5  ;;  %v1289_v40 = vsel %vm1275_vm11, %v1280_v2, %v1288_v44  ;;  %v13900_v39 = vld [vmem:[#allocation72_spill] sm:$0xff] }
  0xfd   :  { %1486 = vmatprep.subr.bf16.mxu1 %v1295_v0  ;;  %v1216_v27 = vsub.f32 %v13900_v39, %v1188_v4  ;;  %v1220_v57 = vsub.f32 %v13901_v22, %v1192_v26  ;;  %v1292_v11 = vrot.slane %v8465_v49, 5  ;;  %v1190_v52 = vunpack.c.l.bf16 %v8203_v3 }
  0xfe   :  { %13898 = vst [vmem:[#allocation17_spill] sm:$0xff] %v8614_v50  ;;  %v8626_v43 = vsel %vm992_vm4, %v1596_v48, %v13899_v32  ;;  %1446 = vmatpush1.bf16.msra.mxu0 %v1289_v40  ;;  %v1194_v41 = vunpack.c.h.bf16 %v8203_v3  ;;  %v1302_v48 = vrot.slane %v8481_v12, 5  ;;  %v1645_v0 = vsel %vm134_vm2, %v8620_v21, %v8395_v35 }
  0xff   :  { %v1244_v32 = vpack.c.bf16 %v1220_v57, %v1216_v27  ;;  %v1299_v2 = vsel %vm1275_vm11, %v1290_v8, %v1298_v34  ;;  %v1293_v4 = vsel %vm1275_vm11, %v1284_v14, %v1292_v11  ;;  %v13902_v26 = vrot.slane %v13854_v51, %v6783_v16  ;;  %v8662_v34 = vpop.permute.xlu1 %1675 }
 0x100   :  { %1487 = vmatpush1.bf16.msra.mxu1 %v1293_v4  ;;  %v1218_v3 = vsub.f32 %v8171_v60, %v1190_v52  ;;  %v1222_v39 = vsub.f32 %v8184_v24, %v1194_v41  ;;  %v1303_v22 = vsel %vm1275_vm11, %v1294_v7, %v1302_v48  ;;  %v13903_v35 = vrot.slane %v13857_v61, %v6792_v19  ;;  %v13905_v48 = vld [vmem:[#allocation20_spill] sm:$0xff] }
 0x101   :  { %v8646_v40 = vmul.f32 %v13902_v26, %v1645_v0  ;;  %v1330_v8 = vrot.slane %v1244_v32, 2  ;;  %v13904_v14 = vrot.slane %v13860_v15, %v6789_v18  ;;  %v1187_v60 = vunpack.c.l.bf16 %v13867_v56  ;;  %v13960_v26 = vld [vmem:[#allocation62_spill] sm:$0xff] }
 0x102   :  { %v8654_v57 = vmul.f32 %v13903_v35, %v1645_v0  ;;  %v1246_v24 = vpack.c.bf16 %v1222_v39, %v1218_v3  ;;  %v1191_v7 = vunpack.c.h.bf16 %v13867_v56  ;;  %v1296_v52 = vrot.slane %v8538_v42, 5  ;;  %v13906_v35 = vld [vmem:[#allocation21_spill] sm:$0xff]  ;;  %v8675_v39 = vpop.permute.xlu0 %1681 }
 0x103   :  { %v8659_v27 = vmul.f32 %v13904_v14, %v1645_v0  ;;  %v1196_v61 = vunpack.c.l.bf16 %v8256_v10  ;;  %v1392_v41 = vsel %vm1002_vm9, %v1299_v2, %v1330_v8  ;;  %v1215_v32 = vsub.f32 %v13905_v48, %v1187_v60 }
 0x104   :  { %v1200_v15 = vunpack.c.h.bf16 %v8256_v10  ;;  %v1189_v0 = vunpack.c.l.bf16 %v8226_v58  ;;  %1447 = vmatprep.subr.bf16.mxu0 %v1392_v41  ;;  %v1332_v4 = vrot.slane %v1246_v24, 2  ;;  %v1219_v3 = vsub.f32 %v13906_v35, %v1191_v7 }
 0x105   :  { %v1224_v56 = vsub.f32 %v8245_v25, %v1196_v61  ;;  %v1297_v14 = vsel %vm1275_vm11, %v1288_v44, %v1296_v52  ;;  %v1193_v60 = vunpack.c.h.bf16 %v8226_v58  ;;  %v1198_v24 = vunpack.c.l.bf16 %v8330_v29  ;;  %v13907_v25 = vld [vmem:[#allocation5_spill] sm:$0xff]  ;;  %v13908_v52 = vld [vmem:[#allocation50_spill] sm:$0xff] }
 0x106   :  { %v1228_v2 = vsub.f32 %v8250_v33, %v1200_v15  ;;  %v1217_v10 = vsub.f32 %v8189_v38, %v1189_v0  ;;  %v1400_v48 = vsel %vm1002_vm9, %v1303_v22, %v1332_v4  ;;  %v1243_v41 = vpack.c.bf16 %v1219_v3, %v1215_v32  ;;  %v8690_v33 = vpop.permute.xlu1 %1783  ;;  %v13910_v3 = vld [vmem:[#allocation51_spill] sm:$0xff] }
 0x107   :  { %v1202_v46 = vunpack.c.h.bf16 %v8330_v29  ;;  %1488 = vmatprep.subr.bf16.mxu1 %v1400_v48  ;;  %v1221_v61 = vsub.f32 %v13907_v25, %v1193_v60  ;;  %v1300_v35 = vrot.slane %v8557_v28, 5  ;;  %v1686_v58 = vsel %vm174_vm7, %v8675_v39, %v8662_v34  ;;  %v13912_v60 = vld [vmem:[#allocation54_spill] sm:$0xff] }
 0x108   :  { %v1248_v7 = vpack.c.bf16 %v1228_v2, %v1224_v56  ;;  %v1329_v38 = vrot.slane %v1243_v41, 2  ;;  %v1226_v44 = vsub.f32 %v8305_v23, %v1198_v24  ;;  %v13909_v29 = vrot.slane %v13908_v52, %v6786_v17 }
 0x109   :  { %v1230_v22 = vsub.f32 %v8313_v53, %v1202_v46  ;;  %v1245_v0 = vpack.c.bf16 %v1221_v61, %v1217_v10  ;;  %v13911_v56 = vrot.slane %v13910_v3, %v6783_v16  ;;  %v13913_v48 = vrot.slane %v13912_v60, %v6792_v19 }
 0x10a   :  { %v8697_v32 = vmul.f32 %v13909_v29, %v1686_v58  ;;  %v8699_v15 = vrot.slane %v1248_v7, 2  ;;  %v1388_v23 = vsel %vm1002_vm9, %v1297_v14, %v1329_v38  ;;  %v1301_v53 = vsel %vm1275_vm11, %v1292_v11, %v1300_v35  ;;  %v6557_v11 = vld [vmem:[%s13185_s0] sm:$0xcc] }
 0x10b   :  { %v1991_v2 = vmul.f32 %v13911_v56, %v1686_v58  ;;  %v2202_v41 = vmul.f32 %v13913_v48, %v1686_v58  ;;  %v1250_v46 = vpack.c.bf16 %v1230_v22, %v1226_v44  ;;  %v1788_v24 = vsel %vm281_vm3, %v8690_v33, %v8493_v30  ;;  %1448 = vmatpush1.bf16.msra.mxu0 %v1388_v23  ;;  %v13918_v23 = vld [vmem:[#allocation49_spill] sm:$0xff] }
 0x10c   :  { %v1336_v10 = vsel %vm1002_vm9, %v1330_v8, %v8699_v15  ;;  %v1331_v7 = vrot.slane %v1245_v0, 2  ;;  %v13914_v30 = vrot.slane %v13883_v13, %v6783_v16  ;;  %v13915_v8 = vrot.slane %v13886_v59, %v6792_v19 }
 0x10d   :  { %v2558_v61 = vrot.slane %v2202_v41, 6  ;;  %1449 = vmatprep.subr.bf16.mxu0 %v1336_v10  ;;  %v8716_v58 = vrot.slane %v1250_v46, 2  ;;  %v8722_v14 = vsel %vm992_vm4, %v1991_v2, %v6557_v11  ;;  %v13916_v29 = vrot.slane %v13889_v6, %v6789_v18  ;;  %v8751_v10 = vpop.permute.xlu0 %1815  ;;  %v8753_v11 = vpop.permute.xlu1 %1817 }
 0x10e   :  { %v1811_v35 = vmul.f32 %v13914_v30, %v1788_v24  ;;  %v8730_v44 = vmul.f32 %v13915_v8, %v1788_v24  ;;  %v1396_v22 = vsel %vm1002_vm9, %v1301_v53, %v1331_v7  ;;  %v1195_v56 = vunpack.c.l.bf16 %v8286_v1  ;;  %v13919_v53 = vld [vmem:[#allocation73_spill] sm:$0xff] }
 0x10f   :  { %v8736_v0 = vmul.f32 %v13916_v29, %v1788_v24  ;;  %v1199_v2 = vunpack.c.h.bf16 %v8286_v1  ;;  %1489 = vmatpush1.bf16.msra.mxu1 %v1396_v22  ;;  %v1340_v13 = vsel %vm1002_vm9, %v1332_v4, %v8716_v58  ;;  %v8744_v59 = vsel %vm992_vm4, %v8500_v5, %v2558_v61  ;;  %v13959_v4 = vld [vmem:[#allocation56_spill] sm:$0xff] }
 0x110   :  { %13917 = vst [vmem:[#allocation47_spill] sm:$0xff] %v8744_v59  ;;  %v2385_v48 = vrot.slane %v1811_v35, 4  ;;  %v1204_v41 = vunpack.c.l.bf16 %v8385_v54  ;;  %1490 = vmatprep.subr.bf16.mxu1 %v1340_v13  ;;  %v1223_v6 = vsub.f32 %v13918_v23, %v1195_v56  ;;  %v1208_v24 = vunpack.c.h.bf16 %v8385_v54  ;;  %v13920_v56 = vld [vmem:[#allocation60_spill] sm:$0xff]  ;;  %v13921_v23 = vld [vmem:[#allocation74_spill] sm:$0xff] }
 0x111   :  { %v1227_v46 = vsub.f32 %v13919_v53, %v1199_v2  ;;  %v1197_v1 = vunpack.c.l.bf16 %v8344_v47  ;;  %v1201_v61 = vunpack.c.h.bf16 %v8344_v47  ;;  %v1206_v30 = vunpack.c.l.bf16 %v8389_v20 }
 0x112   :  { %v1232_v5 = vsub.f32 %v8340_v55, %v1204_v41  ;;  %v1236_v8 = vsub.f32 %v8361_v36, %v1208_v24  ;;  %v1210_v54 = vunpack.c.h.bf16 %v8389_v20  ;;  %v1825_v55 = vsel %vm321_vm8, %v8751_v10, %v8753_v11  ;;  %v13922_v36 = vld [vmem:[#allocation57_spill] sm:$0xff]  ;;  %v13924_v20 = vld [vmem:[#allocation35_spill] sm:$0xff] }
 0x113   :  { %v1247_v35 = vpack.c.bf16 %v1227_v46, %v1223_v6  ;;  %v1225_v22 = vsub.f32 %v8318_v62, %v1197_v1  ;;  %v1229_v29 = vsub.f32 %v8335_v31, %v1201_v61  ;;  %v1234_v2 = vsub.f32 %v13920_v56, %v1206_v30  ;;  %v13925_v24 = vld [vmem:[#allocation63_spill] sm:$0xff] }
 0x114   :  { %v1203_v47 = vunpack.c.l.bf16 %v8429_v9  ;;  %v1252_v41 = vpack.c.bf16 %v1236_v8, %v1232_v5  ;;  %v1238_v6 = vsub.f32 %v13921_v23, %v1210_v54  ;;  %v13923_v62 = vrot.slane %v13922_v36, %v6786_v17  ;;  %v13927_v54 = vld [vmem:[#allocation58_spill] sm:$0xff] }
 0x115   :  { %v1333_v13 = vrot.slane %v1247_v35, 2  ;;  %v8777_v31 = vsel %vm997_vm6, %v13924_v20, %v2385_v48  ;;  %v1249_v46 = vpack.c.bf16 %v1229_v29, %v1225_v22  ;;  %v13926_v1 = vrot.slane %v13925_v24, %v6792_v19  ;;  %v13929_v22 = vld [vmem:[#allocation67_spill] sm:$0xff] }
 0x116   :  { %v8773_v53 = vmul.f32 %v13923_v62, %v1825_v55  ;;  %v1207_v30 = vunpack.c.h.bf16 %v8429_v9  ;;  %v1343_v35 = vrot.slane %v1252_v41, 2  ;;  %v1254_v8 = vpack.c.bf16 %v1238_v6, %v1234_v2  ;;  %v13930_v62 = vld [vmem:[#allocation65_spill] sm:$0xff]  ;;  %v8796_v41 = vpop.permute.xlu0 %1565 }
 0x117   :  { %v2306_v61 = vmul.f32 %v13926_v1, %v1825_v55  ;;  %v1334_v5 = vsel %vm1002_vm9, %v1329_v38, %v1333_v13  ;;  %v13928_v56 = vrot.slane %v13927_v54, %v6783_v16  ;;  %v1337_v36 = vrot.slane %v1249_v46, 2 }
 0x118   :  { %1450 = vmatpush1.bf16.msra.mxu0 %v1334_v5  ;;  %v1231_v29 = vsub.f32 %v13929_v22, %v1203_v47  ;;  %v1235_v20 = vsub.f32 %v13930_v62, %v1207_v30  ;;  %v1344_v9 = vsel %vm1002_vm9, %v8699_v15, %v1343_v35  ;;  %v1347_v24 = vrot.slane %v1254_v8, 2  ;;  %v13931_v15 = vld [vmem:[#allocation52_spill] sm:$0xff]  ;;  %v13932_v8 = vld [vmem:[#allocation41_spill] sm:$0xff]  ;;  %v13933_v22 = vld [vmem:[#allocation14_spill] sm:$0xff] }
 0x119   :  { %v8787_v23 = vmul.f32 %v13928_v56, %v1825_v55  ;;  %v1212_v38 = vunpack.c.l.bf16 %v8446_v45  ;;  %v1205_v2 = vunpack.c.l.bf16 %v8465_v49  ;;  %v1602_v55 = vpop.permute.xlu1 %1601  ;;  %1451 = vmatprep.subr.bf16.mxu0 %v1344_v9  ;;  %v1338_v6 = vsel %vm1002_vm9, %v1331_v7, %v1337_v36  ;;  %v13934_v7 = vld [vmem:[#allocation64_spill] sm:$0xff] }
 0x11a   :  { %v2594_v46 = vrot.slane %v2306_v61, 6  ;;  %v1251_v1 = vpack.c.bf16 %v1235_v20, %v1231_v29  ;;  %v1209_v47 = vunpack.c.h.bf16 %v8465_v49  ;;  %1491 = vmatpush1.bf16.msra.mxu1 %v1338_v6  ;;  %v1348_v30 = vsel %vm1002_vm9, %v8716_v58, %v1347_v24  ;;  %v13935_v61 = vld [vmem:[#allocation33_spill] sm:$0xff]  ;;  %v13936_v20 = vld [vmem:[#allocation26_spill] sm:$0xff]  ;;  %v13939_v6 = vld [vmem:[#allocation44_spill] sm:$0xff] }
 0x11b   :  { %v1240_v5 = vsub.f32 %v13931_v15, %v1212_v38  ;;  %v1233_v45 = vsub.f32 %v13932_v8, %v1205_v2  ;;  %v1214_v54 = vunpack.c.l.bf16 %v8481_v12  ;;  %1492 = vmatprep.subr.bf16.mxu1 %v1348_v30  ;;  %v1569_v49 = vsel %vm55_vm5, %v8796_v41, %v13934_v7  ;;  %v13937_v38 = vld [vmem:[#allocation43_spill] sm:$0xff]  ;;  %v13941_v8 = vld [vmem:[#allocation45_spill] sm:$0xff] }
 0x11c   :  { %v8805_v56 = vrot.slane %v1251_v1, 2  ;;  %v1237_v62 = vsub.f32 %v13933_v22, %v1209_v47  ;;  %v1608_v58 = vsel %vm94_vm0, %v1602_v55, %v13935_v61  ;;  %v13938_v12 = vrot.slane %v13937_v38, %v6783_v16  ;;  %v13945_v61 = vld [vmem:[#allocation4_spill] sm:$0xff] }
 0x11d   :  { %v1256_v29 = vpack.c.bf16 %v1240_v5, %v1240_v5  ;;  %v1242_v9 = vsub.f32 %v13936_v20, %v1214_v54  ;;  %v13940_v1 = vrot.slane %v13939_v6, %v6792_v19  ;;  %v13942_v22 = vrot.slane %v13941_v8, %v6789_v18  ;;  %v13944_v5 = vld [vmem:[#allocation59_spill] sm:$0xff] }
 0x11e   :  { %v1595_v2 = vmul.f32 %v13938_v12, %v1569_v49  ;;  %v1342_v30 = vsel %vm1002_vm9, %v1333_v13, %v8805_v56  ;;  %v1253_v15 = vpack.c.bf16 %v1237_v62, %v1233_v45  ;;  %v1609_v54 = vsel %vm94_vm0, %v13944_v5, %v1602_v55  ;;  %v13947_v62 = vld [vmem:[#allocation55_spill] sm:$0xff] }
 0x11f   :  { %v8822_v47 = vmul.f32 %v13940_v1, %v1569_v49  ;;  %v8829_v7 = vmul.f32 %v13942_v22, %v1569_v49  ;;  %v8836_v20 = vsel %vm992_vm4, %v13945_v61, %v2594_v46  ;;  %1452 = vmatpush1.bf16.msra.mxu0 %v1342_v30  ;;  %v8838_v38 = vrot.slane %v1256_v29, 2  ;;  %v13949_v1 = vld [vmem:[#allocation28_spill] sm:$0xff] }
 0x120   :  { %13946 = vst [vmem:[#allocation68_spill] sm:$0xff] %v8836_v20  ;;  %v1258_v12 = vpack.c.bf16 %v1242_v9, %v1242_v9  ;;  %v1345_v45 = vrot.slane %v1253_v15, 2  ;;  %v13948_v6 = vrot.slane %v13947_v62, 6  ;;  %v13950_v8 = vrot.slane %v13949_v1, %v6789_v18  ;;  %v13952_v15 = vld [vmem:[#allocation29_spill] sm:$0xff] }
 0x121   :  { %13943 = vst [vmem:[#allocation16_spill] sm:$0xff] %v8829_v7  ;;  %v13951_v46 = vrot.slane %v13949_v1, %v6792_v19  ;;  %v1352_v29 = vsel %vm1002_vm9, %v1343_v35, %v8838_v38  ;;  %v13953_v22 = vrot.slane %v13952_v15, %v6786_v17  ;;  %v13954_v5 = vrot.slane %v13952_v15, %v6789_v18  ;;  %v13955_v1 = vld [vmem:[#allocation31_spill] sm:$0xff] }
 0x122   :  { %v8844_v49 = vsel %vm992_vm4, %v1595_v2, %v13948_v6  ;;  %v8849_v55 = vmul.f32 %v13950_v8, %v1609_v54  ;;  %v8858_v9 = vrot.slane %v1258_v12, 2  ;;  %1453 = vmatprep.subr.bf16.mxu0 %v1352_v29  ;;  %v1346_v62 = vsel %vm1002_vm9, %v1337_v36, %v1345_v45 }
 0x123   :  { %v8854_v30 = vmul.f32 %v13951_v46, %v1608_v58  ;;  %v8863_v2 = vmul.f32 %v13953_v22, %v1609_v54  ;;  %v8868_v61 = vmul.f32 %v13954_v5, %v1608_v58  ;;  %v13956_v35 = vrot.slane %v13955_v1, %v6783_v16  ;;  %v8882_v22 = vpop.permute.xlu0 %1679  ;;  %1493 = vmatpush1.bf16.msra.mxu1 %v1346_v62  ;;  %v1744_v62 = vpop.permute.xlu1 %1743 }
 0x124   :  { %v13958_v8 = vrot.slane %v13955_v1, %v6786_v17  ;;  %v1356_v29 = vsel %vm1002_vm9, %v1347_v24, %v8858_v9  ;;  %v1683_v24 = vsel %vm174_vm7, %v8882_v22, %v8675_v39  ;;  %v6559_v39 = vld [vmem:[%s13186_s1 + $0x47] ss:$8 sm:$0xf]  ;;  %v13962_v13 = vrot.slane %v13910_v3, %v6792_v19 }
 0x125   :  { %v8875_v12 = vmul.f32 %v13956_v35, %v1609_v54  ;;  %1494 = vmatprep.subr.bf16.mxu1 %v1356_v29  ;;  %v1213_v35 = vunpack.c.l.bf16 %v8557_v28  ;;  %v6558_v29 = vld [vmem:[%s13186_s1 + $0x26] ss:$8 sm:$0xf]  ;;  %v2234_v5 = vrot.slane %v6559_v39, %v6783_v16  ;;  %v2238_v48 = vrot.slane %v6559_v39, %v6786_v17 }
 0x126   :  { %v8880_v46 = vmul.f32 %v13958_v8, %v1608_v58  ;;  %v1211_v58 = vunpack.c.l.bf16 %v8538_v42  ;;  %v2004_v6 = vrot.slane %v6558_v29, %v6786_v17  ;;  %v2008_v1 = vrot.slane %v6558_v29, %v6789_v18 }
 0x127   :  { %13957 = vst [vmem:[#allocation48_spill] sm:$0xff] %v8875_v12  ;;  %v1241_v28 = vsub.f32 %v13960_v26, %v1213_v35  ;;  %v13961_v8 = vrot.slane %v13908_v52, %v6783_v16  ;;  %v1994_v51 = vmul.f32 %v13962_v13, %v1683_v24  ;;  %v13964_v26 = vld [vmem:[#allocation25_spill] sm:$0xff]  ;;  %v13965_v35 = vld [vmem:[#allocation22_spill] sm:$0xff]  ;;  %v13966_v13 = vld [vmem:[#allocation32_spill] sm:$0xff] }
 0x128   :  { %v1239_v42 = vsub.f32 %v13959_v4, %v1211_v58  ;;  %v13963_v4 = vrot.slane %v13912_v60, %v6789_v18  ;;  %v1747_v52 = vsel %vm241_vm1, %v1744_v62, %v13964_v26  ;;  %v13967_v25 = vrot.slane %v13966_v13, %v6789_v18 }
 0x129   :  { %v8908_v54 = vmul.f32 %v13961_v8, %v1683_v24  ;;  %v1748_v8 = vsel %vm241_vm1, %v13965_v35, %v1744_v62  ;;  %v1257_v15 = vpack.c.bf16 %v1241_v28, %v1241_v28  ;;  %v8936_v62 = vmul.f32 %v2008_v1, %v1747_v52  ;;  %v13970_v28 = vld [vmem:[#allocation6_spill] sm:$0xff]  ;;  %v13973_v1 = vld [vmem:[#allocation69_spill] sm:$0xff] }
 0x12a   :  { %v2201_v58 = vmul.f32 %v13963_v4, %v1683_v24  ;;  %v1255_v29 = vpack.c.bf16 %v1239_v42, %v1239_v42  ;;  %v1775_v60 = vmul.f32 %v13967_v25, %v1748_v8  ;;  %v13968_v24 = vrot.slane %v13966_v13, %v6792_v19  ;;  %v8964_v13 = vpop.permute.xlu0 %1821 }
 0x12b   :  { %v8934_v26 = vmul.f32 %v2004_v6, %v1748_v8  ;;  %v1353_v7 = vrot.slane %v1257_v15, 2  ;;  %v8938_v42 = vmul.f32 %v2234_v5, %v1748_v8  ;;  %v8942_v39 = vsel %vm992_vm4, %v1994_v51, %v13970_v28 }
 0x12c   :  { %v2557_v3 = vrot.slane %v2201_v58, 6  ;;  %v1776_v4 = vmul.f32 %v13968_v24, %v1747_v52  ;;  %v1349_v20 = vrot.slane %v1255_v29, 2  ;;  %v2375_v25 = vrot.slane %v1775_v60, 6 }
 0x12d   :  { %13969 = vst [vmem:[#allocation39_spill] sm:$0xff] %v8938_v42  ;;  %v1354_v29 = vsel %vm1002_vm9, %v1345_v45, %v1353_v7  ;;  %v8951_v15 = vmul.f32 %v2238_v48, %v1747_v52  ;;  %v1430_v45 = vsel %vm1422_vm12, %v1353_v7, 0  ;;  %v13975_v52 = vld [vmem:[#allocation18_spill] sm:$0xff] }
 0x12e   :  { %v8946_v58 = vsel %vm992_vm4, %v8659_v27, %v2557_v3  ;;  %v2376_v35 = vrot.slane %v1776_v4, 6  ;;  %v1350_v6 = vsel %vm1002_vm9, %v8805_v56, %v1349_v20  ;;  %1495 = vmatpush1.bf16.msra.mxu1 %v1354_v29  ;;  %v8957_v8 = vsel %vm992_vm4, %v13973_v1, %v2375_v25  ;;  %v13974_v27 = vld [vmem:[#allocation71_spill] sm:$0xff]  ;;  %v13977_v4 = vld [vmem:[#allocation36_spill] sm:$0xff]  ;;  %v13979_v25 = vld [vmem:[#allocation13_spill] sm:$0xff] }
 0x12f   :  { %13971 = vst [vmem:[#allocation40_spill] sm:$0xff] %v8946_v58  ;;  %13972 = vst [vmem:[#allocation42_spill] sm:$0xff] %v8951_v15  ;;  %1454 = vmatpush1.bf16.msra.mxu0 %v1350_v6  ;;  %6419 = vmatprep.subr.msk.bf16.mxu1 %vm1422_vm12, %v8858_v9  ;;  %v1424_v48 = vsel %vm1422_vm12, %v1349_v20, 0  ;;  %v13976_v60 = vrot.slane %v13975_v52, 4  ;;  %v13978_v28 = vrot.slane %v13977_v4, 4  ;;  %v13980_v6 = vrot.slane %v8697_v32, 2  ;;  %v1564_v4 = vpop.permute.xlu1 %1563 }
 0x130   :  { %v8961_v3 = vsel %vm992_vm4, %v13974_v27, %v2376_v35  ;;  %6417 = vmatprep.subr.msk.bf16.mxu0 %vm1422_vm12, %v8838_v38  ;;  %v13982_v9 = vrot.slane %v8773_v53, 2  ;;  %v8993_v7 = vld [vmem:[%s13186_s1 + $0x7] ss:$8 sm:$0xf]  ;;  %v1826_v52 = vsel %vm321_vm8, %v8964_v13, %v8751_v10 }
 0x131   :  { %v2472_v24 = vsel %vm997_vm6, %v8626_v43, %v13976_v60  ;;  %v2484_v35 = vsel %vm997_vm6, %v13979_v25, %v13978_v28  ;;  %v1832_v43 = vrot.slane %v8993_v7, %v6783_v16  ;;  %v9000_v32 = vld [vmem:[%s13186_s1 + $0x40] ss:$8 sm:$0xf]  ;;  %v9011_v1 = vld [vmem:[%s13186_s1 + $0x61] ss:$8 sm:$0xf] }
 0x132   :  { %v8983_v38 = vsel %vm1002_vm9, %v2472_v24, %v13980_v6  ;;  %v8988_v20 = vsel %vm1002_vm9, %v2484_v35, %v13982_v9  ;;  %v2064_v29 = vrot.slane %v9000_v32, %v6792_v19  ;;  %v2294_v27 = vrot.slane %v9011_v1, %v6789_v18  ;;  %v6563_v60 = vld [vmem:[%s13186_s1] ss:$8 sm:$0xf]  ;;  %1497 = vmatpush1.bf16.msra.mxu1 %v1430_v45  ;;  %v6564_v9 = vld [vmem:[%s13186_s1 + $0x21] ss:$8 sm:$0xf] }
 0x133   :  { %13981 = vst [vmem:[#allocation72_spill] sm:$0xff] %v8983_v38  ;;  %13983 = vst [vmem:[#allocation53_spill] sm:$0xff] %v8988_v20  ;;  %v9006_v53 = vpack.c.bf16 %v8988_v20, %v8983_v38  ;;  %v1586_v24 = vrot.slane %v6563_v60, %v6789_v18  ;;  %1456 = vmatpush1.bf16.msra.mxu0 %v1424_v48  ;;  %v9024_v25 = vmul.f32 %v1832_v43, %v1826_v52  ;;  %v6565_v48 = vld [vmem:[%s13186_s1 + $0x42] ss:$8 sm:$0xf]  ;;  %v1782_v58 = vpop.permute.xlu1 %1781 }
 0x134   :  { %v9026_v35 = vmul.f32 %v2064_v29, %v1826_v52  ;;  %v1590_v6 = vrot.slane %v6563_v60, %v6792_v19  ;;  %v2305_v10 = vmul.f32 %v2294_v27, %v1826_v52  ;;  %v1900_v56 = vrot.slane %v6564_v9, %v6786_v17  ;;  %v13985_v52 = vld [vmem:[#allocation70_spill] sm:$0xff] }
 0x135   :  { %13984 = vst [vmem:[#allocation20_spill] sm:$0xff] %v9006_v53  ;;  %2902 = vmatprep.subr.bf16.mxu0 %v9006_v53  ;;  %v1904_v51 = vrot.slane %v6564_v9, %v6789_v18  ;;  %v2104_v45 = vrot.slane %v6565_v48, %v6783_v16  ;;  %v2108_v29 = vrot.slane %v6565_v48, %v6786_v17  ;;  %v6566_v48 = vld [vmem:[%s13186_s1 + $0x2] ss:$8 sm:$0xf] }
 0x136   :  { %v1570_v27 = vsel %vm55_vm5, %v1564_v4, %v8796_v41  ;;  %v1571_v60 = vsel %vm55_vm5, %v13985_v52, %v1564_v4  ;;  %v2593_v28 = vrot.slane %v2305_v10, 6  ;;  %v1662_v41 = vrot.slane %v6566_v48, %v6789_v18 }
 0x137   :  { %v1597_v9 = vmul.f32 %v1586_v24, %v1571_v60  ;;  %v1598_v5 = vmul.f32 %v1590_v6, %v1570_v27  ;;  %v9047_v36 = vmul.f32 %v1900_v56, %v1571_v60  ;;  %v9049_v20 = vmul.f32 %v1904_v51, %v1570_v27 }
 0x138   :  { %v9051_v38 = vmul.f32 %v2104_v45, %v1571_v60  ;;  %v9053_v43 = vmul.f32 %v2108_v29, %v1570_v27  ;;  %v9061_v4 = vsel %vm992_vm4, %v8736_v0, %v2593_v28  ;;  %v13988_v56 = vrot.slane %v8849_v55, 6  ;;  %v1640_v45 = vpop.permute.xlu0 %1639  ;;  %v6567_v55 = vld [vmem:[%s13186_s1 + $0x23] ss:$8 sm:$0xf] }
 0x139   :  { %13987 = vst [vmem:[#allocation5_spill] sm:$0xff] %v9061_v4  ;;  %v13989_v6 = vrot.slane %v8854_v30, 6  ;;  %v1666_v0 = vrot.slane %v6566_v48, %v6792_v19  ;;  %v1952_v28 = vrot.slane %v6567_v55, %v6786_v17  ;;  %v1956_v30 = vrot.slane %v6567_v55, %v6789_v18  ;;  %v6569_v55 = vld [vmem:[%s13186_s1 + $0x6] ss:$8 sm:$0xf] }
 0x13a   :  { %13986 = vst [vmem:[#allocation21_spill] sm:$0xff] %v9051_v38  ;;  %v2469_v51 = vsel %vm992_vm4, %v1597_v9, %v13988_v56  ;;  %v1646_v48 = vsel %vm134_vm2, %v1640_v45, %v8620_v21  ;;  %v13990_v56 = vld [vmem:[#allocation34_spill] sm:$0xff]  ;;  %v1802_v27 = vrot.slane %v6569_v55, %v6789_v18  ;;  %v1806_v52 = vrot.slane %v6569_v55, %v6792_v19 }
 0x13b   :  { %v2470_v10 = vsel %vm992_vm4, %v1598_v5, %v13989_v6  ;;  %v6568_v5 = vld [vmem:[%s13186_s1 + $0x44] ss:$8 sm:$0xf]  ;;  %v1647_v6 = vsel %vm134_vm2, %v13990_v56, %v1640_v45  ;;  %v1674_v24 = vmul.f32 %v1666_v0, %v1646_v48  ;;  %v6570_v45 = vld [vmem:[%s13186_s1 + $0x27] ss:$8 sm:$0xf] }
 0x13c   :  { %v2156_v60 = vrot.slane %v6568_v5, %v6783_v16  ;;  %v2160_v9 = vrot.slane %v6568_v5, %v6786_v17  ;;  %v1673_v29 = vmul.f32 %v1662_v41, %v1647_v6  ;;  %v9095_v4 = vmul.f32 %v1952_v28, %v1647_v6 }
 0x13d   :  { %v9097_v5 = vmul.f32 %v1956_v30, %v1646_v48  ;;  %v2030_v56 = vrot.slane %v6570_v45, %v6786_v17  ;;  %v2034_v59 = vrot.slane %v6570_v45, %v6789_v18  ;;  %v2352_v41 = vrot.slane %v1674_v24, 4  ;;  %v6571_v30 = vld [vmem:[%s13186_s1 + $0x60] ss:$8 sm:$0xf] }
 0x13e   :  { %v9099_v21 = vmul.f32 %v2156_v60, %v1647_v6  ;;  %v9101_v42 = vmul.f32 %v2160_v9, %v1646_v48  ;;  %v2351_v55 = vrot.slane %v1673_v29, 4  ;;  %v2260_v60 = vrot.slane %v6571_v30, %v6783_v16  ;;  %v13991_v6 = vld [vmem:[#allocation46_spill] sm:$0xff]  ;;  %v6416_v29 = vld.sshfl [vmem:[%s13187_s2] sm:$0x33 pattern:$0x76325410] }
 0x13f   :  { %v2264_v9 = vrot.slane %v6571_v30, %v6786_v17  ;;  %v1785_v48 = vsel %vm281_vm3, %v1782_v58, %v8690_v33  ;;  %v1786_v24 = vsel %vm281_vm3, %v13991_v6, %v1782_v58  ;;  %v9128_v28 = vsel %vm997_vm6, %v2470_v10, %v2352_v41 }
 0x140   :  { %v9125_v45 = vsel %vm997_vm6, %v2469_v51, %v2351_v55  ;;  %v1813_v0 = vmul.f32 %v1802_v27, %v1786_v24  ;;  %v1814_v30 = vmul.f32 %v1806_v52, %v1785_v48  ;;  %v9130_v53 = vmul.f32 %v2030_v56, %v1786_v24  ;;  %v6572_v51 = vld [vmem:[%s13186_s1 + $0x3] ss:$8 sm:$0xf]  ;;  %v1678_v55 = vpop.permute.xlu0 %1677  ;;  %v6573_v56 = vld [vmem:[%s13186_s1 + $0x24] ss:$8 sm:$0xf]  ;;  %v1820_v27 = vpop.permute.xlu1 %1819 }
 0x141   :  { %v9132_v15 = vmul.f32 %v2034_v59, %v1785_v48  ;;  %v9134_v33 = vmul.f32 %v2260_v60, %v1786_v24  ;;  %v9136_v12 = vmul.f32 %v2264_v9, %v1785_v48  ;;  %v1416_v38 = vcombine.high %v6416_v29, %v6416_v29  ;;  %v6574_v48 = vld [vmem:[%s13186_s1 + $0x45] ss:$8 sm:$0xf] }
 0x142   :  { %v2387_v58 = vrot.slane %v1813_v0, 4  ;;  %v2388_v6 = vrot.slane %v1814_v30, 4  ;;  %v1700_v10 = vrot.slane %v6572_v51, %v6789_v18  ;;  %v1704_v59 = vrot.slane %v6572_v51, %v6792_v19 }
 0x143   :  { %v1978_v41 = vrot.slane %v6573_v56, %v6786_v17  ;;  %6418 = vmatprep.mubr.msk.bf16.mxu0 %vm1418_vm13, %v1416_v38  ;;  %v1982_v9 = vrot.slane %v6573_v56, %v6789_v18  ;;  %v2182_v24 = vrot.slane %v6574_v48, %v6783_v16  ;;  %v2186_v30 = vrot.slane %v6574_v48, %v6786_v17 }
 0x144   :  { %v9151_v0 = vsel %vm997_vm6, %v8957_v8, %v2387_v58  ;;  %v9155_v60 = vsel %vm997_vm6, %v8961_v3, %v2388_v6  ;;  %v1684_v8 = vsel %vm174_vm7, %v1678_v55, %v8882_v22  ;;  %v1685_v3 = vsel %vm174_vm7, %v8662_v34, %v1678_v55  ;;  %1468 = vmatmul.mubr.bf16.vlgmr.msra.gmra.mrb[0].mxu0 %v6416_v29 }
 0x145   :  { %v1840_v58 = vrot.slane %v8993_v7, %v6789_v18  ;;  %v9172_v6 = vmul.f32 %v1700_v10, %v1685_v3  ;;  %v9174_v51 = vmul.f32 %v1704_v59, %v1684_v8  ;;  %v1992_v56 = vmul.f32 %v1978_v41, %v1685_v3  ;;  %6420 = vmatprep.mubr.msk.bf16.mxu1 %vm1418_vm13, %v1416_v38  ;;  %v13992_v59 = vld [vmem:[#allocation7_spill] sm:$0xff]  ;;  %v6575_v38 = vld [vmem:[%s13185_s0 + $0x8] sm:$0xcc] }
 0x146   :  { %v1993_v52 = vmul.f32 %v1982_v9, %v1684_v8  ;;  %v2199_v48 = vmul.f32 %v2182_v24, %v1685_v3  ;;  %v2200_v50 = vmul.f32 %v2186_v30, %v1684_v8  ;;  %v1844_v22 = vrot.slane %v8993_v7, %v6792_v19  ;;  %1509 = vmatmul.mubr.bf16.vlgmr.msra.gmra.mrb[0].mxu1 %v6416_v29  ;;  %v1854_v8 = vpop.permute.xlu0 %1853 }
 0x147   :  { %v2056_v34 = vrot.slane %v9000_v32, %v6786_v17  ;;  %v9185_v41 = vsel %vm992_vm4, %v1992_v56, %v13992_v59  ;;  %v2060_v29 = vrot.slane %v9000_v32, %v6789_v18  ;;  %v2286_v30 = vrot.slane %v9011_v1, %v6783_v16 }
 0x148   :  { %v9191_v9 = vsel %vm992_vm4, %v1993_v52, %v6575_v38  ;;  %v2555_v7 = vrot.slane %v2199_v48, 6  ;;  %v2556_v24 = vrot.slane %v2200_v50, 6  ;;  %v2290_v3 = vrot.slane %v9011_v1, %v6786_v17 }
 0x149   :  { %v1823_v56 = vsel %vm321_vm8, %v1820_v27, %v8964_v13  ;;  %v1824_v52 = vsel %vm321_vm8, %v8753_v11, %v1820_v27  ;;  %v13993_v50 = vrot.slane %v8646_v40, 4  ;;  %v6429_v11 = vld [vmem:[%s13186_s1 + $0x20] ss:$8 sm:$0xf] }
 0x14a   :  { %v9211_v48 = vsel %vm992_vm4, %v9099_v21, %v2555_v7  ;;  %v9215_v1 = vsel %vm992_vm4, %v9101_v42, %v2556_v24  ;;  %v9217_v59 = vmul.f32 %v1840_v58, %v1824_v52  ;;  %v1852_v13 = vmul.f32 %v1844_v22, %v1823_v56  ;;  %v6437_v21 = vld [vmem:[%s13186_s1 + $0x41] ss:$8 sm:$0xf]  ;;  %v6446_v42 = vld [vmem:[%s13186_s1 + $0x62] ss:$8 sm:$0xf]  ;;  %v1856_v58 = vpop.permute.xlu1 %1855 }
 0x14b   :  { %v2471_v32 = vsel %vm997_vm6, %v8844_v49, %v13993_v50  ;;  %13994 = vst [vmem:[#allocation50_spill] sm:$0xff] %v9211_v48  ;;  %13995 = vst [vmem:[#allocation51_spill] sm:$0xff] %v9215_v1  ;;  %v9222_v27 = vmul.f32 %v2056_v34, %v1824_v52  ;;  %v9224_v40 = vmul.f32 %v2060_v29, %v1823_v56  ;;  %v13996_v24 = vrot.slane %v8908_v54, 2 }
 0x14c   :  { %v2303_v49 = vmul.f32 %v2286_v30, %v1824_v52  ;;  %v2304_v38 = vmul.f32 %v2290_v3, %v1823_v56  ;;  %v2400_v7 = vrot.slane %v1852_v13, 2  ;;  %v13997_v29 = vrot.slane %v9024_v25, 2  ;;  %v1860_v13 = vpop.permute.xlu0 %1859 }
 0x14d   :  { %v2475_v34 = vsel %vm1002_vm9, %v2471_v32, %v13996_v24  ;;  %v1874_v50 = vrot.slane %v6429_v11, %v6786_v17  ;;  %v2078_v55 = vrot.slane %v6437_v21, %v6783_v16  ;;  %v2324_v22 = vrot.slane %v6446_v42, %v6792_v19 }
 0x14e   :  { %v2487_v30 = vsel %vm1002_vm9, %v8777_v31, %v13997_v29  ;;  %v2591_v3 = vrot.slane %v2303_v49, 6  ;;  %v2592_v56 = vrot.slane %v2304_v38, 6  ;;  %v1863_v54 = vsel %vm361_vm10, %v1854_v8, %v1856_v58 }
 0x14f   :  { %v9240_v52 = vpack.c.bf16 %v2487_v30, %v2475_v34  ;;  %v1870_v32 = vrot.slane %v6429_v11, %v6783_v16  ;;  %v1888_v24 = vmul.f32 %v1874_v50, %v1863_v54  ;;  %v2095_v29 = vmul.f32 %v2078_v55, %v1863_v54 }
 0x150   :  { %v9250_v25 = vsel %vm992_vm4, %v9134_v33, %v2591_v3  ;;  %v9254_v31 = vsel %vm992_vm4, %v9136_v12, %v2592_v56  ;;  %v9259_v10 = vmul.f32 %v2324_v22, %v1863_v54  ;;  %v2090_v48 = vrot.slane %v6437_v21, %v6792_v19 }
 0x151   :  { %13998 = vst [vmem:[#allocation54_spill] sm:$0xff] %v9240_v52  ;;  %13999 = vst [vmem:[#allocation49_spill] sm:$0xff] %v9250_v25  ;;  %v2659_v49 = vunpack.c.l.bf16 %v9240_v52  ;;  %v2663_v38 = vunpack.c.h.bf16 %v9240_v52  ;;  %2903 = vmatpush1.bf16.msra.mxu0 %v9240_v52  ;;  %v2320_v3 = vrot.slane %v6446_v42, %v6789_v18  ;;  %v1864_v12 = vsel %vm361_vm10, %v1860_v13, %v1854_v8 }
 0x152   :  { %v14000_v56 = vrot.slane %v9047_v36, 6  ;;  %v2519_v52 = vrot.slane %v2095_v29, 6  ;;  %v2606_v55 = vrot.slane %v9259_v10, 4  ;;  %v1887_v22 = vmul.f32 %v1870_v32, %v1864_v12 }
 0x153   :  { %v9262_v1 = vsub.f32 %v2475_v34, %v2659_v49  ;;  %v9264_v33 = vsub.f32 %v2487_v30, %v2663_v38  ;;  %v2098_v50 = vmul.f32 %v2090_v48, %v1864_v12  ;;  %v9273_v54 = vmul.f32 %v2320_v3, %v1864_v12  ;;  %v1858_v49 = vpop.permute.xlu1 %1857 }
 0x154   :  { %v2492_v25 = vsel %vm992_vm4, %v1888_v24, %v14000_v56  ;;  %v1878_v34 = vrot.slane %v6429_v11, %v6789_v18  ;;  %v1882_v30 = vrot.slane %v6429_v11, %v6792_v19  ;;  %v9279_v38 = vsel %vm992_vm4, %v8787_v23, %v2519_v52 }
 0x155   :  { %v14001_v36 = vrot.slane %v8609_v37, 6  ;;  %v2082_v24 = vrot.slane %v6437_v21, %v6786_v17  ;;  %v2086_v32 = vrot.slane %v6437_v21, %v6789_v18  ;;  %v2522_v48 = vrot.slane %v2098_v50, 6 }
 0x156   :  { %v2605_v29 = vrot.slane %v9273_v54, 4  ;;  %v2312_v3 = vrot.slane %v6446_v42, %v6783_v16  ;;  %v2316_v11 = vrot.slane %v6446_v42, %v6786_v17  ;;  %v1861_v12 = vsel %vm361_vm10, %v1858_v49, %v1860_v13 }
 0x157   :  { %v2491_v8 = vsel %vm992_vm4, %v1887_v22, %v14001_v36  ;;  %v1862_v23 = vsel %vm361_vm10, %v1856_v58, %v1858_v49  ;;  %v14002_v37 = vrot.slane %v9174_v51, 2  ;;  %v9301_v21 = vsel %vm1002_vm9, %v9155_v60, %v2400_v7 }
 0x158   :  { %v2614_v56 = vsel %vm992_vm4, %v9026_v35, %v2522_v48  ;;  %v1889_v42 = vmul.f32 %v1878_v34, %v1862_v23  ;;  %v1890_v22 = vmul.f32 %v1882_v30, %v1861_v12  ;;  %v2096_v50 = vmul.f32 %v2082_v24, %v1862_v23 }
 0x159   :  { %v9297_v52 = vsel %vm1002_vm9, %v9128_v28, %v14002_v37  ;;  %v2097_v13 = vmul.f32 %v2086_v32, %v1861_v12  ;;  %v9305_v36 = vmul.f32 %v2312_v3, %v1862_v23  ;;  %v9307_v58 = vmul.f32 %v2316_v11, %v1861_v12 }
 0x15a   :  { %v9311_v51 = vpack.c.bf16 %v9301_v21, %v9297_v52  ;;  %v14003_v28 = vrot.slane %v9049_v20, 6  ;;  %v14004_v7 = vrot.slane %v8822_v47, 6  ;;  %v2520_v34 = vrot.slane %v2096_v50, 6 }
 0x15b   :  { %v14005_v30 = vrot.slane %v9172_v6, 2  ;;  %v2521_v24 = vrot.slane %v2097_v13, 6  ;;  %v2603_v32 = vrot.slane %v9305_v36, 4  ;;  %v2604_v48 = vrot.slane %v9307_v58, 4  ;;  %v14015_v13 = vld [vmem:[#allocation24_spill] sm:$0xff] }
 0x15c   :  { %v2493_v60 = vsel %vm992_vm4, %v1889_v42, %v14003_v28  ;;  %v2494_v35 = vsel %vm992_vm4, %v1890_v22, %v14004_v7  ;;  %2943 = vmatprep.subr.bf16.mxu1 %v9311_v51  ;;  %v14006_v20 = vrot.slane %v9217_v59, 2  ;;  %v2612_v3 = vsel %vm992_vm4, %v9222_v27, %v2520_v34  ;;  %v14060_v36 = vld [vmem:[#allocation40_spill] sm:$0xff] }
 0x15d   :  { %v2477_v49 = vsel %vm1002_vm9, %v9125_v45, %v14005_v30  ;;  %v14007_v6 = vrot.slane %v8863_v2, 4  ;;  %v14008_v12 = vrot.slane %v8934_v26, 4  ;;  %v2613_v59 = vsel %vm992_vm4, %v9224_v40, %v2521_v24  ;;  %v14011_v2 = vld [vmem:[#allocation3_spill] sm:$0xff]  ;;  %v14013_v40 = vld [vmem:[#allocation38_spill] sm:$0xff] }
 0x15e   :  { %v2489_v47 = vsel %vm1002_vm9, %v9151_v0, %v14006_v20  ;;  %v14009_v37 = vrot.slane %v9095_v4, 2  ;;  %v14010_v27 = vrot.slane %v9130_v53, 2  ;;  %v14014_v50 = vrot.slane %v14013_v40, 2  ;;  %v14019_v30 = vld [vmem:[#allocation27_spill] sm:$0xff] }
 0x15f   :  { %v9332_v11 = vpack.c.bf16 %v2489_v47, %v2477_v49  ;;  %v2496_v45 = vsel %vm997_vm6, %v2492_v25, %v14007_v6  ;;  %v2508_v23 = vsel %vm997_vm6, %v9185_v41, %v14008_v12  ;;  %v14012_v25 = vrot.slane %v14011_v2, 4 }
 0x160   :  { %v9346_v0 = vsel %vm1002_vm9, %v2496_v45, %v14009_v37  ;;  %v9351_v42 = vsel %vm1002_vm9, %v2508_v23, %v14010_v27  ;;  %v14016_v58 = vrot.slane %v14015_v13, 4  ;;  %v14020_v24 = vrot.slane %v14019_v30, 4 }
 0x161   :  { %v2495_v26 = vsel %vm997_vm6, %v2491_v8, %v14012_v25  ;;  %v2661_v22 = vunpack.c.l.bf16 %v9332_v11  ;;  %v2665_v41 = vunpack.c.h.bf16 %v9332_v11  ;;  %2944 = vmatpush1.bf16.msra.mxu1 %v9332_v11  ;;  %v9361_v4 = vpack.c.bf16 %v9351_v42, %v9346_v0  ;;  %v14017_v8 = vld [vmem:[#allocation61_spill] sm:$0xff] }
 0x162   :  { %v2499_v53 = vsel %vm1002_vm9, %v2495_v26, %v14014_v50  ;;  %v2507_v28 = vsel %vm997_vm6, %v8722_v14, %v14016_v58  ;;  %v14018_v7 = vrot.slane %v14017_v8, 4  ;;  %v2510_v20 = vsel %vm997_vm6, %v8942_v39, %v14020_v24  ;;  %v14022_v14 = vld [vmem:[#allocation37_spill] sm:$0xff] }
 0x163   :  { %v14021_v6 = vrot.slane %v8868_v61, 4  ;;  %v9380_v12 = vsub.f32 %v2477_v49, %v2661_v22  ;;  %v9382_v23 = vsub.f32 %v2489_v47, %v2665_v41  ;;  %2904 = vmatprep.subr.bf16.mxu0 %v9361_v4  ;;  %v14023_v37 = vrot.slane %v14022_v14, 2  ;;  %v14034_v14 = vld [vmem:[#allocation8_spill] sm:$0xff] }
 0x164   :  { %v2498_v34 = vsel %vm997_vm6, %v2494_v35, %v14018_v7  ;;  %v14024_v35 = vrot.slane %v8654_v57, 2  ;;  %v14025_v61 = vrot.slane %v8730_v44, 2  ;;  %v14026_v49 = vrot.slane %v9097_v5, 2  ;;  %v6442_v57 = vld [vmem:[%s13186_s1 + $0x46] ss:$8 sm:$0xf] }
 0x165   :  { %v2497_v45 = vsel %vm997_vm6, %v2493_v60, %v14021_v6  ;;  %v2511_v27 = vsel %vm1002_vm9, %v2507_v28, %v14023_v37  ;;  %v14027_v25 = vrot.slane %v8936_v62, 4  ;;  %v14028_v44 = vrot.slane %v9132_v15, 2  ;;  %v14031_v28 = vld [vmem:[#allocation11_spill] sm:$0xff] }
 0x166   :  { %v9391_v2 = vsel %vm1002_vm9, %v2498_v34, %v14024_v35  ;;  %v9393_v39 = vpack.c.bf16 %v2511_v27, %v2499_v53  ;;  %v9398_v60 = vsel %vm1002_vm9, %v2510_v20, %v14025_v61  ;;  %v2501_v47 = vsel %vm1002_vm9, %v2497_v45, %v14026_v49  ;;  %v14035_v35 = vld [vmem:[#allocation23_spill] sm:$0xff] }
 0x167   :  { %v2509_v26 = vsel %vm997_vm6, %v9191_v9, %v14027_v25  ;;  %v9412_v22 = vpack.c.bf16 %v9398_v60, %v9391_v2  ;;  %v2212_v5 = vrot.slane %v6442_v57, %v6786_v17  ;;  %v14029_v40 = vrot.slane %v9053_v43, 4 }
 0x168   :  { %v2513_v41 = vsel %vm1002_vm9, %v2509_v26, %v14028_v44  ;;  %v2667_v9 = vunpack.c.l.bf16 %v9393_v39  ;;  %v2671_v50 = vunpack.c.h.bf16 %v9393_v39  ;;  %2905 = vmatpush1.bf16.msra.mxu0 %v9393_v39  ;;  %v14030_v58 = vrot.slane %v8880_v46, 2  ;;  %v14038_v26 = vld [vmem:[#allocation21_spill] sm:$0xff] }
 0x169   :  { %v2616_v62 = vsel %vm997_vm6, %v2612_v3, %v14029_v40  ;;  %v9424_v13 = vpack.c.bf16 %v2513_v41, %v2501_v47  ;;  %2945 = vmatprep.subr.bf16.mxu1 %v9412_v22  ;;  %v2226_v8 = vmul.f32 %v2212_v5, %v14031_v28  ;;  %v2220_v43 = vrot.slane %v6442_v57, %v6792_v19  ;;  %v14032_v3 = vld [vmem:[#allocation17_spill] sm:$0xff]  ;;  %v14041_v28 = vld [vmem:[#allocation48_spill] sm:$0xff] }
 0x16a   :  { %v9429_v15 = vsel %vm1002_vm9, %v2616_v62, %v14030_v58  ;;  %v14033_v7 = vrot.slane %v14032_v3, 4  ;;  %v2208_v30 = vrot.slane %v6442_v57, %v6783_v16  ;;  %v9438_v24 = vsub.f32 %v2499_v53, %v2667_v9  ;;  %v14040_v62 = vld [vmem:[#allocation51_spill] sm:$0xff] }
 0x16b   :  { %v9440_v20 = vsub.f32 %v2511_v27, %v2671_v50  ;;  %v2669_v46 = vunpack.c.l.bf16 %v9424_v13  ;;  %v2673_v6 = vunpack.c.h.bf16 %v9424_v13  ;;  %2946 = vmatpush1.bf16.msra.mxu1 %v9424_v13  ;;  %v2568_v45 = vrot.slane %v2226_v8, 4 }
 0x16c   :  { %v2618_v34 = vsel %vm997_vm6, %v2614_v56, %v14033_v7  ;;  %v2228_v37 = vmul.f32 %v2220_v43, %v14034_v14  ;;  %v14036_v61 = vrot.slane %v14035_v35, 2  ;;  %v14037_v56 = vld [vmem:[#allocation10_spill] sm:$0xff]  ;;  %v14039_v44 = vrot.slane %v14038_v26, 4  ;;  %v14048_v14 = vld [vmem:[#allocation16_spill] sm:$0xff] }
 0x16d   :  { %v2225_v25 = vmul.f32 %v2208_v30, %v14037_v56  ;;  %v9452_v53 = vsub.f32 %v2501_v47, %v2669_v46  ;;  %v9454_v27 = vsub.f32 %v2513_v41, %v2673_v6  ;;  %v9462_v40 = vsel %vm997_vm6, %v9254_v31, %v2604_v48  ;;  %v14043_v41 = vld [vmem:[#allocation42_spill] sm:$0xff]  ;;  %v14045_v31 = vld [vmem:[#allocation20_spill] sm:$0xff]  ;;  %v14046_v30 = vld [vmem:[#allocation47_spill] sm:$0xff] }
 0x16e   :  { %v9449_v49 = vsel %vm1002_vm9, %v2618_v34, %v14036_v61  ;;  %v2615_v5 = vsel %vm997_vm6, %v9279_v38, %v14039_v44  ;;  %v2628_v9 = vsel %vm997_vm6, %v14040_v62, %v2568_v45  ;;  %v2570_v50 = vrot.slane %v2228_v37, 4  ;;  %v14047_v6 = vld [vmem:[#allocation50_spill] sm:$0xff]  ;;  %v14054_v62 = vld [vmem:[#allocation9_spill] sm:$0xff] }
 0x16f   :  { %v2567_v58 = vrot.slane %v2225_v25, 4  ;;  %v14042_v8 = vrot.slane %v14041_v28, 2  ;;  %v14044_v43 = vrot.slane %v14043_v41, 2  ;;  %v9476_v38 = vpack.c.bf16 %v9462_v40, %v9462_v40  ;;  %v14050_v61 = vld [vmem:[#allocation30_spill] sm:$0xff]  ;;  %v14057_v41 = vld [vmem:[#allocation68_spill] sm:$0xff] }
 0x170   :  { %v2748_v48 = vrot.slane %v14045_v31, 5  ;;  %v2216_v7 = vrot.slane %v6442_v57, %v6789_v18  ;;  %v2630_v46 = vsel %vm997_vm6, %v14046_v30, %v2570_v50  ;;  %v14049_v37 = vrot.slane %v14048_v14, 4  ;;  %v14052_v57 = vld [vmem:[#allocation39_spill] sm:$0xff] }
 0x171   :  { %v2619_v47 = vsel %vm1002_vm9, %v2615_v5, %v14042_v8  ;;  %v9472_v3 = vsel %vm1002_vm9, %v2628_v9, %v14044_v43  ;;  %v2627_v45 = vsel %vm997_vm6, %v14047_v6, %v2567_v58  ;;  %v14051_v56 = vrot.slane %v14050_v61, 2  ;;  %v14055_v58 = vld [vmem:[#allocation66_spill] sm:$0xff]  ;;  %v14058_v6 = vld [vmem:[#allocation49_spill] sm:$0xff] }
 0x172   :  { %v9482_v34 = vpack.c.bf16 %v9472_v3, %v9429_v15  ;;  %v2617_v35 = vsel %vm997_vm6, %v2613_v59, %v14049_v37  ;;  %v14053_v26 = vrot.slane %v14052_v57, 2  ;;  %v2845_v5 = vsel %vm1275_vm11, %v9476_v38, %v2748_v48  ;;  %v14059_v37 = vld [vmem:[#allocation54_spill] sm:$0xff]  ;;  %v14061_v57 = vld [vmem:[#allocation5_spill] sm:$0xff] }
 0x173   :  { %v9494_v25 = vsel %vm1002_vm9, %v2630_v46, %v14051_v56  ;;  %v2227_v9 = vmul.f32 %v2216_v7, %v14054_v62  ;;  %v14056_v28 = vrot.slane %v14055_v58, 2  ;;  %v9516_v43 = vsel %vm997_vm6, %v14057_v41, %v2606_v55  ;;  %v14062_v58 = vld [vmem:[#allocation15_spill] sm:$0xff] }
 0x174   :  { %v2631_v44 = vsel %vm1002_vm9, %v2627_v45, %v14053_v26  ;;  %2906 = vmatprep.subr.bf16.mxu0 %v9482_v34  ;;  %v9505_v50 = vpack.c.bf16 %v9494_v25, %v9449_v49  ;;  %v9520_v7 = vpack.c.bf16 %v9516_v43, %v9516_v43  ;;  %v2750_v46 = vrot.slane %v9311_v51, 5 }
 0x175   :  { %v9507_v59 = vpack.c.bf16 %v2631_v44, %v2619_v47  ;;  %v2621_v8 = vsel %vm1002_vm9, %v2617_v35, %v14056_v28  ;;  %v2569_v30 = vrot.slane %v2227_v9, 4  ;;  %v9527_v45 = vsel %vm997_vm6, %v14058_v6, %v2603_v32 }
 0x176   :  { %2947 = vmatprep.subr.bf16.mxu1 %v9505_v50  ;;  %v9535_v14 = vpack.c.bf16 %v9527_v45, %v9527_v45  ;;  %v2747_v35 = vrot.slane %v14059_v37, 5  ;;  %v2853_v32 = vsel %vm1275_vm11, %v9520_v7, %v2750_v46  ;;  %v2753_v56 = vrot.slane %v9361_v4, 5 }
 0x177   :  { %v2675_v10 = vunpack.c.l.bf16 %v9507_v59  ;;  %v2679_v55 = vunpack.c.h.bf16 %v9507_v59  ;;  %2907 = vmatpush1.bf16.msra.mxu0 %v9507_v59  ;;  %v2629_v61 = vsel %vm997_vm6, %v14060_v36, %v2569_v30  ;;  %v9547_v26 = vsel %vm997_vm6, %v14061_v57, %v2605_v29 }
 0x178   :  { %2908 = vmatprep.subr.bf16.mxu0 %v2845_v5  ;;  %v14063_v5 = vrot.slane %v14062_v58, 2  ;;  %v2841_v41 = vsel %vm1275_vm11, %v9535_v14, %v2747_v35  ;;  %v2754_v6 = vsel %vm1275_vm11, %v2748_v48, %v2753_v56  ;;  %v9563_v54 = vpack.c.bf16 %v9547_v26, %v9547_v26 }
 0x179   :  { %v9549_v62 = vsub.f32 %v2619_v47, %v2675_v10  ;;  %v9551_v9 = vsub.f32 %v2631_v44, %v2679_v55  ;;  %v2749_v29 = vrot.slane %v9332_v11, 5  ;;  %v2757_v47 = vrot.slane %v9412_v22, 5 }
 0x17a   :  { %v2633_v28 = vsel %vm1002_vm9, %v2629_v61, %v14063_v5  ;;  %v2751_v44 = vrot.slane %v9393_v39, 5  ;;  %v2761_v10 = vrot.slane %v9482_v34, 5  ;;  %v2755_v55 = vrot.slane %v9424_v13, 5 }
 0x17b   :  { %v9558_v30 = vpack.c.bf16 %v2633_v28, %v2621_v8  ;;  %2909 = vmatpush1.bf16.msra.mxu0 %v2841_v41  ;;  %v2849_v48 = vsel %vm1275_vm11, %v9563_v54, %v2749_v29  ;;  %v2765_v11 = vrot.slane %v9505_v50, 5  ;;  %v2758_v61 = vsel %vm1275_vm11, %v2750_v46, %v2757_v47 }
 0x17c   :  { %2910 = vmatprep.subr.bf16.mxu0 %v2754_v6  ;;  %v2752_v39 = vsel %vm1275_vm11, %v2747_v35, %v2751_v44  ;;  %v2762_v57 = vsel %vm1275_vm11, %v2753_v56, %v2761_v10  ;;  %v2756_v13 = vsel %vm1275_vm11, %v2749_v29, %v2755_v55  ;;  %v2759_v6 = vrot.slane %v9507_v59, 5  ;;  %v14064_v59 = vld [vmem:[#allocation72_spill] sm:$0xff] }
 0x17d   :  { %v2677_v37 = vunpack.c.l.bf16 %v9558_v30  ;;  %v2681_v36 = vunpack.c.h.bf16 %v9558_v30  ;;  %2948 = vmatpush1.bf16.msra.mxu1 %v9558_v30  ;;  %v2766_v41 = vsel %vm1275_vm11, %v2757_v47, %v2765_v11  ;;  %v2660_v63 = vunpack.c.l.bf16 %v14045_v31 }
 0x17e   :  { %2949 = vmatprep.subr.bf16.mxu1 %v2853_v32  ;;  %v2664_v32 = vunpack.c.h.bf16 %v14045_v31  ;;  %v2769_v46 = vrot.slane %v9476_v38, 5  ;;  %v2763_v35 = vrot.slane %v9558_v30, 5  ;;  %v2662_v56 = vunpack.c.l.bf16 %v9311_v51 }
 0x17f   :  { %v9580_v58 = vsub.f32 %v2621_v8, %v2677_v37  ;;  %v9582_v5 = vsub.f32 %v2633_v28, %v2681_v36  ;;  %2911 = vmatpush1.bf16.msra.mxu0 %v2752_v39  ;;  %v2760_v8 = vsel %vm1275_vm11, %v2751_v44, %v2759_v6  ;;  %v2666_v28 = vunpack.c.h.bf16 %v9311_v51  ;;  %v14065_v37 = vld [vmem:[#allocation53_spill] sm:$0xff] }
 0x180   :  { %2912 = vmatprep.subr.bf16.mxu0 %v2762_v57  ;;  %v2773_v29 = vrot.slane %v9520_v7, 5  ;;  %v2688_v47 = vsub.f32 %v14064_v59, %v2660_v63  ;;  %v2692_v36 = vsub.f32 %v14065_v37, %v2664_v32  ;;  %v2770_v31 = vsel %vm1275_vm11, %v2761_v10, %v2769_v46 }
 0x181   :  { %2950 = vmatpush1.bf16.msra.mxu1 %v2849_v48  ;;  %v2764_v39 = vsel %vm1275_vm11, %v2755_v55, %v2763_v35  ;;  %v2690_v30 = vsub.f32 %v9297_v52, %v2662_v56  ;;  %v2694_v48 = vsub.f32 %v9301_v21, %v2666_v28  ;;  %v2715_v51 = vpack.c.bf16 %v9264_v33, %v9262_v1 }
 0x182   :  { %2951 = vmatprep.subr.bf16.mxu1 %v2758_v61  ;;  %v2774_v44 = vsel %vm1275_vm11, %v2765_v11, %v2773_v29  ;;  %v2716_v57 = vpack.c.bf16 %v2692_v36, %v2688_v47  ;;  %v2767_v61 = vrot.slane %v9535_v14, 5  ;;  %v2668_v63 = vunpack.c.l.bf16 %v9361_v4 }
 0x183   :  { %2913 = vmatpush1.bf16.msra.mxu0 %v2760_v8  ;;  %v2672_v32 = vunpack.c.h.bf16 %v9361_v4  ;;  %v2718_v10 = vpack.c.bf16 %v2694_v48, %v2690_v30  ;;  %v2799_v55 = vrot.slane %v2715_v51, 2  ;;  %v2717_v52 = vpack.c.bf16 %v9382_v23, %v9380_v12 }
 0x184   :  { %v2771_v21 = vrot.slane %v9563_v54, 5  ;;  %v2800_v11 = vrot.slane %v2716_v57, 2  ;;  %v2768_v1 = vsel %vm1275_vm11, %v2759_v6, %v2767_v61  ;;  %v2696_v33 = vsub.f32 %v9346_v0, %v2668_v63 }
 0x185   :  { %2952 = vmatpush1.bf16.msra.mxu1 %v2756_v13  ;;  %v2700_v46 = vsub.f32 %v9351_v42, %v2672_v32  ;;  %v2802_v8 = vrot.slane %v2718_v10, 2  ;;  %v2857_v56 = vsel %vm1002_vm9, %v2768_v1, %v2799_v55  ;;  %v2801_v13 = vrot.slane %v2717_v52, 2 }
 0x186   :  { %2953 = vmatprep.subr.bf16.mxu1 %v2766_v41  ;;  %v2772_v4 = vsel %vm1275_vm11, %v2763_v35, %v2771_v21  ;;  %v2861_v28 = vsel %vm1002_vm9, %v2770_v31, %v2800_v11  ;;  %v2670_v12 = vunpack.c.l.bf16 %v9412_v22  ;;  %v2674_v23 = vunpack.c.h.bf16 %v9412_v22 }
 0x187   :  { %v2720_v29 = vpack.c.bf16 %v2700_v46, %v2696_v33  ;;  %2914 = vmatprep.subr.bf16.mxu0 %v2861_v28  ;;  %v2869_v41 = vsel %vm1002_vm9, %v2774_v44, %v2802_v8  ;;  %v2865_v0 = vsel %vm1002_vm9, %v2772_v4, %v2801_v13  ;;  %v2719_v42 = vpack.c.bf16 %v9440_v20, %v9438_v24  ;;  %v2871_v28 = vld [vmem:[%s13188_s3 + $0x4] sm:$0xf] }
 0x188   :  { %v2676_v6 = vunpack.c.l.bf16 %v9482_v34  ;;  %2915 = vmatpush1.bf16.msra.mxu0 %v2857_v56  ;;  %v2698_v59 = vsub.f32 %v9391_v2, %v2670_v12  ;;  %v2702_v47 = vsub.f32 %v9398_v60, %v2674_v23  ;;  %v2680_v22 = vunpack.c.h.bf16 %v9482_v34 }
 0x189   :  { %2954 = vmatpush1.bf16.msra.mxu1 %v2764_v39  ;;  %v2805_v35 = vrot.slane %v2720_v29, 2  ;;  %v2803_v37 = vrot.slane %v2719_v42, 2  ;;  %v2721_v31 = vpack.c.bf16 %v9454_v27, %v9452_v53  ;;  %v2678_v39 = vunpack.c.l.bf16 %v9505_v50 }
 0x18a   :  { %2955 = vmatprep.subr.bf16.mxu1 %v2869_v41  ;;  %v2704_v36 = vsub.f32 %v9429_v15, %v2676_v6  ;;  %v2722_v20 = vpack.c.bf16 %v2702_v47, %v2698_v59  ;;  %v2708_v30 = vsub.f32 %v9472_v3, %v2680_v22  ;;  %v2682_v48 = vunpack.c.h.bf16 %v9505_v50 }
 0x18b   :  { %v2806_v24 = vsel %vm1002_vm9, %v2800_v11, %v2805_v35  ;;  %v2804_v2 = vsel %vm1002_vm9, %v2799_v55, %v2803_v37  ;;  %v2807_v60 = vrot.slane %v2721_v31, 2  ;;  %v2706_v34 = vsub.f32 %v9449_v49, %v2678_v39  ;;  %v6447_v49 = vld.sshfl [vmem:[%s13187_s2 + $0x4] sm:$0x33 pattern:$0x76325410] }
 0x18c   :  { %2916 = vmatprep.subr.bf16.mxu0 %v2806_v24  ;;  %v2723_v15 = vpack.c.bf16 %v9551_v9, %v9549_v62  ;;  %v2809_v53 = vrot.slane %v2722_v20, 2  ;;  %v2724_v27 = vpack.c.bf16 %v2708_v30, %v2704_v36  ;;  %v2710_v44 = vsub.f32 %v9494_v25, %v2682_v48 }
 0x18d   :  { %2956 = vmatpush1.bf16.msra.mxu1 %v2865_v0  ;;  %2917 = vmatpush1.bf16.msra.mxu0 %v2804_v2  ;;  %v2684_v51 = vunpack.c.l.bf16 %v9476_v38  ;;  %v2808_v3 = vsel %vm1002_vm9, %v2801_v13, %v2807_v60  ;;  %v2725_v50 = vpack.c.bf16 %v9582_v5, %v9580_v58  ;;  %v2686_v57 = vunpack.c.l.bf16 %v9520_v7 }
 0x18e   :  { %v2810_v62 = vsel %vm1002_vm9, %v2802_v8, %v2809_v53  ;;  %v2813_v9 = vrot.slane %v2724_v27, 2  ;;  %v2726_v61 = vpack.c.bf16 %v2710_v44, %v2706_v34  ;;  %v2811_v25 = vrot.slane %v2723_v15, 2 }
 0x18f   :  { %v2712_v63 = vsub.f32 %v9462_v40, %v2684_v51  ;;  %2957 = vmatprep.subr.bf16.mxu1 %v2810_v62  ;;  %v2815_v38 = vrot.slane %v2725_v50, 2  ;;  %v2714_v32 = vsub.f32 %v9516_v43, %v2686_v57  ;;  %v2683_v10 = vunpack.c.l.bf16 %v9535_v14 }
 0x190   :  { %v2814_v58 = vsel %vm1002_vm9, %v2805_v35, %v2813_v9  ;;  %v2817_v7 = vrot.slane %v2726_v61, 2  ;;  %v2685_v55 = vunpack.c.l.bf16 %v9563_v54  ;;  %v2812_v52 = vsel %vm1002_vm9, %v2803_v37, %v2811_v25  ;;  %v1402_v54 = vld [vmem:[%s13188_s3] sm:$0xf] }
 0x191   :  { %2958 = vmatpush1.bf16.msra.mxu1 %v2808_v3  ;;  %v2728_v5 = vpack.c.bf16 %v2712_v63, %v2712_v63  ;;  %2918 = vmatprep.subr.bf16.mxu0 %v2814_v58  ;;  %v2730_v21 = vpack.c.bf16 %v2714_v32, %v2714_v32  ;;  %v2711_v40 = vsub.f32 %v9527_v45, %v2683_v10  ;;  %v13353_v13 = vmov 0  }
 0x192   :  { %v2885_v11 = vcombine.high %v6447_v49, %v6447_v49  ;;  %v2818_v1 = vsel %vm1002_vm9, %v2809_v53, %v2817_v7  ;;  %2919 = vmatpush1.bf16.msra.mxu0 %v2812_v52  ;;  %v2713_v14 = vsub.f32 %v9547_v26, %v2685_v55  ;;  %v2816_v33 = vsel %vm1002_vm9, %v2807_v60, %v2815_v38 }
 0x193   :  { %v2821_v43 = vrot.slane %v2728_v5, 2  ;;  %2959 = vmatprep.subr.bf16.mxu1 %v2818_v1  ;;  %v2825_v46 = vrot.slane %v2730_v21, 2  ;;  %v2727_v8 = vpack.c.bf16 %v2711_v40, %v2711_v40  ;;  %6545 = vset.pattern.permute.xlu0 %v13353_v13 }
 0x194   :  { %6449 = vmatprep.mubr.msk.bf16.mxu0 %vm1418_vm13, %v2885_v11  ;;  %v2729_v56 = vpack.c.bf16 %v2713_v14, %v2713_v14  ;;  %6451 = vmatprep.mubr.msk.bf16.mxu1 %vm1418_vm13, %v2885_v11 }
 0x195   :  { %v2822_v45 = vsel %vm1002_vm9, %v2813_v9, %v2821_v43  ;;  %2960 = vmatpush1.bf16.msra.mxu1 %v2816_v33  ;;  %v2826_v26 = vsel %vm1002_vm9, %v2817_v7, %v2825_v46  ;;  %v2819_v4 = vrot.slane %v2727_v8, 2  ;;  %1405 = vperm.xlu0 %6545, %v1402_v54  }
 0x196   :  { %2920 = vmatprep.subr.bf16.mxu0 %v2822_v45  ;;  %2961 = vmatprep.subr.bf16.mxu1 %v2826_v26  ;;  %v2823_v29 = vrot.slane %v2729_v56, 2 }
 0x197   :  { %v2820_v12 = vsel %vm1002_vm9, %v2811_v25, %v2819_v4  ;;  %6546 = vset.pattern.permute.xlu1 %v13353_v13  ;;  %v2891_v41 = vsel %vm1422_vm12, %v2819_v4, 0  ;;  %v9975_v13 = vld [vmem:[%s13186_s1 + $0x5] ss:$8 sm:$0xf] }
 0x198   :  { %2921 = vmatpush1.bf16.msra.mxu0 %v2820_v12  ;;  %v2824_v23 = vsel %vm1002_vm9, %v2815_v38, %v2823_v29  ;;  %2874 = vperm.xlu1 %6546, %v2871_v28   ;;  %v2897_v0 = vsel %vm1422_vm12, %v2823_v29, 0 }
 0x199   :  { %6448 = vmatprep.subr.msk.bf16.mxu0 %vm1422_vm12, %v2821_v43  ;;  %2962 = vmatpush1.bf16.msra.mxu1 %v2824_v23 }
 0x19a   :  { %6450 = vmatprep.subr.msk.bf16.mxu1 %vm1422_vm12, %v2825_v46 }
 0x19c   :  { %2923 = vmatpush1.bf16.msra.mxu0 %v2891_v41 }
 0x19d   :  { %2964 = vmatpush1.bf16.msra.mxu1 %v2897_v0 }
 0x19f   :  { %2935 = vmatmul.mubr.bf16.vlgmr.msra.gmra.mrb[4].mxu0 %v6447_v49 }
 0x1a0   :  { %2976 = vmatmul.mubr.bf16.vlgmr.msra.gmra.mrb[4].mxu1 %v6447_v49 }
 0x214   :  { %v1406_v42 = vpop.permute.xlu0 %1405 }
 0x217   :  { %v1469_v6 = vpop.f32.mrb[0].mxu0  ;;  %v2875_v38 = vpop.permute.xlu1 %2874 }
 0x218   :  { %v1471_v35 = vpop.f32.mrb[1].mxu0  ;;  %v1470_v59 = vadd.f32 %v1469_v6, %v1406_v42 }
 0x219   :  { %v1472_v47 = vadd.f32 %v1471_v35, %v1406_v42  ;;  %v1473_v22 = vpop.f32.mrb[2].mxu0  ;;  %v1510_v37 = vpop.f32.mrb[0].mxu1 }
 0x21a   :  { %1517 = vst [vmem:[#allocation2] sm:$0xf] %v1470_v59  ;;  %v1474_v36 = vpop.f32.mrb[3].mxu0  ;;  %v1511_v31 = vadd.f32 %v1510_v37, %v1406_v42  ;;  %v1512_v39 = vpop.f32.mrb[1].mxu1  ;;  %v1521_v24 = vsel %vm997_vm6, %v1470_v59, 0.0  ;;  %v1531_v20 = vmul.f32 %v1470_v59, %v1470_v59 }
 0x21b   :  { %1518 = vst [vmem:[#allocation2 + $0x8] sm:$0xf] %v1472_v47  ;;  %v1513_v30 = vadd.f32 %v1512_v39, %v1406_v42  ;;  %v1514_v48 = vpop.f32.mrb[2].mxu1  ;;  %v1522_v2 = vsel %vm997_vm6, %v1472_v47, 0.0  ;;  %v1532_v60 = vmul.f32 %v1472_v47, %v1472_v47 }
 0x21c   :  { %1519 = vst [vmem:[#allocation2 + $0x10] sm:$0xf] %v1511_v31  ;;  %v1533_v34 = vmul.f32 %v1511_v31, %v1511_v31  ;;  %v1515_v15 = vpop.f32.mrb[3].mxu1  ;;  %v1523_v53 = vadd.f32 %v1522_v2, %v1521_v24  ;;  %v1524_v27 = vsel %vm997_vm6, %v1511_v31, 0.0  ;;  %v1535_v44 = vsel %vm997_vm6, %v1531_v20, 0.0 }
 0x21d   :  { %1520 = vst [vmem:[#allocation2 + $0x18] sm:$0xf] %v1513_v30  ;;  %v1526_v51 = vsel %vm997_vm6, %v1513_v30, 0.0  ;;  %v1534_v3 = vmul.f32 %v1513_v30, %v1513_v30  ;;  %v1536_v50 = vsel %vm997_vm6, %v1532_v60, 0.0 }
 0x21e   :  { %v1525_v57 = vadd.f32 %v1524_v27, %v1523_v53  ;;  %v1537_v49 = vadd.f32 %v1536_v50, %v1535_v44  ;;  %v1538_v62 = vsel %vm997_vm6, %v1533_v34, 0.0  ;;  %v3028_v53 = vld [vmem:[%s13189_s4] sm:$0xf] }
 0x21f   :  { %v1540_v9 = vsel %vm997_vm6, %v1534_v3, 0.0 }
 0x220   :  { %v1527_v61 = vadd.f32 %v1526_v51, %v1525_v57  ;;  %v1539_v63 = vadd.f32 %v1538_v62, %v1537_v49  ;;  %v3032_v51 = vld [vmem:[%s13190_s5] sm:$0xf] }
 0x221   :  { %v3035_v49 = vld [vmem:[#allocation2] sm:$0xf] }
 0x222   :  { %1528 = vadd.xlane.f32.xlu1 %v1527_v61  ;;  %v1541_v25 = vadd.f32 %v1540_v9, %v1539_v63 }
 0x224   :  { %v3038_v62 = vld [vmem:[#allocation2 + $0x18] sm:$0xf] }
 0x272   :  { %v2936_v32 = vpop.f32.mrb[4].mxu0 }
 0x273   :  { %v2937_v10 = vadd.f32 %v2936_v32, %v2875_v38  ;;  %v2938_v58 = vpop.f32.mrb[5].mxu0  ;;  %v2977_v7 = vpop.f32.mrb[4].mxu1 }
 0x274   :  { %v2939_v5 = vadd.f32 %v2938_v58, %v2875_v38  ;;  %v2978_v55 = vadd.f32 %v2977_v7, %v2875_v38  ;;  %v2940_v52 = vpop.f32.mrb[6].mxu0  ;;  %v2979_v21 = vpop.f32.mrb[5].mxu1  ;;  %v3037_v58 = vld [vmem:[#allocation2 + $0x10] sm:$0xf] }
 0x275   :  { %v2988_v40 = vrot.slane %v2937_v10, 4  ;;  %v3000_v11 = vsel %vm997_vm6, %v2937_v10, 0.0  ;;  %v3010_v1 = vmul.f32 %v2937_v10, %v2937_v10  ;;  %v2980_v43 = vadd.f32 %v2979_v21, %v2875_v38  ;;  %v2941_v14 = vpop.f32.mrb[7].mxu0  ;;  %v2981_v33 = vpop.f32.mrb[6].mxu1  ;;  %v3036_v52 = vld [vmem:[#allocation2 + $0x8] sm:$0xf] }
 0x276   :  { %v2989_v46 = vrot.slane %v2939_v5, 4  ;;  %v3001_v8 = vsel %vm997_vm6, %v2939_v5, 0.0  ;;  %v3011_v54 = vmul.f32 %v2939_v5, %v2939_v5  ;;  %v2990_v45 = vrot.slane %v2978_v55, 4  ;;  %v2982_v56 = vpop.f32.mrb[7].mxu1 }
 0x277   :  { %2996 = vst [vmem:[#allocation2] sm:$0xf0] %v2988_v40  ;;  %v3012_v26 = vmul.f32 %v2978_v55, %v2978_v55  ;;  %v2991_v4 = vrot.slane %v2980_v43, 4  ;;  %v3002_v28 = vadd.f32 %v3001_v8, %v3000_v11  ;;  %v3003_v29 = vsel %vm997_vm6, %v2978_v55, 0.0 }
 0x278   :  { %2997 = vst [vmem:[#allocation2 + $0x8] sm:$0xf0] %v2989_v46  ;;  %2998 = vst [vmem:[#allocation2 + $0x10] sm:$0xf0] %v2990_v45  ;;  %v3013_v12 = vmul.f32 %v2980_v43, %v2980_v43  ;;  %v3014_v23 = vsel %vm997_vm6, %v3010_v1, 0.0  ;;  %v3015_v41 = vsel %vm997_vm6, %v3011_v54, 0.0 }
 0x279   :  { %2999 = vst [vmem:[#allocation2 + $0x18] sm:$0xf0] %v2991_v4  ;;  %v3004_v0 = vadd.f32 %v3003_v29, %v3002_v28  ;;  %v3016_v42 = vadd.f32 %v3015_v41, %v3014_v23  ;;  %v3005_v6 = vsel %vm997_vm6, %v2980_v43, 0.0  ;;  %v3017_v35 = vsel %vm997_vm6, %v3012_v26, 0.0 }
 0x27a   :  { %v3019_v22 = vsel %vm997_vm6, %v3013_v12, 0.0 }
 0x27b   :  { %v3006_v59 = vadd.f32 %v3005_v6, %v3004_v0  ;;  %v3018_v47 = vadd.f32 %v3017_v35, %v3016_v42 }
 0x27d   :  { %3007 = vadd.xlane.f32.xlu0 %v3006_v59  ;;  %v3020_v37 = vadd.f32 %v3019_v22, %v3018_v47  ;;  %v6455_v59 = vld [vmem:[%s13186_s1 + $0x4] ss:$8 sm:$0xf]  ;;  %v9809_v47 = vld [vmem:[%s13186_s1 + $0x1] ss:$8 sm:$0xf] }
 0x27e   :  { %v4684_v14 = vld [vmem:[#allocation2] sm:$0xf0] }
 0x27f   :  { %3021 = vadd.xlane.f32.xlu1 %v3020_v37  ;;  %v4686_v4 = vld [vmem:[#allocation2 + $0x10] sm:$0xf0]  ;;  %v4685_v42 = vld [vmem:[#allocation2 + $0x8] sm:$0xf0] }
 0x280   :  { %v4687_v33 = vld [vmem:[#allocation2 + $0x18] sm:$0xf0]  ;;  %v9823_v37 = vld [vmem:[%s13186_s1 + $0x22] ss:$8 sm:$0xf] }
 0x281   :  { %1542 = vadd.xlane.f32.xlu0 %v1541_v25  ;;  %v9814_v22 = vld [vmem:[%s13186_s1 + $0x46] ss:$8 sm:$0xf] }
 0x2af   :  { %v1529_v36 = vpop.xlane.xlu1 %1528 }
 0x30a   :  { %v3008_v31 = vpop.xlane.xlu0 %3007 }
 0x30b   :  { %v3009_v39 = vadd.f32 %v3008_v31, %v1529_v36  ;;  %v9828_v36 = vld [vmem:[%s13186_s1 + $0x43] ss:$8 sm:$0xf] }
 0x30c   :  { %v3022_v20 = vpop.xlane.xlu1 %3021  ;;  %v9833_v31 = vld [vmem:[%s13186_s1 + $0x3] ss:$8 sm:$0xf] }
 0x30d   :  { %v3024_v24 = vmul.f32 0.0009765625, %v3009_v39  ;;  %v9838_v39 = vld [vmem:[%s13186_s1 + $0x24] ss:$8 sm:$0xf] }
 0x30e   :  { %v1543_v30 = vpop.xlane.xlu0 %1542 }
 0x30f   :  { %v3023_v48 = vadd.f32 %v3022_v20, %v1543_v30  ;;  %v3026_v2 = vmul.f32 %v3024_v24, %v3024_v24  ;;  %v3219_v20 = vrot.slane %v6455_v59, %v6783_v16 }
 0x311   :  { %v3025_v60 = vmul.f32 0.0009765625, %v3023_v48  ;;  %v9846_v48 = vld [vmem:[%s13186_s1 + $0x45] ss:$8 sm:$0xf] }
 0x313   :  { %v3027_v34 = vsub.f32 %v3025_v60, %v3026_v2  ;;  %v3231_v2 = vrot.slane %v6455_v59, %v6792_v19  ;;  %v3227_v60 = vrot.slane %v6455_v59, %v6789_v18 }
 0x315   :  { %v3029_v15 = vadd.f32 1e-05, %v3027_v34  ;;  %v3713_v34 = vrot.slane %v9814_v22, %v6786_v17 }
 0x317   :  { %6553 = vrsqrt.f32 %v3029_v15 }
 0x321   :  { %v6554_v27 = vpop.eup %6553 }
 0x322   :  { %v3031_v44 = vmul.f32 %v6554_v27, %v3028_v53  ;;  %v9857_v53 = vld [vmem:[%s13186_s1] ss:$8 sm:$0xf]  ;;  %v3721_v27 = vrot.slane %v9814_v22, %v6792_v19 }
 0x324   :  { %3041 = vperm.xlu0 %6545, %v3031_v44   ;;  %v3033_v3 = vmul.f32 %v3031_v44, %v3024_v24  ;;  %v3223_v24 = vrot.slane %v6455_v59, %v6786_v17  ;;  %v3709_v44 = vrot.slane %v9814_v22, %v6783_v16 }
 0x326   :  { %v3034_v50 = vsub.f32 %v3032_v51, %v3033_v3  ;;  %v3717_v51 = vrot.slane %v9814_v22, %v6789_v18  ;;  %v10022_v22 = vld [vmem:[%s13186_s1 + $0x61] ss:$8 sm:$0xf] }
 0x328   :  { %3050 = vperm.xlu1 %6546, %v3034_v50   ;;  %v10388_v50 = vld [vmem:[%s13186_s1 + $0x26] ss:$8 sm:$0xf] }
 0x329   :  { %14106 = vst [vmem:[#allocation3_spill] sm:$0xff] %v10388_v50 }
 0x3a3   :  { %v3042_v57 = vpop.permute.xlu0 %3041 }
 0x3a4   :  { %v3044_v9 = vmul.f32 %v3042_v57, %v3035_v49  ;;  %v3047_v61 = vmul.f32 %v3042_v57, %v3038_v62  ;;  %v3046_v7 = vmul.f32 %v3042_v57, %v3037_v58  ;;  %v3045_v21 = vmul.f32 %v3042_v57, %v3036_v52  ;;  %v9878_v49 = vld [vmem:[%s13186_s1 + $0x21] ss:$8 sm:$0xf]  ;;  %v9883_v62 = vld [vmem:[%s13186_s1 + $0x42] ss:$8 sm:$0xf] }
 0x3a5   :  { %v4688_v1 = vrot.slane %v3042_v57, 4  ;;  %v9901_v58 = vld [vmem:[%s13186_s1 + $0x23] ss:$8 sm:$0xf] }
 0x3a6   :  { %v10197_v57 = vld [vmem:[%s13186_s1 + $0x62] ss:$8 sm:$0xf] }
 0x3a7   :  { %v3051_v63 = vpop.permute.xlu1 %3050  ;;  %v4690_v46 = vmul.f32 %v4688_v1, %v4684_v14  ;;  %v4693_v8 = vmul.f32 %v4688_v1, %v4687_v33  ;;  %v4692_v28 = vmul.f32 %v4688_v1, %v4686_v4  ;;  %v4691_v6 = vmul.f32 %v4688_v1, %v4685_v42  ;;  %14091 = vst [vmem:[#allocation62_spill] sm:$0xff] %v10197_v57  ;;  %v10577_v57 = vld [vmem:[%s13186_s1 + $0x27] ss:$8 sm:$0xf] }
 0x3a8   :  { %v3053_v25 = vadd.f32 %v3051_v63, %v3044_v9  ;;  %v3056_v38 = vadd.f32 %v3051_v63, %v3047_v61  ;;  %v3055_v5 = vadd.f32 %v3051_v63, %v3046_v7  ;;  %v3054_v40 = vadd.f32 %v3051_v63, %v3045_v21  ;;  %v6502_v21 = vld [vmem:[%s13186_s1 + $0x46] ss:$8 sm:$0xf]  ;;  %v10243_v9 = vld [vmem:[%s13186_s1 + $0x3] ss:$8 sm:$0xf] }
 0x3a9   :  { %v4694_v43 = vrot.slane %v3051_v63, 4  ;;  %v5365_v1 = vrot.slane %v6502_v21, %v6783_v16  ;;  %v5373_v14 = vrot.slane %v6502_v21, %v6789_v18  ;;  %14095 = vst [vmem:[#allocation6_spill] sm:$0xff] %v10243_v9  ;;  %v10409_v9 = vld [vmem:[%s13186_s1 + $0x7] ss:$8 sm:$0xf]  ;;  %14129 = vst [vmem:[#allocation8_spill] sm:$0xff] %v10577_v57 }
 0x3aa   :  { %v9696_v32 = vmax.f32 %v3053_v25, 0.0  ;;  %v9698_v10 = vmax.f32 %v3056_v38, 0.0  ;;  %v9708_v55 = vmax.f32 %v3055_v5, 0.0  ;;  %v9722_v11 = vmax.f32 %v3054_v40, 0.0  ;;  %14109 = vst [vmem:[#allocation24_spill] sm:$0xff] %v10409_v9 }
 0x3ab   :  { %v9760_v54 = vadd.f32 %v4694_v43, %v4690_v46  ;;  %v9762_v45 = vadd.f32 %v4694_v43, %v4693_v8  ;;  %v9774_v29 = vadd.f32 %v4694_v43, %v4692_v28  ;;  %v9801_v35 = vadd.f32 %v4694_v43, %v4691_v6  ;;  %v9896_v38 = vld [vmem:[%s13186_s1 + $0x2] ss:$8 sm:$0xf]  ;;  %v9916_v40 = vld [vmem:[%s13186_s1 + $0x44] ss:$8 sm:$0xf] }
 0x3ac   :  { %3106 = vrot.lane.b32.xlu0 %v9698_v10, %s6583_s18  ;;  %3100 = vrot.lane.b32.xlu1 %v9696_v32, %s6583_s18  ;;  %v9935_v4 = vmul.f32 %v3223_v24, %v9696_v32  ;;  %v9940_v42 = vmul.f32 %v3219_v20, %v9698_v10  ;;  %v9943_v6 = vmul.f32 %v3231_v2, %v9708_v55  ;;  %v6485_v20 = vld [vmem:[%s13186_s1 + $0x4] ss:$8 sm:$0xf]  ;;  %v10100_v28 = vld [vmem:[%s13186_s1 + $0x6] ss:$8 sm:$0xf] }
 0x3ad   :  { %14066 = vst [vmem:[#allocation73_spill] sm:$0xff] %v9760_v54  ;;  %14067 = vst [vmem:[#allocation60_spill] sm:$0xff] %v9762_v45  ;;  %v13350_v56 = vmax.f32 %v9760_v54, 0.0  ;;  %v13351_v26 = vmax.f32 %v9762_v45, 0.0  ;;  %v13349_v41 = vmax.f32 %v9774_v29, 0.0  ;;  %v13352_v30 = vmax.f32 %v9801_v35, 0.0 }
 0x3ae   :  { %14068 = vst [vmem:[#allocation74_spill] sm:$0xff] %v9774_v29  ;;  %14069 = vst [vmem:[#allocation57_spill] sm:$0xff] %v9801_v35  ;;  %v9946_v59 = vmul.f32 %v3227_v60, %v9722_v11  ;;  %v9961_v60 = vmul.f32 %v3713_v34, %v9708_v55  ;;  %v9980_v34 = vld [vmem:[%s13186_s1 + $0x26] ss:$8 sm:$0xf]  ;;  %v4879_v24 = vrot.slane %v6485_v20, %v6786_v17 }
 0x3af   :  { %v9778_v12 = vrot.slane %v13350_v56, 4  ;;  %v9782_v23 = vrot.slane %v13351_v26, 4  ;;  %v9795_v0 = vrot.slane %v13349_v41, 4  ;;  %v9905_v7 = vrot.slane %v13352_v30, 4  ;;  %14070 = vst [vmem:[#allocation35_spill] sm:$0xff] %v9935_v4  ;;  %14071 = vst [vmem:[#allocation63_spill] sm:$0xff] %v9940_v42 }
 0x3b0   :  { %3182 = vrot.lane.b32.xlu0 %v9698_v10, %s6587_s22  ;;  %3176 = vrot.lane.b32.xlu1 %v9696_v32, %s6587_s22  ;;  %14072 = vst [vmem:[#allocation58_spill] sm:$0xff] %v9943_v6  ;;  %14073 = vst [vmem:[#allocation67_spill] sm:$0xff] %v9946_v59  ;;  %v9964_v26 = vmul.f32 %v3721_v27, %v9696_v32  ;;  %v9983_v27 = vmul.f32 %v3709_v44, %v9722_v11  ;;  %v9999_v44 = vld [vmem:[%s13186_s1 + $0x47] ss:$8 sm:$0xf]  ;;  %v14112_v59 = vrot.slane %v9696_v32, 4 }
 0x3b1   :  { %14074 = vst [vmem:[#allocation65_spill] sm:$0xff] %v9961_v60  ;;  %v9986_v56 = vmul.f32 %v3717_v51, %v9698_v10  ;;  %v10004_v51 = vld [vmem:[%s13186_s1 + $0x7] ss:$8 sm:$0xf]  ;;  %v4887_v8 = vrot.slane %v6485_v20, %v6792_v19  ;;  %v4875_v2 = vrot.slane %v6485_v20, %v6783_v16  ;;  %v4883_v52 = vrot.slane %v6485_v20, %v6789_v18 }
 0x3b2   :  { %14075 = vst [vmem:[#allocation52_spill] sm:$0xff] %v9964_v26  ;;  %14076 = vst [vmem:[#allocation41_spill] sm:$0xff] %v9983_v27  ;;  %v10017_v41 = vld [vmem:[%s13186_s1 + $0x40] ss:$8 sm:$0xf]  ;;  %v5369_v5 = vrot.slane %v6502_v21, %v6786_v17  ;;  %v5377_v25 = vrot.slane %v6502_v21, %v6792_v19  ;;  %v10108_v21 = vmul.f32 %v4879_v24, %v9778_v12 }
 0x3b3   :  { %14077 = vst [vmem:[#allocation14_spill] sm:$0xff] %v9986_v56  ;;  %14078 = vst [vmem:[#allocation64_spill] sm:$0xff] %v10100_v28  ;;  %v10105_v30 = vld [vmem:[%s13186_s1 + $0x27] ss:$8 sm:$0xf]  ;;  %v10125_v43 = vmul.f32 %v4887_v8, %v9795_v0  ;;  %v10128_v3 = vmul.f32 %v4875_v2, %v9782_v23  ;;  %v10131_v33 = vmul.f32 %v4883_v52, %v9905_v7 }
 0x3b4   :  { %3180 = vrot.lane.b32.xlu0 %v9708_v55, %s6587_s22  ;;  %3104 = vrot.lane.b32.xlu1 %v9708_v55, %s6583_s18  ;;  %14079 = vst [vmem:[#allocation33_spill] sm:$0xff] %v10105_v30  ;;  %14080 = vst [vmem:[#allocation26_spill] sm:$0xff] %v10108_v21  ;;  %v10121_v20 = vld [vmem:[%s13186_s1 + $0x60] ss:$8 sm:$0xf]  ;;  %v10134_v46 = vmul.f32 %v5369_v5, %v9795_v0  ;;  %v10137_v63 = vmul.f32 %v5377_v25, %v9778_v12 }
 0x3b5   :  { %14081 = vst [vmem:[#allocation43_spill] sm:$0xff] %v10121_v20  ;;  %14082 = vst [vmem:[#allocation44_spill] sm:$0xff] %v10125_v43  ;;  %v10144_v8 = vmul.f32 %v5365_v1, %v9905_v7  ;;  %v10147_v2 = vmul.f32 %v5373_v14, %v9782_v23  ;;  %v10179_v14 = vld [vmem:[%s13186_s1 + $0x20] ss:$8 sm:$0xf]  ;;  %v14123_v9 = vrot.slane %v9896_v38, %v6786_v17 }
 0x3b6   :  { %14083 = vst [vmem:[#allocation45_spill] sm:$0xff] %v10128_v3  ;;  %14084 = vst [vmem:[#allocation59_spill] sm:$0xff] %v10131_v33  ;;  %v10192_v1 = vld [vmem:[%s13186_s1 + $0x41] ss:$8 sm:$0xf]  ;;  %v14135_v28 = vrot.slane %v9878_v49, %v6783_v16  ;;  %v14142_v4 = vrot.slane %v9809_v47, %v6792_v19 }
 0x3b7   :  { %14085 = vst [vmem:[#allocation4_spill] sm:$0xff] %v10134_v46  ;;  %14086 = vst [vmem:[#allocation55_spill] sm:$0xff] %v10137_v63  ;;  %v10220_v5 = vld [vmem:[%s13186_s1 + $0x1] ss:$8 sm:$0xf] }
 0x3b8   :  { %3068 = vrot.lane.b32.xlu0 %v9698_v10, %s6586_s21  ;;  %3062 = vrot.lane.b32.xlu1 %v9696_v32, %s6586_s21  ;;  %14087 = vst [vmem:[#allocation28_spill] sm:$0xff] %v10144_v8  ;;  %14088 = vst [vmem:[#allocation29_spill] sm:$0xff] %v10147_v2  ;;  %v10225_v24 = vld [vmem:[%s13186_s1 + $0x22] ss:$8 sm:$0xf] }
 0x3b9   :  { %14089 = vst [vmem:[#allocation31_spill] sm:$0xff] %v10179_v14  ;;  %14090 = vst [vmem:[#allocation56_spill] sm:$0xff] %v10192_v1  ;;  %v10238_v25 = vld [vmem:[%s13186_s1 + $0x43] ss:$8 sm:$0xf] }
 0x3ba   :  { %14092 = vst [vmem:[#allocation25_spill] sm:$0xff] %v10220_v5  ;;  %14093 = vst [vmem:[#allocation22_spill] sm:$0xff] %v10225_v24  ;;  %v10256_v2 = vld [vmem:[%s13186_s1 + $0x24] ss:$8 sm:$0xf]  ;;  %v14108_v24 = vrot.slane %v9838_v39, %v6783_v16 }
 0x3bb   :  { %14094 = vst [vmem:[#allocation32_spill] sm:$0xff] %v10238_v25  ;;  %14096 = vst [vmem:[#allocation69_spill] sm:$0xff] %v10256_v2  ;;  %v10261_v8 = vld [vmem:[%s13186_s1 + $0x45] ss:$8 sm:$0xf] }
 0x3bc   :  { %3144 = vrot.lane.b32.xlu0 %v9698_v10, %s6584_s19  ;;  %3138 = vrot.lane.b32.xlu1 %v9696_v32, %s6584_s19  ;;  %14097 = vst [vmem:[#allocation71_spill] sm:$0xff] %v10261_v8  ;;  %v10274_v63 = vld [vmem:[%s13186_s1] ss:$8 sm:$0xf]  ;;  %v14117_v8 = vrot.slane %v9846_v48, %v6792_v19 }
 0x3bd   :  { %14098 = vst [vmem:[#allocation18_spill] sm:$0xff] %v10274_v63  ;;  %v10279_v46 = vld [vmem:[%s13186_s1 + $0x21] ss:$8 sm:$0xf] }
 0x3be   :  { %14099 = vst [vmem:[#allocation36_spill] sm:$0xff] %v10279_v46  ;;  %v10294_v52 = vld [vmem:[%s13186_s1 + $0x42] ss:$8 sm:$0xf] }
 0x3bf   :  { %14100 = vst [vmem:[#allocation13_spill] sm:$0xff] %v10294_v52  ;;  %v10299_v29 = vld [vmem:[%s13186_s1 + $0x2] ss:$8 sm:$0xf] }
 0x3c0   :  { %3102 = vrot.lane.b32.xlu0 %v9722_v11, %s6583_s18  ;;  %3066 = vrot.lane.b32.xlu1 %v9708_v55, %s6586_s21  ;;  %14101 = vst [vmem:[#allocation70_spill] sm:$0xff] %v10299_v29  ;;  %v10312_v45 = vld [vmem:[%s13186_s1 + $0x23] ss:$8 sm:$0xf]  ;;  %v14116_v29 = vrot.slane %v9833_v31, %v6786_v17 }
 0x3c1   :  { %14102 = vst [vmem:[#allocation34_spill] sm:$0xff] %v10312_v45  ;;  %v10317_v35 = vld [vmem:[%s13186_s1 + $0x44] ss:$8 sm:$0xf] }
 0x3c2   :  { %14103 = vst [vmem:[#allocation46_spill] sm:$0xff] %v10317_v35  ;;  %v10373_v33 = vld [vmem:[%s13186_s1 + $0x5] ss:$8 sm:$0xf] }
 0x3c3   :  { %14104 = vst [vmem:[#allocation7_spill] sm:$0xff] %v10373_v33  ;;  %v10393_v25 = vld [vmem:[%s13186_s1 + $0x47] ss:$8 sm:$0xf] }
 0x3c4   :  { %3178 = vrot.lane.b32.xlu0 %v9722_v11, %s6587_s22  ;;  %3142 = vrot.lane.b32.xlu1 %v9708_v55, %s6584_s19  ;;  %14107 = vst [vmem:[#allocation38_spill] sm:$0xff] %v10393_v25  ;;  %v10429_v2 = vld [vmem:[%s13186_s1 + $0x61] ss:$8 sm:$0xf] }
 0x3c5   :  { %14111 = vst [vmem:[#allocation27_spill] sm:$0xff] %v10429_v2  ;;  %v14122_v2 = vrot.slane %v9833_v31, %v6783_v16 }
 0x3c8   :  { %3242 = vrot.lane.b32.xlu0 %v9722_v11, %s6582_s17  ;;  %3240 = vrot.lane.b32.xlu1 %v9696_v32, %s6582_s17 }
 0x3cc   :  { %3318 = vrot.lane.b32.xlu0 %v9722_v11, %s6588_s23  ;;  %3316 = vrot.lane.b32.xlu1 %v9696_v32, %s6588_s23 }
 0x3d0   :  { %3140 = vrot.lane.b32.xlu0 %v9722_v11, %s6584_s19  ;;  %3064 = vrot.lane.b32.xlu1 %v9722_v11, %s6586_s21 }
 0x3d4   :  { %3322 = vrot.lane.b32.xlu0 %v9698_v10, %s6588_s23  ;;  %3246 = vrot.lane.b32.xlu1 %v9698_v10, %s6582_s17 }
 0x3d8   :  { %3280 = vrot.lane.b32.xlu0 %v9722_v11, %s6585_s20  ;;  %3278 = vrot.lane.b32.xlu1 %v9696_v32, %s6585_s20 }
 0x3dc   :  { %3284 = vrot.lane.b32.xlu0 %v9698_v10, %s6585_s20  ;;  %3244 = vrot.lane.b32.xlu1 %v9708_v55, %s6582_s17 }
 0x3e0   :  { %3282 = vrot.lane.b32.xlu0 %v9708_v55, %s6585_s20  ;;  %3320 = vrot.lane.b32.xlu1 %v9708_v55, %s6588_s23 }
 0x3e4   :  { %3356 = vrot.lane.b32.xlu0 %v9722_v11, %s6589_s26  ;;  %3354 = vrot.lane.b32.xlu1 %v9696_v32, %s6589_s26 }
 0x3e8   :  { %3358 = vrot.lane.b32.xlu0 %v9708_v55, %s6589_s26  ;;  %3360 = vrot.lane.b32.xlu1 %v9698_v10, %s6589_s26 }
 0x3ec   :  { %4762 = vrot.lane.b32.xlu0 %v9782_v23, %s6583_s18  ;;  %4756 = vrot.lane.b32.xlu1 %v9778_v12, %s6583_s18 }
 0x3f0   :  { %4838 = vrot.lane.b32.xlu0 %v9782_v23, %s6587_s22  ;;  %4832 = vrot.lane.b32.xlu1 %v9778_v12, %s6587_s22 }
 0x3f4   :  { %4836 = vrot.lane.b32.xlu0 %v9795_v0, %s6587_s22  ;;  %4760 = vrot.lane.b32.xlu1 %v9795_v0, %s6583_s18 }
 0x3f8   :  { %4724 = vrot.lane.b32.xlu0 %v9782_v23, %s6586_s21  ;;  %4718 = vrot.lane.b32.xlu1 %v9778_v12, %s6586_s21 }
 0x3fc   :  { %4800 = vrot.lane.b32.xlu0 %v9782_v23, %s6584_s19  ;;  %4794 = vrot.lane.b32.xlu1 %v9778_v12, %s6584_s19 }
 0x400   :  { %4758 = vrot.lane.b32.xlu0 %v9905_v7, %s6583_s18  ;;  %4722 = vrot.lane.b32.xlu1 %v9795_v0, %s6586_s21 }
 0x404   :  { %4834 = vrot.lane.b32.xlu0 %v9905_v7, %s6587_s22  ;;  %4798 = vrot.lane.b32.xlu1 %v9795_v0, %s6584_s19 }
 0x408   :  { %4898 = vrot.lane.b32.xlu0 %v9905_v7, %s6582_s17  ;;  %4896 = vrot.lane.b32.xlu1 %v9778_v12, %s6582_s17 }
 0x40c   :  { %4974 = vrot.lane.b32.xlu0 %v9905_v7, %s6588_s23  ;;  %4972 = vrot.lane.b32.xlu1 %v9778_v12, %s6588_s23 }
 0x410   :  { %4796 = vrot.lane.b32.xlu0 %v9905_v7, %s6584_s19  ;;  %4720 = vrot.lane.b32.xlu1 %v9905_v7, %s6586_s21 }
 0x414   :  { %4978 = vrot.lane.b32.xlu0 %v9782_v23, %s6588_s23  ;;  %4902 = vrot.lane.b32.xlu1 %v9782_v23, %s6582_s17 }
 0x418   :  { %4936 = vrot.lane.b32.xlu0 %v9905_v7, %s6585_s20  ;;  %4934 = vrot.lane.b32.xlu1 %v9778_v12, %s6585_s20 }
 0x41c   :  { %4940 = vrot.lane.b32.xlu0 %v9782_v23, %s6585_s20  ;;  %4900 = vrot.lane.b32.xlu1 %v9795_v0, %s6582_s17 }
 0x41e   :  { %v10319_v54 = vpop.permute.xlu0 %3106  ;;  %v10321_v43 = vpop.permute.xlu1 %3100 }
 0x420   :  { %4938 = vrot.lane.b32.xlu0 %v9795_v0, %s6585_s20  ;;  %4976 = vrot.lane.b32.xlu1 %v9795_v0, %s6588_s23 }
 0x422   :  { %v10358_v27 = vpop.permute.xlu0 %3182  ;;  %v10360_v21 = vpop.permute.xlu1 %3176 }
 0x423   :  { %v3187_v60 = vsel %vm174_vm7, %v10358_v27, %v10360_v21 }
 0x424   :  { %v3492_v3 = vmul.f32 %v14108_v24, %v3187_v60  ;;  %5012 = vrot.lane.b32.xlu0 %v9905_v7, %s6589_s26  ;;  %5010 = vrot.lane.b32.xlu1 %v9778_v12, %s6589_s26  ;;  %v10414_v24 = vld [vmem:[%s13186_s1 + $0x40] ss:$8 sm:$0xf]  ;;  %v3111_v12 = vsel %vm94_vm0, %v10319_v54, %v10321_v43  ;;  %v14115_v7 = vrot.slane %v9809_v47, %v6786_v17 }
 0x425   :  { %14110 = vst [vmem:[#allocation61_spill] sm:$0xff] %v10414_v24  ;;  %v3211_v45 = vmul.f32 %v14116_v29, %v3187_v60  ;;  %v3703_v63 = vmul.f32 %v14117_v8, %v3187_v60 }
 0x426   :  { %v10431_v5 = vpop.permute.xlu0 %3180  ;;  %v10433_v1 = vpop.permute.xlu1 %3104  ;;  %v10438_v6 = vsel %vm997_vm6, %v3492_v3, %v14112_v59  ;;  %v14114_v59 = vrot.slane %v9828_v36, %v6792_v19  ;;  %v6094_v3 = vld [vmem:[%s13191_s7 + $0x4] sm:$0xf]  ;;  %v3135_v35 = vmul.f32 %v14115_v7, %v3111_v12  ;;  %v14118_v7 = vrot.slane %v9883_v62, %v6792_v19 }
 0x427   :  { %14113 = vst [vmem:[#allocation37_spill] sm:$0xff] %v10438_v6  ;;  %v3184_v6 = vsel %vm174_vm7, %v10431_v5, %v10358_v27  ;;  %v3108_v27 = vsel %vm94_vm0, %v10433_v1, %v10319_v54  ;;  %v3851_v24 = vrot.slane %v3211_v45, 4  ;;  %v3993_v54 = vrot.slane %v3703_v63, 4 }
 0x428   :  { %v3651_v56 = vmul.f32 %v14114_v59, %v3111_v12  ;;  %5014 = vrot.lane.b32.xlu0 %v9795_v0, %s6589_s26  ;;  %5016 = vrot.lane.b32.xlu1 %v9782_v23, %s6589_s26  ;;  %v4451_v23 = vld [vmem:[%s13191_s7] sm:$0xf]  ;;  %v3839_v8 = vrot.slane %v3135_v35, 4  ;;  %v14124_v45 = vrot.slane %v9916_v40, %v6792_v19  ;;  %v14126_v63 = vrot.slane %v9838_v39, %v6792_v19 }
 0x42a   :  { %v10478_v14 = vpop.permute.xlu0 %3068  ;;  %v10480_v32 = vpop.permute.xlu1 %3062  ;;  %v3981_v15 = vrot.slane %v3651_v56, 4 }
 0x42b   :  { %v3073_v59 = vsel %vm55_vm5, %v10478_v14, %v10480_v32 }
 0x42c   :  { %v3625_v46 = vmul.f32 %v14118_v7, %v3073_v59  ;;  %6097 = vperm.xlu0 %6545, %v6094_v3   ;;  %4454 = vperm.xlu1 %6546, %v4451_v23   ;;  %v14119_v3 = vrot.slane %v9823_v37, %v6783_v16  ;;  %v14120_v23 = vrot.slane %v9857_v53, %v6786_v17 }
 0x42d   :  { %v10603_v26 = vmul.f32 %v14135_v28, %v3073_v59  ;;  %v14140_v28 = vrot.slane %v9901_v58, %v6783_v16 }
 0x42e   :  { %v10526_v7 = vmul.f32 %v14119_v3, %v3111_v12  ;;  %v3097_v29 = vmul.f32 %v14120_v23, %v3073_v59  ;;  %v3145_v0 = vpop.permute.xlu0 %3144  ;;  %v10535_v56 = vpop.permute.xlu1 %3138  ;;  %v10538_v60 = vsel %vm997_vm6, %v3625_v46, %v3981_v15  ;;  %v10548_v23 = vmul.f32 %v14122_v2, %v3184_v6  ;;  %v10559_v46 = vld [vmem:[%s13186_s1 + $0x6] ss:$8 sm:$0xf] }
 0x42f   :  { %14121 = vst [vmem:[#allocation11_spill] sm:$0xff] %v10538_v60  ;;  %v3149_v12 = vsel %vm134_vm2, %v3145_v0, %v10535_v56  ;;  %14125 = vst [vmem:[#allocation17_spill] sm:$0xff] %v10559_v46  ;;  %v3495_v3 = vmul.f32 %v14126_v63, %v3184_v6  ;;  %v14127_v2 = vrot.slane %v9846_v48, %v6789_v18  ;;  %v10582_v63 = vld [vmem:[%s13186_s1 + $0x60] ss:$8 sm:$0xf] }
 0x430   :  { %v3173_v15 = vmul.f32 %v14123_v9, %v3149_v12  ;;  %v3677_v35 = vmul.f32 %v14124_v45, %v3149_v12  ;;  %v14128_v9 = vrot.slane %v9809_v47, %v6783_v16  ;;  %14130 = vst [vmem:[#allocation23_spill] sm:$0xff] %v10582_v63  ;;  %v10592_v45 = vsel %vm997_vm6, %v3097_v29, %v3839_v8 }
 0x431   :  { %v10567_v52 = vmul.f32 %v14127_v2, %v3184_v6  ;;  %v14131_v6 = vrot.slane %v9828_v36, %v6789_v18  ;;  %14132 = vst [vmem:[#allocation10_spill] sm:$0xff] %v10592_v45  ;;  %v14137_v8 = vrot.slane %v9823_v37, %v6792_v19  ;;  %v3466_v59 = vmul.f32 %v14140_v28, %v3149_v12 }
 0x432   :  { %v3134_v60 = vmul.f32 %v14128_v9, %v3108_v27  ;;  %v3103_v42 = vpop.permute.xlu0 %3102  ;;  %v10589_v9 = vpop.permute.xlu1 %3066  ;;  %v10595_v20 = vsel %vm997_vm6, %v3173_v15, %v3851_v24  ;;  %v10598_v30 = vsel %vm997_vm6, %v3677_v35, %v3993_v54  ;;  %v3850_v24 = vrot.slane %v10548_v23, 4 }
 0x433   :  { %v10587_v2 = vmul.f32 %v14131_v6, %v3108_v27  ;;  %14133 = vst [vmem:[#allocation21_spill] sm:$0xff] %v10595_v20  ;;  %14134 = vst [vmem:[#allocation51_spill] sm:$0xff] %v10598_v30  ;;  %v10607_v6 = vpack.c.bf16 %v10595_v20, %v10592_v45  ;;  %v10617_v54 = vmul.f32 %v14137_v8, %v3108_v27  ;;  %v3992_v15 = vrot.slane %v10567_v52, 4 }
 0x434   :  { %v3838_v35 = vrot.slane %v3134_v60, 4  ;;  %v3110_v29 = vsel %vm94_vm0, %v10321_v43, %v3103_v42  ;;  %v14138_v23 = vrot.slane %v9698_v10, 4  ;;  %v3109_v52 = vsel %vm94_vm0, %v3103_v42, %v10433_v1 }
 0x435   :  { %14136 = vst [vmem:[#allocation48_spill] sm:$0xff] %v10607_v6  ;;  %4492 = vmatprep.subr.bf16.mxu0 %v10607_v6  ;;  %v3070_v43 = vsel %vm55_vm5, %v10589_v9, %v10478_v14  ;;  %v14141_v42 = vrot.slane %v9809_v47, %v6789_v18  ;;  %v14143_v12 = vrot.slane %v9857_v53, %v6783_v16  ;;  %v3898_v63 = vrot.slane %v3466_v59, 4 }
 0x436   :  { %v10631_v27 = vsel %vm997_vm6, %v3495_v3, %v14138_v23  ;;  %v3179_v60 = vpop.permute.xlu0 %3178  ;;  %v3143_v10 = vpop.permute.xlu1 %3142  ;;  %v10665_v3 = vmul.f32 %v14142_v4, %v3109_v52  ;;  %v14144_v28 = vrot.slane %v9828_v36, %v6783_v16  ;;  %v14146_v47 = vrot.slane %v9896_v38, %v6783_v16 }
 0x437   :  { %14139 = vst [vmem:[#allocation42_spill] sm:$0xff] %v10631_v27  ;;  %v10654_v1 = vmul.f32 %v14141_v42, %v3110_v29  ;;  %v3096_v8 = vmul.f32 %v14143_v12, %v3070_v43  ;;  %v3146_v42 = vsel %vm134_vm2, %v3143_v10, %v3145_v0  ;;  %v14147_v12 = vrot.slane %v9823_v37, %v6786_v17 }
 0x438   :  { %v10677_v23 = vmul.f32 %v14144_v28, %v3110_v29  ;;  %v3172_v4 = vmul.f32 %v14146_v47, %v3146_v42  ;;  %v14148_v28 = vrot.slane %v9828_v36, %v6786_v17  ;;  %v14150_v47 = vrot.slane %v9916_v40, %v6789_v18 }
 0x439   :  { %v10691_v59 = vmul.f32 %v14147_v12, %v3110_v29  ;;  %v14151_v0 = vrot.slane %v9823_v37, %v6789_v18  ;;  %v14152_v12 = vrot.slane %v9878_v49, %v6792_v19  ;;  %v14154_v45 = vrot.slane %v9883_v62, %v6789_v18 }
 0x43a   :  { %14145 = vst [vmem:[#allocation20_spill] sm:$0xff] %v10677_v23  ;;  %v10682_v46 = vpop.permute.xlu0 %3242  ;;  %v10684_v57 = vpop.permute.xlu1 %3240  ;;  %v10696_v14 = vmul.f32 %v14148_v28, %v3109_v52  ;;  %v3676_v20 = vmul.f32 %v14150_v47, %v3146_v42  ;;  %v3185_v28 = vsel %vm174_vm7, %v3179_v60, %v10431_v5  ;;  %v3841_v47 = vrot.slane %v10665_v3, 4 }
 0x43b   :  { %v10706_v50 = vmul.f32 %v14151_v0, %v3109_v52  ;;  %v10712_v36 = vmul.f32 %v14152_v12, %v3070_v43  ;;  %v3624_v25 = vmul.f32 %v14154_v45, %v3070_v43  ;;  %v3930_v37 = vsel %vm997_vm6, %v3096_v8, %v3838_v35 }
 0x43c   :  { %14149 = vst [vmem:[#allocation47_spill] sm:$0xff] %v10696_v14  ;;  %v3934_v52 = vsel %vm997_vm6, %v3172_v4, %v3850_v24  ;;  %v3186_v12 = vsel %vm174_vm7, %v10360_v21, %v3179_v60  ;;  %v10733_v3 = vsel %vm997_vm6, %v10526_v7, %v3898_v63  ;;  %v14156_v24 = vrot.slane %v9833_v31, %v6792_v19 }
 0x43d   :  { %14153 = vst [vmem:[#allocation50_spill] sm:$0xff] %v10712_v36  ;;  %v10727_v29 = vpack.c.bf16 %v3934_v52, %v3930_v37  ;;  %v3250_v21 = vsel %vm241_vm1, %v10684_v57, %v10682_v46  ;;  %v10744_v8 = vsel %vm997_vm6, %v3676_v20, %v3992_v15  ;;  %v14158_v43 = vrot.slane %v9846_v48, %v6786_v17 }
 0x43e   :  { %v10729_v33 = vpop.permute.xlu0 %3318  ;;  %v3317_v5 = vpop.permute.xlu1 %3316  ;;  %v3213_v35 = vmul.f32 %v14156_v24, %v3185_v28  ;;  %14157 = vst [vmem:[#allocation30_spill] sm:$0xff] %v10744_v8  ;;  %v14160_v7 = vrot.slane %v9901_v58, %v6792_v19  ;;  %v14161_v20 = vrot.slane %v9833_v31, %v6789_v18  ;;  %v14163_v8 = vrot.slane %v9846_v48, %v6783_v16 }
 0x43f   :  { %14155 = vst [vmem:[#allocation16_spill] sm:$0xff] %v10727_v29  ;;  %v10749_v60 = vmul.f32 %v14158_v43, %v3185_v28  ;;  %v4070_v4 = vunpack.c.l.bf16 %v10727_v29  ;;  %v4074_v24 = vunpack.c.h.bf16 %v10727_v29  ;;  %4493 = vmatpush1.bf16.msra.mxu0 %v10727_v29  ;;  %v14162_v43 = vrot.slane %v9838_v39, %v6789_v18 }
 0x440   :  { %v3469_v63 = vmul.f32 %v14160_v7, %v3146_v42  ;;  %v3212_v15 = vmul.f32 %v14161_v20, %v3186_v12  ;;  %v10767_v42 = vmul.f32 %v14163_v8, %v3186_v12  ;;  %v14165_v7 = vrot.slane %v9975_v13, %v6786_v17 }
 0x441   :  { %14159 = vst [vmem:[#allocation39_spill] sm:$0xff] %v10749_v60  ;;  %v3494_v45 = vmul.f32 %v14162_v43, %v3185_v28  ;;  %v14166_v0 = vrot.slane %v9999_v44, %v6792_v19  ;;  %v10775_v27 = vsub.f32 %v3930_v37, %v4070_v4  ;;  %v10777_v31 = vsub.f32 %v3934_v52, %v4074_v24 }
 0x442   :  { %14164 = vst [vmem:[#allocation9_spill] sm:$0xff] %v10767_v42  ;;  %v3275_v23 = vmul.f32 %v14165_v7, %v3250_v21  ;;  %v3141_v20 = vpop.permute.xlu0 %3140  ;;  %v3065_v36 = vpop.permute.xlu1 %3064  ;;  %v14169_v28 = vrot.slane %v9838_v39, %v6786_v17  ;;  %v3326_v8 = vsel %vm321_vm8, %v3317_v5, %v10729_v33  ;;  %v3853_v52 = vrot.slane %v3213_v35, 4 }
 0x443   :  { %v3755_v14 = vmul.f32 %v14166_v0, %v3250_v21  ;;  %14167 = vst [vmem:[#allocation66_spill] sm:$0xff] %v10775_v27  ;;  %14168 = vst [vmem:[#allocation68_spill] sm:$0xff] %v10777_v31  ;;  %v3147_v43 = vsel %vm134_vm2, %v3141_v20, %v3143_v10  ;;  %v10790_v37 = vsel %vm55_vm5, %v3065_v36, %v10589_v9  ;;  %v3901_v4 = vrot.slane %v3469_v63, 4 }
 0x444   :  { %v3493_v48 = vmul.f32 %v14169_v28, %v3186_v12  ;;  %v3148_v39 = vsel %vm134_vm2, %v10535_v56, %v3141_v20  ;;  %v3852_v12 = vrot.slane %v3212_v15, 4  ;;  %v14170_v24 = vrot.slane %v9896_v38, %v6792_v19 }
 0x445   :  { %v3072_v10 = vsel %vm55_vm5, %v10480_v32, %v3065_v36  ;;  %v14171_v9 = vrot.slane %v9857_v53, %v6792_v19  ;;  %v3863_v28 = vrot.slane %v3275_v23, 4  ;;  %v4005_v0 = vrot.slane %v3755_v14, 4 }
 0x446   :  { %v3175_v7 = vmul.f32 %v14170_v24, %v3147_v43  ;;  %v14172_v56 = vrot.slane %v10004_v51, %v6786_v17  ;;  %v10812_v20 = vpop.permute.xlu0 %3322  ;;  %v10814_v24 = vpop.permute.xlu1 %3246  ;;  %v14173_v32 = vrot.slane %v9980_v34, %v6783_v16  ;;  %v14175_v23 = vrot.slane %v9857_v53, %v6789_v18 }
 0x447   :  { %v3099_v35 = vmul.f32 %v14171_v9, %v10790_v37  ;;  %v14174_v9 = vrot.slane %v9896_v38, %v6789_v18  ;;  %v10834_v27 = vsel %vm997_vm6, %v10617_v54, %v3901_v4  ;;  %v14181_v38 = vrot.slane %v10587_v2, 4 }
 0x448   :  { %v10810_v15 = vmul.f32 %v14172_v56, %v3326_v8  ;;  %v10819_v36 = vmul.f32 %v14173_v32, %v3250_v21  ;;  %v3098_v14 = vmul.f32 %v14175_v23, %v3072_v10  ;;  %v14176_v56 = vrot.slane %v9722_v11, 4  ;;  %14178 = vst [vmem:[#allocation54_spill] sm:$0xff] %v10834_v27 }
 0x449   :  { %v3174_v63 = vmul.f32 %v14174_v9, %v3148_v39  ;;  %v14179_v21 = vrot.slane %v9708_v55, 4  ;;  %v10844_v9 = vsel %vm997_vm6, %v3624_v25, %v14181_v38  ;;  %v14183_v11 = vrot.slane %v10017_v41, %v6783_v16  ;;  %v14190_v38 = vld [vmem:[#allocation52_spill] sm:$0xff] }
 0x44a   :  { %v10830_v31 = vsel %vm997_vm6, %v3493_v48, %v14176_v56  ;;  %14182 = vst [vmem:[#allocation5_spill] sm:$0xff] %v10844_v9  ;;  %v14185_v54 = vrot.slane %v10022_v22, %v6792_v19  ;;  %v10858_v55 = vsel %vm997_vm6, %v3099_v35, %v3841_v47  ;;  %v10861_v2 = vsel %vm997_vm6, %v3175_v7, %v3853_v52  ;;  %v3279_v23 = vpop.permute.xlu1 %3278  ;;  %v14188_v56 = vld [vmem:[#allocation35_spill] sm:$0xff] }
 0x44b   :  { %14177 = vst [vmem:[#allocation49_spill] sm:$0xff] %v10830_v31  ;;  %v10839_v32 = vsel %vm997_vm6, %v3494_v45, %v14179_v21  ;;  %v10850_v48 = vmul.f32 %v14183_v11, %v3326_v8  ;;  %14186 = vst [vmem:[#allocation72_spill] sm:$0xff] %v10858_v55  ;;  %v3875_v25 = vrot.slane %v10810_v15, 4  ;;  %v10864_v45 = vpop.permute.xlu0 %3280  ;;  %v10868_v21 = vsel %vm997_vm6, %v14188_v56, %v3863_v28 }
 0x44c   :  { %14180 = vst [vmem:[#allocation40_spill] sm:$0xff] %v10839_v32  ;;  %v10855_v4 = vmul.f32 %v14185_v54, %v3326_v8  ;;  %14187 = vst [vmem:[#allocation53_spill] sm:$0xff] %v10861_v2  ;;  %v10872_v11 = vsel %vm997_vm6, %v14190_v38, %v4005_v0  ;;  %v14192_v47 = vrot.slane %v9901_v58, %v6786_v17  ;;  %v14194_v35 = vrot.slane %v10654_v1, 4 }
 0x44d   :  { %14184 = vst [vmem:[#allocation15_spill] sm:$0xff] %v10850_v48  ;;  %14189 = vst [vmem:[#allocation19_spill] sm:$0xff] %v10868_v21  ;;  %v10880_v7 = vpack.c.bf16 %v10861_v2, %v10858_v55  ;;  %v3936_v28 = vsel %vm997_vm6, %v3174_v63, %v3852_v12  ;;  %v3327_v0 = vsel %vm321_vm8, %v10812_v20, %v3317_v5  ;;  %v14205_v2 = vld [vmem:[#allocation64_spill] sm:$0xff] }
 0x44e   :  { %14191 = vst [vmem:[#allocation35_spill] sm:$0xff] %v10872_v11  ;;  %v3467_v52 = vmul.f32 %v14192_v47, %v3148_v39  ;;  %v3932_v15 = vsel %vm997_vm6, %v3098_v14, %v14194_v35  ;;  %v3251_v54 = vsel %vm241_vm1, %v10814_v24, %v10684_v57  ;;  %v3288_v38 = vsel %vm281_vm3, %v3279_v23, %v10864_v45  ;;  %v3245_v1 = vpop.permute.xlu1 %3244 }
 0x44f   :  { %14193 = vst [vmem:[#allocation52_spill] sm:$0xff] %v10880_v7  ;;  %v10893_v56 = vpack.c.bf16 %v3936_v28, %v3932_v15  ;;  %v14196_v12 = vrot.slane %v9901_v58, %v6789_v18  ;;  %v14197_v5 = vrot.slane %v9878_v49, %v6786_v17  ;;  %4574 = vmatprep.subr.bf16.mxu1 %v10880_v7  ;;  %v3285_v53 = vpop.permute.xlu0 %3284 }
 0x450   :  { %v10910_v57 = vpack.c.bf16 %v10872_v11, %v10598_v30  ;;  %v14199_v47 = vrot.slane %v9916_v40, %v6783_v16  ;;  %v14201_v58 = vrot.slane %v9878_v49, %v6789_v18  ;;  %v14202_v11 = vrot.slane %v10004_v51, %v6783_v16 }
 0x451   :  { %14195 = vst [vmem:[#allocation75_spill] sm:$0xff] %v10893_v56  ;;  %v3468_v63 = vmul.f32 %v14196_v12, %v3147_v43  ;;  %v10905_v14 = vmul.f32 %v14197_v5, %v3072_v10  ;;  %v4072_v5 = vunpack.c.l.bf16 %v10893_v56  ;;  %v4076_v8 = vunpack.c.h.bf16 %v10893_v56  ;;  %4575 = vmatpush1.bf16.msra.mxu1 %v10893_v56 }
 0x452   :  { %14198 = vst [vmem:[#allocation76_spill] sm:$0xff] %v10910_v57  ;;  %v10915_v35 = vmul.f32 %v14199_v47, %v3148_v39  ;;  %v10921_v12 = vmul.f32 %v14201_v58, %v10790_v37  ;;  %v3350_v30 = vmul.f32 %v14202_v11, %v3327_v0  ;;  %v14203_v39 = vrot.slane %v10022_v22, %v6789_v18 }
 0x453   :  { %v14204_v49 = vrot.slane %v9975_v13, %v6783_v16  ;;  %v14206_v55 = vrot.slane %v14205_v2, %v6786_v17  ;;  %v14207_v56 = vrot.slane %v9916_v40, %v6786_v17  ;;  %v3899_v6 = vrot.slane %v3467_v52, 4  ;;  %v14226_v40 = vld [vmem:[#allocation43_spill] sm:$0xff] }
 0x454   :  { %14200 = vst [vmem:[#allocation77_spill] sm:$0xff] %v10915_v35  ;;  %v10932_v47 = vmul.f32 %v14203_v39, %v3327_v0  ;;  %v10945_v11 = vsub.f32 %v3932_v15, %v4072_v5  ;;  %v10947_v57 = vsub.f32 %v3936_v28, %v4076_v8  ;;  %v3900_v39 = vrot.slane %v3468_v63, 4 }
 0x455   :  { %v3274_v58 = vmul.f32 %v14204_v49, %v3251_v54  ;;  %v3313_v29 = vmul.f32 %v14206_v55, %v3288_v38  ;;  %v10943_v7 = vmul.f32 %v14207_v56, %v3147_v43  ;;  %v14211_v35 = vrot.slane %v9883_v62, %v6783_v16 }
 0x456   :  { %14209 = vst [vmem:[#allocation78_spill] sm:$0xff] %v10945_v11  ;;  %14210 = vst [vmem:[#allocation79_spill] sm:$0xff] %v10947_v57  ;;  %v14213_v55 = vrot.slane %v9883_v62, %v6786_v17  ;;  %v14214_v8 = vrot.slane %v10017_v41, %v6792_v19  ;;  %v14216_v15 = vrot.slane %v9999_v44, %v6789_v18  ;;  %v3283_v62 = vpop.permute.xlu0 %3282  ;;  %v3874_v56 = vrot.slane %v3350_v30, 4 }
 0x457   :  { %14208 = vst [vmem:[#allocation64_spill] sm:$0xff] %v10943_v7  ;;  %v10952_v42 = vmul.f32 %v14211_v35, %v3072_v10  ;;  %v3289_v28 = vsel %vm281_vm3, %v3285_v53, %v3279_v23  ;;  %v3862_v35 = vrot.slane %v3274_v58, 4  ;;  %v10976_v5 = vsel %vm997_vm6, %v3313_v29, %v3875_v25 }
 0x458   :  { %v10958_v49 = vmul.f32 %v14213_v55, %v10790_v37  ;;  %v10965_v52 = vmul.f32 %v14214_v8, %v3327_v0  ;;  %v10970_v10 = vmul.f32 %v14216_v15, %v3251_v54  ;;  %v3321_v37 = vpop.permute.xlu1 %3320  ;;  %14218 = vst [vmem:[#allocation83_spill] sm:$0xff] %v10976_v5  ;;  %v14219_v55 = vld [vmem:[#allocation33_spill] sm:$0xff]  ;;  %v10986_v15 = vsel %vm241_vm1, %v3245_v1, %v10814_v24 }
 0x459   :  { %14212 = vst [vmem:[#allocation80_spill] sm:$0xff] %v10952_v42  ;;  %v14220_v0 = vrot.slane %v14219_v55, %v6783_v16  ;;  %v3249_v30 = vsel %vm241_vm1, %v10682_v46, %v3245_v1  ;;  %v10993_v23 = vpack.c.bf16 %v10976_v5, %v10868_v21  ;;  %v14222_v29 = vrot.slane %v9980_v34, %v6792_v19  ;;  %v14230_v1 = vld [vmem:[#allocation63_spill] sm:$0xff] }
 0x45a   :  { %14215 = vst [vmem:[#allocation81_spill] sm:$0xff] %v10965_v52  ;;  %14217 = vst [vmem:[#allocation82_spill] sm:$0xff] %v10970_v10  ;;  %v14223_v58 = vrot.slane %v14205_v2, %v6783_v16  ;;  %v14224_v24 = vrot.slane %v14219_v55, %v6792_v19  ;;  %v11010_v46 = vsel %vm997_vm6, %v10691_v59, %v3899_v6  ;;  %v3357_v6 = vpop.permute.xlu0 %3356 }
 0x45b   :  { %v10981_v8 = vmul.f32 %v14220_v0, %v3288_v38  ;;  %14221 = vst [vmem:[#allocation33_spill] sm:$0xff] %v10993_v23  ;;  %v10998_v25 = vmul.f32 %v14222_v29, %v3251_v54  ;;  %14225 = vst [vmem:[#allocation84_spill] sm:$0xff] %v11010_v46  ;;  %v14227_v63 = vrot.slane %v14226_v40, %v6792_v19  ;;  %4494 = vmatprep.subr.bf16.mxu0 %v10993_v23 }
 0x45c   :  { %v3312_v0 = vmul.f32 %v14223_v58, %v3289_v28  ;;  %v11006_v43 = vmul.f32 %v14224_v24, %v3289_v28  ;;  %v11022_v29 = vsel %vm321_vm8, %v3321_v37, %v10812_v20  ;;  %v11027_v58 = vsel %vm321_vm8, %v10729_v33, %v3321_v37  ;;  %v3355_v20 = vpop.permute.xlu1 %3354 }
 0x45d   :  { %v11016_v54 = vmul.f32 %v14227_v63, %v3288_v38  ;;  %v14228_v59 = vrot.slane %v9975_v13, %v6789_v18  ;;  %v14229_v38 = vrot.slane %v9975_v13, %v6792_v19  ;;  %v3938_v5 = vsel %vm997_vm6, %v14230_v1, %v3862_v35 }
 0x45e   :  { %v11040_v21 = vsel %vm997_vm6, %v10706_v50, %v3900_v39  ;;  %v14231_v37 = vrot.slane %v14226_v40, %v6789_v18  ;;  %v14233_v13 = vrot.slane %v10022_v22, %v6783_v16  ;;  %v3287_v50 = vsel %vm281_vm3, %v10864_v45, %v3283_v62  ;;  %v3359_v45 = vpop.permute.xlu0 %3358 }
 0x45f   :  { %v3276_v24 = vmul.f32 %v14228_v59, %v3249_v30  ;;  %v3277_v63 = vmul.f32 %v14229_v38, %v10986_v15  ;;  %v14232_v59 = vrot.slane %v9980_v34, %v6786_v17  ;;  %v14234_v39 = vrot.slane %v10004_v51, %v6792_v19 }
 0x460   :  { %v3780_v57 = vmul.f32 %v14231_v37, %v3289_v28  ;;  %v3804_v35 = vmul.f32 %v14233_v13, %v11027_v58  ;;  %v3942_v38 = vsel %vm997_vm6, %v3312_v0, %v3874_v56  ;;  %v14235_v37 = vrot.slane %v9999_v44, %v6783_v16  ;;  %v3361_v60 = vpop.permute.xlu1 %3360 }
 0x461   :  { %v11049_v11 = vmul.f32 %v14232_v59, %v3249_v30  ;;  %v3353_v28 = vmul.f32 %v14234_v39, %v11022_v29  ;;  %v14236_v13 = vrot.slane %v10022_v22, %v6786_v17  ;;  %v11073_v23 = vpack.c.bf16 %v3942_v38, %v3938_v5 }
 0x462   :  { %v11067_v59 = vmul.f32 %v14235_v37, %v3249_v30  ;;  %v4014_v1 = vrot.slane %v3804_v35, 4  ;;  %v14238_v39 = vrot.slane %v9999_v44, %v6786_v17  ;;  %v3864_v56 = vrot.slane %v3276_v24, 4 }
 0x463   :  { %v3805_v33 = vmul.f32 %v14236_v13, %v11022_v29  ;;  %14237 = vst [vmem:[#allocation43_spill] sm:$0xff] %v11073_v23  ;;  %v3865_v0 = vrot.slane %v3277_v63, 4  ;;  %v11083_v30 = vsel %vm361_vm10, %v3357_v6, %v3359_v45  ;;  %v3286_v22 = vsel %vm281_vm3, %v3283_v62, %v3285_v53  ;;  %4495 = vmatpush1.bf16.msra.mxu0 %v11073_v23 }
 0x464   :  { %v11079_v10 = vmul.f32 %v14238_v39, %v10986_v15  ;;  %v14239_v35 = vrot.slane %v14226_v40, %v6783_v16  ;;  %v4078_v13 = vunpack.c.l.bf16 %v11073_v23  ;;  %v4082_v9 = vunpack.c.h.bf16 %v11073_v23  ;;  %v14242_v39 = vld [vmem:[#allocation62_spill] sm:$0xff] }
 0x465   :  { %v14240_v44 = vrot.slane %v14219_v55, %v6786_v17  ;;  %v14241_v63 = vrot.slane %v10004_v51, %v6789_v18  ;;  %v3877_v62 = vrot.slane %v3353_v28, 4  ;;  %v4015_v42 = vrot.slane %v3805_v33, 4 }
 0x466   :  { %v3778_v37 = vmul.f32 %v14239_v35, %v3287_v50  ;;  %v14243_v35 = vrot.slane %v14242_v39, %v6783_v16  ;;  %v11106_v32 = vsub.f32 %v3938_v5, %v4078_v13  ;;  %v11108_v23 = vsub.f32 %v3942_v38, %v4082_v9  ;;  %v14251_v13 = vld [vmem:[#allocation31_spill] sm:$0xff] }
 0x467   :  { %v11096_v24 = vmul.f32 %v14240_v44, %v3287_v50  ;;  %v3352_v53 = vmul.f32 %v14241_v63, %v11027_v58  ;;  %v14246_v48 = vrot.slane %v14205_v2, %v6789_v18  ;;  %v14247_v51 = vrot.slane %v14205_v2, %v6792_v19 }
 0x468   :  { %v3830_v7 = vmul.f32 %v14243_v35, %v11083_v30  ;;  %14244 = vst [vmem:[#allocation63_spill] sm:$0xff] %v11106_v32  ;;  %14245 = vst [vmem:[#allocation62_spill] sm:$0xff] %v11108_v23  ;;  %v4038_v44 = vsel %vm997_vm6, %v3778_v37, %v4014_v1  ;;  %v3364_v63 = vsel %vm361_vm10, %v3355_v20, %v3357_v6 }
 0x469   :  { %v3314_v52 = vmul.f32 %v14246_v48, %v3287_v50  ;;  %v3315_v28 = vmul.f32 %v14247_v51, %v3286_v22  ;;  %v14248_v5 = vrot.slane %v14219_v55, %v6789_v18  ;;  %v14249_v33 = vrot.slane %v14226_v40, %v6786_v17  ;;  %v14253_v51 = vld [vmem:[#allocation58_spill] sm:$0xff] }
 0x46a   :  { %v11119_v35 = vpack.c.bf16 %v3830_v7, %v4038_v44  ;;  %v11131_v48 = vsel %vm361_vm10, %v3359_v45, %v3361_v60  ;;  %v3365_v2 = vsel %vm361_vm10, %v3361_v60, %v3355_v20  ;;  %v3876_v50 = vrot.slane %v3352_v53, 4  ;;  %v11149_v60 = vpop.permute.xlu0 %4762 }
 0x46b   :  { %v11124_v9 = vmul.f32 %v14248_v5, %v3286_v22  ;;  %v3779_v1 = vmul.f32 %v14249_v33, %v3286_v22  ;;  %v11138_v55 = vsel %vm997_vm6, %v3315_v28, %v3877_v62  ;;  %v3923_v37 = vrot.slane %v11096_v24, 4 }
 0x46c   :  { %v4118_v6 = vunpack.c.l.bf16 %v11119_v35  ;;  %v4122_v38 = vunpack.c.h.bf16 %v11119_v35  ;;  %14250 = vst [vmem:[#allocation85_spill] sm:$0xff] %v11138_v55  ;;  %v14252_v40 = vrot.slane %v14251_v13, %v6786_v17  ;;  %v11147_v5 = vsel %vm997_vm6, %v14253_v51, %v3865_v0 }
 0x46d   :  { %v4039_v45 = vsel %vm997_vm6, %v3779_v1, %v4015_v42  ;;  %14254 = vst [vmem:[#allocation31_spill] sm:$0xff] %v11147_v5  ;;  %v14257_v24 = vrot.slane %v14242_v39, %v6786_v17  ;;  %v14258_v28 = vrot.slane %v14242_v39, %v6789_v18  ;;  %v14259_v42 = vrot.slane %v10932_v47, 4 }
 0x46e   :  { %v3389_v22 = vmul.f32 %v14252_v40, %v3364_v63  ;;  %v11151_v20 = vsub.f32 %v4038_v44, %v4118_v6  ;;  %v11153_v53 = vsub.f32 %v3830_v7, %v4122_v38  ;;  %v14260_v1 = vrot.slane %v14251_v13, %v6783_v16  ;;  %v14262_v6 = vld [vmem:[#allocation67_spill] sm:$0xff]  ;;  %v11174_v40 = vpop.permute.xlu1 %4756 }
 0x46f   :  { %v3831_v62 = vmul.f32 %v14257_v24, %v11131_v48  ;;  %v3832_v33 = vmul.f32 %v14258_v28, %v3365_v2  ;;  %v4040_v0 = vsel %vm997_vm6, %v3780_v57, %v14259_v42  ;;  %v11170_v7 = vpack.c.bf16 %v11138_v55, %v11147_v5  ;;  %v11214_v55 = vpop.permute.xlu0 %4838 }
 0x470   :  { %14255 = vst [vmem:[#allocation58_spill] sm:$0xff] %v11151_v20  ;;  %14256 = vst [vmem:[#allocation86_spill] sm:$0xff] %v11153_v53  ;;  %v3388_v44 = vmul.f32 %v14260_v1, %v3365_v2  ;;  %v3940_v38 = vsel %vm997_vm6, %v14262_v6, %v3864_v56  ;;  %v3944_v57 = vsel %vm997_vm6, %v3314_v52, %v3876_v50  ;;  %v14268_v51 = vrot.slane %v10905_v14, 4 }
 0x471   :  { %14261 = vst [vmem:[#allocation87_spill] sm:$0xff] %v11170_v7  ;;  %v11178_v24 = vpack.c.bf16 %v3831_v62, %v4039_v45  ;;  %v11180_v47 = vpack.c.bf16 %v3832_v33, %v4040_v0  ;;  %v14265_v28 = vrot.slane %v14242_v39, %v6792_v19  ;;  %v14266_v56 = vrot.slane %v14251_v13, %v6792_v19 }
 0x472   :  { %4576 = vmatprep.subr.bf16.mxu1 %v11170_v7  ;;  %v11193_v6 = vpack.c.bf16 %v3944_v57, %v3940_v38  ;;  %v11198_v20 = vsel %vm997_vm6, %v3389_v22, %v14268_v51  ;;  %v14270_v22 = vrot.slane %v10603_v26, 4 }
 0x473   :  { %14263 = vst [vmem:[#allocation67_spill] sm:$0xff] %v11178_v24  ;;  %14264 = vst [vmem:[#allocation88_spill] sm:$0xff] %v11180_v47  ;;  %v11186_v42 = vmul.f32 %v14265_v28, %v3364_v63  ;;  %v3391_v1 = vmul.f32 %v14266_v56, %v11131_v48  ;;  %v4119_v52 = vunpack.c.l.bf16 %v11178_v24  ;;  %v4120_v39 = vunpack.c.l.bf16 %v11180_v47 }
 0x474   :  { %14267 = vst [vmem:[#allocation89_spill] sm:$0xff] %v11193_v6  ;;  %14269 = vst [vmem:[#allocation90_spill] sm:$0xff] %v11198_v20  ;;  %v4123_v50 = vunpack.c.h.bf16 %v11178_v24  ;;  %v4124_v28 = vunpack.c.h.bf16 %v11180_v47  ;;  %v4080_v53 = vunpack.c.l.bf16 %v11193_v6  ;;  %v4084_v56 = vunpack.c.h.bf16 %v11193_v6  ;;  %4577 = vmatpush1.bf16.msra.mxu1 %v11193_v6 }
 0x475   :  { %v11209_v14 = vpack.c.bf16 %v11010_v46, %v11198_v20  ;;  %v3946_v51 = vsel %vm997_vm6, %v3388_v44, %v14270_v22  ;;  %v11216_v5 = vsub.f32 %v4039_v45, %v4119_v52  ;;  %v11218_v23 = vsub.f32 %v4040_v0, %v4120_v39  ;;  %v14276_v20 = vld [vmem:[#allocation56_spill] sm:$0xff] }
 0x476   :  { %v11220_v32 = vsub.f32 %v3831_v62, %v4123_v50  ;;  %v11222_v7 = vsub.f32 %v3832_v33, %v4124_v28  ;;  %v14275_v6 = vrot.slane %v14251_v13, %v6789_v18  ;;  %v14277_v26 = vrot.slane %v14276_v20, %v6786_v17  ;;  %v11237_v62 = vpop.permute.xlu1 %4832 }
 0x477   :  { %14271 = vst [vmem:[#allocation91_spill] sm:$0xff] %v11216_v5  ;;  %14272 = vst [vmem:[#allocation92_spill] sm:$0xff] %v11218_v23  ;;  %v11232_v22 = vsub.f32 %v3940_v38, %v4080_v53  ;;  %v11234_v45 = vsub.f32 %v3944_v57, %v4084_v56  ;;  %4496 = vmatprep.subr.bf16.mxu0 %v11209_v14  ;;  %v14280_v33 = vrot.slane %v10855_v4, 4  ;;  %v3924_v50 = vrot.slane %v11124_v9, 4 }
 0x478   :  { %14273 = vst [vmem:[#allocation93_spill] sm:$0xff] %v11220_v32  ;;  %14274 = vst [vmem:[#allocation94_spill] sm:$0xff] %v11222_v7  ;;  %v3390_v46 = vmul.f32 %v14275_v6, %v11083_v30  ;;  %v3597_v44 = vmul.f32 %v14277_v26, %v11083_v30  ;;  %v11246_v6 = vpack.c.bf16 %v10733_v3, %v3946_v51  ;;  %v14281_v30 = vld [vmem:[#allocation50_spill] sm:$0xff] }
 0x479   :  { %14278 = vst [vmem:[#allocation56_spill] sm:$0xff] %v11232_v22  ;;  %14279 = vst [vmem:[#allocation95_spill] sm:$0xff] %v11234_v45  ;;  %v4041_v0 = vsel %vm997_vm6, %v11016_v54, %v14280_v33  ;;  %v14282_v53 = vrot.slane %v14281_v30, 4  ;;  %v14284_v57 = vrot.slane %v14276_v20, %v6783_v16  ;;  %v11265_v39 = vsel %vm997_vm6, %v11049_v11, %v3923_v37  ;;  %v14366_v22 = vld [vmem:[#allocation52_spill] sm:$0xff] }
 0x47a   :  { %v11257_v4 = vpack.c.bf16 %v11186_v42, %v4041_v0  ;;  %14285 = vst [vmem:[#allocation96_spill] sm:$0xff] %v11265_v39  ;;  %v4090_v28 = vunpack.c.h.bf16 %v11246_v6  ;;  %4497 = vmatpush1.bf16.msra.mxu0 %v11246_v6  ;;  %v3967_v56 = vrot.slane %v3597_v44, 4  ;;  %v14286_v26 = vrot.slane %v14276_v20, %v6792_v19 }
 0x47b   :  { %v11251_v38 = vsel %vm997_vm6, %v3391_v1, %v14282_v53  ;;  %v3596_v52 = vmul.f32 %v14284_v57, %v3364_v63  ;;  %v4086_v1 = vunpack.c.l.bf16 %v11246_v6  ;;  %v11273_v63 = vpack.c.bf16 %v11265_v39, %v10830_v31  ;;  %v11288_v53 = vpop.permute.xlu0 %4836 }
 0x47c   :  { %14283 = vst [vmem:[#allocation50_spill] sm:$0xff] %v11251_v38  ;;  %v11261_v54 = vpack.c.bf16 %v10834_v27, %v11251_v38  ;;  %v3599_v33 = vmul.f32 %v14286_v26, %v3365_v2  ;;  %v14287_v11 = vrot.slane %v10921_v12, 4  ;;  %v14288_v37 = vrot.slane %v11006_v43, 4 }
 0x47d   :  { %v14290_v44 = vrot.slane %v10017_v41, %v6786_v17  ;;  %v11294_v2 = vsub.f32 %v3946_v51, %v4086_v1  ;;  %v11297_v26 = vsub.f32 %v10733_v3, %v4090_v28  ;;  %4498 = vmatprep.subr.bf16.mxu0 %v11273_v63  ;;  %v3966_v43 = vrot.slane %v3596_v52, 4  ;;  %v11312_v51 = vpop.permute.xlu1 %4760  ;;  %v14295_v52 = vld [vmem:[#allocation37_spill] sm:$0xff] }
 0x47e   :  { %4578 = vmatprep.subr.bf16.mxu1 %v11261_v54  ;;  %v3948_v9 = vsel %vm997_vm6, %v3390_v46, %v14287_v11  ;;  %v11286_v30 = vsel %vm997_vm6, %v10998_v25, %v14288_v37  ;;  %v4121_v25 = vunpack.c.l.bf16 %v11257_v4  ;;  %v14293_v46 = vld [vmem:[#allocation42_spill] sm:$0xff]  ;;  %v14294_v37 = vrot.slane %v10981_v8, 4 }
 0x47f   :  { %14289 = vst [vmem:[#allocation97_spill] sm:$0xff] %v11286_v30  ;;  %v3571_v57 = vmul.f32 %v14290_v44, %v11027_v58  ;;  %14291 = vst [vmem:[#allocation98_spill] sm:$0xff] %v11294_v2  ;;  %v11301_v12 = vpack.c.bf16 %v11040_v21, %v3948_v9  ;;  %v11306_v11 = vpack.c.bf16 %v11286_v30, %v14293_v46  ;;  %v4125_v3 = vunpack.c.h.bf16 %v11257_v4 }
 0x480   :  { %14292 = vst [vmem:[#allocation99_spill] sm:$0xff] %v11297_v26  ;;  %v3958_v58 = vsel %vm997_vm6, %v10819_v36, %v14294_v37  ;;  %v14296_v8 = vrot.slane %v14276_v20, %v6789_v18  ;;  %v3969_v23 = vrot.slane %v3599_v33, 4  ;;  %v14298_v37 = vld [vmem:[#allocation47_spill] sm:$0xff]  ;;  %v4840_v46 = vsel %vm174_vm7, %v11288_v53, %v11214_v55  ;;  %v14363_v26 = vld [vmem:[#allocation30_spill] sm:$0xff] }
 0x481   :  { %v4088_v1 = vunpack.c.l.bf16 %v11301_v12  ;;  %v4092_v28 = vunpack.c.h.bf16 %v11301_v12  ;;  %4579 = vmatpush1.bf16.msra.mxu1 %v11301_v12  ;;  %v11319_v44 = vpack.c.bf16 %v3958_v58, %v14295_v52  ;;  %v11327_v36 = vsel %vm997_vm6, %v3571_v57, %v3967_v56 }
 0x482   :  { %v3598_v13 = vmul.f32 %v14296_v8, %v11131_v48  ;;  %4580 = vmatprep.subr.bf16.mxu1 %v11306_v11  ;;  %14297 = vst [vmem:[#allocation37_spill] sm:$0xff] %v11327_v36  ;;  %v14299_v7 = vrot.slane %v14298_v37, 4  ;;  %v14303_v56 = vrot.slane %v9980_v34, %v6789_v18  ;;  %v4002_v57 = vrot.slane %v11067_v59, 4  ;;  %v14308_v8 = vld [vmem:[#allocation81_spill] sm:$0xff] }
 0x483   :  { %v11335_v5 = vsub.f32 %v3948_v9, %v4088_v1  ;;  %v11338_v30 = vsub.f32 %v11040_v21, %v4092_v28  ;;  %v4094_v20 = vunpack.c.l.bf16 %v11319_v44  ;;  %v4098_v48 = vunpack.c.h.bf16 %v11319_v44  ;;  %4499 = vmatpush1.bf16.msra.mxu0 %v11319_v44  ;;  %v11353_v21 = vpop.permute.xlu0 %4724 }
 0x484   :  { %v11333_v32 = vsel %vm997_vm6, %v10958_v49, %v14299_v7  ;;  %v3520_v33 = vmul.f32 %v14303_v56, %v10986_v15  ;;  %v4003_v49 = vrot.slane %v11079_v10, 4  ;;  %v14304_v9 = vrot.slane %v10017_v41, %v6789_v18  ;;  %v11378_v56 = vpop.permute.xlu1 %4718 }
 0x485   :  { %14300 = vst [vmem:[#allocation47_spill] sm:$0xff] %v11333_v32  ;;  %14301 = vst [vmem:[#allocation100_spill] sm:$0xff] %v11335_v5  ;;  %v11351_v7 = vpack.c.bf16 %v11333_v32, %v11327_v36  ;;  %v4767_v34 = vsel %vm94_vm0, %v11149_v60, %v11174_v40  ;;  %v11364_v15 = vsub.f32 %v14295_v52, %v4094_v20  ;;  %v14312_v20 = vld [vmem:[#allocation40_spill] sm:$0xff]  ;;  %v14330_v36 = vld [vmem:[#allocation65_spill] sm:$0xff] }
 0x486   :  { %14302 = vst [vmem:[#allocation101_spill] sm:$0xff] %v11338_v30  ;;  %v3572_v1 = vmul.f32 %v14304_v9, %v11022_v29  ;;  %v11366_v10 = vsub.f32 %v3958_v58, %v4098_v48  ;;  %v11368_v59 = vsub.f32 %v4041_v0, %v4121_v25  ;;  %v3960_v28 = vsel %vm997_vm6, %v3520_v33, %v3924_v50  ;;  %v14310_v29 = vld [vmem:[#allocation15_spill] sm:$0xff]  ;;  %v14313_v25 = vld [vmem:[#allocation20_spill] sm:$0xff]  ;;  %v14316_v33 = vld [vmem:[#allocation25_spill] sm:$0xff] }
 0x487   :  { %14305 = vst [vmem:[#allocation102_spill] sm:$0xff] %v11364_v15  ;;  %4500 = vmatprep.subr.bf16.mxu0 %v11351_v7  ;;  %v11374_v41 = vsel %vm997_vm6, %v14308_v8, %v3969_v23  ;;  %v4022_v37 = vsel %vm997_vm6, %v14310_v29, %v3966_v43  ;;  %v11381_v52 = vsub.f32 %v11186_v42, %v4125_v3  ;;  %v3968_v58 = vrot.slane %v3598_v13, 4  ;;  %v14315_v9 = vld [vmem:[#allocation80_spill] sm:$0xff]  ;;  %v14319_v43 = vld [vmem:[#allocation22_spill] sm:$0xff]  ;;  %v14322_v42 = vld [vmem:[#allocation11_spill] sm:$0xff]  ;;  %v11432_v15 = vpop.permute.xlu0 %4800 }
 0x488   :  { %14306 = vst [vmem:[#allocation103_spill] sm:$0xff] %v11366_v10  ;;  %14307 = vst [vmem:[#allocation104_spill] sm:$0xff] %v11368_v59  ;;  %v11384_v0 = vpack.c.bf16 %v3960_v28, %v14312_v20  ;;  %v14314_v48 = vrot.slane %v14313_v25, 4  ;;  %v14317_v23 = vrot.slane %v14316_v33, %v6786_v17  ;;  %v14320_v29 = vrot.slane %v14319_v43, %v6783_v16  ;;  %v14323_v25 = vld [vmem:[#allocation32_spill] sm:$0xff]  ;;  %v11453_v5 = vpop.permute.xlu1 %4794 }
 0x489   :  { %14309 = vst [vmem:[#allocation81_spill] sm:$0xff] %v11374_v41  ;;  %14311 = vst [vmem:[#allocation15_spill] sm:$0xff] %v11381_v52  ;;  %v11402_v13 = vpack.c.bf16 %v14322_v42, %v11374_v41  ;;  %v14324_v52 = vrot.slane %v14323_v25, %v6792_v19  ;;  %v14328_v41 = vld [vmem:[#allocation64_spill] sm:$0xff]  ;;  %v11430_v10 = vsel %vm997_vm6, %v14330_v36, %v4003_v49 }
 0x48a   :  { %v4026_v50 = vsel %vm997_vm6, %v14315_v9, %v14314_v48  ;;  %v11393_v8 = vmul.f32 %v14317_v23, %v4767_v34  ;;  %v11398_v59 = vmul.f32 %v14320_v29, %v4767_v34  ;;  %v4843_v9 = vsel %vm174_vm7, %v11214_v55, %v11237_v62  ;;  %4581 = vmatpush1.bf16.msra.mxu1 %v11384_v0  ;;  %v14337_v55 = vld [vmem:[#allocation6_spill] sm:$0xff] }
 0x48b   :  { %v11404_v3 = vpack.c.bf16 %v4026_v50, %v4022_v37  ;;  %v11409_v48 = vmul.f32 %v14324_v52, %v4767_v34  ;;  %v4096_v23 = vunpack.c.l.bf16 %v11384_v0  ;;  %v4100_v29 = vunpack.c.h.bf16 %v11384_v0  ;;  %4582 = vmatprep.subr.bf16.mxu1 %v11402_v13  ;;  %v14326_v34 = vld [vmem:[#allocation39_spill] sm:$0xff]  ;;  %14331 = vst [vmem:[#allocation22_spill] sm:$0xff] %v11430_v10 }
 0x48c   :  { %14318 = vst [vmem:[#allocation40_spill] sm:$0xff] %v11393_v8  ;;  %14321 = vst [vmem:[#allocation20_spill] sm:$0xff] %v11398_v59  ;;  %v14327_v52 = vrot.slane %v14326_v34, 4 }
 0x48d   :  { %14325 = vst [vmem:[#allocation80_spill] sm:$0xff] %v11409_v48  ;;  %v4102_v59 = vunpack.c.l.bf16 %v11404_v3  ;;  %v4106_v42 = vunpack.c.h.bf16 %v11404_v3  ;;  %4501 = vmatpush1.bf16.msra.mxu0 %v11404_v3  ;;  %v11439_v39 = vsub.f32 %v14312_v20, %v4096_v23  ;;  %v11441_v30 = vsub.f32 %v3960_v28, %v4100_v29  ;;  %v14340_v28 = vld [vmem:[#allocation5_spill] sm:$0xff] }
 0x48e   :  { %v11426_v32 = vsel %vm997_vm6, %v14328_v41, %v14327_v52  ;;  %v4024_v52 = vsel %vm997_vm6, %v3572_v1, %v3968_v58  ;;  %v14338_v20 = vrot.slane %v14337_v55, %v6786_v17  ;;  %v14346_v58 = vld [vmem:[#allocation69_spill] sm:$0xff] }
 0x48f   :  { %14329 = vst [vmem:[#allocation25_spill] sm:$0xff] %v11426_v32  ;;  %14332 = vst [vmem:[#allocation32_spill] sm:$0xff] %v11439_v39  ;;  %v11445_v41 = vpack.c.bf16 %v11430_v10, %v11426_v32  ;;  %v11448_v36 = vsub.f32 %v4022_v37, %v4102_v59  ;;  %v11450_v49 = vsub.f32 %v4026_v50, %v4106_v42  ;;  %v14342_v10 = vld [vmem:[#allocation9_spill] sm:$0xff] }
 0x490   :  { %14333 = vst [vmem:[#allocation39_spill] sm:$0xff] %v11441_v30  ;;  %v11458_v23 = vmul.f32 %v14338_v20, %v4843_v9  ;;  %v11462_v29 = vpack.c.bf16 %v14340_v28, %v4024_v52  ;;  %v14343_v34 = vrot.slane %v14342_v10, 4  ;;  %v14344_v59 = vld [vmem:[#allocation77_spill] sm:$0xff]  ;;  %v14347_v42 = vrot.slane %v14346_v58, %v6783_v16  ;;  %v14349_v20 = vld [vmem:[#allocation71_spill] sm:$0xff] }
 0x491   :  { %14334 = vst [vmem:[#allocation64_spill] sm:$0xff] %v11445_v41  ;;  %14335 = vst [vmem:[#allocation65_spill] sm:$0xff] %v11448_v36  ;;  %4502 = vmatprep.subr.bf16.mxu0 %v11445_v41  ;;  %v14345_v50 = vld [vmem:[#allocation41_spill] sm:$0xff]  ;;  %v14350_v32 = vrot.slane %v14349_v20, %v6792_v19  ;;  %v14352_v36 = vrot.slane %v14337_v55, %v6783_v16 }
 0x492   :  { %14336 = vst [vmem:[#allocation105_spill] sm:$0xff] %v11450_v49  ;;  %14339 = vst [vmem:[#allocation6_spill] sm:$0xff] %v11458_v23  ;;  %v4030_v37 = vsel %vm997_vm6, %v14344_v59, %v14343_v34  ;;  %v4034_v1 = vsel %vm997_vm6, %v14345_v50, %v4002_v57  ;;  %v11473_v8 = vmul.f32 %v14347_v42, %v4843_v9  ;;  %v4104_v59 = vunpack.c.l.bf16 %v11462_v29  ;;  %v14359_v42 = vld [vmem:[#allocation14_spill] sm:$0xff] }
 0x493   :  { %14341 = vst [vmem:[#allocation5_spill] sm:$0xff] %v11462_v29  ;;  %v11478_v49 = vmul.f32 %v14350_v32, %v4843_v9  ;;  %v11483_v10 = vmul.f32 %v14352_v36, %v4840_v46  ;;  %v11485_v30 = vpack.c.bf16 %v4034_v1, %v4030_v37  ;;  %v14355_v57 = vrot.slane %v14349_v20, %v6789_v18  ;;  %v14357_v32 = vld [vmem:[#allocation82_spill] sm:$0xff]  ;;  %v14360_v36 = vld [vmem:[#allocation76_spill] sm:$0xff] }
 0x494   :  { %14348 = vst [vmem:[#allocation9_spill] sm:$0xff] %v11473_v8  ;;  %v4108_v50 = vunpack.c.h.bf16 %v11462_v29  ;;  %4583 = vmatpush1.bf16.msra.mxu1 %v11462_v29  ;;  %v14358_v9 = vrot.slane %v14357_v32, 4  ;;  %v4759_v32 = vpop.permute.xlu0 %4758  ;;  %v11526_v29 = vpop.permute.xlu1 %4722 }
 0x495   :  { %14351 = vst [vmem:[#allocation77_spill] sm:$0xff] %v11478_v49  ;;  %14353 = vst [vmem:[#allocation41_spill] sm:$0xff] %v11483_v10  ;;  %v11490_v34 = vmul.f32 %v14355_v57, %v4840_v46  ;;  %4584 = vmatprep.subr.bf16.mxu1 %v14360_v36  ;;  %v4110_v39 = vunpack.c.l.bf16 %v11485_v30  ;;  %v4114_v31 = vunpack.c.h.bf16 %v11485_v30  ;;  %4503 = vmatpush1.bf16.msra.mxu0 %v11485_v30  ;;  %v14361_v57 = vld [vmem:[#allocation48_spill] sm:$0xff]  ;;  %v14390_v49 = vld [vmem:[#allocation87_spill] sm:$0xff] }
 0x496   :  { %14354 = vst [vmem:[#allocation69_spill] sm:$0xff] %v11485_v30  ;;  %v4036_v8 = vsel %vm997_vm6, %v14359_v42, %v14358_v9  ;;  %v14362_v27 = vrot.slane %v14361_v57, 2  ;;  %v4764_v9 = vsel %vm94_vm0, %v11312_v51, %v11149_v60  ;;  %v11514_v42 = vsub.f32 %v4024_v52, %v4104_v59 }
 0x497   :  { %14356 = vst [vmem:[#allocation71_spill] sm:$0xff] %v11490_v34  ;;  %v11508_v2 = vpack.c.bf16 %v4036_v8, %v14363_v26  ;;  %v11517_v45 = vsub.f32 %v14340_v28, %v4108_v50  ;;  %v4241_v30 = vrot.slane %v14366_v22, 2  ;;  %v11520_v36 = vsub.f32 %v4030_v37, %v4110_v39  ;;  %v14369_v39 = vld [vmem:[#allocation16_spill] sm:$0xff]  ;;  %v14371_v28 = vld [vmem:[#allocation33_spill] sm:$0xff] }
 0x498   :  { %v4425_v38 = vsel %vm1002_vm9, %v11178_v24, %v14362_v27  ;;  %14364 = vst [vmem:[#allocation82_spill] sm:$0xff] %v11514_v42  ;;  %v11522_v27 = vsub.f32 %v4034_v1, %v4114_v31  ;;  %v4729_v60 = vsel %vm55_vm5, %v11353_v21, %v11378_v56  ;;  %v14370_v52 = vrot.slane %v14369_v39, 2  ;;  %v11595_v10 = vpop.permute.xlu1 %4798 }
 0x499   :  { %14365 = vst [vmem:[#allocation14_spill] sm:$0xff] %v11517_v45  ;;  %4504 = vmatprep.subr.bf16.mxu0 %v4425_v38  ;;  %14367 = vst [vmem:[#allocation48_spill] sm:$0xff] %v11520_v36  ;;  %v4112_v24 = vunpack.c.l.bf16 %v11508_v2  ;;  %v4116_v41 = vunpack.c.h.bf16 %v11508_v2  ;;  %4585 = vmatpush1.bf16.msra.mxu1 %v11508_v2  ;;  %v4433_v38 = vsel %vm1002_vm9, %v11257_v4, %v4241_v30  ;;  %v4244_v37 = vrot.slane %v14371_v28, 2  ;;  %v4835_v45 = vpop.permute.xlu0 %4834  ;;  %v14400_v28 = vld [vmem:[#allocation70_spill] sm:$0xff] }
 0x49a   :  { %14368 = vst [vmem:[#allocation30_spill] sm:$0xff] %v11522_v27  ;;  %v4421_v31 = vsel %vm1002_vm9, %v11119_v35, %v14370_v52  ;;  %v14372_v59 = vrot.slane %v14316_v33, %v6783_v16  ;;  %4586 = vmatprep.subr.bf16.mxu1 %v4433_v38  ;;  %v14376_v42 = vrot.slane %v14323_v25, %v6789_v18  ;;  %v4248_v34 = vrot.slane %v14390_v49, 2  ;;  %v14397_v49 = vld [vmem:[#allocation13_spill] sm:$0xff] }
 0x49b   :  { %v11547_v27 = vsub.f32 %v14363_v26, %v4112_v24  ;;  %v11549_v36 = vsub.f32 %v4036_v8, %v4116_v41  ;;  %4505 = vmatpush1.bf16.msra.mxu0 %v4421_v31  ;;  %v14378_v24 = vrot.slane %v14346_v58, %v6792_v19  ;;  %v14380_v8 = vld [vmem:[#allocation36_spill] sm:$0xff]  ;;  %v14383_v31 = vld [vmem:[#allocation75_spill] sm:$0xff] }
 0x49c   :  { %v11544_v50 = vmul.f32 %v14372_v59, %v4764_v9  ;;  %v11556_v1 = vmul.f32 %v14376_v42, %v4764_v9  ;;  %v4805_v59 = vsel %vm134_vm2, %v11432_v15, %v11453_v5  ;;  %v14381_v41 = vrot.slane %v14380_v8, %v6783_v16 }
 0x49d   :  { %14374 = vst [vmem:[#allocation106_spill] sm:$0xff] %v11547_v27  ;;  %14375 = vst [vmem:[#allocation107_spill] sm:$0xff] %v11549_v36  ;;  %v11565_v26 = vmul.f32 %v14378_v24, %v4840_v46  ;;  %v4766_v42 = vsel %vm94_vm0, %v11174_v40, %v4759_v32  ;;  %v4240_v52 = vrot.slane %v14383_v31, 2  ;;  %v14384_v46 = vrot.slane %v14319_v43, %v6792_v19  ;;  %v14387_v36 = vld [vmem:[#allocation34_spill] sm:$0xff] }
 0x49e   :  { %14373 = vst [vmem:[#allocation16_spill] sm:$0xff] %v11544_v50  ;;  %14377 = vst [vmem:[#allocation108_spill] sm:$0xff] %v11556_v1  ;;  %v11570_v38 = vmul.f32 %v14381_v41, %v4729_v60  ;;  %v14388_v40 = vrot.slane %v14387_v36, %v6783_v16 }
 0x49f   :  { %14379 = vst [vmem:[#allocation109_spill] sm:$0xff] %v11565_v26  ;;  %v11581_v24 = vmul.f32 %v14384_v46, %v4764_v9  ;;  %v14386_v26 = vrot.slane %v14361_v57, 2  ;;  %v4429_v48 = vsel %vm1002_vm9, %v11180_v47, %v4240_v52  ;;  %v14391_v46 = vrot.slane %v14316_v33, %v6789_v18 }
 0x4a0   :  { %14382 = vst [vmem:[#allocation36_spill] sm:$0xff] %v11570_v38  ;;  %v11590_v31 = vmul.f32 %v14388_v40, %v4805_v59  ;;  %4587 = vmatpush1.bf16.msra.mxu1 %v4429_v48  ;;  %v14398_v9 = vrot.slane %v14397_v49, %v6792_v19 }
 0x4a1   :  { %14385 = vst [vmem:[#allocation75_spill] sm:$0xff] %v11581_v24  ;;  %v4245_v41 = vsel %vm1002_vm9, %v14386_v26, %v4244_v37  ;;  %v4765_v26 = vsel %vm94_vm0, %v4759_v32, %v11312_v51  ;;  %v11604_v23 = vmul.f32 %v14391_v46, %v4766_v42  ;;  %v14394_v24 = vld [vmem:[#allocation18_spill] sm:$0xff]  ;;  %v4249_v32 = vsel %vm1002_vm9, %v4241_v30, %v4248_v34 }
 0x4a2   :  { %14389 = vst [vmem:[#allocation34_spill] sm:$0xff] %v11590_v31  ;;  %4506 = vmatprep.subr.bf16.mxu0 %v4245_v41  ;;  %v14393_v41 = vld [vmem:[#allocation43_spill] sm:$0xff]  ;;  %v14395_v50 = vrot.slane %v14394_v24, %v6786_v17  ;;  %v11615_v1 = vmul.f32 %v14398_v9, %v4729_v60  ;;  %v14401_v46 = vrot.slane %v14400_v28, %v6786_v17 }
 0x4a3   :  { %14392 = vst [vmem:[#allocation110_spill] sm:$0xff] %v11604_v23  ;;  %v4242_v40 = vrot.slane %v14393_v41, 2  ;;  %v14402_v41 = vld [vmem:[#allocation46_spill] sm:$0xff]  ;;  %4588 = vmatprep.subr.bf16.mxu1 %v4249_v32 }
 0x4a4   :  { %v11610_v27 = vmul.f32 %v14395_v50, %v4729_v60  ;;  %14399 = vst [vmem:[#allocation18_spill] sm:$0xff] %v11615_v1  ;;  %v11622_v48 = vmul.f32 %v14401_v46, %v4805_v59  ;;  %v14403_v22 = vrot.slane %v14402_v41, %v6792_v19  ;;  %v4726_v60 = vsel %vm55_vm5, %v11526_v29, %v11353_v21 }
 0x4a5   :  { %v14405_v50 = vrot.slane %v14369_v39, 2  ;;  %v14406_v46 = vrot.slane %v14316_v33, %v6792_v19  ;;  %v14410_v21 = vrot.slane %v14319_v43, %v6789_v18  ;;  %v11652_v39 = vpop.permute.xlu0 %4898  ;;  %v14414_v33 = vrot.slane %v14323_v25, %v6786_v17 }
 0x4a6   :  { %14396 = vst [vmem:[#allocation43_spill] sm:$0xff] %v11610_v27  ;;  %v11627_v47 = vmul.f32 %v14403_v22, %v4805_v59  ;;  %v14408_v22 = vrot.slane %v14319_v43, %v6786_v17  ;;  %v14416_v43 = vrot.slane %v14380_v8, %v6792_v19 }
 0x4a7   :  { %v4243_v30 = vsel %vm1002_vm9, %v14405_v50, %v4242_v40  ;;  %v11640_v51 = vmul.f32 %v14406_v46, %v4765_v26  ;;  %v11650_v32 = vmul.f32 %v14410_v21, %v4765_v26  ;;  %v14412_v50 = vrot.slane %v14323_v25, %v6783_v16  ;;  %v14418_v21 = vld [vmem:[#allocation89_spill] sm:$0xff] }
 0x4a8   :  { %14404 = vst [vmem:[#allocation13_spill] sm:$0xff] %v11627_v47  ;;  %v11645_v59 = vmul.f32 %v14408_v22, %v4766_v42  ;;  %4507 = vmatpush1.bf16.msra.mxu0 %v4243_v30  ;;  %v11662_v46 = vmul.f32 %v14414_v33, %v4765_v26  ;;  %v4252_v47 = vrot.slane %v11209_v14, 2  ;;  %v11669_v30 = vmul.f32 %v14416_v43, %v4726_v60 }
 0x4a9   :  { %14407 = vst [vmem:[#allocation70_spill] sm:$0xff] %v11640_v51  ;;  %14411 = vst [vmem:[#allocation111_spill] sm:$0xff] %v11650_v32  ;;  %v11657_v9 = vmul.f32 %v14412_v50, %v4766_v42  ;;  %v4246_v1 = vrot.slane %v14418_v21, 2  ;;  %v4256_v32 = vrot.slane %v11261_v54, 2  ;;  %v4250_v42 = vrot.slane %v11246_v6, 2  ;;  %v11674_v50 = vpop.permute.xlu1 %4896 }
 0x4aa   :  { %14409 = vst [vmem:[#allocation46_spill] sm:$0xff] %v11645_v59  ;;  %14415 = vst [vmem:[#allocation113_spill] sm:$0xff] %v11662_v46  ;;  %v14419_v25 = vrot.slane %v14394_v24, %v6783_v16  ;;  %v4841_v33 = vsel %vm174_vm7, %v4835_v45, %v11288_v53  ;;  %v4253_v43 = vsel %vm1002_vm9, %v4244_v37, %v4252_v47  ;;  %v4260_v22 = vrot.slane %v11273_v63, 2 }
 0x4ab   :  { %14413 = vst [vmem:[#allocation112_spill] sm:$0xff] %v11657_v9  ;;  %14417 = vst [vmem:[#allocation114_spill] sm:$0xff] %v11669_v30  ;;  %v4842_v21 = vsel %vm174_vm7, %v11237_v62, %v4835_v45  ;;  %4508 = vmatprep.subr.bf16.mxu0 %v4253_v43  ;;  %v4247_v6 = vsel %vm1002_vm9, %v4240_v52, %v4246_v1  ;;  %v4251_v31 = vsel %vm1002_vm9, %v4242_v40, %v4250_v42  ;;  %v11704_v40 = vpop.permute.xlu0 %4974  ;;  %v14444_v9 = vld [vmem:[#allocation5_spill] sm:$0xff]  ;;  %v14447_v30 = vld [vmem:[#allocation64_spill] sm:$0xff] }
 0x4ac   :  { %v11679_v26 = vmul.f32 %v14419_v25, %v4726_v60  ;;  %v4254_v25 = vrot.slane %v11301_v12, 2  ;;  %4589 = vmatpush1.bf16.msra.mxu1 %v4247_v6  ;;  %v4257_v53 = vsel %vm1002_vm9, %v4248_v34, %v4256_v32  ;;  %4509 = vmatpush1.bf16.msra.mxu0 %v4251_v31  ;;  %v4261_v37 = vsel %vm1002_vm9, %v4252_v47, %v4260_v22 }
 0x4ad   :  { %v14421_v45 = vrot.slane %v14397_v49, %v6789_v18  ;;  %4590 = vmatprep.subr.bf16.mxu1 %v4257_v53  ;;  %4510 = vmatprep.subr.bf16.mxu0 %v4261_v37  ;;  %v4258_v12 = vrot.slane %v11319_v44, 2  ;;  %v14423_v34 = vrot.slane %v14337_v55, %v6789_v18  ;;  %v14425_v47 = vrot.slane %v14337_v55, %v6792_v19 }
 0x4ae   :  { %14420 = vst [vmem:[#allocation89_spill] sm:$0xff] %v11679_v26  ;;  %v4264_v6 = vrot.slane %v11306_v11, 2  ;;  %v14427_v44 = vrot.slane %v14346_v58, %v6786_v17  ;;  %v4255_v37 = vsel %vm1002_vm9, %v4246_v1, %v4254_v25  ;;  %v4268_v55 = vrot.slane %v11351_v7, 2 }
 0x4af   :  { %v11700_v62 = vmul.f32 %v14421_v45, %v4726_v60  ;;  %v11709_v31 = vmul.f32 %v14423_v34, %v4842_v21  ;;  %v11714_v43 = vmul.f32 %v14425_v47, %v4841_v33  ;;  %v4802_v60 = vsel %vm134_vm2, %v11595_v10, %v11432_v15  ;;  %v11728_v34 = vpop.permute.xlu1 %4972 }
 0x4b0   :  { %v11724_v53 = vmul.f32 %v14427_v44, %v4842_v21  ;;  %v4259_v45 = vsel %vm1002_vm9, %v4250_v42, %v4258_v12  ;;  %v14429_v47 = vrot.slane %v14349_v20, %v6783_v16  ;;  %4591 = vmatpush1.bf16.msra.mxu1 %v4255_v37  ;;  %v4265_v15 = vsel %vm1002_vm9, %v4256_v32, %v4264_v6 }
 0x4b1   :  { %14422 = vst [vmem:[#allocation115_spill] sm:$0xff] %v11700_v62  ;;  %14424 = vst [vmem:[#allocation116_spill] sm:$0xff] %v11709_v31  ;;  %4511 = vmatpush1.bf16.msra.mxu0 %v4259_v45  ;;  %v4272_v44 = vrot.slane %v11402_v13, 2  ;;  %v4266_v26 = vrot.slane %v11404_v3, 2  ;;  %v14431_v1 = vrot.slane %v14349_v20, %v6786_v17  ;;  %v4906_v52 = vsel %vm241_vm1, %v11674_v50, %v11652_v39  ;;  %v14438_v20 = vld [vmem:[#allocation7_spill] sm:$0xff] }
 0x4b2   :  { %14426 = vst [vmem:[#allocation117_spill] sm:$0xff] %v11714_v43  ;;  %14428 = vst [vmem:[#allocation118_spill] sm:$0xff] %v11724_v53  ;;  %v11734_v59 = vmul.f32 %v14429_v47, %v4842_v21  ;;  %4592 = vmatprep.subr.bf16.mxu1 %v4265_v15  ;;  %v4269_v21 = vsel %vm1002_vm9, %v4260_v22, %v4268_v55  ;;  %v4262_v32 = vrot.slane %v11384_v0, 2  ;;  %v14448_v43 = vld [vmem:[#allocation24_spill] sm:$0xff] }
 0x4b3   :  { %v11742_v42 = vmul.f32 %v14431_v1, %v4841_v33  ;;  %v14433_v37 = vrot.slane %v14346_v58, %v6789_v18  ;;  %v14435_v47 = vrot.slane %v14400_v28, %v6783_v16  ;;  %4512 = vmatprep.subr.bf16.mxu0 %v4269_v21  ;;  %v14436_v22 = vrot.slane %v14387_v36, %v6792_v19  ;;  %v14441_v21 = vld [vmem:[#allocation38_spill] sm:$0xff]  ;;  %v4721_v53 = vpop.permute.xlu1 %4720 }
 0x4b4   :  { %14430 = vst [vmem:[#allocation119_spill] sm:$0xff] %v11734_v59  ;;  %v4982_v0 = vsel %vm321_vm8, %v11728_v34, %v11704_v40  ;;  %v4263_v58 = vsel %vm1002_vm9, %v4254_v25, %v4262_v32  ;;  %v14442_v3 = vrot.slane %v14441_v21, %v6792_v19  ;;  %v4273_v62 = vsel %vm1002_vm9, %v4264_v6, %v4272_v44  ;;  %v14454_v59 = vld [vmem:[#allocation69_spill] sm:$0xff] }
 0x4b5   :  { %14432 = vst [vmem:[#allocation120_spill] sm:$0xff] %v11742_v42  ;;  %v11753_v45 = vmul.f32 %v14433_v37, %v4841_v33  ;;  %v11760_v1 = vmul.f32 %v14435_v47, %v4802_v60  ;;  %v11765_v15 = vmul.f32 %v14436_v22, %v4802_v60  ;;  %v4267_v33 = vsel %vm1002_vm9, %v4258_v12, %v4266_v26  ;;  %v4797_v37 = vpop.permute.xlu0 %4796 }
 0x4b6   :  { %v14439_v47 = vrot.slane %v14438_v20, %v6786_v17  ;;  %v11781_v22 = vmul.f32 %v14442_v3, %v4906_v52  ;;  %4593 = vmatpush1.bf16.msra.mxu1 %v4263_v58  ;;  %4513 = vmatpush1.bf16.msra.mxu0 %v4267_v33  ;;  %v14445_v46 = vrot.slane %v14402_v41, %v6789_v18  ;;  %v4276_v3 = vrot.slane %v14447_v30, 2  ;;  %v14451_v33 = vld [vmem:[#allocation27_spill] sm:$0xff] }
 0x4b7   :  { %14434 = vst [vmem:[#allocation121_spill] sm:$0xff] %v11753_v45  ;;  %14437 = vst [vmem:[#allocation122_spill] sm:$0xff] %v11765_v15  ;;  %v4270_v45 = vrot.slane %v14444_v9, 2  ;;  %4594 = vmatprep.subr.bf16.mxu1 %v4273_v62  ;;  %v14449_v58 = vrot.slane %v14448_v43, %v6786_v17  ;;  %v14452_v9 = vrot.slane %v14451_v33, %v6792_v19  ;;  %v4274_v42 = vrot.slane %v14454_v59, 2 }
 0x4b8   :  { %v11776_v38 = vmul.f32 %v14439_v47, %v4906_v52  ;;  %14443 = vst [vmem:[#allocation38_spill] sm:$0xff] %v11781_v22  ;;  %v11790_v47 = vmul.f32 %v14445_v46, %v4802_v60  ;;  %v4803_v12 = vsel %vm134_vm2, %v4797_v37, %v11595_v10  ;;  %v4804_v46 = vsel %vm134_vm2, %v11453_v5, %v4797_v37  ;;  %v14458_v5 = vld [vmem:[#allocation61_spill] sm:$0xff] }
 0x4b9   :  { %v11796_v6 = vmul.f32 %v14449_v58, %v4982_v0  ;;  %v11801_v25 = vmul.f32 %v14452_v9, %v4982_v0  ;;  %v4277_v62 = vsel %vm1002_vm9, %v4268_v55, %v4276_v3  ;;  %v4271_v60 = vsel %vm1002_vm9, %v4262_v32, %v4270_v45  ;;  %v14455_v9 = vld [vmem:[#allocation3_spill] sm:$0xff] }
 0x4ba   :  { %14440 = vst [vmem:[#allocation7_spill] sm:$0xff] %v11776_v38  ;;  %14446 = vst [vmem:[#allocation5_spill] sm:$0xff] %v11790_v47  ;;  %v14453_v47 = vld [vmem:[#allocation76_spill] sm:$0xff]  ;;  %v14456_v27 = vrot.slane %v14455_v9, %v6783_v16  ;;  %4514 = vmatprep.subr.bf16.mxu0 %v4277_v62  ;;  %4595 = vmatpush1.bf16.msra.mxu1 %v4271_v60  ;;  %v14459_v55 = vrot.slane %v14458_v5, %v6783_v16  ;;  %v11853_v62 = vpop.permute.xlu1 %4902 }
 0x4bb   :  { %14450 = vst [vmem:[#allocation64_spill] sm:$0xff] %v11796_v6  ;;  %v4280_v58 = vrot.slane %v14453_v47, 2  ;;  %v14461_v59 = vrot.slane %v14387_v36, %v6786_v17  ;;  %v14463_v60 = vrot.slane %v14387_v36, %v6789_v18  ;;  %v4278_v36 = vrot.slane %v11508_v2, 2  ;;  %v14552_v6 = vld [vmem:[#allocation103_spill] sm:$0xff] }
 0x4bc   :  { %v11817_v31 = vmul.f32 %v14456_v27, %v4906_v52  ;;  %v11824_v32 = vmul.f32 %v14459_v55, %v4982_v0  ;;  %v4275_v27 = vsel %vm1002_vm9, %v4266_v26, %v4274_v42  ;;  %v11833_v52 = vpop.permute.xlu0 %4978  ;;  %v14465_v55 = vld [vmem:[#allocation67_spill] sm:$0xff]  ;;  %v14467_v26 = vrot.slane %v14400_v28, %v6792_v19 }
 0x4bd   :  { %v11829_v37 = vmul.f32 %v14461_v59, %v4804_v46  ;;  %v4281_v51 = vsel %vm1002_vm9, %v4272_v44, %v4280_v58  ;;  %v11840_v0 = vmul.f32 %v14463_v60, %v4803_v12  ;;  %4515 = vmatpush1.bf16.msra.mxu0 %v4275_v27  ;;  %v4284_v59 = vrot.slane %v14465_v55, 2 }
 0x4be   :  { %14457 = vst [vmem:[#allocation24_spill] sm:$0xff] %v11817_v31  ;;  %14460 = vst [vmem:[#allocation27_spill] sm:$0xff] %v11824_v32  ;;  %4596 = vmatprep.subr.bf16.mxu1 %v4281_v51  ;;  %v14466_v44 = vrot.slane %v14400_v28, %v6789_v18  ;;  %v11851_v23 = vmul.f32 %v14467_v26, %v4803_v12  ;;  %v4288_v60 = vrot.slane %v11257_v4, 2  ;;  %v4282_v26 = vrot.slane %v11119_v35, 2  ;;  %v14482_v31 = vld [vmem:[#allocation72_spill] sm:$0xff] }
 0x4bf   :  { %14462 = vst [vmem:[#allocation76_spill] sm:$0xff] %v11829_v37  ;;  %14464 = vst [vmem:[#allocation69_spill] sm:$0xff] %v11840_v0  ;;  %v14468_v51 = vrot.slane %v14402_v41, %v6783_v16  ;;  %v14470_v55 = vrot.slane %v14402_v41, %v6786_v17  ;;  %v4285_v28 = vsel %vm1002_vm9, %v4276_v3, %v4284_v59  ;;  %v14479_v41 = vld [vmem:[#allocation68_spill] sm:$0xff] }
 0x4c0   :  { %v11846_v10 = vmul.f32 %v14466_v44, %v4804_v46  ;;  %v4727_v4 = vsel %vm55_vm5, %v4721_v53, %v11526_v29  ;;  %v4728_v2 = vsel %vm55_vm5, %v11378_v56, %v4721_v53  ;;  %4516 = vmatprep.subr.bf16.mxu0 %v4285_v28  ;;  %v4983_v35 = vsel %vm321_vm8, %v11833_v52, %v11728_v34  ;;  %v11884_v29 = vpop.permute.xlu0 %4936 }
 0x4c1   :  { %v11860_v27 = vmul.f32 %v14468_v51, %v4804_v46  ;;  %v11865_v44 = vmul.f32 %v14470_v55, %v4803_v12  ;;  %v4279_v46 = vsel %vm1002_vm9, %v4270_v45, %v4278_v36  ;;  %v4289_v12 = vsel %vm1002_vm9, %v4280_v58, %v4288_v60  ;;  %v14472_v45 = vld [vmem:[#allocation88_spill] sm:$0xff] }
 0x4c2   :  { %4597 = vmatpush1.bf16.msra.mxu1 %v4279_v46  ;;  %v4283_v3 = vsel %vm1002_vm9, %v4274_v42, %v4282_v26  ;;  %v4071_v56 = vunpack.c.l.bf16 %v14361_v57  ;;  %v4075_v53 = vunpack.c.h.bf16 %v14361_v57  ;;  %v4286_v51 = vrot.slane %v14472_v45, 2  ;;  %v14473_v55 = vld [vmem:[#allocation52_spill] sm:$0xff]  ;;  %v4935_v57 = vpop.permute.xlu1 %4934 }
 0x4c3   :  { %14469 = vst [vmem:[#allocation3_spill] sm:$0xff] %v11860_v27  ;;  %14471 = vst [vmem:[#allocation61_spill] sm:$0xff] %v11865_v44  ;;  %4598 = vmatprep.subr.bf16.mxu1 %v4289_v12  ;;  %4517 = vmatpush1.bf16.msra.mxu0 %v4283_v3  ;;  %v4073_v28 = vunpack.c.l.bf16 %v14473_v55  ;;  %v14474_v34 = vrot.slane %v14380_v8, %v6786_v17  ;;  %v14476_v42 = vrot.slane %v14380_v8, %v6789_v18  ;;  %v14478_v3 = vld [vmem:[#allocation66_spill] sm:$0xff]  ;;  %v14481_v44 = vld [vmem:[#allocation21_spill] sm:$0xff] }
 0x4c4   :  { %v4077_v12 = vunpack.c.h.bf16 %v14473_v55  ;;  %v4182_v22 = vpack.c.bf16 %v14479_v41, %v14478_v3  ;;  %v14480_v27 = vld [vmem:[#allocation10_spill] sm:$0xff]  ;;  %v4131_v32 = vsub.f32 %v14481_v44, %v4075_v53  ;;  %v4287_v0 = vsel %vm1002_vm9, %v4278_v36, %v4286_v51  ;;  %v14485_v44 = vld [vmem:[#allocation53_spill] sm:$0xff] }
 0x4c5   :  { %v11893_v46 = vmul.f32 %v14474_v34, %v4728_v2  ;;  %v11898_v58 = vmul.f32 %v14476_v42, %v4727_v4  ;;  %v4127_v45 = vsub.f32 %v14480_v27, %v4071_v56  ;;  %v4129_v34 = vsub.f32 %v14482_v31, %v4073_v28 }
 0x4c6   :  { %v14483_v15 = vrot.slane %v14394_v24, %v6789_v18  ;;  %v14484_v55 = vrot.slane %v14448_v43, %v6783_v16  ;;  %v4907_v27 = vsel %vm241_vm1, %v11853_v62, %v11674_v50  ;;  %4599 = vmatpush1.bf16.msra.mxu1 %v4287_v0  ;;  %v4133_v36 = vsub.f32 %v14485_v44, %v4077_v12 }
 0x4c7   :  { %14475 = vst [vmem:[#allocation67_spill] sm:$0xff] %v11893_v46  ;;  %14477 = vst [vmem:[#allocation88_spill] sm:$0xff] %v11898_v58  ;;  %v14486_v31 = vrot.slane %v14394_v24, %v6792_v19  ;;  %v14489_v43 = vrot.slane %v14397_v49, %v6786_v17  ;;  %v4183_v28 = vpack.c.bf16 %v4131_v32, %v4127_v45 }
 0x4c8   :  { %v11910_v8 = vmul.f32 %v14483_v15, %v4728_v2  ;;  %v11915_v42 = vmul.f32 %v14484_v55, %v4983_v35  ;;  %v14487_v15 = vrot.slane %v14397_v49, %v6783_v16  ;;  %v14491_v24 = vrot.slane %v14458_v5, %v6792_v19  ;;  %v11959_v5 = vpop.permute.xlu0 %4940 }
 0x4c9   :  { %v11925_v41 = vmul.f32 %v14486_v31, %v4727_v4  ;;  %v11935_v53 = vmul.f32 %v14489_v43, %v4727_v4  ;;  %v4185_v3 = vpack.c.bf16 %v4133_v36, %v4129_v34  ;;  %v14494_v49 = vrot.slane %v14438_v20, %v6783_v16  ;;  %v14504_v34 = vld [vmem:[#allocation83_spill] sm:$0xff] }
 0x4ca   :  { %v11930_v56 = vmul.f32 %v14487_v15, %v4728_v2  ;;  %v11942_v12 = vmul.f32 %v14491_v24, %v4983_v35  ;;  %v14493_v2 = vrot.slane %v14451_v33, %v6789_v18  ;;  %v14496_v32 = vrot.slane %v14455_v9, %v6792_v19  ;;  %v4901_v24 = vpop.permute.xlu1 %4900 }
 0x4cb   :  { %14490 = vst [vmem:[#allocation66_spill] sm:$0xff] %v11935_v53  ;;  %v11952_v4 = vmul.f32 %v14494_v49, %v4907_v27  ;;  %v4344_v44 = vrot.slane %v4183_v28, 4  ;;  %v14498_v33 = vrot.slane %v14441_v21, %v6789_v18  ;;  %v4346_v36 = vrot.slane %v4185_v3, 4  ;;  %v14502_v3 = vld [vmem:[#allocation79_spill] sm:$0xff] }
 0x4cc   :  { %14488 = vst [vmem:[#allocation52_spill] sm:$0xff] %v11930_v56  ;;  %14492 = vst [vmem:[#allocation68_spill] sm:$0xff] %v11942_v12  ;;  %v11947_v55 = vmul.f32 %v14493_v2, %v4983_v35  ;;  %v11957_v45 = vmul.f32 %v14496_v32, %v4907_v27  ;;  %v4343_v31 = vrot.slane %v4182_v22, 4  ;;  %v4944_v15 = vsel %vm281_vm3, %v4935_v57, %v11884_v29  ;;  %v14500_v2 = vld [vmem:[#allocation33_spill] sm:$0xff]  ;;  %v14505_v12 = vld [vmem:[#allocation87_spill] sm:$0xff] }
 0x4cd   :  { %14495 = vst [vmem:[#allocation10_spill] sm:$0xff] %v11952_v4  ;;  %v11965_v35 = vmul.f32 %v14498_v33, %v4907_v27  ;;  %v4441_v43 = vsel %vm997_vm6, %v4284_v59, %v4344_v44  ;;  %v4079_v28 = vunpack.c.l.bf16 %v14500_v2  ;;  %v4083_v49 = vunpack.c.h.bf16 %v14500_v2  ;;  %v14501_v27 = vld [vmem:[#allocation78_spill] sm:$0xff]  ;;  %v14503_v59 = vld [vmem:[#allocation19_spill] sm:$0xff] }
 0x4ce   :  { %14497 = vst [vmem:[#allocation21_spill] sm:$0xff] %v11957_v45  ;;  %4518 = vmatprep.subr.bf16.mxu0 %v4441_v43  ;;  %v4449_v32 = vsel %vm997_vm6, %v4288_v60, %v4346_v36  ;;  %v4437_v0 = vsel %vm997_vm6, %v4282_v26, %v4343_v31  ;;  %v4945_v22 = vsel %vm281_vm3, %v11959_v5, %v4935_v57  ;;  %v4081_v2 = vunpack.c.l.bf16 %v14505_v12  ;;  %v14506_v60 = vld [vmem:[#allocation8_spill] sm:$0xff] }
 0x4cf   :  { %14499 = vst [vmem:[#allocation72_spill] sm:$0xff] %v11965_v35  ;;  %v4184_v33 = vpack.c.bf16 %v14502_v3, %v14501_v27  ;;  %4600 = vmatprep.subr.bf16.mxu1 %v4449_v32  ;;  %4519 = vmatpush1.bf16.msra.mxu0 %v4437_v0  ;;  %v4135_v50 = vsub.f32 %v14503_v59, %v4079_v28  ;;  %v4085_v43 = vunpack.c.h.bf16 %v14505_v12  ;;  %v14509_v0 = vld [vmem:[#allocation63_spill] sm:$0xff]  ;;  %v14510_v32 = vld [vmem:[#allocation62_spill] sm:$0xff]  ;;  %v14512_v59 = vld [vmem:[#allocation85_spill] sm:$0xff] }
 0x4d0   :  { %v4139_v56 = vsub.f32 %v14504_v34, %v4083_v49  ;;  %v14507_v26 = vrot.slane %v14506_v60, %v6783_v16  ;;  %v4904_v57 = vsel %vm241_vm1, %v4901_v24, %v11853_v62  ;;  %v4186_v28 = vpack.c.bf16 %v14510_v32, %v14509_v0  ;;  %v14511_v12 = vld [vmem:[#allocation31_spill] sm:$0xff]  ;;  %v14535_v32 = vld [vmem:[#allocation84_spill] sm:$0xff] }
 0x4d1   :  { %v11992_v27 = vrot.slane %v4184_v33, 4  ;;  %v4905_v34 = vsel %vm241_vm1, %v11652_v39, %v4901_v24  ;;  %v4137_v3 = vsub.f32 %v14511_v12, %v4081_v2  ;;  %v4141_v45 = vsub.f32 %v14512_v59, %v4085_v43  ;;  %v14515_v24 = vld [vmem:[#allocation17_spill] sm:$0xff]  ;;  %v14522_v12 = vld [vmem:[#allocation23_spill] sm:$0xff] }
 0x4d2   :  { %v11987_v53 = vmul.f32 %v14507_v26, %v4944_v15  ;;  %v4187_v49 = vpack.c.bf16 %v4139_v56, %v4135_v50  ;;  %v14513_v58 = vrot.slane %v14506_v60, %v6792_v19  ;;  %v12009_v0 = vrot.slane %v4186_v28, 4 }
 0x4d3   :  { %v4445_v33 = vsel %vm997_vm6, %v4286_v51, %v11992_v27  ;;  %v4189_v50 = vpack.c.bf16 %v4141_v45, %v4137_v3  ;;  %v14516_v2 = vrot.slane %v14515_v24, %v6786_v17  ;;  %v14520_v51 = vrot.slane %v14438_v20, %v6792_v19 }
 0x4d4   :  { %14508 = vst [vmem:[#allocation53_spill] sm:$0xff] %v11987_v53  ;;  %v12005_v62 = vmul.f32 %v14513_v58, %v4945_v22  ;;  %v12013_v56 = vrot.slane %v4187_v49, 4  ;;  %4601 = vmatpush1.bf16.msra.mxu1 %v4445_v33  ;;  %v14518_v58 = vrot.slane %v14438_v20, %v6789_v18  ;;  %v4348_v49 = vsel %vm997_vm6, %v4343_v31, %v12009_v0  ;;  %v14539_v53 = vld [vmem:[#allocation95_spill] sm:$0xff] }
 0x4d5   :  { %v12018_v43 = vmul.f32 %v14516_v2, %v4944_v15  ;;  %v12028_v28 = vmul.f32 %v14520_v51, %v4904_v57  ;;  %v14523_v45 = vrot.slane %v14522_v12, %v6792_v19  ;;  %v12040_v2 = vrot.slane %v4189_v50, 4 }
 0x4d6   :  { %14514 = vst [vmem:[#allocation33_spill] sm:$0xff] %v12005_v62  ;;  %v12023_v60 = vmul.f32 %v14518_v58, %v4905_v34  ;;  %v4350_v33 = vsel %vm997_vm6, %v4344_v44, %v12013_v56  ;;  %v14524_v20 = vrot.slane %v14515_v24, %v6783_v16  ;;  %v14525_v31 = vrot.slane %v14522_v12, %v6789_v18  ;;  %v4939_v44 = vpop.permute.xlu0 %4938 }
 0x4d7   :  { %14517 = vst [vmem:[#allocation78_spill] sm:$0xff] %v12018_v43  ;;  %14521 = vst [vmem:[#allocation19_spill] sm:$0xff] %v12028_v28  ;;  %v12035_v3 = vmul.f32 %v14523_v45, %v4944_v15  ;;  %v14526_v45 = vrot.slane %v14441_v21, %v6783_v16  ;;  %4520 = vmatprep.subr.bf16.mxu0 %v4350_v33  ;;  %v14528_v50 = vrot.slane %v14455_v9, %v6786_v17  ;;  %v12098_v15 = vld [vmem:[%s13186_s1 + $0x60] ss:$8 sm:$0xf] }
 0x4d8   :  { %14519 = vst [vmem:[#allocation79_spill] sm:$0xff] %v12023_v60  ;;  %v12045_v58 = vmul.f32 %v14524_v20, %v4945_v22  ;;  %v12050_v51 = vmul.f32 %v14525_v31, %v4945_v22  ;;  %v14530_v20 = vrot.slane %v14455_v9, %v6789_v18  ;;  %v14532_v22 = vrot.slane %v14441_v21, %v6786_v17  ;;  %v6576_v9 = vld [vmem:[%s13186_s1 + $0x6] ss:$8 sm:$0xf] }
 0x4d9   :  { %v12056_v39 = vmul.f32 %v14526_v45, %v4905_v34  ;;  %v12061_v24 = vmul.f32 %v14528_v50, %v4905_v34  ;;  %v4354_v45 = vsel %vm997_vm6, %v4346_v36, %v12040_v2  ;;  %4521 = vmatpush1.bf16.msra.mxu0 %v4348_v49  ;;  %v4963_v34 = vrot.slane %v6576_v9, %v6792_v19  ;;  %v6577_v21 = vld [vmem:[%s13186_s1 + $0x27] ss:$8 sm:$0xf] }
 0x4da   :  { %v12066_v12 = vmul.f32 %v14530_v20, %v4904_v57  ;;  %v12071_v31 = vmul.f32 %v14532_v22, %v4904_v57  ;;  %4602 = vmatprep.subr.bf16.mxu1 %v4354_v45  ;;  %v5191_v57 = vrot.slane %v6577_v21, %v6789_v18  ;;  %v4959_v36 = vrot.slane %v6576_v9, %v6789_v18  ;;  %v4977_v22 = vpop.permute.xlu1 %4976  ;;  %v14534_v33 = vld [vmem:[#allocation90_spill] sm:$0xff] }
 0x4db   :  { %14527 = vst [vmem:[#allocation83_spill] sm:$0xff] %v12056_v39  ;;  %14529 = vst [vmem:[#allocation87_spill] sm:$0xff] %v12061_v24  ;;  %v12089_v49 = vsel %vm281_vm3, %v4939_v44, %v11959_v5  ;;  %v4087_v50 = vunpack.c.l.bf16 %v11209_v14  ;;  %v4091_v20 = vunpack.c.h.bf16 %v11209_v14  ;;  %v5187_v45 = vrot.slane %v6577_v21, %v6786_v17  ;;  %v14551_v43 = vld [vmem:[#allocation102_spill] sm:$0xff] }
 0x4dc   :  { %14531 = vst [vmem:[#allocation8_spill] sm:$0xff] %v12066_v12  ;;  %14533 = vst [vmem:[#allocation63_spill] sm:$0xff] %v12071_v31  ;;  %v5417_v9 = vrot.slane %v12098_v15, %v6783_v16  ;;  %v4943_v5 = vsel %vm281_vm3, %v11884_v29, %v4939_v44  ;;  %v12111_v35 = vmul.f32 %v4963_v34, %v12089_v49  ;;  %v14538_v12 = vld [vmem:[#allocation56_spill] sm:$0xff]  ;;  %v4089_v29 = vunpack.c.l.bf16 %v11261_v54  ;;  %v14541_v31 = vld [vmem:[#allocation98_spill] sm:$0xff] }
 0x4dd   :  { %v4143_v21 = vsub.f32 %v14534_v33, %v4087_v50  ;;  %v4147_v26 = vsub.f32 %v14535_v32, %v4091_v20  ;;  %v12114_v39 = vmul.f32 %v5191_v57, %v12089_v49  ;;  %v4188_v62 = vpack.c.bf16 %v14539_v53, %v14538_v12  ;;  %v14542_v33 = vld [vmem:[#allocation99_spill] sm:$0xff]  ;;  %v14543_v57 = vld [vmem:[#allocation50_spill] sm:$0xff] }
 0x4de   :  { %14536 = vst [vmem:[#allocation62_spill] sm:$0xff] %v12111_v35  ;;  %v12119_v44 = vmul.f32 %v4959_v36, %v4943_v5  ;;  %v4093_v14 = vunpack.c.h.bf16 %v11261_v54  ;;  %v4190_v50 = vpack.c.bf16 %v14542_v33, %v14541_v31  ;;  %v12124_v32 = vmul.f32 %v5187_v45, %v4943_v5  ;;  %v6579_v53 = vld [vmem:[%s13186_s1 + $0x7] ss:$8 sm:$0xf] }
 0x4df   :  { %14537 = vst [vmem:[#allocation31_spill] sm:$0xff] %v12114_v39  ;;  %v4191_v59 = vpack.c.bf16 %v4147_v26, %v4143_v21  ;;  %v12126_v34 = vmul.f32 %v5417_v9, %v4943_v5  ;;  %v4351_v20 = vrot.slane %v4188_v62, 4  ;;  %v4145_v24 = vsub.f32 %v14543_v57, %v4089_v29  ;;  %v14544_v26 = vld [vmem:[#allocation54_spill] sm:$0xff]  ;;  %v14547_v62 = vld [vmem:[#allocation101_spill] sm:$0xff]  ;;  %v14586_v39 = vld [vmem:[#allocation15_spill] sm:$0xff] }
 0x4e0   :  { %14540 = vst [vmem:[#allocation85_spill] sm:$0xff] %v12119_v44  ;;  %v4997_v12 = vrot.slane %v6579_v53, %v6789_v18  ;;  %v4149_v21 = vsub.f32 %v14544_v26, %v4093_v14  ;;  %v12134_v54 = vrot.slane %v4190_v50, 4  ;;  %v5001_v31 = vrot.slane %v6579_v53, %v6792_v19  ;;  %v12140_v45 = vld [vmem:[%s13186_s1 + $0x40] ss:$8 sm:$0xf]  ;;  %v5013_v50 = vpop.permute.xlu0 %5012 }
 0x4e1   :  { %v4357_v36 = vrot.slane %v4191_v59, 4  ;;  %v4352_v9 = vsel %vm997_vm6, %v11992_v27, %v4351_v20  ;;  %v4095_v5 = vunpack.c.l.bf16 %v11273_v63  ;;  %v12157_v57 = vld [vmem:[%s13186_s1 + $0x62] ss:$8 sm:$0xf]  ;;  %v12159_v27 = vpop.permute.xlu1 %5010  ;;  %v4097_v28 = vunpack.c.l.bf16 %v11306_v11 }
 0x4e2   :  { %4603 = vmatpush1.bf16.msra.mxu1 %v4352_v9  ;;  %v4193_v29 = vpack.c.bf16 %v4149_v21, %v4145_v24  ;;  %v4356_v33 = vsel %vm997_vm6, %v12009_v0, %v12134_v54  ;;  %v6581_v53 = vld [vmem:[%s13186_s1 + $0x61] ss:$8 sm:$0xf]  ;;  %v4980_v24 = vsel %vm321_vm8, %v4977_v22, %v11833_v52  ;;  %v4099_v0 = vunpack.c.h.bf16 %v11273_v63 }
 0x4e3   :  { %v4358_v14 = vsel %vm997_vm6, %v12013_v56, %v4357_v36  ;;  %v5443_v56 = vrot.slane %v6581_v53, %v6783_v16  ;;  %v14545_v26 = vld [vmem:[#allocation49_spill] sm:$0xff]  ;;  %v14546_v59 = vld [vmem:[#allocation100_spill] sm:$0xff]  ;;  %v4101_v60 = vunpack.c.h.bf16 %v11306_v11  ;;  %v4981_v46 = vsel %vm321_vm8, %v11704_v40, %v4977_v22  ;;  %v14549_v40 = vld [vmem:[#allocation42_spill] sm:$0xff] }
 0x4e4   :  { %4522 = vmatprep.subr.bf16.mxu0 %v4358_v14  ;;  %v4151_v21 = vsub.f32 %v14545_v26, %v4095_v5  ;;  %v4361_v9 = vrot.slane %v4193_v29, 4  ;;  %v4192_v37 = vpack.c.bf16 %v14547_v62, %v14546_v59  ;;  %v5481_v52 = vrot.slane %v12157_v57, %v6792_v19  ;;  %v14548_v5 = vld [vmem:[#allocation96_spill] sm:$0xff]  ;;  %v14550_v29 = vld [vmem:[#allocation97_spill] sm:$0xff] }
 0x4e5   :  { %4523 = vmatpush1.bf16.msra.mxu0 %v4356_v33  ;;  %v5020_v63 = vsel %vm361_vm10, %v12159_v27, %v5013_v50  ;;  %v4155_v14 = vsub.f32 %v14548_v5, %v4099_v0  ;;  %v12188_v11 = vld [vmem:[%s13186_s1 + $0x41] ss:$8 sm:$0xf]  ;;  %v4153_v22 = vsub.f32 %v14549_v40, %v4097_v28  ;;  %v4157_v33 = vsub.f32 %v14550_v29, %v4101_v60 }
 0x4e6   :  { %v4362_v62 = vsel %vm997_vm6, %v12040_v2, %v4361_v9  ;;  %v12190_v59 = vrot.slane %v4192_v37, 4  ;;  %v5447_v26 = vrot.slane %v6581_v53, %v6786_v17  ;;  %v12195_v35 = vmul.f32 %v5001_v31, %v4980_v24  ;;  %v5015_v53 = vpop.permute.xlu0 %5014 }
 0x4e7   :  { %4604 = vmatprep.subr.bf16.mxu1 %v4362_v62  ;;  %v4195_v0 = vpack.c.bf16 %v4155_v14, %v4151_v21  ;;  %v4197_v5 = vpack.c.bf16 %v4157_v33, %v4153_v22  ;;  %v6591_v44 = vmov 1983009808   ;;  %v4194_v37 = vpack.c.bf16 %v14552_v6, %v14551_v43  ;;  %v12229_v62 = vld [vmem:[%s13192_s6] sm:$0x3f] }
 0x4e8   :  { %v4360_v2 = vsel %vm997_vm6, %v4351_v20, %v12190_v59  ;;  %v4460_v38 = vunpack.c.l.s4 %v6591_v44  ;;  %v12201_v4 = vmul.f32 %v4997_v12, %v4981_v46  ;;  %v5235_v60 = vrot.slane %v12188_v11, %v6783_v16  ;;  %v12212_v20 = vld [vmem:[%s13186_s1 + $0x20] ss:$8 sm:$0xf] }
 0x4e9   :  { %v12205_v28 = vmul.f32 %v5481_v52, %v5020_v63  ;;  %v12207_v31 = vrot.slane %v4195_v0, 4  ;;  %4605 = vmatpush1.bf16.msra.mxu1 %v4360_v2  ;;  %v5460_v21 = vmul.f32 %v5443_v56, %v4981_v46  ;;  %v12214_v44 = vrot.slane %v4197_v5, 4 }
 0x4ea   :  { %v4461_v6 = vunpack.c.0.s8 %v4460_v38  ;;  %v12216_v43 = vrot.slane %v4194_v37, 4  ;;  %v5461_v12 = vmul.f32 %v5447_v26, %v4980_v24  ;;  %v14553_v14 = vrot.slane %v11801_v25, 4  ;;  %v14554_v25 = vld [vmem:[#allocation12_spill] sm:$0xff] }
 0x4eb   :  { %v4366_v56 = vsel %vm997_vm6, %v4357_v36, %v12207_v31  ;;  %v5469_v38 = vrot.slane %v12157_v57, %v6783_v16  ;;  %v4370_v40 = vsel %vm997_vm6, %v4361_v9, %v12214_v44  ;;  %v12243_v36 = vsel %vm361_vm10, %v5013_v50, %v5015_v53 }
 0x4ec   :  { %v12222_v52 = vsel %vm997_vm6, %v12035_v3, %v14553_v14  ;;  %4533 = vmatprep.subr.bf16.mxu0 %v4366_v56  ;;  %v12236_v22 = vsub.s32 %v4461_v6, %v14554_v25  ;;  %v4364_v3 = vsel %vm997_vm6, %v12134_v54, %v12216_v43  ;;  %v14556_v29 = vrot.slane %v12098_v15, %v6786_v17 }
 0x4ed   :  { %v5031_v26 = vrot.slane %v12212_v20, %v6786_v17  ;;  %v12251_v9 = vmul.f32 %v5235_v60, %v5020_v63  ;;  %v12255_v0 = vpack.c.bf16 %v12205_v28, %v12222_v52  ;;  %4615 = vmatprep.subr.bf16.mxu1 %v4370_v40  ;;  %v5658_v2 = vrot.slane %v5460_v21, 4 }
 0x4ee   :  { %14555 = vst [vmem:[#allocation17_spill] sm:$0xff] %v12236_v22  ;;  %v5435_v33 = vmul.f32 %v14556_v29, %v12089_v49  ;;  %v4465_v50 = vrot.slane %v12229_v62, %v12236_v22  ;;  %v5239_v15 = vrot.slane %v12188_v11, %v6786_v17  ;;  %v14558_v5 = vrot.slane %v12140_v45, %v6786_v17  ;;  %v14563_v49 = vld [vmem:[#allocation37_spill] sm:$0xff] }
 0x4ef   :  { %14557 = vst [vmem:[#allocation23_spill] sm:$0xff] %v12251_v9  ;;  %v14560_v60 = vrot.slane %v12140_v45, %v6789_v18  ;;  %v12274_v21 = vmul.f32 %v5469_v38, %v12243_v36  ;;  %v5659_v40 = vrot.slane %v5461_v12, 4  ;;  %v12278_v29 = vmul.f32 %v5031_v26, %v5020_v63  ;;  %v5017_v63 = vpop.permute.xlu1 %5016  ;;  %v14579_v9 = vld [vmem:[#allocation30_spill] sm:$0xff] }
 0x4f0   :  { %v12266_v37 = vmul.f32 %v14558_v5, %v4981_v46  ;;  %v4473_v25 = vcombine.high %v4465_v50, %v4465_v50  ;;  %v12287_v38 = vmul.f32 %v5239_v15, %v12243_v36  ;;  %v5682_v12 = vsel %vm997_vm6, %v12126_v34, %v5658_v2  ;;  %v14568_v15 = vld [vmem:[#allocation81_spill] sm:$0xff] }
 0x4f1   :  { %v12271_v6 = vmul.f32 %v14560_v60, %v4980_v24  ;;  %v4103_v26 = vunpack.c.l.bf16 %v11351_v7  ;;  %v12293_v5 = vpack.c.bf16 %v12274_v21, %v5682_v12  ;;  %v4107_v54 = vunpack.c.h.bf16 %v11351_v7  ;;  %v14567_v60 = vld [vmem:[#allocation39_spill] sm:$0xff] }
 0x4f2   :  { %14559 = vst [vmem:[#allocation90_spill] sm:$0xff] %v12266_v37  ;;  %4524 = vmatprep.mubr.bf16.mxu0 %v4473_v25  ;;  %4606 = vmatprep.mubr.bf16.mxu1 %v4473_v25  ;;  %v5243_v34 = vrot.slane %v12188_v11, %v6789_v18  ;;  %v5247_v2 = vrot.slane %v12188_v11, %v6792_v19  ;;  %v14564_v14 = vmov 0  }
 0x4f3   :  { %14561 = vst [vmem:[#allocation84_spill] sm:$0xff] %v12271_v6  ;;  %4525 = vmatmul.mubr.bf16.vlgmr.msra.gmra.mrb[8].mxu0 %v4465_v50  ;;  %14562 = vst [vmem:[#allocation56_spill] sm:$0xff] %v12293_v5  ;;  %4607 = vmatmul.mubr.bf16.vlgmr.msra.gmra.mrb[8].mxu1 %v4465_v50  ;;  %v4159_v56 = vsub.f32 %v14563_v49, %v4103_v26  ;;  %v5473_v45 = vrot.slane %v12157_v57, %v6786_v17  ;;  %v14565_v50 = vld [vmem:[#allocation47_spill] sm:$0xff]  ;;  %v4105_v17 = vunpack.c.l.bf16 %v11402_v13  ;;  %v14578_v6 = vld [vmem:[#allocation48_spill] sm:$0xff] }
 0x4f4   :  { %4534 = vmatpush1.bf16.msra.mxu0 %v4364_v3  ;;  %4565 = vmatprep.mubr.bf16.mxu0 %v14564_v14  ;;  %v12311_v7 = vsel %vm361_vm10, %v5015_v53, %v5017_v63  ;;  %v4163_v25 = vsub.f32 %v14565_v50, %v4107_v54  ;;  %v14566_v3 = vld [vmem:[#allocation32_spill] sm:$0xff]  ;;  %v5477_v11 = vrot.slane %v12157_v57, %v6789_v18  ;;  %v4109_v53 = vunpack.c.h.bf16 %v11402_v13 }
 0x4f5   :  { %v4196_v24 = vpack.c.bf16 %v14567_v60, %v14566_v3  ;;  %4647 = vmatprep.mubr.bf16.mxu1 %v14564_v14  ;;  %v12322_v49 = vsel %vm361_vm10, %v5017_v63, %v12159_v27  ;;  %v5762_v26 = vunpack.c.l.bf16 %v12293_v5  ;;  %v12328_v54 = vsel %vm997_vm6, %v5435_v33, %v5659_v40  ;;  %v14569_v27 = vld [vmem:[#allocation11_spill] sm:$0xff]  ;;  %v14570_v40 = vld [vmem:[#allocation65_spill] sm:$0xff] }
 0x4f6   :  { %v4199_v60 = vpack.c.bf16 %v4163_v25, %v4159_v56  ;;  %v5766_v3 = vunpack.c.h.bf16 %v12293_v5  ;;  %v12332_v57 = vmul.f32 %v5243_v34, %v12311_v7  ;;  %v4161_v61 = vsub.f32 %v14568_v15, %v4105_v17 }
 0x4f7   :  { %v4367_v50 = vrot.slane %v4196_v24, 4  ;;  %v4165_v63 = vsub.f32 %v14569_v27, %v4109_v53  ;;  %v12337_v46 = vmul.f32 %v5247_v2, %v12322_v49  ;;  %v12340_v13 = vmul.f32 %v5473_v45, %v12311_v7  ;;  %v14571_v24 = vld [vmem:[#allocation105_spill] sm:$0xff]  ;;  %v14573_v45 = vld [vmem:[#allocation82_spill] sm:$0xff] }
 0x4f8   :  { %v4373_v14 = vrot.slane %v4199_v60, 4  ;;  %v4198_v25 = vpack.c.bf16 %v14571_v24, %v14570_v40  ;;  %v4111_v34 = vunpack.c.l.bf16 %v14447_v30  ;;  %v4115_v15 = vunpack.c.h.bf16 %v14447_v30  ;;  %v14574_v53 = vld [vmem:[#allocation14_spill] sm:$0xff] }
 0x4f9   :  { %v4368_v33 = vsel %vm997_vm6, %v12190_v59, %v4367_v50  ;;  %v4201_v56 = vpack.c.bf16 %v4165_v63, %v4161_v61  ;;  %v12348_v17 = vsub.f32 %v5682_v12, %v5762_v26  ;;  %v4200_v60 = vpack.c.bf16 %v14574_v53, %v14573_v45  ;;  %v14575_v63 = vld [vmem:[#allocation25_spill] sm:$0xff]  ;;  %v14576_v40 = vld [vmem:[#allocation22_spill] sm:$0xff]  ;;  %v14577_v12 = vld [vmem:[#allocation51_spill] sm:$0xff] }
 0x4fa   :  { %4616 = vmatpush1.bf16.msra.mxu1 %v4368_v33  ;;  %v4374_v2 = vsel %vm997_vm6, %v12207_v31, %v4373_v14  ;;  %v4113_v27 = vunpack.c.l.bf16 %v14453_v47  ;;  %v4371_v61 = vrot.slane %v4198_v25, 4  ;;  %v4167_v33 = vsub.f32 %v14575_v63, %v4111_v34  ;;  %v14580_v25 = vld [vmem:[#allocation91_spill] sm:$0xff]  ;;  %v14581_v53 = vld [vmem:[#allocation93_spill] sm:$0xff]  ;;  %v14583_v63 = vld [vmem:[#allocation106_spill] sm:$0xff] }
 0x4fb   :  { %14572 = vst [vmem:[#allocation95_spill] sm:$0xff] %v12348_v17  ;;  %4535 = vmatprep.subr.bf16.mxu0 %v4374_v2  ;;  %v4377_v59 = vrot.slane %v4201_v56, 4  ;;  %v4171_v24 = vsub.f32 %v14576_v40, %v4115_v15  ;;  %v4375_v5 = vrot.slane %v4200_v60, 4  ;;  %v4117_v30 = vunpack.c.h.bf16 %v14453_v47  ;;  %v14582_v47 = vld [vmem:[#allocation35_spill] sm:$0xff] }
 0x4fc   :  { %v4169_v26 = vsub.f32 %v14577_v12, %v4113_v27  ;;  %v4202_v31 = vpack.c.bf16 %v14579_v9, %v14578_v6  ;;  %v4372_v2 = vsel %vm997_vm6, %v12216_v43, %v4371_v61  ;;  %v4207_v34 = vpack.c.bf16 %v14581_v53, %v14580_v25  ;;  %v14584_v40 = vld [vmem:[#allocation107_spill] sm:$0xff]  ;;  %v14585_v12 = vld [vmem:[#allocation104_spill] sm:$0xff]  ;;  %v14590_v53 = vld [vmem:[#allocation94_spill] sm:$0xff] }
 0x4fd   :  { %v4378_v45 = vsel %vm997_vm6, %v12214_v44, %v4377_v59  ;;  %v4203_v56 = vpack.c.bf16 %v4171_v24, %v4167_v33  ;;  %4536 = vmatpush1.bf16.msra.mxu0 %v4372_v2  ;;  %v4376_v15 = vsel %vm997_vm6, %v4367_v50, %v4375_v5  ;;  %v4173_v60 = vsub.f32 %v14582_v47, %v4117_v30  ;;  %v14587_v33 = vld [vmem:[#allocation86_spill] sm:$0xff]  ;;  %v14591_v30 = vld [vmem:[#allocation92_spill] sm:$0xff]  ;;  %v14688_v17 = vld [vmem:[#allocation111_spill] sm:$0xff] }
 0x4fe   :  { %4617 = vmatprep.subr.bf16.mxu1 %v4378_v45  ;;  %v4379_v27 = vrot.slane %v4202_v31, 4  ;;  %v4204_v9 = vpack.c.bf16 %v14584_v40, %v14583_v63  ;;  %v4389_v44 = vrot.slane %v4207_v34, 4  ;;  %v4209_v43 = vpack.c.bf16 %v14586_v39, %v14585_v12  ;;  %v14588_v24 = vld [vmem:[#allocation58_spill] sm:$0xff] }
 0x4ff   :  { %v4381_v6 = vrot.slane %v4203_v56, 4  ;;  %4618 = vmatpush1.bf16.msra.mxu1 %v4376_v15  ;;  %v14589_v37 = vpack.c.bf16 %v14587_v33, %v14588_v24  ;;  %v4205_v45 = vpack.c.bf16 %v4173_v60, %v4169_v26  ;;  %v14592_v31 = vpack.c.bf16 %v14590_v53, %v14591_v30 }
 0x500   :  { %v4380_v2 = vsel %vm997_vm6, %v4371_v61, %v4379_v27  ;;  %v4383_v50 = vrot.slane %v4204_v9, 4  ;;  %v12381_v63 = vsub.f32 %v12274_v21, %v5766_v3  ;;  %v12384_v56 = vmul.f32 %v5477_v11, %v12322_v49 }
 0x501   :  { %v4387_v25 = vrot.slane %v14589_v37, 4  ;;  %v4391_v47 = vrot.slane %v14592_v31, 4  ;;  %v4382_v39 = vsel %vm997_vm6, %v4373_v14, %v4381_v6  ;;  %v4385_v37 = vrot.slane %v4205_v45, 4  ;;  %v14610_v31 = vld [vmem:[#allocation116_spill] sm:$0xff] }
 0x502   :  { %14593 = vst [vmem:[#allocation98_spill] sm:$0xff] %v12381_v63  ;;  %14594 = vst [vmem:[#allocation99_spill] sm:$0xff] %v12384_v56  ;;  %4537 = vmatprep.subr.bf16.mxu0 %v4382_v39  ;;  %v4384_v26 = vsel %vm997_vm6, %v4375_v5, %v4383_v50  ;;  %v4393_v61 = vrot.slane %v4209_v43, 4  ;;  %v14595_v60 = vunpack.c.l.bf16 %v12255_v0  ;;  %v14597_v21 = vunpack.c.h.bf16 %v12255_v0 }
 0x503   :  { %v4388_v34 = vsel %vm997_vm6, %v4379_v27, %v4387_v25  ;;  %v4392_v15 = vsel %vm997_vm6, %v4383_v50, %v4391_v47  ;;  %v12402_v14 = vpack.c.bf16 %v12340_v13, %v12328_v54  ;;  %4538 = vmatpush1.bf16.msra.mxu0 %v4380_v2  ;;  %v4390_v5 = vsel %vm997_vm6, %v4381_v6, %v4389_v44  ;;  %v14608_v50 = vld [vmem:[#allocation110_spill] sm:$0xff] }
 0x504   :  { %v12393_v40 = vsub.f32 %v12222_v52, %v14595_v60  ;;  %v12398_v11 = vsub.f32 %v12205_v28, %v14597_v21  ;;  %v14599_v3 = vrot.slane %v12212_v20, %v6789_v18  ;;  %v14600_v9 = vrot.slane %v11947_v55, 4  ;;  %4539 = vmatprep.subr.bf16.mxu0 %v4390_v5  ;;  %v14615_v5 = vld [vmem:[#allocation16_spill] sm:$0xff] }
 0x505   :  { %v4386_v12 = vsel %vm997_vm6, %v4377_v59, %v4385_v37  ;;  %v14602_v6 = vrot.slane %v12212_v20, %v6783_v16  ;;  %v14603_v18 = vrot.slane %v12212_v20, %v6792_v19  ;;  %v4394_v16 = vsel %vm997_vm6, %v4385_v37, %v4393_v61 }
 0x506   :  { %14596 = vst [vmem:[#allocation50_spill] sm:$0xff] %v12393_v40  ;;  %14598 = vst [vmem:[#allocation54_spill] sm:$0xff] %v12398_v11  ;;  %v12409_v27 = vmul.f32 %v14599_v3, %v12243_v36  ;;  %v12416_v28 = vsel %vm997_vm6, %v12050_v51, %v14600_v9  ;;  %4619 = vmatprep.subr.bf16.mxu1 %v4386_v12  ;;  %v5763_v20 = vunpack.c.l.bf16 %v12402_v14  ;;  %v14609_v53 = vrot.slane %v14608_v50, 4  ;;  %v14618_v12 = vld [vmem:[#allocation70_spill] sm:$0xff] }
 0x507   :  { %14601 = vst [vmem:[#allocation49_spill] sm:$0xff] %v12416_v28  ;;  %v12423_v43 = vmul.f32 %v14602_v6, %v12322_v49  ;;  %v12429_v36 = vmul.f32 %v14603_v18, %v12311_v7  ;;  %v12437_v33 = vpack.c.bf16 %v12384_v56, %v12416_v28  ;;  %4620 = vmatpush1.bf16.msra.mxu1 %v4384_v26  ;;  %v14604_v49 = vld [vmem:[#allocation41_spill] sm:$0xff]  ;;  %v14606_v7 = vld [vmem:[#allocation6_spill] sm:$0xff]  ;;  %v14611_v39 = vrot.slane %v14610_v31, 4  ;;  %v14612_v26 = vld [vmem:[#allocation40_spill] sm:$0xff] }
 0x508   :  { %v14605_v24 = vrot.slane %v14604_v49, 4  ;;  %4621 = vmatprep.subr.bf16.mxu1 %v4394_v16  ;;  %4540 = vmatpush1.bf16.msra.mxu0 %v4388_v34  ;;  %v14607_v45 = vrot.slane %v14606_v7, 4  ;;  %v5576_v30 = vsel %vm997_vm6, %v11910_v8, %v14609_v53  ;;  %v5767_v37 = vunpack.c.h.bf16 %v12402_v14  ;;  %v14617_v8 = vld [vmem:[#allocation89_spill] sm:$0xff]  ;;  %v14690_v11 = vld [vmem:[#allocation90_spill] sm:$0xff] }
 0x509   :  { %6477 = vmatprep.subr.msk.bf16.mxu0 %vm992_vm4, %v4389_v44  ;;  %v4481_v34 = vsel %vm992_vm4, %v4387_v25, 0  ;;  %v14613_v60 = vrot.slane %v14612_v26, 4  ;;  %v14616_v3 = vrot.slane %v14615_v5, 4  ;;  %v14619_v6 = vrot.slane %v14618_v12, 4  ;;  %v14620_v44 = vld [vmem:[#allocation117_spill] sm:$0xff]  ;;  %v14629_v26 = vld [vmem:[#allocation78_spill] sm:$0xff] }
 0x50a   :  { %v5578_v19 = vsel %vm997_vm6, %v11760_v1, %v14605_v24  ;;  %v12449_v2 = vsel %vm997_vm6, %v11622_v48, %v14607_v45  ;;  %v5580_v1 = vsel %vm997_vm6, %v11846_v10, %v14611_v39  ;;  %v14614_v48 = vld [vmem:[#allocation43_spill] sm:$0xff]  ;;  %v14621_v18 = vrot.slane %v14620_v44, 4  ;;  %v14626_v31 = vld [vmem:[#allocation45_spill] sm:$0xff]  ;;  %v14633_v44 = vld [vmem:[#allocation26_spill] sm:$0xff] }
 0x50b   :  { %v12466_v21 = vsel %vm997_vm6, %v14614_v48, %v14613_v60  ;;  %v5574_v9 = vsel %vm997_vm6, %v14617_v8, %v14616_v3  ;;  %v12476_v10 = vsel %vm997_vm6, %v11925_v41, %v14619_v6  ;;  %v14622_v49 = vrot.slane %v11915_v42, 4  ;;  %4622 = vmatpush1.bf16.msra.mxu1 %v4392_v15  ;;  %v14631_v12 = vld [vmem:[#allocation7_spill] sm:$0xff]  ;;  %v14695_v56 = vld [vmem:[#allocation109_spill] sm:$0xff]  ;;  %v14702_v28 = vld [vmem:[#allocation66_spill] sm:$0xff] }
 0x50c   :  { %v12482_v25 = vsel %vm997_vm6, %v11851_v23, %v14621_v18  ;;  %v12484_v16 = vpack.c.bf16 %v5578_v19, %v5574_v9  ;;  %v12492_v7 = vpack.c.bf16 %v12449_v2, %v12466_v21  ;;  %v14623_v41 = vcombine.high %v12229_v62, %v12229_v62  ;;  %v14624_v23 = vld [vmem:[#allocation10_spill] sm:$0xff]  ;;  %6479 = vmatprep.subr.msk.bf16.mxu1 %vm992_vm4, %v4393_v61 }
 0x50d   :  { %v5586_v24 = vsel %vm997_vm6, %v12045_v58, %v14622_v49  ;;  %v12498_v50 = vpack.c.bf16 %v5580_v1, %v5576_v30  ;;  %v14625_v53 = vrot.slane %v14624_v23, 4  ;;  %4542 = vmatpush1.bf16.msra.mxu0 %v4481_v34  ;;  %v14627_v58 = vld [vmem:[#allocation64_spill] sm:$0xff]  ;;  %v12516_v5 = vsub.f32 %v12328_v54, %v5763_v20  ;;  %v14635_v20 = vld [vmem:[#allocation85_spill] sm:$0xff] }
 0x50e   :  { %v4472_v45 = vrot.slane %v14623_v41, %v12236_v22  ;;  %v14628_v15 = vrot.slane %v14627_v58, 4  ;;  %v4487_v3 = vsel %vm992_vm4, %v4391_v47, 0  ;;  %6134 = vmatprep.subr.bf16.mxu0 %v12492_v7  ;;  %v12522_v61 = vpack.c.bf16 %v12482_v25, %v12476_v10  ;;  %v14640_v58 = vld [vmem:[#allocation67_spill] sm:$0xff] }
 0x50f   :  { %v5582_v42 = vsel %vm997_vm6, %v14626_v31, %v14625_v53  ;;  %14630 = vst [vmem:[#allocation100_spill] sm:$0xff] %v12516_v5  ;;  %v5714_v34 = vunpack.c.l.bf16 %v12484_v16  ;;  %v5718_v8 = vunpack.c.h.bf16 %v12484_v16  ;;  %v14632_v6 = vrot.slane %v14631_v12, 4  ;;  %4624 = vmatpush1.bf16.msra.mxu1 %v4487_v3  ;;  %v14638_v31 = vld [vmem:[#allocation62_spill] sm:$0xff]  ;;  %v14643_v3 = vld [vmem:[#allocation79_spill] sm:$0xff]  ;;  %v14709_v5 = vld [vmem:[#allocation68_spill] sm:$0xff] }
 0x510   :  { %v12510_v60 = vsel %vm997_vm6, %v14629_v26, %v14628_v15  ;;  %v12512_v62 = vpack.c.bf16 %v5586_v24, %v5582_v42  ;;  %v14634_v54 = vrot.slane %v12201_v4, 4  ;;  %v12539_v49 = vsub.f32 %v12340_v13, %v5767_v37  ;;  %6478 = vmatmul.mubr.msk.bf16.vlgmr.msra.gmra.mrb[8].mxu0 %vm4476_vm14, %v4472_v45  ;;  %6216 = vmatprep.subr.bf16.mxu1 %v12522_v61  ;;  %v14645_v12 = vld [vmem:[#allocation59_spill] sm:$0xff] }
 0x511   :  { %v12530_v18 = vsel %vm997_vm6, %v14633_v44, %v14632_v6  ;;  %v5716_v23 = vunpack.c.l.bf16 %v12498_v50  ;;  %v14637_v53 = vrot.slane %v12195_v35, 4  ;;  %6135 = vmatpush1.bf16.msra.mxu0 %v12484_v16  ;;  %v5720_v13 = vunpack.c.h.bf16 %v12498_v50  ;;  %v14646_v44 = vld [vmem:[#allocation19_spill] sm:$0xff] }
 0x512   :  { %v12536_v47 = vsel %vm997_vm6, %v14635_v20, %v14634_v54  ;;  %14636 = vst [vmem:[#allocation101_spill] sm:$0xff] %v12539_v49  ;;  %v12544_v41 = vpack.c.bf16 %v12510_v60, %v12530_v18  ;;  %v5722_v37 = vunpack.c.l.bf16 %v12512_v62  ;;  %v14641_v15 = vrot.slane %v14640_v58, 4  ;;  %v14648_v20 = vld [vmem:[#allocation44_spill] sm:$0xff]  ;;  %6480 = vmatmul.mubr.msk.bf16.vlgmr.msra.gmra.mrb[8].mxu1 %vm4476_vm14, %v4472_v45 }
 0x513   :  { %v12551_v4 = vsel %vm997_vm6, %v14638_v31, %v14637_v53  ;;  %v14644_v35 = vrot.slane %v14643_v3, 4  ;;  %v14647_v54 = vrot.slane %v14646_v44, 4  ;;  %v5726_v31 = vunpack.c.h.bf16 %v12512_v62  ;;  %6217 = vmatpush1.bf16.msra.mxu1 %v12498_v50  ;;  %v14706_v49 = vld [vmem:[#allocation8_spill] sm:$0xff] }
 0x514   :  { %14639 = vst [vmem:[#allocation96_spill] sm:$0xff] %v12551_v4  ;;  %v12561_v26 = vsel %vm997_vm6, %v12278_v29, %v14641_v15  ;;  %6136 = vmatprep.subr.bf16.mxu0 %v12544_v41  ;;  %v12580_v15 = vsub.f32 %v5574_v9, %v5714_v34  ;;  %v12582_v3 = vsub.f32 %v5578_v19, %v5718_v8  ;;  %v14655_v19 = vld [vmem:[#allocation114_spill] sm:$0xff]  ;;  %v14658_v8 = vld [vmem:[#allocation36_spill] sm:$0xff]  ;;  %v14679_v29 = vld [vmem:[#allocation33_spill] sm:$0xff] }
 0x515   :  { %14642 = vst [vmem:[#allocation42_spill] sm:$0xff] %v12561_v26  ;;  %v5584_v6 = vsel %vm997_vm6, %v14645_v12, %v14644_v35  ;;  %v12572_v53 = vsel %vm997_vm6, %v14648_v20, %v14647_v54  ;;  %v14650_v12 = vld [vmem:[#allocation76_spill] sm:$0xff]  ;;  %v14652_v54 = vld [vmem:[#allocation46_spill] sm:$0xff]  ;;  %v12594_v59 = vsub.f32 %v5576_v30, %v5716_v23  ;;  %v14656_v45 = vrot.slane %v14655_v19, 4  ;;  %6137 = vmatpush1.bf16.msra.mxu0 %v12512_v62  ;;  %v14663_v19 = vld [vmem:[#allocation87_spill] sm:$0xff] }
 0x516   :  { %14649 = vst [vmem:[#allocation97_spill] sm:$0xff] %v12572_v53  ;;  %v12576_v58 = vpack.c.bf16 %v12536_v47, %v5584_v6  ;;  %v12586_v35 = vpack.c.bf16 %v12551_v4, %v12572_v53  ;;  %v14651_v44 = vrot.slane %v14650_v12, 4  ;;  %v14659_v12 = vrot.slane %v14658_v8, 4  ;;  %v14670_v8 = vld [vmem:[#allocation34_spill] sm:$0xff]  ;;  %v14752_v53 = vld [vmem:[#allocation72_spill] sm:$0xff] }
 0x517   :  { %14654 = vst [vmem:[#allocation103_spill] sm:$0xff] %v12594_v59  ;;  %v12605_v34 = vsel %vm997_vm6, %v12429_v36, %v14656_v45  ;;  %v12614_v30 = vsub.f32 %v5582_v42, %v5722_v37  ;;  %v14662_v23 = vrot.slane %v12124_v32, 4  ;;  %v12624_v45 = vsub.f32 %v5586_v24, %v5726_v31  ;;  %v14668_v42 = vld [vmem:[#allocation75_spill] sm:$0xff] }
 0x518   :  { %v12592_v20 = vsel %vm997_vm6, %v14652_v54, %v14651_v44  ;;  %14657 = vst [vmem:[#allocation12_spill] sm:$0xff] %v12605_v34  ;;  %v5590_v44 = vsel %vm997_vm6, %v12423_v43, %v14659_v12  ;;  %v12611_v54 = vsub.f32 %v5580_v1, %v5720_v13  ;;  %6218 = vmatprep.subr.bf16.mxu1 %v12586_v35  ;;  %v5724_v43 = vunpack.c.l.bf16 %v12576_v58  ;;  %v14666_v1 = vld [vmem:[#allocation122_spill] sm:$0xff]  ;;  %v14672_v12 = vld [vmem:[#allocation20_spill] sm:$0xff] }
 0x519   :  { %14653 = vst [vmem:[#allocation102_spill] sm:$0xff] %v12592_v20  ;;  %v12599_v9 = vpack.c.bf16 %v12592_v20, %v12561_v26  ;;  %14661 = vst [vmem:[#allocation47_spill] sm:$0xff] %v12614_v30  ;;  %v12621_v48 = vsel %vm997_vm6, %v14663_v19, %v14662_v23  ;;  %v14667_v13 = vrot.slane %v14666_v1, 4  ;;  %v14671_v32 = vrot.slane %v14670_v8, 4  ;;  %v14673_v19 = vld [vmem:[#allocation57_spill] sm:$0xff]  ;;  %v14675_v1 = vld [vmem:[#allocation118_spill] sm:$0xff]  ;;  %6219 = vmatpush1.bf16.msra.mxu1 %v12576_v58 }
 0x51a   :  { %14660 = vst [vmem:[#allocation37_spill] sm:$0xff] %v12611_v54  ;;  %14664 = vst [vmem:[#allocation32_spill] sm:$0xff] %v12621_v48  ;;  %v14674_v39 = vmax.f32 %v14673_v19, 0.0  ;;  %v14680_v55 = vrot.slane %v14679_v29, 4  ;;  %v14681_v19 = vld [vmem:[#allocation21_spill] sm:$0xff]  ;;  %v14689_v29 = vrot.slane %v12287_v38, 4 }
 0x51b   :  { %14665 = vst [vmem:[#allocation39_spill] sm:$0xff] %v12624_v45  ;;  %6138 = vmatprep.subr.bf16.mxu0 %v12599_v9  ;;  %v12632_v37 = vsel %vm997_vm6, %v14668_v42, %v14667_v13  ;;  %v12638_v23 = vsel %vm997_vm6, %v14672_v12, %v14671_v32  ;;  %v14677_v13 = vld [vmem:[#allocation88_spill] sm:$0xff]  ;;  %v5728_v32 = vunpack.c.h.bf16 %v12576_v58  ;;  %v14697_v38 = vld [vmem:[#allocation73_spill] sm:$0xff]  ;;  %v14741_v45 = vld [vmem:[#allocation115_spill] sm:$0xff]  ;;  %v14753_v54 = vrot.slane %v14752_v53, 4 }
 0x51c   :  { %14669 = vst [vmem:[#allocation81_spill] sm:$0xff] %v12632_v37  ;;  %v12642_v24 = vpack.c.bf16 %v12632_v37, %v12605_v34  ;;  %v12645_v31 = vpack.c.bf16 %v12638_v23, %v5590_v44  ;;  %v12651_v36 = vsel %vm997_vm6, %v14675_v1, %v14674_v39  ;;  %v14678_v42 = vrot.slane %v14677_v13, 4  ;;  %v14683_v39 = vld [vmem:[#allocation53_spill] sm:$0xff]  ;;  %v14685_v13 = vld [vmem:[#allocation24_spill] sm:$0xff] }
 0x51d   :  { %14676 = vst [vmem:[#allocation11_spill] sm:$0xff] %v12651_v36  ;;  %v12661_v12 = vpack.c.bf16 %v12621_v48, %v12651_v36  ;;  %v12667_v51 = vsel %vm997_vm6, %v14681_v19, %v14680_v55  ;;  %v14684_v1 = vrot.slane %v14683_v39, 4  ;;  %v12685_v55 = vsel %vm997_vm6, %v14690_v11, %v14689_v29  ;;  %v14699_v11 = vld [vmem:[#allocation9_spill] sm:$0xff]  ;;  %v14723_v48 = vld [vmem:[#allocation18_spill] sm:$0xff]  ;;  %v14728_v34 = vld [vmem:[#allocation120_spill] sm:$0xff] }
 0x51e   :  { %v5592_v8 = vsel %vm997_vm6, %v12409_v27, %v14678_v42  ;;  %14682 = vst [vmem:[#allocation65_spill] sm:$0xff] %v12667_v51  ;;  %6220 = vmatprep.subr.bf16.mxu1 %v12642_v24  ;;  %6139 = vmatpush1.bf16.msra.mxu0 %v12645_v31  ;;  %v14686_v27 = vld [vmem:[#allocation69_spill] sm:$0xff]  ;;  %14691 = vst [vmem:[#allocation105_spill] sm:$0xff] %v12685_v55  ;;  %v14758_v53 = vrot.slane %v12492_v7, 2 }
 0x51f   :  { %v12673_v52 = vsel %vm997_vm6, %v14685_v13, %v14684_v1  ;;  %v14687_v42 = vrot.slane %v14686_v27, 4  ;;  %v12689_v1 = vsub.f32 %v5584_v6, %v5724_v43  ;;  %6140 = vmatprep.subr.bf16.mxu0 %v12661_v12  ;;  %v14693_v27 = vld [vmem:[#allocation60_spill] sm:$0xff]  ;;  %v14700_v43 = vld [vmem:[#allocation113_spill] sm:$0xff] }
 0x520   :  { %v14694_v40 = vmax.f32 %v14693_v27, 0.0  ;;  %v14701_v19 = vrot.slane %v14700_v43, 4  ;;  %v14708_v43 = vrot.slane %v12337_v46, 4 }
 0x521   :  { %v5596_v63 = vsel %vm997_vm6, %v14688_v17, %v14687_v42  ;;  %14692 = vst [vmem:[#allocation82_spill] sm:$0xff] %v12689_v1  ;;  %v14698_v42 = vmax.f32 %v14697_v38, 0.0  ;;  %v14736_v1 = vld [vmem:[#allocation55_spill] sm:$0xff] }
 0x522   :  { %v12692_v13 = vpack.c.bf16 %v5596_v63, %v5592_v8  ;;  %v12698_v17 = vsel %vm997_vm6, %v14695_v56, %v14694_v40  ;;  %v12715_v27 = vsel %vm997_vm6, %v14702_v28, %v14701_v19  ;;  %v14704_v56 = vld [vmem:[#allocation31_spill] sm:$0xff]  ;;  %v12735_v28 = vsel %vm997_vm6, %v14709_v5, %v14708_v43 }
 0x523   :  { %14696 = vst [vmem:[#allocation14_spill] sm:$0xff] %v12698_v17  ;;  %v5598_v29 = vsel %vm997_vm6, %v14699_v11, %v14698_v42  ;;  %v12706_v39 = vpack.c.bf16 %v12667_v51, %v12698_v17  ;;  %14703 = vst [vmem:[#allocation25_spill] sm:$0xff] %v12715_v27  ;;  %v14705_v40 = vrot.slane %v14704_v56, 4  ;;  %v12724_v42 = vsub.f32 %v12536_v47, %v5728_v32  ;;  %v14711_v19 = vld [vmem:[#allocation23_spill] sm:$0xff] }
 0x524   :  { %v12709_v6 = vpack.c.bf16 %v12673_v52, %v5598_v29  ;;  %6221 = vmatpush1.bf16.msra.mxu1 %v12692_v13  ;;  %v12729_v11 = vpack.c.bf16 %v12715_v27, %v12685_v55  ;;  %14710 = vst [vmem:[#allocation51_spill] sm:$0xff] %v12735_v28  ;;  %v14712_v56 = vrot.slane %v14711_v19, 4  ;;  %v14713_v51 = vld [vmem:[#allocation27_spill] sm:$0xff]  ;;  %v5730_v47 = vunpack.c.l.bf16 %v12645_v31  ;;  %v14716_v27 = vld [vmem:[#allocation121_spill] sm:$0xff]  ;;  %v14719_v19 = vld [vmem:[#allocation4_spill] sm:$0xff] }
 0x525   :  { %v12721_v38 = vsel %vm997_vm6, %v14706_v49, %v14705_v40  ;;  %14707 = vst [vmem:[#allocation22_spill] sm:$0xff] %v12724_v42  ;;  %v5734_v32 = vunpack.c.h.bf16 %v12645_v31  ;;  %6222 = vmatprep.subr.bf16.mxu1 %v12706_v39  ;;  %v14714_v40 = vld [vmem:[#allocation74_spill] sm:$0xff]  ;;  %v14717_v43 = vld [vmem:[#allocation63_spill] sm:$0xff]  ;;  %v14730_v42 = vld [vmem:[#allocation61_spill] sm:$0xff] }
 0x526   :  { %v12741_v49 = vsel %vm997_vm6, %v14713_v51, %v14712_v56  ;;  %6141 = vmatpush1.bf16.msra.mxu0 %v12709_v6  ;;  %v14715_v46 = vmax.f32 %v14714_v40, 0.0  ;;  %v14718_v55 = vrot.slane %v14717_v43, 4  ;;  %v14721_v56 = vld [vmem:[#allocation80_spill] sm:$0xff]  ;;  %v5736_v43 = vunpack.c.h.bf16 %v12692_v13 }
 0x527   :  { %6142 = vmatprep.subr.bf16.mxu0 %v12729_v11  ;;  %v14722_v22 = vrot.slane %v14721_v56, 4  ;;  %v14725_v40 = vld [vmem:[#allocation112_spill] sm:$0xff]  ;;  %v14729_v56 = vrot.slane %v14728_v34, 4  ;;  %v14734_v34 = vld [vmem:[#allocation38_spill] sm:$0xff] }
 0x528   :  { %v5600_v5 = vsel %vm997_vm6, %v14716_v27, %v14715_v46  ;;  %v12755_v17 = vsel %vm997_vm6, %v14719_v19, %v14718_v55  ;;  %v14726_v37 = vrot.slane %v14725_v40, 4  ;;  %v14727_v27 = vld [vmem:[#allocation52_spill] sm:$0xff] }
 0x529   :  { %14720 = vst [vmem:[#allocation48_spill] sm:$0xff] %v12755_v17  ;;  %v12759_v51 = vpack.c.bf16 %v12721_v38, %v5600_v5  ;;  %v12765_v36 = vsel %vm997_vm6, %v14723_v48, %v14722_v22  ;;  %v12783_v22 = vsel %vm997_vm6, %v14730_v42, %v14729_v56  ;;  %v14732_v48 = vrot.slane %v12332_v57, 4  ;;  %v14733_v40 = vld [vmem:[#allocation84_spill] sm:$0xff] }
 0x52a   :  { %14724 = vst [vmem:[#allocation30_spill] sm:$0xff] %v12765_v36  ;;  %v5670_v46 = vsel %vm997_vm6, %v14727_v27, %v14726_v37  ;;  %v12774_v55 = vpack.c.bf16 %v12765_v36, %v12735_v28  ;;  %14731 = vst [vmem:[#allocation91_spill] sm:$0xff] %v12783_v22  ;;  %v5732_v27 = vunpack.c.l.bf16 %v12692_v13  ;;  %v12794_v36 = vpack.c.bf16 %v12755_v17, %v12783_v22  ;;  %v14742_v22 = vld [vmem:[#allocation83_spill] sm:$0xff] }
 0x52b   :  { %v12777_v19 = vpack.c.bf16 %v5670_v46, %v12741_v49  ;;  %v5668_v37 = vsel %vm997_vm6, %v14733_v40, %v14732_v48  ;;  %6223 = vmatpush1.bf16.msra.mxu1 %v12759_v51  ;;  %v14735_v28 = vrot.slane %v14734_v34, 4  ;;  %v12802_v57 = vsub.f32 %v5590_v44, %v5730_v47  ;;  %v14739_v48 = vld [vmem:[#allocation108_spill] sm:$0xff] }
 0x52c   :  { %v5738_v56 = vunpack.c.l.bf16 %v12709_v6  ;;  %6224 = vmatprep.subr.bf16.mxu1 %v12774_v55  ;;  %v14740_v40 = vrot.slane %v14739_v48, 4  ;;  %v14743_v30 = vrot.slane %v14742_v22, 4  ;;  %v14744_v34 = vld [vmem:[#allocation28_spill] sm:$0xff]  ;;  %v14749_v48 = vld [vmem:[#allocation119_spill] sm:$0xff] }
 0x52d   :  { %v12800_v42 = vsel %vm997_vm6, %v14736_v1, %v14735_v28  ;;  %14738 = vst [vmem:[#allocation35_spill] sm:$0xff] %v12802_v57  ;;  %6143 = vmatpush1.bf16.msra.mxu0 %v12777_v19  ;;  %v5742_v1 = vunpack.c.h.bf16 %v12709_v6  ;;  %v14745_v28 = vld [vmem:[#allocation77_spill] sm:$0xff]  ;;  %v14750_v4 = vrot.slane %v14749_v48, 4  ;;  %v5892_v48 = vrot.slane %v12586_v35, 2 }
 0x52e   :  { %14737 = vst [vmem:[#allocation93_spill] sm:$0xff] %v12800_v42  ;;  %v5672_v17 = vsel %vm997_vm6, %v14741_v45, %v14740_v40  ;;  %v5678_v20 = vsel %vm997_vm6, %v14744_v34, %v14743_v30  ;;  %6144 = vmatprep.subr.bf16.mxu0 %v12794_v36  ;;  %v14746_v47 = vrot.slane %v14745_v28, 4  ;;  %v14747_v57 = vld [vmem:[#allocation13_spill] sm:$0xff]  ;;  %v14751_v45 = vld [vmem:[#allocation3_spill] sm:$0xff]  ;;  %v5740_v40 = vunpack.c.l.bf16 %v12759_v51 }
 0x52f   :  { %v12817_v44 = vpack.c.bf16 %v5672_v17, %v5668_v37  ;;  %v5674_v22 = vsel %vm997_vm6, %v14751_v45, %v14750_v4  ;;  %v14754_v28 = vld [vmem:[#allocation29_spill] sm:$0xff]  ;;  %v12847_v4 = vsub.f32 %v5596_v63, %v5736_v43  ;;  %v12851_v45 = vsub.f32 %v5598_v29, %v5738_v56 }
 0x530   :  { %v12823_v26 = vsel %vm997_vm6, %v14747_v57, %v14746_v47  ;;  %v12834_v34 = vpack.c.bf16 %v5678_v20, %v5674_v22  ;;  %v12840_v59 = vsel %vm997_vm6, %v14754_v28, %v14753_v54  ;;  %v12843_v57 = vsub.f32 %v12638_v23, %v5734_v32  ;;  %v14759_v23 = vld [vmem:[#allocation71_spill] sm:$0xff] }
 0x531   :  { %14748 = vst [vmem:[#allocation106_spill] sm:$0xff] %v12823_v26  ;;  %v12832_v30 = vpack.c.bf16 %v12800_v42, %v12823_v26  ;;  %14755 = vst [vmem:[#allocation107_spill] sm:$0xff] %v12840_v59  ;;  %v12845_v47 = vsub.f32 %v5592_v8, %v5732_v27  ;;  %6225 = vmatpush1.bf16.msra.mxu1 %v12817_v44  ;;  %v5744_v42 = vunpack.c.h.bf16 %v12759_v51  ;;  %v14760_v63 = vrot.slane %v14759_v23, 4  ;;  %v14761_v8 = vld [vmem:[#allocation5_spill] sm:$0xff] }
 0x532   :  { %14756 = vst [vmem:[#allocation104_spill] sm:$0xff] %v12847_v4  ;;  %14757 = vst [vmem:[#allocation15_spill] sm:$0xff] %v12851_v45  ;;  %6145 = vmatpush1.bf16.msra.mxu0 %v12834_v34  ;;  %v6068_v54 = vsel %vm1002_vm9, %v12402_v14, %v14758_v53  ;;  %v5746_v29 = vunpack.c.l.bf16 %v12777_v19  ;;  %v5750_v43 = vunpack.c.h.bf16 %v12777_v19  ;;  %v5748_v27 = vunpack.c.l.bf16 %v12817_v44 }
 0x533   :  { %6226 = vmatprep.subr.bf16.mxu1 %v12832_v30  ;;  %v12864_v32 = vsel %vm997_vm6, %v14761_v8, %v14760_v63  ;;  %6146 = vmatprep.subr.bf16.mxu0 %v6068_v54  ;;  %v12874_v28 = vsub.f32 %v12673_v52, %v5742_v1  ;;  %v12876_v53 = vsub.f32 %v5600_v5, %v5740_v40  ;;  %v5752_v23 = vunpack.c.h.bf16 %v12817_v44 }
 0x534   :  { %14762 = vst [vmem:[#allocation86_spill] sm:$0xff] %v12864_v32  ;;  %v12871_v56 = vpack.c.bf16 %v12840_v59, %v12864_v32  ;;  %v5754_v63 = vunpack.c.l.bf16 %v12834_v34  ;;  %v5758_v8 = vunpack.c.h.bf16 %v12834_v34  ;;  %v14765_v26 = vrot.slane %v12522_v61, 2  ;;  %v14767_v32 = vld [vmem:[#allocation56_spill] sm:$0xff] }
 0x535   :  { %14763 = vst [vmem:[#allocation58_spill] sm:$0xff] %v12874_v28  ;;  %14764 = vst [vmem:[#allocation94_spill] sm:$0xff] %v12876_v53  ;;  %v14766_v59 = vrot.slane %v12484_v16, 2  ;;  %v5886_v5 = vrot.slane %v12512_v62, 2  ;;  %v12892_v1 = vsub.f32 %v12721_v38, %v5744_v42  ;;  %v14768_v40 = vrot.slane %v12544_v41, 2 }
 0x536   :  { %6227 = vmatpush1.bf16.msra.mxu1 %v12871_v56  ;;  %v6076_v54 = vsel %vm1002_vm9, %v12255_v0, %v14765_v26  ;;  %v14769_v53 = vrot.slane %v12492_v7, 2  ;;  %v5896_v26 = vrot.slane %v12599_v9, 2  ;;  %v5890_v45 = vrot.slane %v12576_v58, 2 }
 0x537   :  { %v6064_v52 = vsel %vm1002_vm9, %v14767_v32, %v14766_v59  ;;  %6228 = vmatprep.subr.bf16.mxu1 %v6076_v54  ;;  %v12902_v4 = vsub.f32 %v12741_v49, %v5746_v29  ;;  %v12904_v59 = vsub.f32 %v5670_v46, %v5750_v43  ;;  %v12906_v62 = vsub.f32 %v5668_v37, %v5748_v27 }
 0x538   :  { %6147 = vmatpush1.bf16.msra.mxu0 %v6064_v52  ;;  %v5889_v28 = vsel %vm1002_vm9, %v14769_v53, %v14768_v40  ;;  %v5900_v38 = vrot.slane %v12642_v24, 2  ;;  %v12909_v42 = vsub.f32 %v5672_v17, %v5752_v23  ;;  %v12911_v54 = vsub.f32 %v5674_v22, %v5754_v63 }
 0x539   :  { %6148 = vmatprep.subr.bf16.mxu0 %v5889_v28  ;;  %v14770_v53 = vrot.slane %v12498_v50, 2  ;;  %v5894_v58 = vrot.slane %v12645_v31, 2  ;;  %v12918_v49 = vsub.f32 %v5678_v20, %v5758_v8  ;;  %v14771_v46 = vrot.slane %v12522_v61, 2 }
 0x53a   :  { %v14772_v29 = vrot.slane %v12484_v16, 2  ;;  %v5898_v22 = vrot.slane %v12692_v13, 2  ;;  %v5756_v43 = vunpack.c.l.bf16 %v12871_v56  ;;  %v14773_v27 = vmov %v14768_v40 }
 0x53b   :  { %v6072_v52 = vsel %vm1002_vm9, %v12437_v33, %v14770_v53  ;;  %v5893_v37 = vsel %vm1002_vm9, %v14771_v46, %v5892_v48  ;;  %v5897_v20 = vsel %vm1002_vm9, %v14773_v27, %v5896_v26  ;;  %v14774_v31 = vmov %v14770_v53 }
 0x53c   :  { %6229 = vmatpush1.bf16.msra.mxu1 %v6072_v52  ;;  %v5887_v17 = vsel %vm1002_vm9, %v14772_v29, %v5886_v5  ;;  %v5891_v28 = vsel %vm1002_vm9, %v14774_v31, %v5890_v45  ;;  %v5904_v23 = vrot.slane %v12661_v12, 2  ;;  %v5901_v16 = vsel %vm1002_vm9, %v5892_v48, %v5900_v38 }
 0x53d   :  { %6230 = vmatprep.subr.bf16.mxu1 %v5893_v37  ;;  %6149 = vmatpush1.bf16.msra.mxu0 %v5887_v17  ;;  %v5908_v63 = vrot.slane %v12706_v39, 2  ;;  %v5912_v13 = vrot.slane %v12729_v11, 2  ;;  %v5916_v8 = vrot.slane %v12774_v55, 2  ;;  %v5895_v40 = vsel %vm1002_vm9, %v5886_v5, %v5894_v58 }
 0x53e   :  { %6150 = vmatprep.subr.bf16.mxu0 %v5897_v20  ;;  %v5905_v53 = vsel %vm1002_vm9, %v5896_v26, %v5904_v23  ;;  %v5910_v52 = vrot.slane %v12777_v19, 2  ;;  %v5914_v50 = vrot.slane %v12817_v44, 2  ;;  %v5899_v46 = vsel %vm1002_vm9, %v5890_v45, %v5898_v22 }
 0x53f   :  { %v5909_v37 = vsel %vm1002_vm9, %v5900_v38, %v5908_v63  ;;  %v5902_v48 = vrot.slane %v12709_v6, 2  ;;  %v5906_v29 = vrot.slane %v12759_v51, 2  ;;  %v5920_v17 = vrot.slane %v12794_v36, 2 }
 0x540   :  { %6231 = vmatpush1.bf16.msra.mxu1 %v5891_v28  ;;  %v5924_v5 = vrot.slane %v12832_v30, 2  ;;  %v5715_v26 = vunpack.c.l.bf16 %v12492_v7  ;;  %v5719_v19 = vunpack.c.h.bf16 %v12492_v7  ;;  %v5913_v45 = vsel %vm1002_vm9, %v5904_v23, %v5912_v13 }
 0x541   :  { %6232 = vmatprep.subr.bf16.mxu1 %v5901_v16  ;;  %6151 = vmatpush1.bf16.msra.mxu0 %v5895_v40  ;;  %v5903_v44 = vsel %vm1002_vm9, %v5894_v58, %v5902_v48  ;;  %v5907_v38 = vsel %vm1002_vm9, %v5898_v22, %v5906_v29  ;;  %v5917_v6 = vsel %vm1002_vm9, %v5908_v63, %v5916_v8  ;;  %v5717_v7 = vunpack.c.l.bf16 %v12522_v61 }
 0x542   :  { %6152 = vmatprep.subr.bf16.mxu0 %v5905_v53  ;;  %v5911_v51 = vsel %vm1002_vm9, %v5902_v48, %v5910_v52  ;;  %v5921_v27 = vsel %vm1002_vm9, %v5912_v13, %v5920_v17  ;;  %v5915_v20 = vsel %vm1002_vm9, %v5906_v29, %v5914_v50  ;;  %v5925_v31 = vsel %vm1002_vm9, %v5916_v8, %v5924_v5 }
 0x543   :  { %v5721_v28 = vunpack.c.h.bf16 %v12522_v61  ;;  %v5723_v58 = vunpack.c.l.bf16 %v12544_v41  ;;  %v5727_v23 = vunpack.c.h.bf16 %v12544_v41  ;;  %v5918_v22 = vrot.slane %v12834_v34, 2 }
 0x544   :  { %6233 = vmatpush1.bf16.msra.mxu1 %v5899_v46  ;;  %v5928_v16 = vrot.slane %v12402_v14, 2  ;;  %v5771_v63 = vsub.f32 %v12466_v21, %v5715_v26  ;;  %v5775_v13 = vsub.f32 %v12449_v2, %v5719_v19  ;;  %v5922_v8 = vrot.slane %v12871_v56, 2  ;;  %v14777_v19 = vld [vmem:[#allocation97_spill] sm:$0xff] }
 0x545   :  { %6234 = vmatprep.subr.bf16.mxu1 %v5909_v37  ;;  %6153 = vmatpush1.bf16.msra.mxu0 %v5903_v44  ;;  %v5932_v40 = vrot.slane %v12255_v0, 2  ;;  %v5779_v61 = vsub.f32 %v12530_v18, %v5723_v58  ;;  %v5783_v53 = vsub.f32 %v12510_v60, %v5727_v23  ;;  %v5926_v41 = vrot.slane %v14767_v32, 2  ;;  %v14775_v18 = vld [vmem:[#allocation103_spill] sm:$0xff]  ;;  %v14776_v32 = vld [vmem:[#allocation37_spill] sm:$0xff] }
 0x546   :  { %6154 = vmatprep.subr.bf16.mxu0 %v5913_v45  ;;  %v5930_v46 = vrot.slane %v12437_v33, 2  ;;  %v5725_v34 = vunpack.c.l.bf16 %v12586_v35  ;;  %v5729_v14 = vunpack.c.h.bf16 %v12586_v35  ;;  %v5919_v2 = vsel %vm1002_vm9, %v5910_v52, %v5918_v22  ;;  %v14778_v45 = vld [vmem:[#allocation96_spill] sm:$0xff] }
 0x547   :  { %v5773_v21 = vsub.f32 %v12476_v10, %v5717_v7  ;;  %v5777_v37 = vsub.f32 %v12482_v25, %v5721_v28  ;;  %v5826_v0 = vpack.c.bf16 %v12582_v3, %v12580_v15  ;;  %v5827_v60 = vpack.c.bf16 %v5775_v13, %v5771_v63  ;;  %v14780_v28 = vld [vmem:[#allocation102_spill] sm:$0xff]  ;;  %v14782_v63 = vld [vmem:[#allocation39_spill] sm:$0xff] }
 0x548   :  { %6235 = vmatpush1.bf16.msra.mxu1 %v5907_v38  ;;  %v5828_v48 = vpack.c.bf16 %v14776_v32, %v14775_v18  ;;  %v5731_v29 = vunpack.c.l.bf16 %v12599_v9  ;;  %v5735_v35 = vunpack.c.h.bf16 %v12599_v9  ;;  %v5929_v52 = vsel %vm1002_vm9, %v5920_v17, %v5928_v16 }
 0x549   :  { %6236 = vmatprep.subr.bf16.mxu1 %v5917_v6  ;;  %6155 = vmatpush1.bf16.msra.mxu0 %v5911_v51  ;;  %v5923_v10 = vsel %vm1002_vm9, %v5914_v50, %v5922_v8  ;;  %v5933_v25 = vsel %vm1002_vm9, %v5924_v5, %v5932_v40  ;;  %v5831_v26 = vpack.c.bf16 %v5783_v53, %v5779_v61  ;;  %v5986_v51 = vrot.slane %v5826_v0, 4  ;;  %v14783_v53 = vld [vmem:[#allocation82_spill] sm:$0xff] }
 0x54a   :  { %6156 = vmatprep.subr.bf16.mxu0 %v5921_v27  ;;  %v5927_v15 = vsel %vm1002_vm9, %v5918_v22, %v5926_v41  ;;  %v5931_v3 = vsel %vm1002_vm9, %v5922_v8, %v5930_v46  ;;  %v5781_v44 = vsub.f32 %v14777_v19, %v5725_v34  ;;  %v5785_v38 = vsub.f32 %v14778_v45, %v5729_v14  ;;  %v14779_v27 = vld [vmem:[#allocation42_spill] sm:$0xff]  ;;  %v14781_v22 = vld [vmem:[#allocation47_spill] sm:$0xff]  ;;  %v14790_v45 = vld [vmem:[#allocation17_spill] sm:$0xff] }
 0x54b   :  { %v5829_v6 = vpack.c.bf16 %v5777_v37, %v5773_v21  ;;  %v5733_v9 = vunpack.c.l.bf16 %v12642_v24  ;;  %v5737_v17 = vunpack.c.h.bf16 %v12642_v24  ;;  %v5987_v50 = vrot.slane %v5827_v60, 4  ;;  %v14784_v34 = vld [vmem:[#allocation22_spill] sm:$0xff]  ;;  %v14785_v37 = vld [vmem:[#allocation12_spill] sm:$0xff]  ;;  %v14786_v60 = vld [vmem:[#allocation81_spill] sm:$0xff] }
 0x54c   :  { %6237 = vmatpush1.bf16.msra.mxu1 %v5915_v20  ;;  %v5988_v5 = vrot.slane %v5828_v48, 4  ;;  %v5787_v7 = vsub.f32 %v14779_v27, %v5731_v29  ;;  %v5791_v58 = vsub.f32 %v14780_v28, %v5735_v35  ;;  %v5992_v23 = vrot.slane %v5831_v26, 4  ;;  %v14788_v48 = vld [vmem:[#allocation32_spill] sm:$0xff] }
 0x54d   :  { %6238 = vmatprep.subr.bf16.mxu1 %v5925_v31  ;;  %6157 = vmatpush1.bf16.msra.mxu0 %v5919_v2  ;;  %v5830_v13 = vpack.c.bf16 %v14782_v63, %v14781_v22  ;;  %v5739_v20 = vunpack.c.l.bf16 %v12661_v12  ;;  %v5743_v8 = vunpack.c.h.bf16 %v12661_v12  ;;  %v6084_v61 = vsel %vm997_vm6, %v5928_v16, %v5987_v50  ;;  %v13009_v12 = vld [vmem:[%s13192_s6 + $0x6] sm:$0x3f]  ;;  %v14794_v22 = vld [vmem:[#allocation105_spill] sm:$0xff] }
 0x54e   :  { %6158 = vmatprep.subr.bf16.mxu0 %v5929_v52  ;;  %v6080_v24 = vsel %vm997_vm6, %v5926_v41, %v5986_v51  ;;  %v5833_v31 = vpack.c.bf16 %v5785_v38, %v5781_v44  ;;  %v5832_v14 = vpack.c.bf16 %v14784_v34, %v14783_v53  ;;  %v5989_v2 = vrot.slane %v5829_v6, 4  ;;  %v14787_v41 = vld [vmem:[#allocation11_spill] sm:$0xff] }
 0x54f   :  { %v6088_v21 = vsel %vm997_vm6, %v5930_v46, %v5988_v5  ;;  %v5789_v0 = vsub.f32 %v14785_v37, %v5733_v9  ;;  %v5793_v18 = vsub.f32 %v14786_v60, %v5737_v17  ;;  %v5835_v16 = vpack.c.bf16 %v5791_v58, %v5787_v7  ;;  %v14791_v9 = vld [vmem:[#allocation104_spill] sm:$0xff]  ;;  %v14792_v7 = vld [vmem:[#allocation14_spill] sm:$0xff]  ;;  %v14793_v58 = vld [vmem:[#allocation65_spill] sm:$0xff] }
 0x550   :  { %6239 = vmatpush1.bf16.msra.mxu1 %v5923_v10  ;;  %v5795_v32 = vsub.f32 %v14787_v41, %v5739_v20  ;;  %v5799_v29 = vsub.f32 %v14788_v48, %v5743_v8  ;;  %v5741_v35 = vunpack.c.l.bf16 %v12706_v39  ;;  %v6092_v46 = vsel %vm997_vm6, %v5932_v40, %v5989_v2  ;;  %v14796_v34 = vld [vmem:[#allocation51_spill] sm:$0xff]  ;;  %v14799_v41 = vld [vmem:[#allocation58_spill] sm:$0xff] }
 0x551   :  { %6240 = vmatprep.subr.bf16.mxu1 %v5933_v25  ;;  %6159 = vmatpush1.bf16.msra.mxu0 %v5927_v15  ;;  %v5993_v52 = vsel %vm997_vm6, %v5987_v50, %v5992_v23  ;;  %v5990_v10 = vrot.slane %v5830_v13, 4  ;;  %v5745_v26 = vunpack.c.h.bf16 %v12706_v39  ;;  %v5996_v19 = vrot.slane %v5833_v31, 4  ;;  %v14789_v25 = vld [vmem:[#allocation35_spill] sm:$0xff]  ;;  %v14795_v13 = vld [vmem:[#allocation25_spill] sm:$0xff] }
 0x552   :  { %6160 = vmatprep.subr.bf16.mxu0 %v6084_v61  ;;  %v13017_v44 = vrot.slane %v5832_v14, 4  ;;  %v5834_v15 = vpack.c.bf16 %v12843_v57, %v14789_v25  ;;  %v13023_v38 = vrot.slane %v13009_v12, %v14790_v45  ;;  %v5837_v6 = vpack.c.bf16 %v5793_v18, %v5789_v0  ;;  %v14800_v48 = vld [vmem:[#allocation91_spill] sm:$0xff] }
 0x553   :  { %v5836_v40 = vpack.c.bf16 %v14791_v9, %v12845_v47  ;;  %v5747_v17 = vunpack.c.l.bf16 %v12729_v11  ;;  %v5751_v50 = vunpack.c.h.bf16 %v12729_v11  ;;  %v6000_v39 = vrot.slane %v5835_v16, 4 }
 0x554   :  { %6241 = vmatpush1.bf16.msra.mxu1 %v5931_v3  ;;  %v5839_v27 = vpack.c.bf16 %v5799_v29, %v5795_v32  ;;  %v5797_v28 = vsub.f32 %v14792_v7, %v5741_v35  ;;  %v6116_v57 = vcombine.high %v13023_v38, %v13023_v38  ;;  %v5801_v3 = vsub.f32 %v14793_v58, %v5745_v26  ;;  %v14801_v35 = vld [vmem:[#allocation48_spill] sm:$0xff] }
 0x555   :  { %6242 = vmatprep.subr.bf16.mxu1 %v6092_v46  ;;  %6161 = vmatpush1.bf16.msra.mxu0 %v6080_v24  ;;  %v5803_v63 = vsub.f32 %v14794_v22, %v5747_v17  ;;  %v5807_v47 = vsub.f32 %v14795_v13, %v5751_v50  ;;  %v5749_v20 = vunpack.c.l.bf16 %v12774_v55  ;;  %v5997_v11 = vsel %vm997_vm6, %v5989_v2, %v5996_v19  ;;  %v14802_v17 = vld [vmem:[#allocation94_spill] sm:$0xff]  ;;  %v14806_v13 = vld [vmem:[#allocation107_spill] sm:$0xff] }
 0x556   :  { %6162 = vmatprep.subr.bf16.mxu0 %v5993_v52  ;;  %v5991_v8 = vsel %vm997_vm6, %v5986_v51, %v5990_v10  ;;  %v5995_v61 = vsel %vm997_vm6, %v5988_v5, %v13017_v44  ;;  %6166 = vmatprep.mubr.bf16.mxu0 %v6116_v57  ;;  %v5753_v24 = vunpack.c.h.bf16 %v12774_v55  ;;  %v6004_v31 = vrot.slane %v5837_v6, 4  ;;  %v14797_v51 = vld [vmem:[#allocation30_spill] sm:$0xff] }
 0x557   :  { %6248 = vmatprep.mubr.bf16.mxu1 %v6116_v57  ;;  %v5998_v53 = vrot.slane %v5834_v15, 4  ;;  %v5805_v14 = vsub.f32 %v14796_v34, %v5749_v20  ;;  %v5755_v37 = vunpack.c.l.bf16 %v12794_v36  ;;  %v6001_v2 = vsel %vm997_vm6, %v5992_v23, %v6000_v39  ;;  %v14808_v20 = vld [vmem:[#allocation101_spill] sm:$0xff]  ;;  %v14813_v34 = vld [vmem:[#allocation99_spill] sm:$0xff] }
 0x558   :  { %6243 = vmatpush1.bf16.msra.mxu1 %v6088_v21  ;;  %v5843_v0 = vpack.c.bf16 %v5807_v47, %v5803_v63  ;;  %v5809_v60 = vsub.f32 %v14797_v51, %v5753_v24  ;;  %v5759_v5 = vunpack.c.h.bf16 %v12794_v36  ;;  %v6008_v18 = vrot.slane %v5839_v27, 4  ;;  %v14798_v21 = vld [vmem:[#allocation15_spill] sm:$0xff]  ;;  %v14807_v47 = vld [vmem:[#allocation100_spill] sm:$0xff] }
 0x559   :  { %6244 = vmatprep.subr.bf16.mxu1 %v5997_v11  ;;  %6163 = vmatpush1.bf16.msra.mxu0 %v5991_v8  ;;  %v6002_v16 = vrot.slane %v5836_v40, 4  ;;  %v5841_v55 = vpack.c.bf16 %v5801_v3, %v5797_v28  ;;  %v5838_v32 = vpack.c.bf16 %v14799_v41, %v14798_v21  ;;  %v5811_v29 = vsub.f32 %v14800_v48, %v5755_v37 }
 0x55a   :  { %6164 = vmatprep.subr.bf16.mxu0 %v6001_v2  ;;  %v5815_v46 = vsub.f32 %v14801_v35, %v5759_v5  ;;  %v5757_v52 = vunpack.c.l.bf16 %v12832_v30  ;;  %v5761_v23 = vunpack.c.h.bf16 %v12832_v30  ;;  %v6005_v26 = vsel %vm997_vm6, %v5996_v19, %v6004_v31  ;;  %v14803_v19 = vld [vmem:[#allocation106_spill] sm:$0xff] }
 0x55b   :  { %v5999_v36 = vsel %vm997_vm6, %v5990_v10, %v5998_v53  ;;  %v5845_v25 = vpack.c.bf16 %v5809_v60, %v5805_v14  ;;  %v5842_v15 = vpack.c.bf16 %v12904_v59, %v12902_v4  ;;  %v5760_v6 = vunpack.c.h.bf16 %v12871_v56  ;;  %v14804_v10 = vld [vmem:[#allocation93_spill] sm:$0xff]  ;;  %v14805_v4 = vld [vmem:[#allocation86_spill] sm:$0xff] }
 0x55c   :  { %6245 = vmatpush1.bf16.msra.mxu1 %v5995_v61  ;;  %v6009_v9 = vsel %vm997_vm6, %v6000_v39, %v6008_v18  ;;  %v6016_v40 = vrot.slane %v5843_v0, 4  ;;  %v5840_v50 = vpack.c.bf16 %v12892_v1, %v14802_v17  ;;  %v6012_v30 = vrot.slane %v5841_v55, 4  ;;  %v14814_v5 = vld [vmem:[#allocation50_spill] sm:$0xff] }
 0x55d   :  { %6246 = vmatprep.subr.bf16.mxu1 %v6005_v26  ;;  %6165 = vmatpush1.bf16.msra.mxu0 %v5999_v36  ;;  %v6006_v27 = vrot.slane %v5838_v32, 4  ;;  %v5813_v7 = vsub.f32 %v14803_v19, %v5757_v52  ;;  %v5817_v28 = vsub.f32 %v14804_v10, %v5761_v23  ;;  %v5812_v59 = vsub.f32 %v14805_v4, %v5756_v43  ;;  %v14816_v35 = vld [vmem:[#allocation98_spill] sm:$0xff] }
 0x55e   :  { %6175 = vmatprep.subr.bf16.mxu0 %v6009_v9  ;;  %v6003_v57 = vsel %vm997_vm6, %v13017_v44, %v6002_v16  ;;  %v5847_v58 = vpack.c.bf16 %v5815_v46, %v5811_v29  ;;  %v5844_v39 = vpack.c.bf16 %v12909_v42, %v12906_v62  ;;  %v6013_v1 = vsel %vm997_vm6, %v6004_v31, %v6012_v30  ;;  %v14810_v42 = vld [vmem:[#allocation49_spill] sm:$0xff]  ;;  %v14817_v46 = vld [vmem:[#allocation95_spill] sm:$0xff] }
 0x55f   :  { %v6007_v3 = vsel %vm997_vm6, %v5998_v53, %v6006_v27  ;;  %v6020_v22 = vrot.slane %v5845_v25, 4  ;;  %v6014_v63 = vrot.slane %v5842_v15, 4  ;;  %v5816_v56 = vsub.f32 %v14806_v13, %v5760_v6 }
 0x560   :  { %6247 = vmatpush1.bf16.msra.mxu1 %v6003_v57  ;;  %6167 = vmatmul.mubr.bf16.vlgmr.msra.gmra.mrb[12].mxu0 %v13023_v38  ;;  %v6017_v43 = vsel %vm997_vm6, %v6008_v18, %v6016_v40  ;;  %v6010_v44 = vrot.slane %v5840_v50, 4  ;;  %v5851_v11 = vpack.c.bf16 %v14808_v20, %v14807_v47  ;;  %v14809_v62 = vunpack.c.l.bf16 %v12437_v33  ;;  %v14815_v18 = vld [vmem:[#allocation54_spill] sm:$0xff] }
 0x561   :  { %6257 = vmatprep.subr.bf16.mxu1 %v6013_v1  ;;  %6176 = vmatpush1.bf16.msra.mxu0 %v6007_v3  ;;  %v5849_v61 = vpack.c.bf16 %v5817_v28, %v5813_v7  ;;  %v5846_v24 = vpack.c.bf16 %v12918_v49, %v12911_v54  ;;  %v14811_v31 = vmov 0   ;;  %v14812_v53 = vunpack.c.h.bf16 %v12437_v33 }
 0x562   :  { %v5820_v8 = vsub.f32 %v14810_v42, %v14809_v62  ;;  %6177 = vmatprep.subr.bf16.mxu0 %v6017_v43  ;;  %6207 = vmatprep.mubr.bf16.mxu0 %v14811_v31  ;;  %v6011_v37 = vsel %vm997_vm6, %v6002_v16, %v6010_v44  ;;  %v6024_v2 = vrot.slane %v5847_v58, 4  ;;  %v6018_v0 = vrot.slane %v5844_v39, 4 }
 0x563   :  { %v5824_v14 = vsub.f32 %v14813_v34, %v14812_v53  ;;  %6249 = vmatmul.mubr.bf16.vlgmr.msra.gmra.mrb[12].mxu1 %v13023_v38  ;;  %v6021_v51 = vsel %vm997_vm6, %v6012_v30, %v6020_v22  ;;  %v6015_v60 = vsel %vm997_vm6, %v6006_v27, %v6014_v63  ;;  %v5853_v54 = vpack.c.bf16 %v14815_v18, %v14814_v5  ;;  %v4455_v27 = vpop.permute.xlu1 %4454 }
 0x564   :  { %6258 = vmatpush1.bf16.msra.mxu1 %v6011_v37  ;;  %6289 = vmatprep.mubr.bf16.mxu1 %v14811_v31  ;;  %v6025_v33 = vsel %vm997_vm6, %v6016_v40, %v6024_v2  ;;  %v6032_v49 = vrot.slane %v5851_v11, 4  ;;  %v5848_v38 = vpack.c.bf16 %v5816_v56, %v5812_v59  ;;  %v6028_v16 = vrot.slane %v5849_v61, 4  ;;  %v6098_v37 = vpop.permute.xlu0 %6097 }
 0x565   :  { %6259 = vmatprep.subr.bf16.mxu1 %v6021_v51  ;;  %6178 = vmatpush1.bf16.msra.mxu0 %v6015_v60  ;;  %v6022_v55 = vrot.slane %v5846_v24, 4  ;;  %v5852_v21 = vpack.c.bf16 %v5824_v14, %v5820_v8  ;;  %v6019_v41 = vsel %vm997_vm6, %v6010_v44, %v6018_v0  ;;  %v6036_v29 = vrot.slane %v5853_v54, 4 }
 0x566   :  { %6179 = vmatprep.subr.bf16.mxu0 %v6025_v33  ;;  %v6029_v32 = vsel %vm997_vm6, %v6020_v22, %v6028_v16  ;;  %v14818_v52 = vpack.c.bf16 %v14816_v35, %v14817_v46  ;;  %v6033_v26 = vsel %vm997_vm6, %v6024_v2, %v6032_v49  ;;  %v6026_v36 = vrot.slane %v5848_v38, 4 }
 0x567   :  { %v6023_v48 = vsel %vm997_vm6, %v6014_v63, %v6022_v55  ;;  %v6034_v15 = vrot.slane %v5852_v21, 4  ;;  %v6101_v6 = vcombine.high %v13009_v12, %v13009_v12  ;;  %v6037_v9 = vsel %vm997_vm6, %v6028_v16, %v6036_v29 }
 0x568   :  { %6260 = vmatpush1.bf16.msra.mxu1 %v6019_v41  ;;  %v6030_v23 = vrot.slane %v14818_v52, 4  ;;  %v6027_v25 = vsel %vm997_vm6, %v6018_v0, %v6026_v36 }
 0x569   :  { %6261 = vmatprep.subr.bf16.mxu1 %v6029_v32  ;;  %6180 = vmatpush1.bf16.msra.mxu0 %v6023_v48  ;;  %v6035_v17 = vsel %vm997_vm6, %v6026_v36, %v6034_v15  ;;  %v6115_v30 = vrot.slane %v6101_v6, %v14790_v45  ;;  %v6129_v12 = vsel %vm992_vm4, %v6034_v15, 0 }
 0x56a   :  { %6181 = vmatprep.subr.bf16.mxu0 %v6033_v26  ;;  %v6031_v40 = vsel %vm997_vm6, %v6022_v55, %v6030_v23  ;;  %v6123_v50 = vsel %vm992_vm4, %v6030_v23, 0 }
 0x56c   :  { %6262 = vmatpush1.bf16.msra.mxu1 %v6027_v25 }
 0x56d   :  { %6263 = vmatprep.subr.bf16.mxu1 %v6037_v9  ;;  %6182 = vmatpush1.bf16.msra.mxu0 %v6031_v40 }
 0x56e   :  { %6507 = vmatprep.subr.msk.bf16.mxu0 %vm992_vm4, %v6032_v49 }
 0x570   :  { %6264 = vmatpush1.bf16.msra.mxu1 %v6035_v17 }
 0x571   :  { %6509 = vmatprep.subr.msk.bf16.mxu1 %vm992_vm4, %v6036_v29  ;;  %6184 = vmatpush1.bf16.msra.mxu0 %v6123_v50 }
 0x574   :  { %6266 = vmatpush1.bf16.msra.mxu1 %v6129_v12  ;;  %6508 = vmatmul.mubr.msk.bf16.vlgmr.msra.gmra.mrb[12].mxu0 %vm4476_vm14, %v6115_v30 }
 0x577   :  { %6510 = vmatmul.mubr.msk.bf16.vlgmr.msra.gmra.mrb[12].mxu1 %vm4476_vm14, %v6115_v30 }
 0x5e3   :  { %v4567_v19 = vpop.f32.mrb[8].mxu0 }
 0x5e4   :  { %v6511_v7 = vadd.f32 %v4567_v19, %v4455_v27  ;;  %v4569_v10 = vpop.f32.mrb[9].mxu0 }
 0x5e5   :  { %v6512_v28 = vadd.f32 %v4569_v10, %v4455_v27  ;;  %v4571_v4 = vpop.f32.mrb[10].mxu0  ;;  %v4649_v57 = vpop.f32.mrb[8].mxu1 }
 0x5e6   :  { %4656 = vst [vmem:[%s13193_s10] sm:$0xf] %v6511_v7  ;;  %v4660_v45 = vsel %vm997_vm6, %v6511_v7, 0.0  ;;  %v4670_v59 = vmul.f32 %v6511_v7, %v6511_v7  ;;  %v4572_v58 = vpop.f32.mrb[11].mxu0  ;;  %v6513_v3 = vadd.f32 %v4649_v57, %v4455_v27  ;;  %v4651_v22 = vpop.f32.mrb[9].mxu1 }
 0x5e7   :  { %4657 = vst [vmem:[%s13193_s10 + $0x8] sm:$0xf] %v6512_v28  ;;  %v4661_v39 = vsel %vm997_vm6, %v6512_v28, 0.0  ;;  %v4671_v1 = vmul.f32 %v6512_v28, %v6512_v28  ;;  %v6514_v56 = vadd.f32 %v4651_v22, %v4455_v27  ;;  %v4653_v43 = vpop.f32.mrb[10].mxu1  ;;  %v6342_v22 = vld [vmem:[%s13194_s8] sm:$0xf] }
 0x5e8   :  { %v4674_v63 = vsel %vm997_vm6, %v4670_v59, 0.0  ;;  %v4662_v13 = vadd.f32 %v4661_v39, %v4660_v45  ;;  %4658 = vst [vmem:[%s13193_s10 + $0x10] sm:$0xf] %v6513_v3  ;;  %v4663_v47 = vsel %vm997_vm6, %v6513_v3, 0.0  ;;  %v4672_v20 = vmul.f32 %v6513_v3, %v6513_v3  ;;  %v4654_v11 = vpop.f32.mrb[11].mxu1 }
 0x5e9   :  { %v4675_v44 = vsel %vm997_vm6, %v4671_v1, 0.0  ;;  %4659 = vst [vmem:[%s13193_s10 + $0x18] sm:$0xf] %v6514_v56  ;;  %v4673_v62 = vmul.f32 %v6514_v56, %v6514_v56  ;;  %v4665_v61 = vsel %vm997_vm6, %v6514_v56, 0.0  ;;  %v6346_v56 = vld [vmem:[%s13195_s9] sm:$0xf] }
 0x5ea   :  { %v4664_v42 = vadd.f32 %v4663_v47, %v4662_v13  ;;  %v4676_v8 = vadd.f32 %v4675_v44, %v4674_v63  ;;  %v4677_v24 = vsel %vm997_vm6, %v4672_v20, 0.0 }
 0x5eb   :  { %v4679_v34 = vsel %vm997_vm6, %v4673_v62, 0.0 }
 0x5ec   :  { %v4666_v31 = vadd.f32 %v4665_v61, %v4664_v42  ;;  %v4678_v53 = vadd.f32 %v4677_v24, %v4676_v8 }
 0x5ee   :  { %4667 = vadd.xlane.f32.xlu1 %v4666_v31  ;;  %v4680_v14 = vadd.f32 %v4679_v34, %v4678_v53 }
 0x647   :  { %v6209_v2 = vpop.f32.mrb[12].mxu0 }
 0x648   :  { %v6515_v0 = vadd.f32 %v6209_v2, %v6098_v37  ;;  %v6211_v51 = vpop.f32.mrb[13].mxu0 }
 0x649   :  { %v6516_v60 = vadd.f32 %v6211_v51, %v6098_v37  ;;  %v6213_v5 = vpop.f32.mrb[14].mxu0 }
 0x64a   :  { %v6302_v18 = vrot.slane %v6515_v0, 4  ;;  %v6314_v54 = vsel %vm997_vm6, %v6515_v0, 0.0  ;;  %v6324_v33 = vmul.f32 %v6515_v0, %v6515_v0  ;;  %v6291_v49 = vpop.f32.mrb[12].mxu1  ;;  %v6214_v38 = vpop.f32.mrb[15].mxu0 }
 0x64b   :  { %v6303_v16 = vrot.slane %v6516_v60, 4  ;;  %v6315_v55 = vsel %vm997_vm6, %v6516_v60, 0.0  ;;  %v6325_v21 = vmul.f32 %v6516_v60, %v6516_v60  ;;  %v6517_v41 = vadd.f32 %v6291_v49, %v6098_v37  ;;  %v6293_v32 = vpop.f32.mrb[13].mxu1 }
 0x64c   :  { %6310 = vst [vmem:[%s13193_s10] sm:$0xf0] %v6302_v18  ;;  %v6328_v48 = vsel %vm997_vm6, %v6324_v33, 0.0  ;;  %v6316_v29 = vadd.f32 %v6315_v55, %v6314_v54  ;;  %v6518_v35 = vadd.f32 %v6293_v32, %v6098_v37  ;;  %v6295_v46 = vpop.f32.mrb[14].mxu1 }
 0x64d   :  { %6311 = vst [vmem:[%s13193_s10 + $0x8] sm:$0xf0] %v6303_v16  ;;  %v6329_v52 = vsel %vm997_vm6, %v6325_v21, 0.0  ;;  %v6304_v23 = vrot.slane %v6517_v41, 4  ;;  %v6317_v26 = vsel %vm997_vm6, %v6517_v41, 0.0  ;;  %v6326_v36 = vmul.f32 %v6517_v41, %v6517_v41  ;;  %v6296_v25 = vpop.f32.mrb[15].mxu1 }
 0x64e   :  { %v6305_v15 = vrot.slane %v6518_v35, 4  ;;  %v6327_v6 = vmul.f32 %v6518_v35, %v6518_v35  ;;  %v6318_v9 = vadd.f32 %v6317_v26, %v6316_v29  ;;  %v6319_v40 = vsel %vm997_vm6, %v6518_v35, 0.0 }
 0x64f   :  { %6312 = vst [vmem:[%s13193_s10 + $0x10] sm:$0xf0] %v6304_v23  ;;  %v6330_v17 = vadd.f32 %v6329_v52, %v6328_v48  ;;  %v6331_v30 = vsel %vm997_vm6, %v6326_v36, 0.0 }
 0x650   :  { %6313 = vst [vmem:[%s13193_s10 + $0x18] sm:$0xf0] %v6305_v15  ;;  %v6320_v50 = vadd.f32 %v6319_v40, %v6318_v9  ;;  %v6333_v27 = vsel %vm997_vm6, %v6327_v6, 0.0 }
 0x651   :  { %v6332_v12 = vadd.f32 %v6331_v30, %v6330_v17 }
 0x652   :  { %6321 = vadd.xlane.f32.xlu0 %v6320_v50 }
 0x653   :  { %v6334_v19 = vadd.f32 %v6333_v27, %v6332_v12  ;;  %v6357_v8 = vld [vmem:[%s13193_s10] sm:$0xff] }
 0x654   :  { %v6358_v61 = vld [vmem:[%s13193_s10 + $0x8] sm:$0xff] }
 0x655   :  { %6335 = vadd.xlane.f32.xlu1 %v6334_v19 }
 0x656   :  { %4681 = vadd.xlane.f32.xlu0 %v4680_v14  ;;  %v6359_v31 = vld [vmem:[%s13193_s10 + $0x10] sm:$0xff] }
 0x657   :  { %v6360_v24 = vld [vmem:[%s13193_s10 + $0x18] sm:$0xff] }
 0x67b   :  { %v4668_v7 = vpop.xlane.xlu1 %4667 }
 0x6df   :  { %v6322_v10 = vpop.xlane.xlu0 %6321 }
 0x6e0   :  { %v6323_v28 = vadd.f32 %v6322_v10, %v4668_v7 }
 0x6e2   :  { %v6338_v4 = vmul.f32 0.0009765625, %v6323_v28  ;;  %v6336_v45 = vpop.xlane.xlu1 %6335 }
 0x6e3   :  { %v4682_v59 = vpop.xlane.xlu0 %4681 }
 0x6e4   :  { %v6337_v57 = vadd.f32 %v6336_v45, %v4682_v59  ;;  %v6340_v58 = vmul.f32 %v6338_v4, %v6338_v4 }
 0x6e6   :  { %v6339_v39 = vmul.f32 0.0009765625, %v6337_v57 }
 0x6e8   :  { %v6341_v1 = vsub.f32 %v6339_v39, %v6340_v58 }
 0x6ea   :  { %v6343_v3 = vadd.f32 1e-05, %v6341_v1 }
 0x6ec   :  { %6555 = vrsqrt.f32 %v6343_v3 }
 0x6f6   :  { %v6556_v63 = vpop.eup %6555 }
 0x6f7   :  { %v6345_v13 = vmul.f32 %v6556_v63, %v6342_v22 }
 0x6f9   :  { %v6350_v43 = vrot.slane %v6345_v13, 4  ;;  %v6347_v44 = vmul.f32 %v6345_v13, %v6338_v4 }
 0x6fb   :  { %v6352_v47 = vsel %vm997_vm6, %v6345_v13, %v6350_v43  ;;  %v6348_v20 = vsub.f32 %v6346_v56, %v6347_v44 }
 0x6fc   :  { %6363 = vperm.xlu0 %6545, %v6352_v47  }
 0x6fd   :  { %v6354_v11 = vrot.slane %v6348_v20, 4 }
 0x6ff   :  { %v6356_v62 = vsel %vm997_vm6, %v6348_v20, %v6354_v11 }
 0x700   :  { %6372 = vperm.xlu1 %6546, %v6356_v62  }
 0x77b   :  { %v6364_v42 = vpop.permute.xlu0 %6363 }
 0x77c   :  { %v6366_v53 = vmul.f32 %v6364_v42, %v6357_v8  ;;  %v6367_v34 = vmul.f32 %v6364_v42, %v6358_v61  ;;  %v6368_v14 = vmul.f32 %v6364_v42, %v6359_v31  ;;  %v6369_v37 = vmul.f32 %v6364_v42, %v6360_v24 }
 0x77f   :  { %v6373_v2 = vpop.permute.xlu1 %6372 }
 0x780   :  { %v6375_v0 = vadd.f32 %v6373_v2, %v6366_v53  ;;  %v6376_v51 = vadd.f32 %v6373_v2, %v6367_v34  ;;  %v6377_v60 = vadd.f32 %v6373_v2, %v6368_v14  ;;  %v6378_v5 = vadd.f32 %v6373_v2, %v6369_v37 }
 0x782   :  { %v6379_v18 = vmax.f32 %v6375_v0, 0.0  ;;  %v6380_v54 = vmax.f32 %v6376_v51, 0.0  ;;  %v6381_v33 = vmax.f32 %v6377_v60, 0.0  ;;  %v6382_v49 = vmax.f32 %v6378_v5, 0.0 }
 0x784   :  { %6383 = vst [vmem:[%s13193_s10] sm:$0xff] %v6379_v18  ;;  %6384 = vst [vmem:[%s13193_s10 + $0x8] sm:$0xff] %v6380_v54 }
 0x785   :  { %6385 = vst [vmem:[%s13193_s10 + $0x10] sm:$0xff] %v6381_v33  ;;  %6386 = vst [vmem:[%s13193_s10 + $0x18] sm:$0xff] %v6382_v49 }

</bundles_post_ra>
